<compile_context>
chip_gen: v5e
topology: v5e:2x2
jax: 0.10.0
libtpu: 0.0.40
codegen_flags: <defaults>
</compile_context>

<pallas_src>
import math
import functools

import numpy as np
import jax
import jax.numpy as jnp
from jax.experimental import pallas as pl
from jax.experimental.pallas import tpu as pltpu

EPS = 1e-6
NEG_INF = -1e9


def _sublayer_connection_kernel(
    x_ref,        # (B*S, D)     f32   input rows (batch*seq flattened in the wrapper)
    mask_ref,     # (H, S, S)    f32   attention mask (0 => masked)
    a2_ref,       # (1, D)       f32   LayerNorm gain
    b2_ref,       # (1, D)       f32   LayerNorm bias
    wqkv_ref,     # (3H, D, d_k) bf16  head-major fused {Q,K,V} weights (Q pre-scaled)
    bqkv_ref,     # (3H, 1, d_k) f32   fused biases (Q bias pre-scaled)
    wo_ref,       # (H, d_k, D)  bf16  head-major output projection
    bo_ref,       # (1, D)       f32
    o_ref,        # (B*S, D)     f32
    *, batch, seq, num_heads,
):
    B, S, H = batch, seq, num_heads
    x = x_ref[...].astype(jnp.float32)                      # (N, D)
    N, D = x.shape

    # ---- LayerNorm (torch.std is unbiased: ddof = 1); denominator is (std + eps) ----
    mean = jnp.mean(x, axis=-1, keepdims=True)
    cen = x - mean
    var = jnp.sum(cen * cen, axis=-1, keepdims=True) * (1.0 / (D - 1))
    inv_std = pl.reciprocal(jnp.sqrt(var) + EPS, approx=False)
    xn = a2_ref[...] * (cen * inv_std) + b2_ref[...]         # (N, D) f32

    # ---- fused head-major QKV projection: one batched bf16 MXU matmul ---------------
    # The head split happens inside the matmul (3H small matmuls), so no 64-lane
    # unaligned slicing / stacking of the projected activations is needed afterwards.
    xn16 = jnp.broadcast_to(xn.astype(jnp.bfloat16), (3 * H, N, D))
    qkv = jnp.einsum("tnd,tdk->tnk", xn16, wqkv_ref[...],
                     preferred_element_type=jnp.float32) + bqkv_ref[...]   # (3H, N, d_k)
    q, k, v = qkv[0:H], qkv[H:2 * H], qkv[2 * H:3 * H]       # free leading-dim slices

    # masked_fill semantics (not additive): with a fully-masked row (spec's mask=zeros)
    # the softmax must degenerate to uniform, which an additive -1e9 would not reproduce.
    mask = mask_ref[...]                                     # (H, S, S)

    for b in range(B):                                       # static unroll, B is tiny
        rows = slice(b * S, (b + 1) * S)
        qb, kb, vb = q[:, rows, :], k[:, rows, :], v[:, rows, :]       # (H, S, d_k)

        s = jnp.einsum("hqd,hkd->hqk", qb, kb, preferred_element_type=jnp.float32)
        s = jnp.where(mask == 0, NEG_INF, s)
        s = s - jnp.max(s, axis=-1, keepdims=True)
        p = jnp.exp(s)
        p = p * pl.reciprocal(jnp.sum(p, axis=-1, keepdims=True), approx=False)
        ctx = jnp.einsum("hqk,hkd->hqd", p, vb, preferred_element_type=jnp.float32)

        # head-major Wo: head merge folded into the batched matmul + sum (no concat).
        proj = jnp.einsum("hsk,hkd->hsd", ctx.astype(jnp.bfloat16), wo_ref[...],
                          preferred_element_type=jnp.float32)
        proj = jnp.sum(proj, axis=0) + bo_ref[...]           # (S, D)

        # residual (dropout == identity in eval mode)
        o_ref[rows, :] = (x[rows, :] + proj).astype(o_ref.dtype)


def prepare_params(params, num_heads):
    """One-time host-side parameter transform (constant fold, not a per-call op):
       - fold the 1/sqrt(d_k) attention scale into Wq / bq,
       - store Wq/Wk/Wv head-major and fused as (3H, D, d_k), cast to bf16,
       - reshape Wo to head-major (H, d_k, D), cast to bf16.
       Biases and LayerNorm params stay f32 (negligible bytes)."""
    D = params["wq"].shape[0]
    H = num_heads
    d_k = D // H
    scale = 1.0 / math.sqrt(d_k)

    def w_heads(w):                      # (D, D) -> (H, D, d_k), head-major
        return w.reshape(D, H, d_k).transpose(1, 0, 2)

    def b_heads(b):                      # (1, D) -> (H, 1, d_k)
        return b.reshape(H, 1, d_k)

    wqkv_h = jnp.concatenate(
        [w_heads(params["wq"] * scale), w_heads(params["wk"]), w_heads(params["wv"])],
        axis=0).astype(jnp.bfloat16)                          # (3H, D, d_k) bf16
    bqkv_h = jnp.concatenate(
        [b_heads(params["bq"] * scale), b_heads(params["bk"]), b_heads(params["bv"])],
        axis=0)                                               # (3H, 1, d_k) f32
    wo_h = params["wo"].reshape(H, d_k, D).astype(jnp.bfloat16)
    return {"a2": params["a2"], "b2": params["b2"],
            "wqkv_h": wqkv_h, "bqkv_h": bqkv_h, "wo_h": wo_h, "bo": params["bo"]}


def sublayer_connection(x, mask, prepared, *, num_heads):
    """x: (B, S, D) f32; mask: (H, S, S) f32; prepared: output of prepare_params()."""
    B, S, D = x.shape
    H = num_heads
    d_k = D // H
    N = B * S
    x2d = x.reshape(N, D)    # contiguous reshape -> free in XLA, dense (8,512) kernel slab

    def const(shape):
        nd = len(shape)
        return pl.BlockSpec(shape, lambda i, _nd=nd: (0,) * _nd)

    flops = int(2 * N * D * 3 * D + B * 4 * H * S * S * d_k + 2 * N * D * D)
    transcendentals = int(B * H * S * S)
    bytes_accessed = int(
        2 * x.size * x.dtype.itemsize + mask.size * mask.dtype.itemsize
        + sum(int(p.size) * p.dtype.itemsize for p in prepared.values()))

    kernel = functools.partial(_sublayer_connection_kernel,
                               batch=B, seq=S, num_heads=H)
    out = pl.pallas_call(
        kernel,
        out_shape=jax.ShapeDtypeStruct((N, D), x.dtype),
        grid=(1,),                                  # single step: whole problem fits VMEM
        in_specs=[
            const((N, D)),                          # x (flattened)
            const((H, S, S)),                       # mask
            const((1, D)),                          # a2
            const((1, D)),                          # b2
            const((3 * H, D, d_k)),                 # fused head-major Wqkv (bf16)
            const((3 * H, 1, d_k)),                 # fused biases (f32)
            const((H, d_k, D)),                     # head-major Wo (bf16)
            const((1, D)),                          # bo
        ],
        out_specs=const((N, D)),
        compiler_params=pltpu.CompilerParams(dimension_semantics=("arbitrary",)),
        cost_estimate=pl.CostEstimate(flops=flops, transcendentals=transcendentals,
                                      bytes_accessed=bytes_accessed),
    )(x2d, mask, prepared["a2"], prepared["b2"],
      prepared["wqkv_h"], prepared["bqkv_h"], prepared["wo_h"], prepared["bo"])
    return out.reshape(B, S, D)


def _reference_f32(x, mask, params, num_heads):
    """Pure-JAX f32 reference mirroring the PyTorch module math exactly."""
    B, S, D = x.shape
    H = num_heads
    d_k = D // H
    mean = jnp.mean(x, axis=-1, keepdims=True)
    var = jnp.sum((x - mean) ** 2, axis=-1, keepdims=True) / (D - 1)
    xn = params["a2"][0] * (x - mean) / (jnp.sqrt(var) + EPS) + params["b2"][0]

    def proj(w, b):
        return (xn @ w + b[0]).reshape(B, S, H, d_k).transpose(0, 2, 1, 3)

    q = proj(params["wq"], params["bq"])
    k = proj(params["wk"], params["bk"])
    v = proj(params["wv"], params["bv"])
    s = jnp.einsum("bhqd,bhkd->bhqk", q, k) / math.sqrt(d_k)
    s = jnp.where(mask[None] == 0, NEG_INF, s)
    p = jax.nn.softmax(s, axis=-1)
    attn = jnp.einsum("bhqk,bhkd->bhqd", p, v).transpose(0, 2, 1, 3).reshape(B, S, D)
    return x + attn @ params["wo"] + params["bo"][0]


def _reference_bf16_matched(x, mask, params, num_heads):
    """Reference that rounds weights/activations to bf16 at the same points as the
       kernel, so the comparison isolates kernel correctness from quantization."""
    B, S, D = x.shape
    H = num_heads
    d_k = D // H
    scale = 1.0 / math.sqrt(d_k)
    mean = jnp.mean(x, axis=-1, keepdims=True)
    var = jnp.sum((x - mean) ** 2, axis=-1, keepdims=True) / (D - 1)
    xn = params["a2"][0] * (x - mean) / (jnp.sqrt(var) + EPS) + params["b2"][0]
    xn16 = xn.astype(jnp.bfloat16)

    def proj(w, b, s=1.0):
        w16 = (w * s).astype(jnp.bfloat16)
        y = jnp.einsum("bsd,dk->bsk", xn16, w16,
                       preferred_element_type=jnp.float32) + b[0] * s
        return y.reshape(B, S, H, d_k).transpose(0, 2, 1, 3)

    q = proj(params["wq"], params["bq"], scale)
    k = proj(params["wk"], params["bk"])
    v = proj(params["wv"], params["bv"])
    s = jnp.einsum("bhqd,bhkd->bhqk", q, k, preferred_element_type=jnp.float32)
    s = jnp.where(mask[None] == 0, NEG_INF, s)
    p = jax.nn.softmax(s, axis=-1)
    ctx = jnp.einsum("bhqk,bhkd->bhqd", p, v, preferred_element_type=jnp.float32)
    wo16 = params["wo"].reshape(H, d_k, D).astype(jnp.bfloat16)
    proj_o = jnp.einsum("bhsk,hkd->bsd", ctx.astype(jnp.bfloat16), wo16,
                        preferred_element_type=jnp.float32) + params["bo"][0]
    return x + proj_o


if __name__ == "__main__":
    # Matches the reference script: d_model = 512, head = 8, mask = torch.zeros(8, 4, 4); batch = 2.
    B, S, D, H = 2, 4, 512, 8
    key = jax.random.PRNGKey(0)
    ks = jax.random.split(key, 10)

    x = jax.random.normal(ks[0], (B, S, D), dtype=jnp.float32)

    scale = 1.0 / math.sqrt(D)
    params = {
        "a2": jnp.ones((1, D), jnp.float32),          # LayerNorm gain
        "b2": jnp.zeros((1, D), jnp.float32),         # LayerNorm bias
        "wq": scale * jax.random.normal(ks[1], (D, D), jnp.float32),
        "bq": 0.01 * jax.random.normal(ks[2], (1, D), jnp.float32),
        "wk": scale * jax.random.normal(ks[3], (D, D), jnp.float32),
        "bk": 0.01 * jax.random.normal(ks[4], (1, D), jnp.float32),
        "wv": scale * jax.random.normal(ks[5], (D, D), jnp.float32),
        "bv": 0.01 * jax.random.normal(ks[6], (1, D), jnp.float32),
        "wo": scale * jax.random.normal(ks[7], (D, D), jnp.float32),
        "bo": 0.01 * jax.random.normal(ks[8], (1, D), jnp.float32),
    }
    prepared = prepare_params(params, num_heads=H)

    for name, mask in [
        # Case 1: all-zero mask, exactly as in the reference script (every score masked
        #         -> softmax degenerates to uniform; exercises the masked_fill path).
        ("zero", jnp.zeros((H, S, S), dtype=jnp.float32)),
        # Case 2: causal mask -- exercises the non-degenerate softmax path.
        ("causal", jnp.broadcast_to(jnp.tril(jnp.ones((S, S), jnp.float32)), (H, S, S))),
    ]:
        out = jax.block_until_ready(sublayer_connection(x, mask, prepared, num_heads=H))
        # Tight check: same bf16 rounding points as the kernel -> isolates kernel bugs.
        np.testing.assert_allclose(
            np.asarray(out), np.asarray(_reference_bf16_matched(x, mask, params, H)),
            rtol=2e-3, atol=2e-3, err_msg=f"bf16-matched reference mismatch ({name})")
        # Loose check vs the full-f32 PyTorch-faithful math: tolerance covers the
        # bf16 weight-quantization envelope (kernel trades exact f32 weights for
        # halved HBM weight DMA, per review).
        np.testing.assert_allclose(
            np.asarray(out), np.asarray(_reference_f32(x, mask, params, H)),
            rtol=5e-2, atol=1e-1, err_msg=f"f32 reference mismatch ({name})")

    print("KERNEL_OK")
</pallas_src>

<mosaic_0001>
module attributes {stable_mosaic.version = 11 : i64} {
  func.func @_sublayer_connection_kernel(%arg0: i32, %arg1: memref<8x512xf32, #tpu.memory_space<vmem>>, %arg2: memref<8x4x4xf32, #tpu.memory_space<vmem>>, %arg3: memref<1x512xf32, #tpu.memory_space<vmem>>, %arg4: memref<1x512xf32, #tpu.memory_space<vmem>>, %arg5: memref<24x512x64xbf16, #tpu.memory_space<vmem>>, %arg6: memref<24x1x64xf32, #tpu.memory_space<vmem>>, %arg7: memref<8x64x512xbf16, #tpu.memory_space<vmem>>, %arg8: memref<1x512xf32, #tpu.memory_space<vmem>>, %arg9: memref<8x512xf32, #tpu.memory_space<vmem>>) attributes {dimension_semantics = [#tpu.dimension_semantics<arbitrary>], iteration_bounds = array<i64: 1>, scalar_prefetch = 0 : i64, scratch_operands = 0 : i64, tpu.core_type = #tpu.core_type<tc>, window_params = [{pipeline_mode = #tpu.pipeline_mode<synchronous>, transform_indices = @transform_0, window_bounds = array<i64: 8, 512>}, {pipeline_mode = #tpu.pipeline_mode<synchronous>, transform_indices = @transform_1, window_bounds = array<i64: 8, 4, 4>}, {pipeline_mode = #tpu.pipeline_mode<synchronous>, transform_indices = @transform_2, window_bounds = array<i64: 1, 512>}, {pipeline_mode = #tpu.pipeline_mode<synchronous>, transform_indices = @transform_3, window_bounds = array<i64: 1, 512>}, {pipeline_mode = #tpu.pipeline_mode<synchronous>, transform_indices = @transform_4, window_bounds = array<i64: 24, 512, 64>}, {pipeline_mode = #tpu.pipeline_mode<synchronous>, transform_indices = @transform_5, window_bounds = array<i64: 24, 1, 64>}, {pipeline_mode = #tpu.pipeline_mode<synchronous>, transform_indices = @transform_6, window_bounds = array<i64: 8, 64, 512>}, {pipeline_mode = #tpu.pipeline_mode<synchronous>, transform_indices = @transform_7, window_bounds = array<i64: 1, 512>}, {pipeline_mode = #tpu.pipeline_mode<synchronous>, transform_indices = @transform_8, window_bounds = array<i64: 8, 512>}]} {
    %c0 = arith.constant 0 : index
    %c0_0 = arith.constant 0 : index
    %0 = vector.load %arg1[%c0, %c0_0] : memref<8x512xf32, #tpu.memory_space<vmem>>, vector<8x512xf32>
    %cst = arith.constant dense<0.000000e+00> : vector<8xf32>
    %1 = vector.multi_reduction <add>, %0, %cst [1] : vector<8x512xf32> to vector<8xf32>
    %2 = vector.shape_cast %1 : vector<8xf32> to vector<8x1xf32>
    %cst_1 = arith.constant 5.120000e+02 : f32
    %3 = vector.broadcast %cst_1 : f32 to vector<8x1xf32>
    %4 = arith.divf %2, %3 : vector<8x1xf32>
    %5 = vector.broadcast %4 : vector<8x1xf32> to vector<8x512xf32>
    %6 = arith.subf %0, %5 : vector<8x512xf32>
    %7 = arith.mulf %6, %6 : vector<8x512xf32>
    %cst_2 = arith.constant dense<0.000000e+00> : vector<8xf32>
    %8 = vector.multi_reduction <add>, %7, %cst_2 [1] : vector<8x512xf32> to vector<8xf32>
    %9 = vector.shape_cast %8 : vector<8xf32> to vector<8x1xf32>
    %cst_3 = arith.constant 0.00195694715 : f32
    %10 = vector.broadcast %cst_3 : f32 to vector<8x1xf32>
    %11 = arith.mulf %9, %10 : vector<8x1xf32>
    %12 = math.sqrt %11 : vector<8x1xf32>
    %cst_4 = arith.constant 9.99999997E-7 : f32
    %13 = vector.broadcast %cst_4 : f32 to vector<8x1xf32>
    %14 = arith.addf %12, %13 : vector<8x1xf32>
    %15 = tpu.reciprocal %14 : vector<8x1xf32> -> vector<8x1xf32>
    %c0_5 = arith.constant 0 : index
    %c0_6 = arith.constant 0 : index
    %16 = vector.load %arg3[%c0_5, %c0_6] : memref<1x512xf32, #tpu.memory_space<vmem>>, vector<1x512xf32>
    %17 = vector.broadcast %15 : vector<8x1xf32> to vector<8x512xf32>
    %18 = arith.mulf %6, %17 : vector<8x512xf32>
    %19 = vector.broadcast %16 : vector<1x512xf32> to vector<8x512xf32>
    %20 = arith.mulf %19, %18 : vector<8x512xf32>
    %c0_7 = arith.constant 0 : index
    %c0_8 = arith.constant 0 : index
    %21 = vector.load %arg4[%c0_7, %c0_8] : memref<1x512xf32, #tpu.memory_space<vmem>>, vector<1x512xf32>
    %22 = vector.broadcast %21 : vector<1x512xf32> to vector<8x512xf32>
    %23 = arith.addf %20, %22 : vector<8x512xf32>
    %24 = arith.truncf %23 : vector<8x512xf32> to vector<8x512xbf16>
    %25 = vector.shape_cast %24 : vector<8x512xbf16> to vector<1x8x512xbf16>
    %26 = vector.broadcast %25 : vector<1x8x512xbf16> to vector<24x8x512xbf16>
    %c0_9 = arith.constant 0 : index
    %c0_10 = arith.constant 0 : index
    %c0_11 = arith.constant 0 : index
    %27 = vector.load %arg5[%c0_9, %c0_10, %c0_11] : memref<24x512x64xbf16, #tpu.memory_space<vmem>>, vector<24x512x64xbf16>
    "tpu.trace_start"() <{level = 10 : i32, message = "tnd,tdk->tnk"}> : () -> ()
    %cst_12 = arith.constant dense<0.000000e+00> : vector<24x8x64xf32>
    %28 = tpu.matmul %26, %27, %cst_12 {dimension_numbers = #tpu.dot_dimension_numbers<[2], [1], [1], [2], [0, 0, 0, 1, 1, 2], [0], [0]>} : vector<24x8x512xbf16>, vector<24x512x64xbf16>, vector<24x8x64xf32> -> vector<24x8x64xf32>
    "tpu.trace_stop"() : () -> ()
    %c0_13 = arith.constant 0 : index
    %c0_14 = arith.constant 0 : index
    %c0_15 = arith.constant 0 : index
    %29 = vector.load %arg6[%c0_13, %c0_14, %c0_15] : memref<24x1x64xf32, #tpu.memory_space<vmem>>, vector<24x1x64xf32>
    %30 = vector.broadcast %29 : vector<24x1x64xf32> to vector<24x8x64xf32>
    %31 = arith.addf %28, %30 : vector<24x8x64xf32>
    %32 = vector.extract_strided_slice %31 {offsets = [0, 0, 0], sizes = [8, 8, 64], strides = [1, 1, 1]} : vector<24x8x64xf32> to vector<8x8x64xf32>
    %33 = vector.extract_strided_slice %31 {offsets = [8, 0, 0], sizes = [8, 8, 64], strides = [1, 1, 1]} : vector<24x8x64xf32> to vector<8x8x64xf32>
    %34 = vector.extract_strided_slice %31 {offsets = [16, 0, 0], sizes = [8, 8, 64], strides = [1, 1, 1]} : vector<24x8x64xf32> to vector<8x8x64xf32>
    %c0_16 = arith.constant 0 : index
    %c0_17 = arith.constant 0 : index
    %c0_18 = arith.constant 0 : index
    %35 = vector.load %arg2[%c0_16, %c0_17, %c0_18] : memref<8x4x4xf32, #tpu.memory_space<vmem>>, vector<8x4x4xf32>
    %36 = vector.extract_strided_slice %32 {offsets = [0, 0, 0], sizes = [8, 4, 64], strides = [1, 1, 1]} : vector<8x8x64xf32> to vector<8x4x64xf32>
    %37 = vector.extract_strided_slice %33 {offsets = [0, 0, 0], sizes = [8, 4, 64], strides = [1, 1, 1]} : vector<8x8x64xf32> to vector<8x4x64xf32>
    %38 = vector.extract_strided_slice %34 {offsets = [0, 0, 0], sizes = [8, 4, 64], strides = [1, 1, 1]} : vector<8x8x64xf32> to vector<8x4x64xf32>
    "tpu.trace_start"() <{level = 10 : i32, message = "hqd,hkd->hqk"}> : () -> ()
    %cst_19 = arith.constant dense<0.000000e+00> : vector<8x4x4xf32>
    %39 = tpu.matmul %36, %37, %cst_19 {dimension_numbers = #tpu.dot_dimension_numbers<[2], [2], [1], [1], [0, 0, 0, 1, 1, 1], [0], [0]>} : vector<8x4x64xf32>, vector<8x4x64xf32>, vector<8x4x4xf32> -> vector<8x4x4xf32>
    %cst_20 = arith.constant 0.000000e+00 : f32
    "tpu.trace_stop"() : () -> ()
    %40 = vector.broadcast %cst_20 : f32 to vector<8x4x4xf32>
    %41 = arith.cmpf oeq, %35, %40 : vector<8x4x4xf32>
    %cst_21 = arith.constant -1.000000e+09 : f32
    %42 = vector.broadcast %cst_21 : f32 to vector<8x4x4xf32>
    %43 = arith.select %41, %42, %39 : vector<8x4x4xi1>, vector<8x4x4xf32>
    %cst_22 = arith.constant dense<0xFF800000> : vector<8x4xf32>
    %44 = vector.multi_reduction <maximumf>, %43, %cst_22 [2] : vector<8x4x4xf32> to vector<8x4xf32>
    %45 = vector.shape_cast %44 : vector<8x4xf32> to vector<8x4x1xf32>
    %46 = vector.broadcast %45 : vector<8x4x1xf32> to vector<8x4x4xf32>
    %47 = arith.subf %43, %46 : vector<8x4x4xf32>
    %48 = math.exp %47 : vector<8x4x4xf32>
    %cst_23 = arith.constant dense<0.000000e+00> : vector<8x4xf32>
    %49 = vector.multi_reduction <add>, %48, %cst_23 [2] : vector<8x4x4xf32> to vector<8x4xf32>
    %50 = vector.shape_cast %49 : vector<8x4xf32> to vector<8x4x1xf32>
    %51 = tpu.reciprocal %50 : vector<8x4x1xf32> -> vector<8x4x1xf32>
    %52 = vector.broadcast %51 : vector<8x4x1xf32> to vector<8x4x4xf32>
    %53 = arith.mulf %48, %52 : vector<8x4x4xf32>
    "tpu.trace_start"() <{level = 10 : i32, message = "hqk,hkd->hqd"}> : () -> ()
    %cst_24 = arith.constant dense<0.000000e+00> : vector<8x4x64xf32>
    %54 = tpu.matmul %53, %38, %cst_24 {dimension_numbers = #tpu.dot_dimension_numbers<[2], [1], [1], [2], [0, 0, 0, 1, 1, 2], [0], [0]>} : vector<8x4x4xf32>, vector<8x4x64xf32>, vector<8x4x64xf32> -> vector<8x4x64xf32>
    "tpu.trace_stop"() : () -> ()
    %55 = arith.truncf %54 : vector<8x4x64xf32> to vector<8x4x64xbf16>
    %c0_25 = arith.constant 0 : index
    %c0_26 = arith.constant 0 : index
    %c0_27 = arith.constant 0 : index
    %56 = vector.load %arg7[%c0_25, %c0_26, %c0_27] : memref<8x64x512xbf16, #tpu.memory_space<vmem>>, vector<8x64x512xbf16>
    "tpu.trace_start"() <{level = 10 : i32, message = "hsk,hkd->hsd"}> : () -> ()
    %cst_28 = arith.constant dense<0.000000e+00> : vector<8x4x512xf32>
    %57 = tpu.matmul %55, %56, %cst_28 {dimension_numbers = #tpu.dot_dimension_numbers<[2], [1], [1], [2], [0, 0, 0, 1, 1, 2], [0], [0]>} : vector<8x4x64xbf16>, vector<8x64x512xbf16>, vector<8x4x512xf32> -> vector<8x4x512xf32>
    "tpu.trace_stop"() : () -> ()
    %cst_29 = arith.constant dense<0.000000e+00> : vector<4x512xf32>
    %58 = vector.multi_reduction <add>, %57, %cst_29 [0] : vector<8x4x512xf32> to vector<4x512xf32>
    %c0_30 = arith.constant 0 : index
    %c0_31 = arith.constant 0 : index
    %59 = vector.load %arg8[%c0_30, %c0_31] : memref<1x512xf32, #tpu.memory_space<vmem>>, vector<1x512xf32>
    %60 = vector.broadcast %59 : vector<1x512xf32> to vector<4x512xf32>
    %61 = arith.addf %58, %60 : vector<4x512xf32>
    %62 = vector.extract_strided_slice %0 {offsets = [0, 0], sizes = [4, 512], strides = [1, 1]} : vector<8x512xf32> to vector<4x512xf32>
    %63 = arith.addf %62, %61 : vector<4x512xf32>
    %c0_32 = arith.constant 0 : index
    %c0_33 = arith.constant 0 : index
    %64 = vector.load %arg9[%c0_32, %c0_33] : memref<8x512xf32, #tpu.memory_space<vmem>>, vector<4x512xf32>
    tpu.vector_store %arg9[%c0_32, %c0_33], %63 {strides = array<i32>} : memref<8x512xf32, #tpu.memory_space<vmem>>, vector<4x512xf32>,
    %65 = vector.extract_strided_slice %32 {offsets = [0, 4, 0], sizes = [8, 4, 64], strides = [1, 1, 1]} : vector<8x8x64xf32> to vector<8x4x64xf32>
    %66 = vector.extract_strided_slice %33 {offsets = [0, 4, 0], sizes = [8, 4, 64], strides = [1, 1, 1]} : vector<8x8x64xf32> to vector<8x4x64xf32>
    %67 = vector.extract_strided_slice %34 {offsets = [0, 4, 0], sizes = [8, 4, 64], strides = [1, 1, 1]} : vector<8x8x64xf32> to vector<8x4x64xf32>
    "tpu.trace_start"() <{level = 10 : i32, message = "hqd,hkd->hqk"}> : () -> ()
    %cst_34 = arith.constant dense<0.000000e+00> : vector<8x4x4xf32>
    %68 = tpu.matmul %65, %66, %cst_34 {dimension_numbers = #tpu.dot_dimension_numbers<[2], [2], [1], [1], [0, 0, 0, 1, 1, 1], [0], [0]>} : vector<8x4x64xf32>, vector<8x4x64xf32>, vector<8x4x4xf32> -> vector<8x4x4xf32>
    %cst_35 = arith.constant 0.000000e+00 : f32
    "tpu.trace_stop"() : () -> ()
    %69 = vector.broadcast %cst_35 : f32 to vector<8x4x4xf32>
    %70 = arith.cmpf oeq, %35, %69 : vector<8x4x4xf32>
    %cst_36 = arith.constant -1.000000e+09 : f32
    %71 = vector.broadcast %cst_36 : f32 to vector<8x4x4xf32>
    %72 = arith.select %70, %71, %68 : vector<8x4x4xi1>, vector<8x4x4xf32>
    %cst_37 = arith.constant dense<0xFF800000> : vector<8x4xf32>
    %73 = vector.multi_reduction <maximumf>, %72, %cst_37 [2] : vector<8x4x4xf32> to vector<8x4xf32>
    %74 = vector.shape_cast %73 : vector<8x4xf32> to vector<8x4x1xf32>
    %75 = vector.broadcast %74 : vector<8x4x1xf32> to vector<8x4x4xf32>
    %76 = arith.subf %72, %75 : vector<8x4x4xf32>
    %77 = math.exp %76 : vector<8x4x4xf32>
    %cst_38 = arith.constant dense<0.000000e+00> : vector<8x4xf32>
    %78 = vector.multi_reduction <add>, %77, %cst_38 [2] : vector<8x4x4xf32> to vector<8x4xf32>
    %79 = vector.shape_cast %78 : vector<8x4xf32> to vector<8x4x1xf32>
    %80 = tpu.reciprocal %79 : vector<8x4x1xf32> -> vector<8x4x1xf32>
    %81 = vector.broadcast %80 : vector<8x4x1xf32> to vector<8x4x4xf32>
    %82 = arith.mulf %77, %81 : vector<8x4x4xf32>
    "tpu.trace_start"() <{level = 10 : i32, message = "hqk,hkd->hqd"}> : () -> ()
    %cst_39 = arith.constant dense<0.000000e+00> : vector<8x4x64xf32>
    %83 = tpu.matmul %82, %67, %cst_39 {dimension_numbers = #tpu.dot_dimension_numbers<[2], [1], [1], [2], [0, 0, 0, 1, 1, 2], [0], [0]>} : vector<8x4x4xf32>, vector<8x4x64xf32>, vector<8x4x64xf32> -> vector<8x4x64xf32>
    "tpu.trace_stop"() : () -> ()
    %84 = arith.truncf %83 : vector<8x4x64xf32> to vector<8x4x64xbf16>
    %c0_40 = arith.constant 0 : index
    %c0_41 = arith.constant 0 : index
    %c0_42 = arith.constant 0 : index
    %85 = vector.load %arg7[%c0_40, %c0_41, %c0_42] : memref<8x64x512xbf16, #tpu.memory_space<vmem>>, vector<8x64x512xbf16>
    "tpu.trace_start"() <{level = 10 : i32, message = "hsk,hkd->hsd"}> : () -> ()
    %cst_43 = arith.constant dense<0.000000e+00> : vector<8x4x512xf32>
    %86 = tpu.matmul %84, %85, %cst_43 {dimension_numbers = #tpu.dot_dimension_numbers<[2], [1], [1], [2], [0, 0, 0, 1, 1, 2], [0], [0]>} : vector<8x4x64xbf16>, vector<8x64x512xbf16>, vector<8x4x512xf32> -> vector<8x4x512xf32>
    "tpu.trace_stop"() : () -> ()
    %cst_44 = arith.constant dense<0.000000e+00> : vector<4x512xf32>
    %87 = vector.multi_reduction <add>, %86, %cst_44 [0] : vector<8x4x512xf32> to vector<4x512xf32>
    %c0_45 = arith.constant 0 : index
    %c0_46 = arith.constant 0 : index
    %88 = vector.load %arg8[%c0_45, %c0_46] : memref<1x512xf32, #tpu.memory_space<vmem>>, vector<1x512xf32>
    %89 = vector.broadcast %88 : vector<1x512xf32> to vector<4x512xf32>
    %90 = arith.addf %87, %89 : vector<4x512xf32>
    %91 = vector.extract_strided_slice %0 {offsets = [4, 0], sizes = [4, 512], strides = [1, 1]} : vector<8x512xf32> to vector<4x512xf32>
    %92 = arith.addf %91, %90 : vector<4x512xf32>
    %c4 = arith.constant 4 : index
    %c0_47 = arith.constant 0 : index
    %93 = vector.load %arg9[%c4, %c0_47] : memref<8x512xf32, #tpu.memory_space<vmem>>, vector<4x512xf32>
    tpu.vector_store %arg9[%c4, %c0_47], %92 {strides = array<i32>} : memref<8x512xf32, #tpu.memory_space<vmem>>, vector<4x512xf32>,
    return
  }
  func.func @transform_0(%arg0: i32) -> (i32, i32) {
    %c0_i32 = arith.constant 0 : i32
    %c0_i32_0 = arith.constant 0 : i32
    %c0_i32_1 = arith.constant 0 : i32
    return %c0_i32, %c0_i32_0 : i32, i32
  }
  func.func @transform_1(%arg0: i32) -> (i32, i32, i32) {
    %c0_i32 = arith.constant 0 : i32
    %c0_i32_0 = arith.constant 0 : i32
    %c0_i32_1 = arith.constant 0 : i32
    %c0_i32_2 = arith.constant 0 : i32
    return %c0_i32, %c0_i32_0, %c0_i32_1 : i32, i32, i32
  }
  func.func @transform_2(%arg0: i32) -> (i32, i32) {
    %c0_i32 = arith.constant 0 : i32
    %c0_i32_0 = arith.constant 0 : i32
    %c0_i32_1 = arith.constant 0 : i32
    return %c0_i32, %c0_i32_0 : i32, i32
  }
  func.func @transform_3(%arg0: i32) -> (i32, i32) {
    %c0_i32 = arith.constant 0 : i32
    %c0_i32_0 = arith.constant 0 : i32
    %c0_i32_1 = arith.constant 0 : i32
    return %c0_i32, %c0_i32_0 : i32, i32
  }
  func.func @transform_4(%arg0: i32) -> (i32, i32, i32) {
    %c0_i32 = arith.constant 0 : i32
    %c0_i32_0 = arith.constant 0 : i32
    %c0_i32_1 = arith.constant 0 : i32
    %c0_i32_2 = arith.constant 0 : i32
    return %c0_i32, %c0_i32_0, %c0_i32_1 : i32, i32, i32
  }
  func.func @transform_5(%arg0: i32) -> (i32, i32, i32) {
    %c0_i32 = arith.constant 0 : i32
    %c0_i32_0 = arith.constant 0 : i32
    %c0_i32_1 = arith.constant 0 : i32
    %c0_i32_2 = arith.constant 0 : i32
    return %c0_i32, %c0_i32_0, %c0_i32_1 : i32, i32, i32
  }
  func.func @transform_6(%arg0: i32) -> (i32, i32, i32) {
    %c0_i32 = arith.constant 0 : i32
    %c0_i32_0 = arith.constant 0 : i32
    %c0_i32_1 = arith.constant 0 : i32
    %c0_i32_2 = arith.constant 0 : i32
    return %c0_i32, %c0_i32_0, %c0_i32_1 : i32, i32, i32
  }
  func.func @transform_7(%arg0: i32) -> (i32, i32) {
    %c0_i32 = arith.constant 0 : i32
    %c0_i32_0 = arith.constant 0 : i32
    %c0_i32_1 = arith.constant 0 : i32
    return %c0_i32, %c0_i32_0 : i32, i32
  }
  func.func @transform_8(%arg0: i32) -> (i32, i32) {
    %c0_i32 = arith.constant 0 : i32
    %c0_i32_0 = arith.constant 0 : i32
    %c0_i32_1 = arith.constant 0 : i32
    return %c0_i32, %c0_i32_0 : i32, i32
  }
}

</mosaic_0001>

<bundles_post_ra>
// kernel: tpu_custom_call.1
= control target key start
LH: loop header
LB: loop body
LE: loop exit
PB: predicated region body
PF: predicated region fallthrough
CT: control target
= control target key end

     0   :  { %s21640_s0 = inlined_call_operand.vmem [shape: f32[8,512], index: 0, kind: input, shape index: {}]   ;;  %s21641_s1 = inlined_call_operand.vmem [shape: f32[8,4,4], index: 1, kind: input, shape index: {}]   ;;  %s21642_s2 = inlined_call_operand.vmem [shape: f32[1,512], index: 2, kind: input, shape index: {}]   ;;  %s21643_s3 = inlined_call_operand.vmem [shape: f32[1,512], index: 3, kind: input, shape index: {}]   ;;  %s21644_s4 = inlined_call_operand.vmem [shape: bf16[24,512,64], index: 4, kind: input, shape index: {}]   ;;  %s21645_s5 = inlined_call_operand.vmem [shape: f32[24,1,64], index: 5, kind: input, shape index: {}]   ;;  %s21646_s6 = inlined_call_operand.vmem [shape: bf16[8,64,512], index: 6, kind: input, shape index: {}]   ;;  %s21647_s7 = inlined_call_operand.vmem [shape: f32[1,512], index: 7, kind: input, shape index: {}]   ;;  %s21648_s8 = inlined_call_operand.hbm [shape: f32[8,512], index: 8, kind: output, shape index: {}]  }
   0x1   :  { %v31_v0 = vld [vmem:[%s21640_s0] sm:$0xff]  ;;  %v32_v1 = vld [vmem:[%s21640_s0 + $0x8] sm:$0xff]  ;;  %v33_v2 = vld [vmem:[%s21640_s0 + $0x10] sm:$0xff] }
   0x2   :  { %v34_v3 = vld [vmem:[%s21640_s0 + $0x18] sm:$0xff]  ;;  %v35_v4 = vadd.f32 %v32_v1, %v31_v0 }
   0x4   :  { %v36_v5 = vadd.f32 %v35_v4, %v33_v2 }
   0x6   :  { %v37_v6 = vadd.f32 %v36_v5, %v34_v3 }
   0x8   :  { %38 = vadd.xlane.f32.xlu0 %v37_v6 }
   0x9   :  { %13 = vsyncpa [#allocation3], 0  ;;  %v16879_v7 = vmov 512.0   ;;  %v15732_v9 = vld [vmem:[%s21644_s4 + $0x38] sm:$0xff]  ;;  %v15731_v31 = vld [vmem:[%s21644_s4 + $0x30] sm:$0xff]  ;;  %vm7633_vm7 = vcmask 523264  }
   0xa   :  { %16775 = vrcp.f32 %v16879_v7  ;;  %v15740_v10 = vld [vmem:[%s21644_s4 + $0x78] sm:$0xff]  ;;  %1961 = vmatpush.bf16.msra.mxu0 %v15732_v9  ;;  %v15739_v32 = vld [vmem:[%s21644_s4 + $0x70] sm:$0xff]  ;;  %v15730_v35 = vld [vmem:[%s21644_s4 + $0x28] sm:$0xff]  ;;  %vm8055_vm8 = vcmask 1043456   ;;  %vm7858_vm10 = vcmask 27648   ;;  %s16880_s27 = smov [#allocation2]  }
   0xb   :  { %v15748_v11 = vld [vmem:[%s21644_s4 + $0xb8] sm:$0xff]  ;;  %1974 = vmatpush.bf16.msra.mxu1 %v15740_v10  ;;  %v15747_v33 = vld [vmem:[%s21644_s4 + $0xb0] sm:$0xff]  ;;  %v15738_v36 = vld [vmem:[%s21644_s4 + $0x68] sm:$0xff]  ;;  %s11492_s30 = sshll.u32 %s21648_s8, 4  ;;  %s11493_s30 = int_to_ptr.hbm [resolvable:$true] %s11492_s30 }
   0xc   :  { %v15756_v13 = vld [vmem:[%s21644_s4 + $0xf8] sm:$0xff]  ;;  %1987 = vmatpush.bf16.msra.mxu2 %v15748_v11  ;;  %v15755_v34 = vld [vmem:[%s21644_s4 + $0xf0] sm:$0xff]  ;;  %v15746_v37 = vld [vmem:[%s21644_s4 + $0xa8] sm:$0xff] }
   0xd   :  { %2000 = vmatpush.bf16.msra.mxu3 %v15756_v13  ;;  %v15754_v38 = vld [vmem:[%s21644_s4 + $0xe8] sm:$0xff]  ;;  %v15729_v39 = vld [vmem:[%s21644_s4 + $0x20] sm:$0xff]  ;;  %v15728_v43 = vld [vmem:[%s21644_s4 + $0x18] sm:$0xff] }
   0xe   :  { %1962 = vmatpush.bf16.msra.mxu0 %v15731_v31  ;;  %v15737_v40 = vld [vmem:[%s21644_s4 + $0x60] sm:$0xff]  ;;  %v15736_v44 = vld [vmem:[%s21644_s4 + $0x58] sm:$0xff]  ;;  %v15727_v47 = vld [vmem:[%s21644_s4 + $0x10] sm:$0xff] }
   0xf   :  { %1975 = vmatpush.bf16.msra.mxu1 %v15739_v32  ;;  %v15745_v41 = vld [vmem:[%s21644_s4 + $0xa0] sm:$0xff]  ;;  %v15744_v45 = vld [vmem:[%s21644_s4 + $0x98] sm:$0xff]  ;;  %v15735_v48 = vld [vmem:[%s21644_s4 + $0x50] sm:$0xff] }
  0x10   :  { %v16776_v8 = vpop.eup %16775  ;;  %1988 = vmatpush.bf16.msra.mxu2 %v15747_v33  ;;  %v15753_v42 = vld [vmem:[%s21644_s4 + $0xe0] sm:$0xff]  ;;  %v15752_v46 = vld [vmem:[%s21644_s4 + $0xd8] sm:$0xff]  ;;  %v15743_v49 = vld [vmem:[%s21644_s4 + $0x90] sm:$0xff] }
  0x11   :  { %v41_v12 = vmul.f32 512.0, %v16776_v8  ;;  %vm45_vm0 = vweird.f32 %v16776_v8  ;;  %2001 = vmatpush.bf16.msra.mxu3 %v15755_v34  ;;  %v15751_v50 = vld [vmem:[%s21644_s4 + $0xd0] sm:$0xff]  ;;  %v15726_v51 = vld [vmem:[%s21644_s4 + $0x8] sm:$0xff]  ;;  %v15725_v55 = vld [vmem:[%s21644_s4] sm:$0xff] }
  0x12   :  { %1963 = vmatpush.bf16.msra.mxu0 %v15730_v35  ;;  %v15734_v52 = vld [vmem:[%s21644_s4 + $0x48] sm:$0xff]  ;;  %v15733_v56 = vld [vmem:[%s21644_s4 + $0x40] sm:$0xff]  ;;  %v15764_v59 = vld [vmem:[%s21644_s4 + $0x138] sm:$0xff] }
  0x13   :  { %v42_v14 = vsub.f32 1.0, %v41_v12  ;;  %1976 = vmatpush.bf16.msra.mxu1 %v15738_v36  ;;  %v15742_v53 = vld [vmem:[%s21644_s4 + $0x88] sm:$0xff]  ;;  %v15741_v57 = vld [vmem:[%s21644_s4 + $0x80] sm:$0xff]  ;;  %v15772_v60 = vld [vmem:[%s21644_s4 + $0x178] sm:$0xff] }
  0x14   :  { %1989 = vmatpush.bf16.msra.mxu2 %v15746_v37  ;;  %v15750_v54 = vld [vmem:[%s21644_s4 + $0xc8] sm:$0xff]  ;;  %v15749_v58 = vld [vmem:[%s21644_s4 + $0xc0] sm:$0xff]  ;;  %v15780_v61 = vld [vmem:[%s21644_s4 + $0x1b8] sm:$0xff] }
  0x15   :  { %v43_v15 = vmul.f32 %v16776_v8, %v42_v14  ;;  %2002 = vmatpush.bf16.msra.mxu3 %v15754_v38  ;;  %v15788_v62 = vld [vmem:[%s21644_s4 + $0x1f8] sm:$0xff]  ;;  %v15763_v63 = vld [vmem:[%s21644_s4 + $0x130] sm:$0xff]  ;;  %v15762_v4 = vld [vmem:[%s21644_s4 + $0x128] sm:$0xff] }
  0x16   :  { %1964 = vmatpush.bf16.msra.mxu0 %v15729_v39  ;;  %v15770_v5 = vld [vmem:[%s21644_s4 + $0x168] sm:$0xff]  ;;  %v15761_v9 = vld [vmem:[%s21644_s4 + $0x120] sm:$0xff]  ;;  %v15760_v13 = vld [vmem:[%s21644_s4 + $0x118] sm:$0xff] }
  0x17   :  { %v44_v16 = vadd.f32 %v16776_v8, %v43_v15  ;;  %1977 = vmatpush.bf16.msra.mxu1 %v15737_v40  ;;  %v15778_v6 = vld [vmem:[%s21644_s4 + $0x1a8] sm:$0xff]  ;;  %v15769_v10 = vld [vmem:[%s21644_s4 + $0x160] sm:$0xff]  ;;  %v15768_v14 = vld [vmem:[%s21644_s4 + $0x158] sm:$0xff] }
  0x18   :  { %1990 = vmatpush.bf16.msra.mxu2 %v15745_v41  ;;  %v15777_v11 = vld [vmem:[%s21644_s4 + $0x1a0] sm:$0xff]  ;;  %v15776_v15 = vld [vmem:[%s21644_s4 + $0x198] sm:$0xff]  ;;  %v15766_v31 = vld [vmem:[%s21644_s4 + $0x148] sm:$0xff] }
  0x19   :  { %v46_v17 = vsel %vm45_vm0, %v16776_v8, %v44_v16  ;;  %2003 = vmatpush.bf16.msra.mxu3 %v15753_v42  ;;  %v15786_v8 = vld [vmem:[%s21644_s4 + $0x1e8] sm:$0xff]  ;;  %v15785_v12 = vld [vmem:[%s21644_s4 + $0x1e0] sm:$0xff] }
  0x1a   :  { %1965 = vmatpush.bf16.msra.mxu0 %v15728_v43  ;;  %v15774_v32 = vld [vmem:[%s21644_s4 + $0x188] sm:$0xff]  ;;  %v15757_v36 = vld [vmem:[%s21644_s4 + $0x100] sm:$0xff] }
  0x1b   :  { %1978 = vmatpush.bf16.msra.mxu1 %v15736_v44  ;;  %v15782_v33 = vld [vmem:[%s21644_s4 + $0x1c8] sm:$0xff]  ;;  %v15765_v37 = vld [vmem:[%s21644_s4 + $0x140] sm:$0xff] }
  0x1c   :  { %1991 = vmatpush.bf16.msra.mxu2 %v15744_v45  ;;  %v15773_v38 = vld [vmem:[%s21644_s4 + $0x180] sm:$0xff] }
  0x1d   :  { %2004 = vmatpush.bf16.msra.mxu3 %v15752_v46  ;;  %v15781_v40 = vld [vmem:[%s21644_s4 + $0x1c0] sm:$0xff] }
  0x1e   :  { %1966 = vmatpush.bf16.msra.mxu0 %v15727_v47 }
  0x1f   :  { %1979 = vmatpush.bf16.msra.mxu1 %v15735_v48  ;;  %v89_v48 = vld [vmem:[%s21642_s2] sm:$0xf] }
  0x20   :  { %1992 = vmatpush.bf16.msra.mxu2 %v15743_v49 }
  0x21   :  { %2005 = vmatpush.bf16.msra.mxu3 %v15751_v50 }
  0x22   :  { %1967 = vmatpush.bf16.msra.mxu0 %v15726_v51  ;;  %v107_v51 = vld [vmem:[%s21643_s3] sm:$0xf] }
  0x23   :  { %1980 = vmatpush.bf16.msra.mxu1 %v15734_v52 }
  0x24   :  { %1993 = vmatpush.bf16.msra.mxu2 %v15742_v53  ;;  %v95_v53 = vperm.slane %v89_v48, 0 }
  0x25   :  { %2006 = vmatpush.bf16.msra.mxu3 %v15750_v54  ;;  %v96_v54 = vperm.slane %v89_v48, 1 }
  0x26   :  { %1968 = vmatpush.bf16.msra.mxu0 %v15725_v55  ;;  %v97_v55 = vperm.slane %v89_v48, 2 }
  0x27   :  { %1981 = vmatpush.bf16.msra.mxu1 %v15733_v56 }
  0x28   :  { %1994 = vmatpush.bf16.msra.mxu2 %v15741_v57  ;;  %v98_v57 = vperm.slane %v89_v48, 3  ;;  %v15806_v48 = vld [vmem:[%s21644_s4 + $0x288] sm:$0xff] }
  0x29   :  { %2007 = vmatpush.bf16.msra.mxu3 %v15749_v58  ;;  %v109_v58 = vperm.slane %v107_v51, 0 }
  0x2a   :  { %2205 = vmatpush.bf16.msrb.mxu0 %v15764_v59 }
  0x2b   :  { %2218 = vmatpush.bf16.msrb.mxu1 %v15772_v60  ;;  %v110_v60 = vperm.slane %v107_v51, 1 }
  0x2c   :  { %2231 = vmatpush.bf16.msrb.mxu2 %v15780_v61  ;;  %v111_v61 = vperm.slane %v107_v51, 2 }
  0x2d   :  { %2244 = vmatpush.bf16.msrb.mxu3 %v15788_v62  ;;  %v112_v62 = vperm.slane %v107_v51, 3  ;;  %v15797_v51 = vld [vmem:[%s21644_s4 + $0x240] sm:$0xff] }
  0x2e   :  { %2206 = vmatpush.bf16.msrb.mxu0 %v15763_v63 }
  0x32   :  { %2207 = vmatpush.bf16.msrb.mxu0 %v15762_v4 }
  0x36   :  { %2208 = vmatpush.bf16.msrb.mxu0 %v15761_v9 }
  0x3a   :  { %2209 = vmatpush.bf16.msrb.mxu0 %v15760_v13 }
  0x7b   :  { %v39_v18 = vpop.xlane.xlu0 %38 }
  0x7c   :  { %v47_v19 = vmul.f32 %v46_v17, %v39_v18  ;;  %v15784_v17 = vld [vmem:[%s21644_s4 + $0x1d8] sm:$0xff] }
  0x7e   :  { %v16950_v20 = vsub.f32 %v31_v0, %v47_v19  ;;  %v16952_v21 = vsub.f32 %v32_v1, %v47_v19  ;;  %v16954_v22 = vsub.f32 %v33_v2, %v47_v19  ;;  %v16956_v23 = vsub.f32 %v34_v3, %v47_v19  ;;  %v15771_v0 = vld [vmem:[%s21644_s4 + $0x170] sm:$0xff] }
  0x7f   :  { %v15779_v1 = vld [vmem:[%s21644_s4 + $0x1b0] sm:$0xff]  ;;  %2219 = vmatpush.bf16.msrb.mxu1 %v15771_v0 }
  0x80   :  { %v52_v24 = vmul.f32 %v16950_v20, %v16950_v20  ;;  %v53_v25 = vmul.f32 %v16952_v21, %v16952_v21  ;;  %v54_v26 = vmul.f32 %v16954_v22, %v16954_v22  ;;  %v55_v28 = vmul.f32 %v16956_v23, %v16956_v23  ;;  %v15787_v2 = vld [vmem:[%s21644_s4 + $0x1f0] sm:$0xff]  ;;  %2232 = vmatpush.bf16.msrb.mxu2 %v15779_v1 }
  0x81   :  { %2245 = vmatpush.bf16.msrb.mxu3 %v15787_v2 }
  0x82   :  { %v56_v27 = vadd.f32 %v53_v25, %v52_v24  ;;  %v15759_v24 = vld [vmem:[%s21644_s4 + $0x110] sm:$0xff] }
  0x83   :  { %2220 = vmatpush.bf16.msrb.mxu1 %v15770_v5  ;;  %v15767_v25 = vld [vmem:[%s21644_s4 + $0x150] sm:$0xff]  ;;  %2210 = vmatpush.bf16.msrb.mxu0 %v15759_v24  ;;  %v15812_v24 = vld [vmem:[%s21644_s4 + $0x2b8] sm:$0xff] }
  0x84   :  { %v57_v29 = vadd.f32 %v56_v27, %v54_v26  ;;  %2233 = vmatpush.bf16.msrb.mxu2 %v15778_v6  ;;  %v15775_v26 = vld [vmem:[%s21644_s4 + $0x190] sm:$0xff] }
  0x85   :  { %2246 = vmatpush.bf16.msrb.mxu3 %v15786_v8  ;;  %v15783_v27 = vld [vmem:[%s21644_s4 + $0x1d0] sm:$0xff] }
  0x86   :  { %v58_v30 = vadd.f32 %v57_v29, %v55_v28 }
  0x87   :  { %2221 = vmatpush.bf16.msrb.mxu1 %v15769_v10 }
  0x88   :  { %59 = vadd.xlane.f32.xlu0 %v58_v30  ;;  %2234 = vmatpush.bf16.msrb.mxu2 %v15777_v11  ;;  %v15758_v30 = vld [vmem:[%s21644_s4 + $0x108] sm:$0xff] }
  0x89   :  { %2247 = vmatpush.bf16.msrb.mxu3 %v15785_v12  ;;  %2211 = vmatpush.bf16.msrb.mxu0 %v15758_v30  ;;  %v15794_v30 = vld [vmem:[%s21644_s4 + $0x228] sm:$0xff] }
  0x8b   :  { %2222 = vmatpush.bf16.msrb.mxu1 %v15768_v14 }
  0x8c   :  { %2235 = vmatpush.bf16.msrb.mxu2 %v15776_v15 }
  0x8d   :  { %2248 = vmatpush.bf16.msrb.mxu3 %v15784_v17  ;;  %2212 = vmatpush.bf16.msrb.mxu0 %v15757_v36  ;;  %v15809_v36 = vld [vmem:[%s21644_s4 + $0x2a0] sm:$0xff] }
  0x8f   :  { %2223 = vmatpush.bf16.msrb.mxu1 %v15767_v25  ;;  %v15820_v25 = vld [vmem:[%s21644_s4 + $0x2f8] sm:$0xff] }
  0x90   :  { %2236 = vmatpush.bf16.msrb.mxu2 %v15775_v26  ;;  %v15795_v26 = vld [vmem:[%s21644_s4 + $0x230] sm:$0xff] }
  0x91   :  { %2249 = vmatpush.bf16.msrb.mxu3 %v15783_v27  ;;  %v15803_v27 = vld [vmem:[%s21644_s4 + $0x270] sm:$0xff] }
  0x93   :  { %2224 = vmatpush.bf16.msrb.mxu1 %v15766_v31  ;;  %v15802_v31 = vld [vmem:[%s21644_s4 + $0x268] sm:$0xff] }
  0x94   :  { %2237 = vmatpush.bf16.msrb.mxu2 %v15774_v32  ;;  %v15810_v32 = vld [vmem:[%s21644_s4 + $0x2a8] sm:$0xff] }
  0x95   :  { %2250 = vmatpush.bf16.msrb.mxu3 %v15782_v33  ;;  %v15818_v33 = vld [vmem:[%s21644_s4 + $0x2e8] sm:$0xff] }
  0x97   :  { %2225 = vmatpush.bf16.msrb.mxu1 %v15765_v37  ;;  %v15817_v37 = vld [vmem:[%s21644_s4 + $0x2e0] sm:$0xff] }
  0x98   :  { %2238 = vmatpush.bf16.msrb.mxu2 %v15773_v38  ;;  %v15792_v38 = vld [vmem:[%s21644_s4 + $0x218] sm:$0xff] }
  0x99   :  { %2251 = vmatpush.bf16.msrb.mxu3 %v15781_v40  ;;  %v15808_v40 = vld [vmem:[%s21644_s4 + $0x298] sm:$0xff] }
  0xfb   :  { %v60_v3 = vpop.xlane.xlu0 %59 }
  0xfc   :  { %v61_v7 = vmul.f32 0.0019569471, %v60_v3 }
  0xfe   :  { %16777 = vrsqrt.f32 %v61_v7  ;;  %vm69_vm1 = vcmp.eq.f32.partialorder %v61_v7, inf  ;;  %v72_v39 = vand.u32 2147483648, %v61_v7  ;;  %vm71_vm2 = vcmp.eq.f32.partialorder %v61_v7, 0.0 }
 0x104   :  { %v16778_v16 = vpop.eup %16777 }
 0x105   :  { %v63_v18 = vmul.f32 %v16778_v16, %v61_v7 }
 0x107   :  { %v64_v19 = vmul.f32 %v16778_v16, %v63_v18  ;;  %v15796_v18 = vld [vmem:[%s21644_s4 + $0x238] sm:$0xff] }
 0x109   :  { %v65_v28 = vmul.f32 0.5, %v64_v19  ;;  %v15804_v19 = vld [vmem:[%s21644_s4 + $0x278] sm:$0xff] }
 0x10b   :  { %v66_v29 = vsub.f32 1.5, %v65_v28  ;;  %v15811_v28 = vld [vmem:[%s21644_s4 + $0x2b0] sm:$0xff] }
 0x10d   :  { %v67_v34 = vmul.f32 %v16778_v16, %v66_v29  ;;  %v15819_v29 = vld [vmem:[%s21644_s4 + $0x2f0] sm:$0xff] }
 0x10f   :  { %v68_v35 = vmul.f32 %v67_v34, %v61_v7  ;;  %v15793_v34 = vld [vmem:[%s21644_s4 + $0x220] sm:$0xff] }
 0x111   :  { %v70_v41 = vsel %vm69_vm1, %v61_v7, %v68_v35  ;;  %v15801_v35 = vld [vmem:[%s21644_s4 + $0x260] sm:$0xff] }
 0x112   :  { %v73_v42 = vsel %vm71_vm2, %v72_v39, %v70_v41  ;;  %v15800_v39 = vld [vmem:[%s21644_s4 + $0x258] sm:$0xff] }
 0x113   :  { %v74_v43 = vadd.f32 1e-06, %v73_v42  ;;  %v15816_v41 = vld [vmem:[%s21644_s4 + $0x2d8] sm:$0xff]  ;;  %v15791_v42 = vld [vmem:[%s21644_s4 + $0x210] sm:$0xff] }
 0x115   :  { %16779 = vrcp.f32 %v74_v43  ;;  %v86_v47 = vand.u32 2147483648, %v74_v43  ;;  %v84_v50 = vand.u32 2147483647, %v74_v43  ;;  %vm80_vm4 = vweird.f32 %v74_v43 }
 0x117   :  { %v87_v56 = vor.u32 1.1754944e-38, %v86_v47  ;;  %vm85_vm6 = vcmp.eq.f32.partialorder %v84_v50, 8.507059e+37  ;;  %v15798_v47 = vld [vmem:[%s21644_s4 + $0x248] sm:$0xff]  ;;  %v15789_v50 = vld [vmem:[%s21644_s4 + $0x200] sm:$0xff] }
 0x11b   :  { %v16780_v44 = vpop.eup %16779 }
 0x11c   :  { %v76_v45 = vmul.f32 %v16780_v44, %v74_v43  ;;  %vm81_vm3 = vweird.f32 %v16780_v44  ;;  %v15799_v43 = vld [vmem:[%s21644_s4 + $0x250] sm:$0xff] }
 0x11d   :  { %vm82_vm5 = vmor %vm80_vm4, %vm81_vm3 }
 0x11e   :  { %v77_v46 = vsub.f32 1.0, %v76_v45  ;;  %v15815_v45 = vld [vmem:[%s21644_s4 + $0x2d0] sm:$0xff] }
 0x120   :  { %v78_v49 = vmul.f32 %v16780_v44, %v77_v46  ;;  %v15790_v46 = vld [vmem:[%s21644_s4 + $0x208] sm:$0xff] }
 0x122   :  { %v79_v52 = vadd.f32 %v16780_v44, %v78_v49  ;;  %v15814_v49 = vld [vmem:[%s21644_s4 + $0x2c8] sm:$0xff] }
 0x124   :  { %v83_v59 = vsel %vm82_vm5, %v16780_v44, %v79_v52  ;;  %v15807_v44 = vld [vmem:[%s21644_s4 + $0x290] sm:$0xff]  ;;  %v15805_v52 = vld [vmem:[%s21644_s4 + $0x280] sm:$0xff] }
 0x125   :  { %v88_v63 = vsel %vm85_vm6, %v87_v56, %v83_v59  ;;  %v15844_v56 = vld [vmem:[%s21644_s4 + $0x3b8] sm:$0xff]  ;;  %v15835_v59 = vld [vmem:[%s21644_s4 + $0x370] sm:$0xff]  ;;  %vm8051_vm6 = vcmask 31744  }
 0x126   :  { %v90_v0 = vmul.f32 %v88_v63, %v16950_v20  ;;  %v91_v1 = vmul.f32 %v88_v63, %v16952_v21  ;;  %v92_v2 = vmul.f32 %v88_v63, %v16954_v22  ;;  %v93_v3 = vmul.f32 %v88_v63, %v16956_v23  ;;  %v15834_v63 = vld [vmem:[%s21644_s4 + $0x368] sm:$0xff] }
 0x128   :  { %v103_v4 = vmul.f32 %v95_v53, %v90_v0  ;;  %v104_v5 = vmul.f32 %v96_v54, %v91_v1  ;;  %v105_v6 = vmul.f32 %v97_v55, %v92_v2  ;;  %v106_v7 = vmul.f32 %v98_v57, %v93_v3  ;;  %v15813_v53 = vld [vmem:[%s21644_s4 + $0x2c0] sm:$0xff]  ;;  %v15828_v54 = vld [vmem:[%s21644_s4 + $0x338] sm:$0xff]  ;;  %v15842_v0 = vld [vmem:[%s21644_s4 + $0x3a8] sm:$0xff] }
 0x129   :  { %v15836_v55 = vld [vmem:[%s21644_s4 + $0x378] sm:$0xff]  ;;  %v15850_v1 = vld [vmem:[%s21644_s4 + $0x3e8] sm:$0xff]  ;;  %v15825_v2 = vld [vmem:[%s21644_s4 + $0x320] sm:$0xff] }
 0x12a   :  { %v117_v8 = vadd.f32 %v109_v58, %v103_v4  ;;  %v118_v9 = vadd.f32 %v110_v60, %v104_v5  ;;  %v119_v10 = vadd.f32 %v111_v61, %v105_v6  ;;  %v120_v11 = vadd.f32 %v112_v62, %v106_v7  ;;  %v15852_v57 = vld [vmem:[%s21644_s4 + $0x3f8] sm:$0xff]  ;;  %v15827_v58 = vld [vmem:[%s21644_s4 + $0x330] sm:$0xff]  ;;  %v15826_v62 = vld [vmem:[%s21644_s4 + $0x328] sm:$0xff] }
 0x12b   :  { %v15843_v60 = vld [vmem:[%s21644_s4 + $0x3b0] sm:$0xff]  ;;  %v15833_v3 = vld [vmem:[%s21644_s4 + $0x360] sm:$0xff]  ;;  %v15824_v6 = vld [vmem:[%s21644_s4 + $0x318] sm:$0xff] }
 0x12c   :  { %v121_v12 = vpack.c.bf16 %v118_v9, %v117_v8  ;;  %v122_v13 = vpack.c.bf16 %v120_v11, %v119_v10  ;;  %v15851_v61 = vld [vmem:[%s21644_s4 + $0x3f0] sm:$0xff]  ;;  %v15841_v4 = vld [vmem:[%s21644_s4 + $0x3a0] sm:$0xff]  ;;  %v15832_v7 = vld [vmem:[%s21644_s4 + $0x358] sm:$0xff] }
 0x12d   :  { %v15849_v5 = vld [vmem:[%s21644_s4 + $0x3e0] sm:$0xff]  ;;  %v15840_v8 = vld [vmem:[%s21644_s4 + $0x398] sm:$0xff]  ;;  %v15823_v10 = vld [vmem:[%s21644_s4 + $0x310] sm:$0xff] }
 0x12e   :  { %v1757_v14 = vunpack.c.l.b16 %v121_v12  ;;  %v1758_v15 = vunpack.c.h.b16 %v121_v12  ;;  %v1759_v16 = vunpack.c.l.b16 %v122_v13  ;;  %v1760_v20 = vunpack.c.h.b16 %v122_v13  ;;  %v15848_v9 = vld [vmem:[%s21644_s4 + $0x3d8] sm:$0xff]  ;;  %v15831_v11 = vld [vmem:[%s21644_s4 + $0x350] sm:$0xff] }
 0x12f   :  { %v15839_v12 = vld [vmem:[%s21644_s4 + $0x390] sm:$0xff] }
 0x130   :  { %v17156_v17 = vpack.c.b16 %v1757_v14, %v1757_v14  ;;  %v17158_v21 = vpack.c.b16 %v1758_v15, %v1758_v15  ;;  %v17160_v22 = vpack.c.b16 %v1759_v16, %v1759_v16  ;;  %v17162_v23 = vpack.c.b16 %v1760_v20, %v1760_v20  ;;  %v15847_v13 = vld [vmem:[%s21644_s4 + $0x3d0] sm:$0xff]  ;;  %v15822_v14 = vld [vmem:[%s21644_s4 + $0x308] sm:$0xff] }
 0x131   :  { %v15830_v15 = vld [vmem:[%s21644_s4 + $0x348] sm:$0xff] }
 0x132   :  { %1969 = vmatmul.bf16.vlgmr.msra.gmra.mxu0 %v17156_v17  ;;  %1982 = vmatmul.bf16.vlgmr.msra.gmra.mxu1 %v17158_v21  ;;  %v15838_v16 = vld [vmem:[%s21644_s4 + $0x388] sm:$0xff] }
 0x133   :  { %1995 = vmatmul.bf16.vlgmr.msra.gmra.mxu2 %v17160_v22  ;;  %2008 = vmatmul.bf16.vlgmr.msra.gmra.mxu3 %v17162_v23  ;;  %v15846_v20 = vld [vmem:[%s21644_s4 + $0x3c8] sm:$0xff] }
 0x134   :  { %2449 = vmatpush.bf16.msra.mxu0 %v15796_v18  ;;  %2462 = vmatpush.bf16.msra.mxu1 %v15804_v19  ;;  %v15821_v18 = vld [vmem:[%s21644_s4 + $0x300] sm:$0xff] }
 0x135   :  { %2475 = vmatpush.bf16.msra.mxu2 %v15812_v24  ;;  %2488 = vmatpush.bf16.msra.mxu3 %v15820_v25  ;;  %v15829_v19 = vld [vmem:[%s21644_s4 + $0x340] sm:$0xff] }
 0x136   :  { %v15837_v24 = vld [vmem:[%s21644_s4 + $0x380] sm:$0xff] }
 0x137   :  { %v15845_v25 = vld [vmem:[%s21644_s4 + $0x3c0] sm:$0xff] }
 0x138   :  { %2450 = vmatpush.bf16.msra.mxu0 %v15795_v26  ;;  %2463 = vmatpush.bf16.msra.mxu1 %v15803_v27  ;;  %v15860_v26 = vld [vmem:[%s21644_s4 + $0x438] sm:$0xff] }
 0x139   :  { %2476 = vmatpush.bf16.msra.mxu2 %v15811_v28  ;;  %2489 = vmatpush.bf16.msra.mxu3 %v15819_v29  ;;  %v15868_v27 = vld [vmem:[%s21644_s4 + $0x478] sm:$0xff] }
 0x13a   :  { %v15876_v28 = vld [vmem:[%s21644_s4 + $0x4b8] sm:$0xff] }
 0x13b   :  { %v15884_v29 = vld [vmem:[%s21644_s4 + $0x4f8] sm:$0xff] }
 0x13c   :  { %2451 = vmatpush.bf16.msra.mxu0 %v15794_v30  ;;  %2464 = vmatpush.bf16.msra.mxu1 %v15802_v31  ;;  %v15859_v30 = vld [vmem:[%s21644_s4 + $0x430] sm:$0xff] }
 0x13d   :  { %2477 = vmatpush.bf16.msra.mxu2 %v15810_v32  ;;  %2490 = vmatpush.bf16.msra.mxu3 %v15818_v33  ;;  %v15867_v31 = vld [vmem:[%s21644_s4 + $0x470] sm:$0xff] }
 0x13e   :  { %v15875_v32 = vld [vmem:[%s21644_s4 + $0x4b0] sm:$0xff] }
 0x13f   :  { %v15883_v33 = vld [vmem:[%s21644_s4 + $0x4f0] sm:$0xff] }
 0x140   :  { %2452 = vmatpush.bf16.msra.mxu0 %v15793_v34  ;;  %2465 = vmatpush.bf16.msra.mxu1 %v15801_v35  ;;  %v15858_v34 = vld [vmem:[%s21644_s4 + $0x428] sm:$0xff] }
 0x141   :  { %2478 = vmatpush.bf16.msra.mxu2 %v15809_v36  ;;  %2491 = vmatpush.bf16.msra.mxu3 %v15817_v37  ;;  %v15866_v35 = vld [vmem:[%s21644_s4 + $0x468] sm:$0xff] }
 0x142   :  { %2213 = vmatmul.bf16.vlgmr.msrb.gmra.mxu0 %v17156_v17  ;;  %2226 = vmatmul.bf16.vlgmr.msrb.gmra.mxu1 %v17158_v21  ;;  %v15874_v36 = vld [vmem:[%s21644_s4 + $0x4a8] sm:$0xff] }
 0x143   :  { %2239 = vmatmul.bf16.vlgmr.msrb.gmra.mxu2 %v17160_v22  ;;  %2252 = vmatmul.bf16.vlgmr.msrb.gmra.mxu3 %v17162_v23  ;;  %v15882_v37 = vld [vmem:[%s21644_s4 + $0x4e8] sm:$0xff] }
 0x144   :  { %2453 = vmatpush.bf16.msra.mxu0 %v15792_v38  ;;  %2466 = vmatpush.bf16.msra.mxu1 %v15800_v39  ;;  %v15857_v38 = vld [vmem:[%s21644_s4 + $0x420] sm:$0xff] }
 0x145   :  { %2479 = vmatpush.bf16.msra.mxu2 %v15808_v40  ;;  %2492 = vmatpush.bf16.msra.mxu3 %v15816_v41  ;;  %v15865_v39 = vld [vmem:[%s21644_s4 + $0x460] sm:$0xff] }
 0x146   :  { %v15873_v40 = vld [vmem:[%s21644_s4 + $0x4a0] sm:$0xff] }
 0x147   :  { %v15881_v41 = vld [vmem:[%s21644_s4 + $0x4e0] sm:$0xff] }
 0x148   :  { %2454 = vmatpush.bf16.msra.mxu0 %v15791_v42  ;;  %2467 = vmatpush.bf16.msra.mxu1 %v15799_v43  ;;  %v15856_v42 = vld [vmem:[%s21644_s4 + $0x418] sm:$0xff] }
 0x149   :  { %2480 = vmatpush.bf16.msra.mxu2 %v15807_v44  ;;  %2493 = vmatpush.bf16.msra.mxu3 %v15815_v45  ;;  %v15864_v43 = vld [vmem:[%s21644_s4 + $0x458] sm:$0xff] }
 0x14a   :  { %v15872_v44 = vld [vmem:[%s21644_s4 + $0x498] sm:$0xff] }
 0x14b   :  { %v15880_v45 = vld [vmem:[%s21644_s4 + $0x4d8] sm:$0xff] }
 0x14c   :  { %2455 = vmatpush.bf16.msra.mxu0 %v15790_v46  ;;  %2468 = vmatpush.bf16.msra.mxu1 %v15798_v47  ;;  %v15855_v46 = vld [vmem:[%s21644_s4 + $0x410] sm:$0xff] }
 0x14d   :  { %2481 = vmatpush.bf16.msra.mxu2 %v15806_v48  ;;  %2494 = vmatpush.bf16.msra.mxu3 %v15814_v49  ;;  %v15863_v47 = vld [vmem:[%s21644_s4 + $0x450] sm:$0xff] }
 0x14e   :  { %v15871_v48 = vld [vmem:[%s21644_s4 + $0x490] sm:$0xff] }
 0x14f   :  { %v15879_v49 = vld [vmem:[%s21644_s4 + $0x4d0] sm:$0xff] }
 0x150   :  { %2456 = vmatpush.bf16.msra.mxu0 %v15789_v50  ;;  %2469 = vmatpush.bf16.msra.mxu1 %v15797_v51  ;;  %v15854_v50 = vld [vmem:[%s21644_s4 + $0x408] sm:$0xff] }
 0x151   :  { %2482 = vmatpush.bf16.msra.mxu2 %v15805_v52  ;;  %2495 = vmatpush.bf16.msra.mxu3 %v15813_v53  ;;  %v15862_v51 = vld [vmem:[%s21644_s4 + $0x448] sm:$0xff] }
 0x152   :  { %v15870_v52 = vld [vmem:[%s21644_s4 + $0x488] sm:$0xff] }
 0x153   :  { %2457 = vmatmul.bf16.vlgmr.msra.gmra.mxu0 %v17156_v17  ;;  %2470 = vmatmul.bf16.vlgmr.msra.gmra.mxu1 %v17158_v21  ;;  %v15878_v53 = vld [vmem:[%s21644_s4 + $0x4c8] sm:$0xff] }
 0x154   :  { %2693 = vmatpush.bf16.msrb.mxu0 %v15828_v54  ;;  %2706 = vmatpush.bf16.msrb.mxu1 %v15836_v55  ;;  %v15853_v54 = vld [vmem:[%s21644_s4 + $0x400] sm:$0xff] }
 0x155   :  { %2719 = vmatpush.bf16.msrb.mxu2 %v15844_v56  ;;  %2732 = vmatpush.bf16.msrb.mxu3 %v15852_v57  ;;  %v15861_v55 = vld [vmem:[%s21644_s4 + $0x440] sm:$0xff] }
 0x156   :  { %2483 = vmatmul.bf16.vlgmr.msra.gmra.mxu2 %v17160_v22  ;;  %2496 = vmatmul.bf16.vlgmr.msra.gmra.mxu3 %v17162_v23  ;;  %v15869_v56 = vld [vmem:[%s21644_s4 + $0x480] sm:$0xff] }
 0x157   :  { %v15877_v57 = vld [vmem:[%s21644_s4 + $0x4c0] sm:$0xff] }
 0x158   :  { %2694 = vmatpush.bf16.msrb.mxu0 %v15827_v58  ;;  %2707 = vmatpush.bf16.msrb.mxu1 %v15835_v59  ;;  %v15892_v58 = vld [vmem:[%s21644_s4 + $0x538] sm:$0xff] }
 0x159   :  { %2720 = vmatpush.bf16.msrb.mxu2 %v15843_v60  ;;  %2733 = vmatpush.bf16.msrb.mxu3 %v15851_v61  ;;  %v15900_v59 = vld [vmem:[%s21644_s4 + $0x578] sm:$0xff] }
 0x15a   :  { %v15908_v60 = vld [vmem:[%s21644_s4 + $0x5b8] sm:$0xff] }
 0x15b   :  { %v15916_v61 = vld [vmem:[%s21644_s4 + $0x5f8] sm:$0xff] }
 0x15c   :  { %2695 = vmatpush.bf16.msrb.mxu0 %v15826_v62  ;;  %2708 = vmatpush.bf16.msrb.mxu1 %v15834_v63  ;;  %v15891_v62 = vld [vmem:[%s21644_s4 + $0x530] sm:$0xff] }
 0x15d   :  { %2721 = vmatpush.bf16.msrb.mxu2 %v15842_v0  ;;  %2734 = vmatpush.bf16.msrb.mxu3 %v15850_v1  ;;  %v15899_v63 = vld [vmem:[%s21644_s4 + $0x570] sm:$0xff] }
 0x15e   :  { %v15907_v0 = vld [vmem:[%s21644_s4 + $0x5b0] sm:$0xff] }
 0x15f   :  { %v15915_v1 = vld [vmem:[%s21644_s4 + $0x5f0] sm:$0xff] }
 0x160   :  { %2696 = vmatpush.bf16.msrb.mxu0 %v15825_v2  ;;  %2709 = vmatpush.bf16.msrb.mxu1 %v15833_v3  ;;  %v15890_v2 = vld [vmem:[%s21644_s4 + $0x528] sm:$0xff] }
 0x161   :  { %2722 = vmatpush.bf16.msrb.mxu2 %v15841_v4  ;;  %2735 = vmatpush.bf16.msrb.mxu3 %v15849_v5  ;;  %v15898_v3 = vld [vmem:[%s21644_s4 + $0x568] sm:$0xff] }
 0x162   :  { %v15906_v4 = vld [vmem:[%s21644_s4 + $0x5a8] sm:$0xff] }
 0x163   :  { %v15914_v5 = vld [vmem:[%s21644_s4 + $0x5e8] sm:$0xff] }
 0x164   :  { %2697 = vmatpush.bf16.msrb.mxu0 %v15824_v6  ;;  %2710 = vmatpush.bf16.msrb.mxu1 %v15832_v7  ;;  %v15889_v6 = vld [vmem:[%s21644_s4 + $0x520] sm:$0xff] }
 0x165   :  { %2723 = vmatpush.bf16.msrb.mxu2 %v15840_v8  ;;  %2736 = vmatpush.bf16.msrb.mxu3 %v15848_v9  ;;  %v15897_v7 = vld [vmem:[%s21644_s4 + $0x560] sm:$0xff] }
 0x166   :  { %v15905_v8 = vld [vmem:[%s21644_s4 + $0x5a0] sm:$0xff] }
 0x167   :  { %v15913_v9 = vld [vmem:[%s21644_s4 + $0x5e0] sm:$0xff] }
 0x168   :  { %2698 = vmatpush.bf16.msrb.mxu0 %v15823_v10  ;;  %2711 = vmatpush.bf16.msrb.mxu1 %v15831_v11  ;;  %v15888_v10 = vld [vmem:[%s21644_s4 + $0x518] sm:$0xff] }
 0x169   :  { %2724 = vmatpush.bf16.msrb.mxu2 %v15839_v12  ;;  %2737 = vmatpush.bf16.msrb.mxu3 %v15847_v13  ;;  %v15896_v11 = vld [vmem:[%s21644_s4 + $0x558] sm:$0xff] }
 0x16a   :  { %v15904_v12 = vld [vmem:[%s21644_s4 + $0x598] sm:$0xff] }
 0x16b   :  { %v15912_v13 = vld [vmem:[%s21644_s4 + $0x5d8] sm:$0xff] }
 0x16c   :  { %2699 = vmatpush.bf16.msrb.mxu0 %v15822_v14  ;;  %2712 = vmatpush.bf16.msrb.mxu1 %v15830_v15  ;;  %v15887_v14 = vld [vmem:[%s21644_s4 + $0x510] sm:$0xff] }
 0x16d   :  { %2725 = vmatpush.bf16.msrb.mxu2 %v15838_v16  ;;  %2738 = vmatpush.bf16.msrb.mxu3 %v15846_v20  ;;  %v15895_v15 = vld [vmem:[%s21644_s4 + $0x550] sm:$0xff] }
 0x16e   :  { %v15903_v16 = vld [vmem:[%s21644_s4 + $0x590] sm:$0xff] }
 0x16f   :  { %v15911_v20 = vld [vmem:[%s21644_s4 + $0x5d0] sm:$0xff] }
 0x170   :  { %2700 = vmatpush.bf16.msrb.mxu0 %v15821_v18  ;;  %2713 = vmatpush.bf16.msrb.mxu1 %v15829_v19  ;;  %v15886_v18 = vld [vmem:[%s21644_s4 + $0x508] sm:$0xff] }
 0x171   :  { %2726 = vmatpush.bf16.msrb.mxu2 %v15837_v24  ;;  %2739 = vmatpush.bf16.msrb.mxu3 %v15845_v25  ;;  %v15894_v19 = vld [vmem:[%s21644_s4 + $0x548] sm:$0xff] }
 0x172   :  { %v15902_v24 = vld [vmem:[%s21644_s4 + $0x588] sm:$0xff] }
 0x173   :  { %2701 = vmatmul.bf16.vlgmr.msrb.gmra.mxu0 %v17156_v17  ;;  %2714 = vmatmul.bf16.vlgmr.msrb.gmra.mxu1 %v17158_v21  ;;  %v15910_v25 = vld [vmem:[%s21644_s4 + $0x5c8] sm:$0xff] }
 0x174   :  { %2937 = vmatpush.bf16.msra.mxu0 %v15860_v26  ;;  %2950 = vmatpush.bf16.msra.mxu1 %v15868_v27  ;;  %v15885_v26 = vld [vmem:[%s21644_s4 + $0x500] sm:$0xff] }
 0x175   :  { %2963 = vmatpush.bf16.msra.mxu2 %v15876_v28  ;;  %2976 = vmatpush.bf16.msra.mxu3 %v15884_v29  ;;  %v15893_v27 = vld [vmem:[%s21644_s4 + $0x540] sm:$0xff] }
 0x176   :  { %2727 = vmatmul.bf16.vlgmr.msrb.gmra.mxu2 %v17160_v22  ;;  %2740 = vmatmul.bf16.vlgmr.msrb.gmra.mxu3 %v17162_v23  ;;  %v15901_v28 = vld [vmem:[%s21644_s4 + $0x580] sm:$0xff] }
 0x177   :  { %v15909_v29 = vld [vmem:[%s21644_s4 + $0x5c0] sm:$0xff] }
 0x178   :  { %2938 = vmatpush.bf16.msra.mxu0 %v15859_v30  ;;  %2951 = vmatpush.bf16.msra.mxu1 %v15867_v31  ;;  %v15924_v30 = vld [vmem:[%s21644_s4 + $0x638] sm:$0xff] }
 0x179   :  { %2964 = vmatpush.bf16.msra.mxu2 %v15875_v32  ;;  %2977 = vmatpush.bf16.msra.mxu3 %v15883_v33  ;;  %v15932_v31 = vld [vmem:[%s21644_s4 + $0x678] sm:$0xff] }
 0x17a   :  { %v15940_v32 = vld [vmem:[%s21644_s4 + $0x6b8] sm:$0xff] }
 0x17b   :  { %v15948_v33 = vld [vmem:[%s21644_s4 + $0x6f8] sm:$0xff] }
 0x17c   :  { %2939 = vmatpush.bf16.msra.mxu0 %v15858_v34  ;;  %2952 = vmatpush.bf16.msra.mxu1 %v15866_v35  ;;  %v15923_v34 = vld [vmem:[%s21644_s4 + $0x630] sm:$0xff] }
 0x17d   :  { %2965 = vmatpush.bf16.msra.mxu2 %v15874_v36  ;;  %2978 = vmatpush.bf16.msra.mxu3 %v15882_v37  ;;  %v15931_v35 = vld [vmem:[%s21644_s4 + $0x670] sm:$0xff]  ;;  %v16751_v36 = vld [vmem:[%s21645_s5] ss:$0 sm:$0xff] }
 0x17e   :  { %v15939_v37 = vld [vmem:[%s21644_s4 + $0x6b0] sm:$0xff] }
 0x180   :  { %2940 = vmatpush.bf16.msra.mxu0 %v15857_v38  ;;  %2953 = vmatpush.bf16.msra.mxu1 %v15865_v39  ;;  %v15947_v38 = vld [vmem:[%s21644_s4 + $0x6f0] sm:$0xff] }
 0x181   :  { %2966 = vmatpush.bf16.msra.mxu2 %v15873_v40  ;;  %2979 = vmatpush.bf16.msra.mxu3 %v15881_v41  ;;  %v15922_v41 = vld [vmem:[%s21644_s4 + $0x628] sm:$0xff] }
 0x184   :  { %2941 = vmatpush.bf16.msra.mxu0 %v15856_v42  ;;  %2954 = vmatpush.bf16.msra.mxu1 %v15864_v43  ;;  %v15930_v42 = vld [vmem:[%s21644_s4 + $0x668] sm:$0xff] }
 0x185   :  { %2967 = vmatpush.bf16.msra.mxu2 %v15872_v44  ;;  %2980 = vmatpush.bf16.msra.mxu3 %v15880_v45  ;;  %v15938_v44 = vld [vmem:[%s21644_s4 + $0x6a8] sm:$0xff] }
 0x186   :  { %v15946_v45 = vld [vmem:[%s21644_s4 + $0x6e8] sm:$0xff] }
 0x188   :  { %2942 = vmatpush.bf16.msra.mxu0 %v15855_v46  ;;  %2955 = vmatpush.bf16.msra.mxu1 %v15863_v47  ;;  %v15921_v47 = vld [vmem:[%s21644_s4 + $0x620] sm:$0xff] }
 0x189   :  { %2968 = vmatpush.bf16.msra.mxu2 %v15871_v48  ;;  %2981 = vmatpush.bf16.msra.mxu3 %v15879_v49  ;;  %v15929_v48 = vld [vmem:[%s21644_s4 + $0x660] sm:$0xff] }
 0x18a   :  { %v15937_v49 = vld [vmem:[%s21644_s4 + $0x6a0] sm:$0xff] }
 0x18c   :  { %2943 = vmatpush.bf16.msra.mxu0 %v15854_v50  ;;  %2956 = vmatpush.bf16.msra.mxu1 %v15862_v51  ;;  %v15945_v50 = vld [vmem:[%s21644_s4 + $0x6e0] sm:$0xff] }
 0x18d   :  { %2969 = vmatpush.bf16.msra.mxu2 %v15870_v52  ;;  %2982 = vmatpush.bf16.msra.mxu3 %v15878_v53 }
 0x190   :  { %2944 = vmatpush.bf16.msra.mxu0 %v15853_v54  ;;  %2957 = vmatpush.bf16.msra.mxu1 %v15861_v55 }
 0x191   :  { %2970 = vmatpush.bf16.msra.mxu2 %v15869_v56  ;;  %2983 = vmatpush.bf16.msra.mxu3 %v15877_v57  ;;  %v15920_v56 = vld [vmem:[%s21644_s4 + $0x618] sm:$0xff] }
 0x192   :  { %v15928_v57 = vld [vmem:[%s21644_s4 + $0x658] sm:$0xff] }
 0x193   :  { %2945 = vmatmul.bf16.vlgmr.msra.gmra.mxu0 %v17156_v17  ;;  %2958 = vmatmul.bf16.vlgmr.msra.gmra.mxu1 %v17158_v21 }
 0x194   :  { %3181 = vmatpush.bf16.msrb.mxu0 %v15892_v58  ;;  %3194 = vmatpush.bf16.msrb.mxu1 %v15900_v59  ;;  %v15936_v59 = vld [vmem:[%s21644_s4 + $0x698] sm:$0xff] }
 0x195   :  { %3207 = vmatpush.bf16.msrb.mxu2 %v15908_v60  ;;  %3220 = vmatpush.bf16.msrb.mxu3 %v15916_v61  ;;  %v15944_v60 = vld [vmem:[%s21644_s4 + $0x6d8] sm:$0xff]  ;;  %v15919_v61 = vld [vmem:[%s21644_s4 + $0x610] sm:$0xff] }
 0x196   :  { %2971 = vmatmul.bf16.vlgmr.msra.gmra.mxu2 %v17160_v22  ;;  %2984 = vmatmul.bf16.vlgmr.msra.gmra.mxu3 %v17162_v23 }
 0x198   :  { %3182 = vmatpush.bf16.msrb.mxu0 %v15891_v62  ;;  %3195 = vmatpush.bf16.msrb.mxu1 %v15899_v63  ;;  %v15927_v62 = vld [vmem:[%s21644_s4 + $0x650] sm:$0xff]  ;;  %v16752_v63 = vld [vmem:[%s21645_s5 + $0x1] ss:$0 sm:$0xff] }
 0x199   :  { %3208 = vmatpush.bf16.msrb.mxu2 %v15907_v0  ;;  %3221 = vmatpush.bf16.msrb.mxu3 %v15915_v1  ;;  %v15935_v0 = vld [vmem:[%s21644_s4 + $0x690] sm:$0xff] }
 0x19a   :  { %v15943_v1 = vld [vmem:[%s21644_s4 + $0x6d0] sm:$0xff] }
 0x19c   :  { %3183 = vmatpush.bf16.msrb.mxu0 %v15890_v2  ;;  %3196 = vmatpush.bf16.msrb.mxu1 %v15898_v3 }
 0x19d   :  { %3209 = vmatpush.bf16.msrb.mxu2 %v15906_v4  ;;  %3222 = vmatpush.bf16.msrb.mxu3 %v15914_v5 }
 0x1a0   :  { %3184 = vmatpush.bf16.msrb.mxu0 %v15889_v6  ;;  %3197 = vmatpush.bf16.msrb.mxu1 %v15897_v7  ;;  %v15918_v6 = vld [vmem:[%s21644_s4 + $0x608] sm:$0xff] }
 0x1a1   :  { %3210 = vmatpush.bf16.msrb.mxu2 %v15905_v8  ;;  %3223 = vmatpush.bf16.msrb.mxu3 %v15913_v9  ;;  %v15926_v7 = vld [vmem:[%s21644_s4 + $0x648] sm:$0xff] }
 0x1a2   :  { %v15934_v9 = vld [vmem:[%s21644_s4 + $0x688] sm:$0xff] }
 0x1a4   :  { %3185 = vmatpush.bf16.msrb.mxu0 %v15888_v10  ;;  %3198 = vmatpush.bf16.msrb.mxu1 %v15896_v11  ;;  %v15942_v10 = vld [vmem:[%s21644_s4 + $0x6c8] sm:$0xff] }
 0x1a5   :  { %3211 = vmatpush.bf16.msrb.mxu2 %v15904_v12  ;;  %3224 = vmatpush.bf16.msrb.mxu3 %v15912_v13  ;;  %v15917_v12 = vld [vmem:[%s21644_s4 + $0x600] sm:$0xff] }
 0x1a6   :  { %v15925_v13 = vld [vmem:[%s21644_s4 + $0x640] sm:$0xff] }
 0x1a8   :  { %3186 = vmatpush.bf16.msrb.mxu0 %v15887_v14  ;;  %3199 = vmatpush.bf16.msrb.mxu1 %v15895_v15  ;;  %v15933_v14 = vld [vmem:[%s21644_s4 + $0x680] sm:$0xff] }
 0x1a9   :  { %3212 = vmatpush.bf16.msrb.mxu2 %v15903_v16  ;;  %3225 = vmatpush.bf16.msrb.mxu3 %v15911_v20  ;;  %v15941_v15 = vld [vmem:[%s21644_s4 + $0x6c0] sm:$0xff]  ;;  %v15956_v16 = vld [vmem:[%s21644_s4 + $0x738] sm:$0xff] }
 0x1aa   :  { %v15964_v20 = vld [vmem:[%s21644_s4 + $0x778] sm:$0xff] }
 0x1ac   :  { %3187 = vmatpush.bf16.msrb.mxu0 %v15886_v18  ;;  %3200 = vmatpush.bf16.msrb.mxu1 %v15894_v19 }
 0x1ad   :  { %3213 = vmatpush.bf16.msrb.mxu2 %v15902_v24  ;;  %3226 = vmatpush.bf16.msrb.mxu3 %v15910_v25  ;;  %v15972_v24 = vld [vmem:[%s21644_s4 + $0x7b8] sm:$0xff] }
 0x1ae   :  { %v15980_v25 = vld [vmem:[%s21644_s4 + $0x7f8] sm:$0xff] }
 0x1af   :  { %v1970_v39 = vpop.f32.mrf.mxu0  ;;  %v1983_v40 = vpop.f32.mrf.mxu1 }
 0x1b0   :  { %3188 = vmatpush.bf16.msrb.mxu0 %v15885_v26  ;;  %3201 = vmatpush.bf16.msrb.mxu1 %v15893_v27  ;;  %v1971_v43 = vadd.f32 %v16751_v36, %v1970_v39  ;;  %v15970_v39 = vld [vmem:[%s21644_s4 + $0x7a8] sm:$0xff] }
 0x1b1   :  { %3214 = vmatpush.bf16.msrb.mxu2 %v15901_v28  ;;  %3227 = vmatpush.bf16.msrb.mxu3 %v15909_v29 }
 0x1b2   :  { %v1984_v46 = vadd.f32 %v1983_v40, %v1971_v43  ;;  %v15978_v40 = vld [vmem:[%s21644_s4 + $0x7e8] sm:$0xff] }
 0x1b3   :  { %3189 = vmatmul.bf16.vlgmr.msrb.gmra.mxu0 %v17156_v17  ;;  %3202 = vmatmul.bf16.vlgmr.msrb.gmra.mxu1 %v17158_v21 }
 0x1b4   :  { %3425 = vmatpush.bf16.msra.mxu0 %v15924_v30  ;;  %3438 = vmatpush.bf16.msra.mxu1 %v15932_v31  ;;  %v15955_v30 = vld [vmem:[%s21644_s4 + $0x730] sm:$0xff] }
 0x1b5   :  { %3451 = vmatpush.bf16.msra.mxu2 %v15940_v32  ;;  %3464 = vmatpush.bf16.msra.mxu3 %v15948_v33  ;;  %v15963_v31 = vld [vmem:[%s21644_s4 + $0x770] sm:$0xff] }
 0x1b6   :  { %3215 = vmatmul.bf16.vlgmr.msrb.gmra.mxu2 %v17160_v22  ;;  %3228 = vmatmul.bf16.vlgmr.msrb.gmra.mxu3 %v17162_v23  ;;  %v1996_v51 = vpop.f32.mrf.mxu2  ;;  %v2009_v52 = vpop.f32.mrf.mxu3  ;;  %v15971_v32 = vld [vmem:[%s21644_s4 + $0x7b0] sm:$0xff] }
 0x1b7   :  { %v1997_v53 = vadd.f32 %v1996_v51, %v1984_v46  ;;  %v1972_v54 = vpop.f32.mrf.mxu0  ;;  %v1985_v55 = vpop.f32.mrf.mxu1  ;;  %v15979_v33 = vld [vmem:[%s21644_s4 + $0x7f0] sm:$0xff]  ;;  %v15969_v46 = vld [vmem:[%s21644_s4 + $0x7a0] sm:$0xff]  ;;  %v15968_v51 = vld [vmem:[%s21644_s4 + $0x798] sm:$0xff] }
 0x1b8   :  { %3426 = vmatpush.bf16.msra.mxu0 %v15923_v34  ;;  %3439 = vmatpush.bf16.msra.mxu1 %v15931_v35  ;;  %v15954_v34 = vld [vmem:[%s21644_s4 + $0x728] sm:$0xff] }
 0x1b9   :  { %3452 = vmatpush.bf16.msra.mxu2 %v15939_v37  ;;  %3465 = vmatpush.bf16.msra.mxu3 %v15947_v38  ;;  %v17629_v58 = vadd.f32 %v2009_v52, %v1997_v53  ;;  %v15962_v35 = vld [vmem:[%s21644_s4 + $0x768] sm:$0xff]  ;;  %v16753_v38 = vld [vmem:[%s21645_s5 + $0x2] ss:$0 sm:$0xff]  ;;  %v15976_v52 = vld [vmem:[%s21644_s4 + $0x7d8] sm:$0xff] }
 0x1bc   :  { %3427 = vmatpush.bf16.msra.mxu0 %v15922_v41  ;;  %3440 = vmatpush.bf16.msra.mxu1 %v15930_v42 }
 0x1bd   :  { %3453 = vmatpush.bf16.msra.mxu2 %v15938_v44  ;;  %3466 = vmatpush.bf16.msra.mxu3 %v15946_v45  ;;  %v15953_v44 = vld [vmem:[%s21644_s4 + $0x720] sm:$0xff] }
 0x1be   :  { %v1998_v2 = vpop.f32.mrf.mxu2  ;;  %v2011_v3 = vpop.f32.mrf.mxu3  ;;  %v15961_v45 = vld [vmem:[%s21644_s4 + $0x760] sm:$0xff] }
 0x1bf   :  { %v2214_v4 = vpop.f32.mrf.mxu0  ;;  %v2227_v5 = vpop.f32.mrf.mxu1  ;;  %v15966_v2 = vld [vmem:[%s21644_s4 + $0x788] sm:$0xff] }
 0x1c0   :  { %3428 = vmatpush.bf16.msra.mxu0 %v15921_v47  ;;  %3441 = vmatpush.bf16.msra.mxu1 %v15929_v48  ;;  %v2215_v8 = vadd.f32 %v16752_v63, %v2214_v4  ;;  %v15977_v47 = vld [vmem:[%s21644_s4 + $0x7e0] sm:$0xff]  ;;  %v15975_v63 = vld [vmem:[%s21644_s4 + $0x7d0] sm:$0xff]  ;;  %v15974_v3 = vld [vmem:[%s21644_s4 + $0x7c8] sm:$0xff] }
 0x1c1   :  { %3454 = vmatpush.bf16.msra.mxu2 %v15937_v49  ;;  %3467 = vmatpush.bf16.msra.mxu3 %v15945_v50  ;;  %v15952_v49 = vld [vmem:[%s21644_s4 + $0x718] sm:$0xff] }
 0x1c2   :  { %v2228_v11 = vadd.f32 %v2227_v5, %v2215_v8  ;;  %v15960_v50 = vld [vmem:[%s21644_s4 + $0x758] sm:$0xff]  ;;  %v15965_v8 = vld [vmem:[%s21644_s4 + $0x780] sm:$0xff] }
 0x1c4   :  { %3429 = vmatpush.bf16.msra.mxu0 %v15920_v56  ;;  %3442 = vmatpush.bf16.msra.mxu1 %v15928_v57 }
 0x1c5   :  { %3455 = vmatpush.bf16.msra.mxu2 %v15936_v59  ;;  %3468 = vmatpush.bf16.msra.mxu3 %v15944_v60  ;;  %v15951_v59 = vld [vmem:[%s21644_s4 + $0x710] sm:$0xff] }
 0x1c6   :  { %v2240_v18 = vpop.f32.mrf.mxu2  ;;  %v2253_v19 = vpop.f32.mrf.mxu3  ;;  %v15959_v60 = vld [vmem:[%s21644_s4 + $0x750] sm:$0xff] }
 0x1c7   :  { %v2241_v26 = vadd.f32 %v2240_v18, %v2228_v11  ;;  %v2216_v27 = vpop.f32.mrf.mxu0  ;;  %v2229_v28 = vpop.f32.mrf.mxu1  ;;  %v15996_v11 = vld [vmem:[%s21644_s4 + $0x878] sm:$0xff]  ;;  %v15986_v18 = vld [vmem:[%s21644_s4 + $0x828] sm:$0xff] }
 0x1c8   :  { %3430 = vmatpush.bf16.msra.mxu0 %v15919_v61  ;;  %3443 = vmatpush.bf16.msra.mxu1 %v15927_v62  ;;  %v15967_v62 = vld [vmem:[%s21644_s4 + $0x790] sm:$0xff] }
 0x1c9   :  { %3456 = vmatpush.bf16.msra.mxu2 %v15935_v0  ;;  %3469 = vmatpush.bf16.msra.mxu3 %v15943_v1  ;;  %v17688_v29 = vadd.f32 %v2253_v19, %v2241_v26  ;;  %v15950_v0 = vld [vmem:[%s21644_s4 + $0x708] sm:$0xff] }
 0x1ca   :  { %v15958_v1 = vld [vmem:[%s21644_s4 + $0x748] sm:$0xff] }
 0x1cb   :  { %v15994_v19 = vld [vmem:[%s21644_s4 + $0x868] sm:$0xff] }
 0x1cc   :  { %3431 = vmatpush.bf16.msra.mxu0 %v15918_v6  ;;  %3444 = vmatpush.bf16.msra.mxu1 %v15926_v7  ;;  %v15949_v6 = vld [vmem:[%s21644_s4 + $0x700] sm:$0xff]  ;;  %v16010_v26 = vld [vmem:[%s21644_s4 + $0x8e8] sm:$0xff] }
 0x1cd   :  { %3457 = vmatpush.bf16.msra.mxu2 %v15934_v9  ;;  %3470 = vmatpush.bf16.msra.mxu3 %v15942_v10  ;;  %v15957_v7 = vld [vmem:[%s21644_s4 + $0x740] sm:$0xff]  ;;  %v15988_v10 = vld [vmem:[%s21644_s4 + $0x838] sm:$0xff] }
 0x1ce   :  { %v2242_v36 = vpop.f32.mrf.mxu2  ;;  %v2255_v37 = vpop.f32.mrf.mxu3  ;;  %v15973_v9 = vld [vmem:[%s21644_s4 + $0x7c0] sm:$0xff] }
 0x1cf   :  { %v15984_v36 = vld [vmem:[%s21644_s4 + $0x818] sm:$0xff] }
 0x1d0   :  { %3432 = vmatpush.bf16.msra.mxu0 %v15917_v12  ;;  %3445 = vmatpush.bf16.msra.mxu1 %v15925_v13  ;;  %v2458_v41 = vpop.f32.mrf.mxu0  ;;  %v2471_v42 = vpop.f32.mrf.mxu1  ;;  %v16004_v12 = vld [vmem:[%s21644_s4 + $0x8b8] sm:$0xff] }
 0x1d1   :  { %3458 = vmatpush.bf16.msra.mxu2 %v15933_v14  ;;  %3471 = vmatpush.bf16.msra.mxu3 %v15941_v15  ;;  %v2459_v43 = vadd.f32 %v16753_v38, %v2458_v41  ;;  %v16012_v13 = vld [vmem:[%s21644_s4 + $0x8f8] sm:$0xff]  ;;  %v15987_v14 = vld [vmem:[%s21644_s4 + $0x830] sm:$0xff] }
 0x1d2   :  { %v15995_v15 = vld [vmem:[%s21644_s4 + $0x870] sm:$0xff]  ;;  %v15992_v37 = vld [vmem:[%s21644_s4 + $0x858] sm:$0xff] }
 0x1d3   :  { %3433 = vmatmul.bf16.vlgmr.msra.gmra.mxu0 %v17156_v17  ;;  %3446 = vmatmul.bf16.vlgmr.msra.gmra.mxu1 %v17158_v21  ;;  %v2472_v48 = vadd.f32 %v2471_v42, %v2459_v43  ;;  %v16000_v38 = vld [vmem:[%s21644_s4 + $0x898] sm:$0xff] }
 0x1d4   :  { %3669 = vmatpush.bf16.msrb.mxu0 %v15956_v16  ;;  %3682 = vmatpush.bf16.msrb.mxu1 %v15964_v20  ;;  %v16003_v16 = vld [vmem:[%s21644_s4 + $0x8b0] sm:$0xff] }
 0x1d5   :  { %3695 = vmatpush.bf16.msrb.mxu2 %v15972_v24  ;;  %3708 = vmatpush.bf16.msrb.mxu3 %v15980_v25  ;;  %v16011_v20 = vld [vmem:[%s21644_s4 + $0x8f0] sm:$0xff]  ;;  %v16754_v24 = vld [vmem:[%s21645_s5 + $0x3] ss:$0 sm:$0xff]  ;;  %v16002_v25 = vld [vmem:[%s21644_s4 + $0x8a8] sm:$0xff] }
 0x1d6   :  { %3459 = vmatmul.bf16.vlgmr.msra.gmra.mxu2 %v17160_v22  ;;  %3472 = vmatmul.bf16.vlgmr.msra.gmra.mxu3 %v17162_v23 }
 0x1d8   :  { %3670 = vmatpush.bf16.msrb.mxu0 %v15955_v30  ;;  %3683 = vmatpush.bf16.msrb.mxu1 %v15963_v31  ;;  %v2460_v56 = vpop.f32.mrf.mxu0  ;;  %v2473_v57 = vpop.f32.mrf.mxu1  ;;  %v15985_v31 = vld [vmem:[%s21644_s4 + $0x820] sm:$0xff] }
 0x1d9   :  { %3696 = vmatpush.bf16.msrb.mxu2 %v15971_v32  ;;  %3709 = vmatpush.bf16.msrb.mxu3 %v15979_v33  ;;  %v2484_v53 = vpop.f32.mrf.mxu2  ;;  %v2497_v54 = vpop.f32.mrf.mxu3  ;;  %v15993_v32 = vld [vmem:[%s21644_s4 + $0x860] sm:$0xff] }
 0x1da   :  { %v2485_v55 = vadd.f32 %v2484_v53, %v2472_v48  ;;  %v16001_v33 = vld [vmem:[%s21644_s4 + $0x8a0] sm:$0xff]  ;;  %v15999_v48 = vld [vmem:[%s21644_s4 + $0x890] sm:$0xff]  ;;  %v16006_v53 = vld [vmem:[%s21644_s4 + $0x8c8] sm:$0xff] }
 0x1db   :  { %v15981_v56 = vld [vmem:[%s21644_s4 + $0x800] sm:$0xff] }
 0x1dc   :  { %3671 = vmatpush.bf16.msrb.mxu0 %v15954_v34  ;;  %3684 = vmatpush.bf16.msrb.mxu1 %v15962_v35  ;;  %v17751_v61 = vadd.f32 %v2497_v54, %v2485_v55  ;;  %v16009_v34 = vld [vmem:[%s21644_s4 + $0x8e0] sm:$0xff] }
 0x1dd   :  { %3697 = vmatpush.bf16.msrb.mxu2 %v15970_v39  ;;  %3710 = vmatpush.bf16.msrb.mxu3 %v15978_v40  ;;  %v16008_v39 = vld [vmem:[%s21644_s4 + $0x8d8] sm:$0xff]  ;;  %v15989_v57 = vld [vmem:[%s21644_s4 + $0x840] sm:$0xff] }
 0x1e0   :  { %3672 = vmatpush.bf16.msrb.mxu0 %v15953_v44  ;;  %3685 = vmatpush.bf16.msrb.mxu1 %v15961_v45  ;;  %v15983_v45 = vld [vmem:[%s21644_s4 + $0x810] sm:$0xff] }
 0x1e1   :  { %3698 = vmatpush.bf16.msrb.mxu2 %v15969_v46  ;;  %3711 = vmatpush.bf16.msrb.mxu3 %v15977_v47  ;;  %v2486_v4 = vpop.f32.mrf.mxu2  ;;  %v2499_v5 = vpop.f32.mrf.mxu3  ;;  %v15991_v46 = vld [vmem:[%s21644_s4 + $0x850] sm:$0xff] }
 0x1e2   :  { %v16035_v4 = vld [vmem:[%s21644_s4 + $0x9b0] sm:$0xff] }
 0x1e3   :  { %v16043_v5 = vld [vmem:[%s21644_s4 + $0x9f0] sm:$0xff] }
 0x1e4   :  { %3673 = vmatpush.bf16.msrb.mxu0 %v15952_v49  ;;  %3686 = vmatpush.bf16.msrb.mxu1 %v15960_v50  ;;  %v16007_v49 = vld [vmem:[%s21644_s4 + $0x8d0] sm:$0xff]  ;;  %v15982_v50 = vld [vmem:[%s21644_s4 + $0x808] sm:$0xff] }
 0x1e5   :  { %3699 = vmatpush.bf16.msrb.mxu2 %v15968_v51  ;;  %3712 = vmatpush.bf16.msrb.mxu3 %v15976_v52  ;;  %v15990_v51 = vld [vmem:[%s21644_s4 + $0x848] sm:$0xff] }
 0x1e6   :  { %v15998_v52 = vld [vmem:[%s21644_s4 + $0x888] sm:$0xff] }
 0x1e8   :  { %3674 = vmatpush.bf16.msrb.mxu0 %v15951_v59  ;;  %3687 = vmatpush.bf16.msrb.mxu1 %v15959_v60  ;;  %v15997_v59 = vld [vmem:[%s21644_s4 + $0x880] sm:$0xff] }
 0x1e9   :  { %3700 = vmatpush.bf16.msrb.mxu2 %v15967_v62  ;;  %3713 = vmatpush.bf16.msrb.mxu3 %v15975_v63  ;;  %v16005_v60 = vld [vmem:[%s21644_s4 + $0x8c0] sm:$0xff]  ;;  %v16020_v62 = vld [vmem:[%s21644_s4 + $0x938] sm:$0xff] }
 0x1ea   :  { %v16028_v63 = vld [vmem:[%s21644_s4 + $0x978] sm:$0xff] }
 0x1ec   :  { %3675 = vmatpush.bf16.msrb.mxu0 %v15950_v0  ;;  %3688 = vmatpush.bf16.msrb.mxu1 %v15958_v1  ;;  %v16036_v0 = vld [vmem:[%s21644_s4 + $0x9b8] sm:$0xff] }
 0x1ed   :  { %3701 = vmatpush.bf16.msrb.mxu2 %v15966_v2  ;;  %3714 = vmatpush.bf16.msrb.mxu3 %v15974_v3  ;;  %v16044_v1 = vld [vmem:[%s21644_s4 + $0x9f8] sm:$0xff]  ;;  %v16019_v2 = vld [vmem:[%s21644_s4 + $0x930] sm:$0xff] }
 0x1ee   :  { %v16027_v3 = vld [vmem:[%s21644_s4 + $0x970] sm:$0xff] }
 0x1f0   :  { %3676 = vmatpush.bf16.msrb.mxu0 %v15949_v6  ;;  %3689 = vmatpush.bf16.msrb.mxu1 %v15957_v7  ;;  %v2702_v27 = vpop.f32.mrf.mxu0  ;;  %v2715_v28 = vpop.f32.mrf.mxu1  ;;  %v16018_v6 = vld [vmem:[%s21644_s4 + $0x928] sm:$0xff] }
 0x1f1   :  { %3702 = vmatpush.bf16.msrb.mxu2 %v15965_v8  ;;  %3715 = vmatpush.bf16.msrb.mxu3 %v15973_v9  ;;  %v2703_v30 = vadd.f32 %v16754_v24, %v2702_v27  ;;  %v16026_v7 = vld [vmem:[%s21644_s4 + $0x968] sm:$0xff]  ;;  %v16755_v8 = vld [vmem:[%s21645_s5 + $0x4] ss:$0 sm:$0xff]  ;;  %v16024_v24 = vld [vmem:[%s21644_s4 + $0x958] sm:$0xff] }
 0x1f2   :  { %v16034_v9 = vld [vmem:[%s21644_s4 + $0x9a8] sm:$0xff] }
 0x1f3   :  { %3677 = vmatmul.bf16.vlgmr.msrb.gmra.mxu0 %v17156_v17  ;;  %3690 = vmatmul.bf16.vlgmr.msrb.gmra.mxu1 %v17158_v21  ;;  %v2716_v35 = vadd.f32 %v2715_v28, %v2703_v30 }
 0x1f4   :  { %3913 = vmatpush.bf16.msra.mxu0 %v15988_v10  ;;  %3926 = vmatpush.bf16.msra.mxu1 %v15996_v11  ;;  %v16042_v10 = vld [vmem:[%s21644_s4 + $0x9e8] sm:$0xff] }
 0x1f5   :  { %3939 = vmatpush.bf16.msra.mxu2 %v16004_v12  ;;  %3952 = vmatpush.bf16.msra.mxu3 %v16012_v13 }
 0x1f6   :  { %3703 = vmatmul.bf16.vlgmr.msrb.gmra.mxu2 %v17160_v22  ;;  %3716 = vmatmul.bf16.vlgmr.msrb.gmra.mxu3 %v17162_v23 }
 0x1f8   :  { %3914 = vmatpush.bf16.msra.mxu0 %v15987_v14  ;;  %3927 = vmatpush.bf16.msra.mxu1 %v15995_v15  ;;  %v2704_v43 = vpop.f32.mrf.mxu0  ;;  %v2717_v44 = vpop.f32.mrf.mxu1  ;;  %v16017_v14 = vld [vmem:[%s21644_s4 + $0x920] sm:$0xff] }
 0x1f9   :  { %3940 = vmatpush.bf16.msra.mxu2 %v16003_v16  ;;  %3953 = vmatpush.bf16.msra.mxu3 %v16011_v20  ;;  %v2728_v40 = vpop.f32.mrf.mxu2  ;;  %v2741_v41 = vpop.f32.mrf.mxu3  ;;  %v16025_v15 = vld [vmem:[%s21644_s4 + $0x960] sm:$0xff] }
 0x1fa   :  { %v2729_v42 = vadd.f32 %v2728_v40, %v2716_v35  ;;  %v16033_v16 = vld [vmem:[%s21644_s4 + $0x9a0] sm:$0xff]  ;;  %v16030_v40 = vld [vmem:[%s21644_s4 + $0x988] sm:$0xff] }
 0x1fb   :  { %v16041_v20 = vld [vmem:[%s21644_s4 + $0x9e0] sm:$0xff] }
 0x1fc   :  { %3915 = vmatpush.bf16.msra.mxu0 %v15986_v18  ;;  %3928 = vmatpush.bf16.msra.mxu1 %v15994_v19  ;;  %v17856_v47 = vadd.f32 %v2741_v41, %v2729_v42  ;;  %v16016_v19 = vld [vmem:[%s21644_s4 + $0x918] sm:$0xff]  ;;  %v16038_v41 = vld [vmem:[%s21644_s4 + $0x9c8] sm:$0xff]  ;;  %v16013_v44 = vld [vmem:[%s21644_s4 + $0x900] sm:$0xff] }
 0x1fd   :  { %3941 = vmatpush.bf16.msra.mxu2 %v16002_v25  ;;  %3954 = vmatpush.bf16.msra.mxu3 %v16010_v26  ;;  %v16032_v25 = vld [vmem:[%s21644_s4 + $0x998] sm:$0xff] }
 0x1fe   :  { %v16040_v26 = vld [vmem:[%s21644_s4 + $0x9d8] sm:$0xff] }
 0x200   :  { %3916 = vmatpush.bf16.msra.mxu0 %v15985_v31  ;;  %3929 = vmatpush.bf16.msra.mxu1 %v15993_v32 }
 0x201   :  { %3942 = vmatpush.bf16.msra.mxu2 %v16001_v33  ;;  %3955 = vmatpush.bf16.msra.mxu3 %v16009_v34  ;;  %v2730_v54 = vpop.f32.mrf.mxu2  ;;  %v2743_v55 = vpop.f32.mrf.mxu3  ;;  %v16015_v33 = vld [vmem:[%s21644_s4 + $0x910] sm:$0xff] }
 0x202   :  { %v16023_v34 = vld [vmem:[%s21644_s4 + $0x950] sm:$0xff] }
 0x203   :  { %v16059_v54 = vld [vmem:[%s21644_s4 + $0xa70] sm:$0xff] }
 0x204   :  { %3917 = vmatpush.bf16.msra.mxu0 %v15984_v36  ;;  %3930 = vmatpush.bf16.msra.mxu1 %v15992_v37  ;;  %v16031_v36 = vld [vmem:[%s21644_s4 + $0x990] sm:$0xff] }
 0x205   :  { %3943 = vmatpush.bf16.msra.mxu2 %v16000_v38  ;;  %3956 = vmatpush.bf16.msra.mxu3 %v16008_v39  ;;  %v16039_v37 = vld [vmem:[%s21644_s4 + $0x9d0] sm:$0xff]  ;;  %v16014_v38 = vld [vmem:[%s21644_s4 + $0x908] sm:$0xff] }
 0x206   :  { %v16022_v39 = vld [vmem:[%s21644_s4 + $0x948] sm:$0xff]  ;;  %v16067_v55 = vld [vmem:[%s21644_s4 + $0xab0] sm:$0xff] }
 0x208   :  { %3918 = vmatpush.bf16.msra.mxu0 %v15983_v45  ;;  %3931 = vmatpush.bf16.msra.mxu1 %v15991_v46  ;;  %v16021_v45 = vld [vmem:[%s21644_s4 + $0x940] sm:$0xff] }
 0x209   :  { %3944 = vmatpush.bf16.msra.mxu2 %v15999_v48  ;;  %3957 = vmatpush.bf16.msra.mxu3 %v16007_v49  ;;  %v16029_v46 = vld [vmem:[%s21644_s4 + $0x980] sm:$0xff]  ;;  %v16052_v49 = vld [vmem:[%s21644_s4 + $0xa38] sm:$0xff] }
 0x20a   :  { %v16037_v48 = vld [vmem:[%s21644_s4 + $0x9c0] sm:$0xff] }
 0x20c   :  { %3919 = vmatpush.bf16.msra.mxu0 %v15982_v50  ;;  %3932 = vmatpush.bf16.msra.mxu1 %v15990_v51  ;;  %v16060_v50 = vld [vmem:[%s21644_s4 + $0xa78] sm:$0xff] }
 0x20d   :  { %3945 = vmatpush.bf16.msra.mxu2 %v15998_v52  ;;  %3958 = vmatpush.bf16.msra.mxu3 %v16006_v53  ;;  %v16068_v51 = vld [vmem:[%s21644_s4 + $0xab8] sm:$0xff]  ;;  %v16051_v53 = vld [vmem:[%s21644_s4 + $0xa30] sm:$0xff] }
 0x20e   :  { %v16076_v52 = vld [vmem:[%s21644_s4 + $0xaf8] sm:$0xff] }
 0x210   :  { %3920 = vmatpush.bf16.msra.mxu0 %v15981_v56  ;;  %3933 = vmatpush.bf16.msra.mxu1 %v15989_v57  ;;  %v2946_v11 = vpop.f32.mrf.mxu0  ;;  %v2959_v12 = vpop.f32.mrf.mxu1  ;;  %v16075_v56 = vld [vmem:[%s21644_s4 + $0xaf0] sm:$0xff]  ;;  %v16050_v57 = vld [vmem:[%s21644_s4 + $0xa28] sm:$0xff] }
 0x211   :  { %3946 = vmatpush.bf16.msra.mxu2 %v15997_v59  ;;  %3959 = vmatpush.bf16.msra.mxu3 %v16005_v60  ;;  %v2947_v13 = vadd.f32 %v16755_v8, %v2946_v11  ;;  %v16058_v59 = vld [vmem:[%s21644_s4 + $0xa68] sm:$0xff]  ;;  %v16756_v60 = vld [vmem:[%s21645_s5 + $0x5] ss:$0 sm:$0xff]  ;;  %v16048_v8 = vld [vmem:[%s21644_s4 + $0xa18] sm:$0xff] }
 0x212   :  { %v16072_v11 = vld [vmem:[%s21644_s4 + $0xad8] sm:$0xff] }
 0x213   :  { %3921 = vmatmul.bf16.vlgmr.msra.gmra.mxu0 %v17156_v17  ;;  %3934 = vmatmul.bf16.vlgmr.msra.gmra.mxu1 %v17158_v21  ;;  %v2960_v18 = vadd.f32 %v2959_v12, %v2947_v13 }
 0x214   :  { %4157 = vmatpush.bf16.msrb.mxu0 %v16020_v62  ;;  %4170 = vmatpush.bf16.msrb.mxu1 %v16028_v63  ;;  %v16066_v62 = vld [vmem:[%s21644_s4 + $0xaa8] sm:$0xff] }
 0x215   :  { %4183 = vmatpush.bf16.msrb.mxu2 %v16036_v0  ;;  %4196 = vmatpush.bf16.msrb.mxu3 %v16044_v1  ;;  %v16074_v63 = vld [vmem:[%s21644_s4 + $0xae8] sm:$0xff] }
 0x216   :  { %3947 = vmatmul.bf16.vlgmr.msra.gmra.mxu2 %v17160_v22  ;;  %3960 = vmatmul.bf16.vlgmr.msra.gmra.mxu3 %v17162_v23 }
 0x218   :  { %4158 = vmatpush.bf16.msrb.mxu0 %v16019_v2  ;;  %4171 = vmatpush.bf16.msrb.mxu1 %v16027_v3  ;;  %v2948_v31 = vpop.f32.mrf.mxu0  ;;  %v2961_v32 = vpop.f32.mrf.mxu1  ;;  %v16049_v3 = vld [vmem:[%s21644_s4 + $0xa20] sm:$0xff] }
 0x219   :  { %4184 = vmatpush.bf16.msrb.mxu2 %v16035_v4  ;;  %4197 = vmatpush.bf16.msrb.mxu3 %v16043_v5  ;;  %v2972_v27 = vpop.f32.mrf.mxu2  ;;  %v2985_v28 = vpop.f32.mrf.mxu3  ;;  %v16057_v4 = vld [vmem:[%s21644_s4 + $0xa60] sm:$0xff] }
 0x21a   :  { %v2973_v30 = vadd.f32 %v2972_v27, %v2960_v18  ;;  %v16065_v5 = vld [vmem:[%s21644_s4 + $0xaa0] sm:$0xff]  ;;  %v16055_v18 = vld [vmem:[%s21644_s4 + $0xa50] sm:$0xff]  ;;  %v16054_v27 = vld [vmem:[%s21644_s4 + $0xa48] sm:$0xff] }
 0x21c   :  { %4159 = vmatpush.bf16.msrb.mxu0 %v16018_v6  ;;  %4172 = vmatpush.bf16.msrb.mxu1 %v16026_v7  ;;  %v17961_v35 = vadd.f32 %v2985_v28, %v2973_v30  ;;  %v16073_v6 = vld [vmem:[%s21644_s4 + $0xae0] sm:$0xff]  ;;  %v16062_v28 = vld [vmem:[%s21644_s4 + $0xa88] sm:$0xff] }
 0x21d   :  { %4185 = vmatpush.bf16.msrb.mxu2 %v16034_v9  ;;  %4198 = vmatpush.bf16.msrb.mxu3 %v16042_v10  ;;  %v16056_v9 = vld [vmem:[%s21644_s4 + $0xa58] sm:$0xff]  ;;  %v16070_v30 = vld [vmem:[%s21644_s4 + $0xac8] sm:$0xff] }
 0x21e   :  { %v16064_v10 = vld [vmem:[%s21644_s4 + $0xa98] sm:$0xff] }
 0x220   :  { %4160 = vmatpush.bf16.msrb.mxu0 %v16017_v14  ;;  %4173 = vmatpush.bf16.msrb.mxu1 %v16025_v15 }
 0x221   :  { %4186 = vmatpush.bf16.msrb.mxu2 %v16033_v16  ;;  %4199 = vmatpush.bf16.msrb.mxu3 %v16041_v20  ;;  %v2974_v42 = vpop.f32.mrf.mxu2  ;;  %v2987_v43 = vpop.f32.mrf.mxu3  ;;  %v16047_v20 = vld [vmem:[%s21644_s4 + $0xa10] sm:$0xff] }
 0x222   :  { %v16083_v42 = vld [vmem:[%s21644_s4 + $0xb30] sm:$0xff] }
 0x223   :  { %v16091_v43 = vld [vmem:[%s21644_s4 + $0xb70] sm:$0xff] }
 0x224   :  { %4161 = vmatpush.bf16.msrb.mxu0 %v16016_v19  ;;  %4174 = vmatpush.bf16.msrb.mxu1 %v16024_v24  ;;  %v16063_v24 = vld [vmem:[%s21644_s4 + $0xa90] sm:$0xff] }
 0x225   :  { %4187 = vmatpush.bf16.msrb.mxu2 %v16032_v25  ;;  %4200 = vmatpush.bf16.msrb.mxu3 %v16040_v26  ;;  %v16071_v25 = vld [vmem:[%s21644_s4 + $0xad0] sm:$0xff]  ;;  %v16046_v26 = vld [vmem:[%s21644_s4 + $0xa08] sm:$0xff] }
 0x228   :  { %4162 = vmatpush.bf16.msrb.mxu0 %v16015_v33  ;;  %4175 = vmatpush.bf16.msrb.mxu1 %v16023_v34  ;;  %v16045_v33 = vld [vmem:[%s21644_s4 + $0xa00] sm:$0xff] }
 0x229   :  { %4188 = vmatpush.bf16.msrb.mxu2 %v16031_v36  ;;  %4201 = vmatpush.bf16.msrb.mxu3 %v16039_v37  ;;  %v16053_v34 = vld [vmem:[%s21644_s4 + $0xa40] sm:$0xff] }
 0x22a   :  { %v16061_v36 = vld [vmem:[%s21644_s4 + $0xa80] sm:$0xff] }
 0x22b   :  { %v16069_v37 = vld [vmem:[%s21644_s4 + $0xac0] sm:$0xff] }
 0x22c   :  { %4163 = vmatpush.bf16.msrb.mxu0 %v16014_v38  ;;  %4176 = vmatpush.bf16.msrb.mxu1 %v16022_v39  ;;  %v16084_v38 = vld [vmem:[%s21644_s4 + $0xb38] sm:$0xff] }
 0x22d   :  { %4189 = vmatpush.bf16.msrb.mxu2 %v16030_v40  ;;  %4202 = vmatpush.bf16.msrb.mxu3 %v16038_v41  ;;  %v16092_v39 = vld [vmem:[%s21644_s4 + $0xb78] sm:$0xff] }
 0x22e   :  { %v16100_v40 = vld [vmem:[%s21644_s4 + $0xbb8] sm:$0xff] }
 0x22f   :  { %v16108_v41 = vld [vmem:[%s21644_s4 + $0xbf8] sm:$0xff] }
 0x230   :  { %4164 = vmatpush.bf16.msrb.mxu0 %v16013_v44  ;;  %4177 = vmatpush.bf16.msrb.mxu1 %v16021_v45  ;;  %v3190_v0 = vpop.f32.mrf.mxu0  ;;  %v3203_v1 = vpop.f32.mrf.mxu1  ;;  %v16099_v44 = vld [vmem:[%s21644_s4 + $0xbb0] sm:$0xff] }
 0x231   :  { %4190 = vmatpush.bf16.msrb.mxu2 %v16029_v46  ;;  %4203 = vmatpush.bf16.msrb.mxu3 %v16037_v48  ;;  %v3191_v2 = vadd.f32 %v16756_v60, %v3190_v0  ;;  %v16107_v45 = vld [vmem:[%s21644_s4 + $0xbf0] sm:$0xff]  ;;  %v16082_v46 = vld [vmem:[%s21644_s4 + $0xb28] sm:$0xff]  ;;  %v16096_v0 = vld [vmem:[%s21644_s4 + $0xb98] sm:$0xff] }
 0x232   :  { %v16090_v48 = vld [vmem:[%s21644_s4 + $0xb68] sm:$0xff] }
 0x233   :  { %4165 = vmatmul.bf16.vlgmr.msrb.gmra.mxu0 %v17156_v17  ;;  %4178 = vmatmul.bf16.vlgmr.msrb.gmra.mxu1 %v17158_v21  ;;  %v3204_v7 = vadd.f32 %v3203_v1, %v3191_v2  ;;  %v16104_v1 = vld [vmem:[%s21644_s4 + $0xbd8] sm:$0xff] }
 0x234   :  { %4401 = vmatpush.bf16.msra.mxu0 %v16052_v49  ;;  %4414 = vmatpush.bf16.msra.mxu1 %v16060_v50  ;;  %v16757_v49 = vld [vmem:[%s21645_s5 + $0x6] ss:$0 sm:$0xff]  ;;  %v16098_v50 = vld [vmem:[%s21644_s4 + $0xba8] sm:$0xff] }
 0x235   :  { %4427 = vmatpush.bf16.msra.mxu2 %v16068_v51  ;;  %4440 = vmatpush.bf16.msra.mxu3 %v16076_v52  ;;  %v16106_v51 = vld [vmem:[%s21644_s4 + $0xbe8] sm:$0xff] }
 0x236   :  { %4191 = vmatmul.bf16.vlgmr.msrb.gmra.mxu2 %v17160_v22  ;;  %4204 = vmatmul.bf16.vlgmr.msrb.gmra.mxu3 %v17162_v23 }
 0x238   :  { %4402 = vmatpush.bf16.msra.mxu0 %v16051_v53  ;;  %4415 = vmatpush.bf16.msra.mxu1 %v16059_v54  ;;  %v3192_v15 = vpop.f32.mrf.mxu0  ;;  %v3205_v16 = vpop.f32.mrf.mxu1 }
 0x239   :  { %4428 = vmatpush.bf16.msra.mxu2 %v16067_v55  ;;  %4441 = vmatpush.bf16.msra.mxu3 %v16075_v56  ;;  %v3216_v12 = vpop.f32.mrf.mxu2  ;;  %v3229_v13 = vpop.f32.mrf.mxu3  ;;  %v16081_v55 = vld [vmem:[%s21644_s4 + $0xb20] sm:$0xff]  ;;  %v16102_v15 = vld [vmem:[%s21644_s4 + $0xbc8] sm:$0xff] }
 0x23a   :  { %v3217_v14 = vadd.f32 %v3216_v12, %v3204_v7  ;;  %v16089_v56 = vld [vmem:[%s21644_s4 + $0xb60] sm:$0xff]  ;;  %v16079_v7 = vld [vmem:[%s21644_s4 + $0xb10] sm:$0xff]  ;;  %v16078_v12 = vld [vmem:[%s21644_s4 + $0xb08] sm:$0xff] }
 0x23c   :  { %4403 = vmatpush.bf16.msra.mxu0 %v16050_v57  ;;  %4416 = vmatpush.bf16.msra.mxu1 %v16058_v59  ;;  %v18066_v19 = vadd.f32 %v3229_v13, %v3217_v14  ;;  %v16097_v57 = vld [vmem:[%s21644_s4 + $0xba0] sm:$0xff]  ;;  %v16086_v13 = vld [vmem:[%s21644_s4 + $0xb48] sm:$0xff] }
 0x23d   :  { %4429 = vmatpush.bf16.msra.mxu2 %v16066_v62  ;;  %4442 = vmatpush.bf16.msra.mxu3 %v16074_v63  ;;  %v16105_v59 = vld [vmem:[%s21644_s4 + $0xbe0] sm:$0xff]  ;;  %v16080_v62 = vld [vmem:[%s21644_s4 + $0xb18] sm:$0xff]  ;;  %v16094_v14 = vld [vmem:[%s21644_s4 + $0xb88] sm:$0xff] }
 0x23e   :  { %v16088_v63 = vld [vmem:[%s21644_s4 + $0xb58] sm:$0xff] }
 0x240   :  { %4404 = vmatpush.bf16.msra.mxu0 %v16049_v3  ;;  %4417 = vmatpush.bf16.msra.mxu1 %v16057_v4 }
 0x241   :  { %4430 = vmatpush.bf16.msra.mxu2 %v16065_v5  ;;  %4443 = vmatpush.bf16.msra.mxu3 %v16073_v6  ;;  %v3218_v31 = vpop.f32.mrf.mxu2  ;;  %v3231_v32 = vpop.f32.mrf.mxu3 }
 0x242   :  { %v16140_v31 = vld [vmem:[%s21644_s4 + $0xcf8] sm:$0xff]  ;;  %v16115_v32 = vld [vmem:[%s21644_s4 + $0xc30] sm:$0xff] }
 0x244   :  { %4405 = vmatpush.bf16.msra.mxu0 %v16048_v8  ;;  %4418 = vmatpush.bf16.msra.mxu1 %v16056_v9  ;;  %v16087_v8 = vld [vmem:[%s21644_s4 + $0xb50] sm:$0xff] }
 0x245   :  { %4431 = vmatpush.bf16.msra.mxu2 %v16064_v10  ;;  %4444 = vmatpush.bf16.msra.mxu3 %v16072_v11  ;;  %v16095_v10 = vld [vmem:[%s21644_s4 + $0xb90] sm:$0xff] }
 0x246   :  { %v16103_v11 = vld [vmem:[%s21644_s4 + $0xbd0] sm:$0xff] }
 0x248   :  { %4406 = vmatpush.bf16.msra.mxu0 %v16047_v20  ;;  %4419 = vmatpush.bf16.msra.mxu1 %v16055_v18  ;;  %v16077_v18 = vld [vmem:[%s21644_s4 + $0xb00] sm:$0xff] }
 0x249   :  { %4432 = vmatpush.bf16.msra.mxu2 %v16063_v24  ;;  %4445 = vmatpush.bf16.msra.mxu3 %v16071_v25  ;;  %v16085_v24 = vld [vmem:[%s21644_s4 + $0xb40] sm:$0xff] }
 0x24a   :  { %v16093_v25 = vld [vmem:[%s21644_s4 + $0xb80] sm:$0xff] }
 0x24c   :  { %4407 = vmatpush.bf16.msra.mxu0 %v16046_v26  ;;  %4420 = vmatpush.bf16.msra.mxu1 %v16054_v27  ;;  %v16101_v26 = vld [vmem:[%s21644_s4 + $0xbc0] sm:$0xff]  ;;  %v16116_v27 = vld [vmem:[%s21644_s4 + $0xc38] sm:$0xff] }
 0x24d   :  { %4433 = vmatpush.bf16.msra.mxu2 %v16062_v28  ;;  %4446 = vmatpush.bf16.msra.mxu3 %v16070_v30  ;;  %v16124_v28 = vld [vmem:[%s21644_s4 + $0xc78] sm:$0xff] }
 0x24e   :  { %v16132_v30 = vld [vmem:[%s21644_s4 + $0xcb8] sm:$0xff] }
 0x250   :  { %4408 = vmatpush.bf16.msra.mxu0 %v16045_v33  ;;  %4421 = vmatpush.bf16.msra.mxu1 %v16053_v34  ;;  %v3434_v52 = vpop.f32.mrf.mxu0  ;;  %v3447_v53 = vpop.f32.mrf.mxu1  ;;  %v16123_v33 = vld [vmem:[%s21644_s4 + $0xc70] sm:$0xff] }
 0x251   :  { %4434 = vmatpush.bf16.msra.mxu2 %v16061_v36  ;;  %4447 = vmatpush.bf16.msra.mxu3 %v16069_v37  ;;  %v3435_v54 = vadd.f32 %v16757_v49, %v3434_v52  ;;  %v16131_v34 = vld [vmem:[%s21644_s4 + $0xcb0] sm:$0xff]  ;;  %v16114_v37 = vld [vmem:[%s21644_s4 + $0xc28] sm:$0xff]  ;;  %v16137_v49 = vld [vmem:[%s21644_s4 + $0xce0] sm:$0xff] }
 0x252   :  { %v16139_v36 = vld [vmem:[%s21644_s4 + $0xcf0] sm:$0xff]  ;;  %v16120_v52 = vld [vmem:[%s21644_s4 + $0xc58] sm:$0xff] }
 0x253   :  { %4409 = vmatmul.bf16.vlgmr.msra.gmra.mxu0 %v17156_v17  ;;  %4422 = vmatmul.bf16.vlgmr.msra.gmra.mxu1 %v17158_v21  ;;  %v3448_v60 = vadd.f32 %v3447_v53, %v3435_v54  ;;  %v16128_v53 = vld [vmem:[%s21644_s4 + $0xc98] sm:$0xff] }
 0x254   :  { %4645 = vmatpush.bf16.msrb.mxu0 %v16084_v38  ;;  %4658 = vmatpush.bf16.msrb.mxu1 %v16092_v39  ;;  %v16122_v38 = vld [vmem:[%s21644_s4 + $0xc68] sm:$0xff]  ;;  %v16758_v39 = vld [vmem:[%s21645_s5 + $0x7] ss:$0 sm:$0xff]  ;;  %v16136_v54 = vld [vmem:[%s21644_s4 + $0xcd8] sm:$0xff] }
 0x255   :  { %4671 = vmatpush.bf16.msrb.mxu2 %v16100_v40  ;;  %4684 = vmatpush.bf16.msrb.mxu3 %v16108_v41  ;;  %v16130_v40 = vld [vmem:[%s21644_s4 + $0xca8] sm:$0xff] }
 0x256   :  { %4435 = vmatmul.bf16.vlgmr.msra.gmra.mxu2 %v17160_v22  ;;  %4448 = vmatmul.bf16.vlgmr.msra.gmra.mxu3 %v17162_v23  ;;  %v16138_v41 = vld [vmem:[%s21644_s4 + $0xce8] sm:$0xff] }
 0x258   :  { %4646 = vmatpush.bf16.msrb.mxu0 %v16083_v42  ;;  %4659 = vmatpush.bf16.msrb.mxu1 %v16091_v43  ;;  %v3436_v5 = vpop.f32.mrf.mxu0  ;;  %v3449_v6 = vpop.f32.mrf.mxu1 }
 0x259   :  { %4672 = vmatpush.bf16.msrb.mxu2 %v16099_v44  ;;  %4685 = vmatpush.bf16.msrb.mxu3 %v16107_v45  ;;  %v3460_v2 = vpop.f32.mrf.mxu2  ;;  %v3473_v3 = vpop.f32.mrf.mxu3  ;;  %v16113_v45 = vld [vmem:[%s21644_s4 + $0xc20] sm:$0xff]  ;;  %v16126_v5 = vld [vmem:[%s21644_s4 + $0xc88] sm:$0xff] }
 0x25a   :  { %v3461_v4 = vadd.f32 %v3460_v2, %v3448_v60  ;;  %v16135_v2 = vld [vmem:[%s21644_s4 + $0xcd0] sm:$0xff]  ;;  %v16134_v6 = vld [vmem:[%s21644_s4 + $0xcc8] sm:$0xff] }
 0x25c   :  { %4647 = vmatpush.bf16.msrb.mxu0 %v16082_v46  ;;  %4660 = vmatpush.bf16.msrb.mxu1 %v16090_v48  ;;  %v18171_v9 = vadd.f32 %v3473_v3, %v3461_v4  ;;  %v16121_v46 = vld [vmem:[%s21644_s4 + $0xc60] sm:$0xff]  ;;  %v16110_v3 = vld [vmem:[%s21644_s4 + $0xc08] sm:$0xff] }
 0x25d   :  { %4673 = vmatpush.bf16.msrb.mxu2 %v16098_v50  ;;  %4686 = vmatpush.bf16.msrb.mxu3 %v16106_v51  ;;  %v16129_v48 = vld [vmem:[%s21644_s4 + $0xca0] sm:$0xff]  ;;  %v16112_v51 = vld [vmem:[%s21644_s4 + $0xc18] sm:$0xff]  ;;  %v16118_v4 = vld [vmem:[%s21644_s4 + $0xc48] sm:$0xff] }
 0x260   :  { %4648 = vmatpush.bf16.msrb.mxu0 %v16081_v55  ;;  %4661 = vmatpush.bf16.msrb.mxu1 %v16089_v56 }
 0x261   :  { %4674 = vmatpush.bf16.msrb.mxu2 %v16097_v57  ;;  %4687 = vmatpush.bf16.msrb.mxu3 %v16105_v59  ;;  %v3462_v16 = vpop.f32.mrf.mxu2  ;;  %v3475_v20 = vpop.f32.mrf.mxu3 }
 0x262   :  { %v16164_v16 = vld [vmem:[%s21644_s4 + $0xdb8] sm:$0xff] }
 0x263   :  { %v16172_v20 = vld [vmem:[%s21644_s4 + $0xdf8] sm:$0xff] }
 0x264   :  { %4649 = vmatpush.bf16.msrb.mxu0 %v16080_v62  ;;  %4662 = vmatpush.bf16.msrb.mxu1 %v16088_v63  ;;  %v16111_v62 = vld [vmem:[%s21644_s4 + $0xc10] sm:$0xff] }
 0x265   :  { %4675 = vmatpush.bf16.msrb.mxu2 %v16096_v0  ;;  %4688 = vmatpush.bf16.msrb.mxu3 %v16104_v1  ;;  %v16119_v63 = vld [vmem:[%s21644_s4 + $0xc50] sm:$0xff] }
 0x266   :  { %v16127_v1 = vld [vmem:[%s21644_s4 + $0xc90] sm:$0xff] }
 0x268   :  { %4650 = vmatpush.bf16.msrb.mxu0 %v16079_v7  ;;  %4663 = vmatpush.bf16.msrb.mxu1 %v16087_v8 }
 0x269   :  { %4676 = vmatpush.bf16.msrb.mxu2 %v16095_v10  ;;  %4689 = vmatpush.bf16.msrb.mxu3 %v16103_v11  ;;  %v16109_v10 = vld [vmem:[%s21644_s4 + $0xc00] sm:$0xff] }
 0x26a   :  { %v16117_v11 = vld [vmem:[%s21644_s4 + $0xc40] sm:$0xff] }
 0x26c   :  { %4651 = vmatpush.bf16.msrb.mxu0 %v16078_v12  ;;  %4664 = vmatpush.bf16.msrb.mxu1 %v16086_v13  ;;  %v16125_v12 = vld [vmem:[%s21644_s4 + $0xc80] sm:$0xff] }
 0x26d   :  { %4677 = vmatpush.bf16.msrb.mxu2 %v16094_v14  ;;  %4690 = vmatpush.bf16.msrb.mxu3 %v16102_v15  ;;  %v16133_v13 = vld [vmem:[%s21644_s4 + $0xcc0] sm:$0xff]  ;;  %v16148_v14 = vld [vmem:[%s21644_s4 + $0xd38] sm:$0xff] }
 0x26e   :  { %v16156_v15 = vld [vmem:[%s21644_s4 + $0xd78] sm:$0xff] }
 0x270   :  { %4652 = vmatpush.bf16.msrb.mxu0 %v16077_v18  ;;  %4665 = vmatpush.bf16.msrb.mxu1 %v16085_v24  ;;  %v3678_v42 = vpop.f32.mrf.mxu0  ;;  %v3691_v43 = vpop.f32.mrf.mxu1  ;;  %v16147_v18 = vld [vmem:[%s21644_s4 + $0xd30] sm:$0xff] }
 0x271   :  { %4678 = vmatpush.bf16.msrb.mxu2 %v16093_v25  ;;  %4691 = vmatpush.bf16.msrb.mxu3 %v16101_v26  ;;  %v3679_v44 = vadd.f32 %v16758_v39, %v3678_v42  ;;  %v16155_v24 = vld [vmem:[%s21644_s4 + $0xd70] sm:$0xff]  ;;  %v16161_v39 = vld [vmem:[%s21644_s4 + $0xda0] sm:$0xff]  ;;  %v16144_v42 = vld [vmem:[%s21644_s4 + $0xd18] sm:$0xff] }
 0x272   :  { %v16163_v25 = vld [vmem:[%s21644_s4 + $0xdb0] sm:$0xff] }
 0x273   :  { %4653 = vmatmul.bf16.vlgmr.msrb.gmra.mxu0 %v17156_v17  ;;  %4666 = vmatmul.bf16.vlgmr.msrb.gmra.mxu1 %v17158_v21  ;;  %v3692_v50 = vadd.f32 %v3691_v43, %v3679_v44  ;;  %v16171_v26 = vld [vmem:[%s21644_s4 + $0xdf0] sm:$0xff]  ;;  %v16152_v43 = vld [vmem:[%s21644_s4 + $0xd58] sm:$0xff] }
 0x274   :  { %4889 = vmatpush.bf16.msra.mxu0 %v16116_v27  ;;  %4902 = vmatpush.bf16.msra.mxu1 %v16124_v28  ;;  %v16146_v27 = vld [vmem:[%s21644_s4 + $0xd28] sm:$0xff]  ;;  %v16160_v44 = vld [vmem:[%s21644_s4 + $0xd98] sm:$0xff] }
 0x275   :  { %4915 = vmatpush.bf16.msra.mxu2 %v16132_v30  ;;  %4928 = vmatpush.bf16.msra.mxu3 %v16140_v31  ;;  %v16154_v28 = vld [vmem:[%s21644_s4 + $0xd68] sm:$0xff] }
 0x276   :  { %4679 = vmatmul.bf16.vlgmr.msrb.gmra.mxu2 %v17160_v22  ;;  %4692 = vmatmul.bf16.vlgmr.msrb.gmra.mxu3 %v17162_v23  ;;  %v16759_v30 = vld [vmem:[%s21645_s5 + $0x8] ss:$0 sm:$0xff] }
 0x277   :  { %v16162_v31 = vld [vmem:[%s21644_s4 + $0xda8] sm:$0xff] }
 0x278   :  { %4890 = vmatpush.bf16.msra.mxu0 %v16115_v32  ;;  %4903 = vmatpush.bf16.msra.mxu1 %v16123_v33  ;;  %v3680_v59 = vpop.f32.mrf.mxu0  ;;  %v3693_v60 = vpop.f32.mrf.mxu1  ;;  %v16170_v32 = vld [vmem:[%s21644_s4 + $0xde8] sm:$0xff] }
 0x279   :  { %4916 = vmatpush.bf16.msra.mxu2 %v16131_v34  ;;  %4929 = vmatpush.bf16.msra.mxu3 %v16139_v36  ;;  %v3704_v55 = vpop.f32.mrf.mxu2  ;;  %v3717_v56 = vpop.f32.mrf.mxu3  ;;  %v16150_v59 = vld [vmem:[%s21644_s4 + $0xd48] sm:$0xff] }
 0x27a   :  { %v3705_v57 = vadd.f32 %v3704_v55, %v3692_v50  ;;  %v16159_v55 = vld [vmem:[%s21644_s4 + $0xd90] sm:$0xff]  ;;  %v16158_v60 = vld [vmem:[%s21644_s4 + $0xd88] sm:$0xff] }
 0x27c   :  { %4891 = vmatpush.bf16.msra.mxu0 %v16114_v37  ;;  %4904 = vmatpush.bf16.msra.mxu1 %v16122_v38  ;;  %v18276_v0 = vadd.f32 %v3717_v56, %v3705_v57  ;;  %v16145_v37 = vld [vmem:[%s21644_s4 + $0xd20] sm:$0xff]  ;;  %v16167_v56 = vld [vmem:[%s21644_s4 + $0xdd0] sm:$0xff]  ;;  %v16142_v57 = vld [vmem:[%s21644_s4 + $0xd08] sm:$0xff] }
 0x27d   :  { %4917 = vmatpush.bf16.msra.mxu2 %v16130_v40  ;;  %4930 = vmatpush.bf16.msra.mxu3 %v16138_v41  ;;  %v16153_v38 = vld [vmem:[%s21644_s4 + $0xd60] sm:$0xff] }
 0x27e   :  { %v16169_v40 = vld [vmem:[%s21644_s4 + $0xde0] sm:$0xff] }
 0x280   :  { %4892 = vmatpush.bf16.msra.mxu0 %v16113_v45  ;;  %4905 = vmatpush.bf16.msra.mxu1 %v16121_v46  ;;  %v16168_v45 = vld [vmem:[%s21644_s4 + $0xdd8] sm:$0xff] }
 0x281   :  { %4918 = vmatpush.bf16.msra.mxu2 %v16129_v48  ;;  %4931 = vmatpush.bf16.msra.mxu3 %v16137_v49  ;;  %v3706_v7 = vpop.f32.mrf.mxu2  ;;  %v3719_v8 = vpop.f32.mrf.mxu3 }
 0x282   :  { %v16188_v7 = vld [vmem:[%s21644_s4 + $0xe78] sm:$0xff] }
 0x283   :  { %v16196_v8 = vld [vmem:[%s21644_s4 + $0xeb8] sm:$0xff] }
 0x284   :  { %4893 = vmatpush.bf16.msra.mxu0 %v16112_v51  ;;  %4906 = vmatpush.bf16.msra.mxu1 %v16120_v52  ;;  %v16143_v52 = vld [vmem:[%s21644_s4 + $0xd10] sm:$0xff] }
 0x285   :  { %4919 = vmatpush.bf16.msra.mxu2 %v16128_v53  ;;  %4932 = vmatpush.bf16.msra.mxu3 %v16136_v54  ;;  %v16151_v53 = vld [vmem:[%s21644_s4 + $0xd50] sm:$0xff] }
 0x288   :  { %4894 = vmatpush.bf16.msra.mxu0 %v16111_v62  ;;  %4907 = vmatpush.bf16.msra.mxu1 %v16119_v63  ;;  %v16166_v62 = vld [vmem:[%s21644_s4 + $0xdc8] sm:$0xff] }
 0x289   :  { %4920 = vmatpush.bf16.msra.mxu2 %v16127_v1  ;;  %4933 = vmatpush.bf16.msra.mxu3 %v16135_v2  ;;  %v16141_v2 = vld [vmem:[%s21644_s4 + $0xd00] sm:$0xff] }
 0x28c   :  { %4895 = vmatpush.bf16.msra.mxu0 %v16110_v3  ;;  %4908 = vmatpush.bf16.msra.mxu1 %v16118_v4  ;;  %v16149_v3 = vld [vmem:[%s21644_s4 + $0xd40] sm:$0xff] }
 0x28d   :  { %4921 = vmatpush.bf16.msra.mxu2 %v16126_v5  ;;  %4934 = vmatpush.bf16.msra.mxu3 %v16134_v6  ;;  %v16157_v4 = vld [vmem:[%s21644_s4 + $0xd80] sm:$0xff]  ;;  %v16180_v6 = vld [vmem:[%s21644_s4 + $0xe38] sm:$0xff] }
 0x28e   :  { %v16165_v5 = vld [vmem:[%s21644_s4 + $0xdc0] sm:$0xff] }
 0x290   :  { %4896 = vmatpush.bf16.msra.mxu0 %v16109_v10  ;;  %4909 = vmatpush.bf16.msra.mxu1 %v16117_v11  ;;  %v3922_v33 = vpop.f32.mrf.mxu0  ;;  %v3935_v34 = vpop.f32.mrf.mxu1  ;;  %v16204_v10 = vld [vmem:[%s21644_s4 + $0xef8] sm:$0xff]  ;;  %v16179_v11 = vld [vmem:[%s21644_s4 + $0xe30] sm:$0xff] }
 0x291   :  { %4922 = vmatpush.bf16.msra.mxu2 %v16125_v12  ;;  %4935 = vmatpush.bf16.msra.mxu3 %v16133_v13  ;;  %v3923_v36 = vadd.f32 %v16759_v30, %v3922_v33  ;;  %v16187_v12 = vld [vmem:[%s21644_s4 + $0xe70] sm:$0xff]  ;;  %v16185_v30 = vld [vmem:[%s21644_s4 + $0xe60] sm:$0xff] }
 0x292   :  { %v16195_v13 = vld [vmem:[%s21644_s4 + $0xeb0] sm:$0xff] }
 0x293   :  { %4897 = vmatmul.bf16.vlgmr.msra.gmra.mxu0 %v17156_v17  ;;  %4910 = vmatmul.bf16.vlgmr.msra.gmra.mxu1 %v17158_v21  ;;  %v3936_v41 = vadd.f32 %v3935_v34, %v3923_v36  ;;  %v16176_v34 = vld [vmem:[%s21644_s4 + $0xe18] sm:$0xff] }
 0x294   :  { %5133 = vmatpush.bf16.msrb.mxu0 %v16148_v14  ;;  %5146 = vmatpush.bf16.msrb.mxu1 %v16156_v15  ;;  %v16203_v14 = vld [vmem:[%s21644_s4 + $0xef0] sm:$0xff]  ;;  %v16178_v15 = vld [vmem:[%s21644_s4 + $0xe28] sm:$0xff]  ;;  %v16184_v36 = vld [vmem:[%s21644_s4 + $0xe58] sm:$0xff] }
 0x295   :  { %5159 = vmatpush.bf16.msrb.mxu2 %v16164_v16  ;;  %5172 = vmatpush.bf16.msrb.mxu3 %v16172_v20  ;;  %v16186_v16 = vld [vmem:[%s21644_s4 + $0xe68] sm:$0xff] }
 0x296   :  { %4923 = vmatmul.bf16.vlgmr.msra.gmra.mxu2 %v17160_v22  ;;  %4936 = vmatmul.bf16.vlgmr.msra.gmra.mxu3 %v17162_v23  ;;  %v16760_v20 = vld [vmem:[%s21645_s5 + $0x9] ss:$0 sm:$0xff] }
 0x298   :  { %5134 = vmatpush.bf16.msrb.mxu0 %v16147_v18  ;;  %5147 = vmatpush.bf16.msrb.mxu1 %v16155_v24  ;;  %v3924_v50 = vpop.f32.mrf.mxu0  ;;  %v3937_v51 = vpop.f32.mrf.mxu1  ;;  %v16194_v18 = vld [vmem:[%s21644_s4 + $0xea8] sm:$0xff] }
 0x299   :  { %5160 = vmatpush.bf16.msrb.mxu2 %v16163_v25  ;;  %5173 = vmatpush.bf16.msrb.mxu3 %v16171_v26  ;;  %v3948_v46 = vpop.f32.mrf.mxu2  ;;  %v3961_v48 = vpop.f32.mrf.mxu3  ;;  %v16202_v24 = vld [vmem:[%s21644_s4 + $0xee8] sm:$0xff] }
 0x29a   :  { %v3949_v49 = vadd.f32 %v3948_v46, %v3936_v41  ;;  %v16174_v50 = vld [vmem:[%s21644_s4 + $0xe08] sm:$0xff] }
 0x29b   :  { %v16182_v51 = vld [vmem:[%s21644_s4 + $0xe48] sm:$0xff] }
 0x29c   :  { %5135 = vmatpush.bf16.msrb.mxu0 %v16146_v27  ;;  %5148 = vmatpush.bf16.msrb.mxu1 %v16154_v28  ;;  %v18381_v54 = vadd.f32 %v3961_v48, %v3949_v49  ;;  %v16177_v28 = vld [vmem:[%s21644_s4 + $0xe20] sm:$0xff]  ;;  %v16191_v48 = vld [vmem:[%s21644_s4 + $0xe90] sm:$0xff] }
 0x29d   :  { %5161 = vmatpush.bf16.msrb.mxu2 %v16162_v31  ;;  %5174 = vmatpush.bf16.msrb.mxu3 %v16170_v32  ;;  %v16193_v31 = vld [vmem:[%s21644_s4 + $0xea0] sm:$0xff]  ;;  %v16199_v49 = vld [vmem:[%s21644_s4 + $0xed0] sm:$0xff] }
 0x29e   :  { %v16201_v32 = vld [vmem:[%s21644_s4 + $0xee0] sm:$0xff] }
 0x2a0   :  { %5136 = vmatpush.bf16.msrb.mxu0 %v16145_v37  ;;  %5149 = vmatpush.bf16.msrb.mxu1 %v16153_v38  ;;  %v16192_v37 = vld [vmem:[%s21644_s4 + $0xe98] sm:$0xff] }
 0x2a1   :  { %5162 = vmatpush.bf16.msrb.mxu2 %v16161_v39  ;;  %5175 = vmatpush.bf16.msrb.mxu3 %v16169_v40  ;;  %v3950_v63 = vpop.f32.mrf.mxu2  ;;  %v3963_v1 = vpop.f32.mrf.mxu3  ;;  %v16200_v38 = vld [vmem:[%s21644_s4 + $0xed8] sm:$0xff] }
 0x2a2   :  { %v16212_v63 = vld [vmem:[%s21644_s4 + $0xf38] sm:$0xff] }
 0x2a3   :  { %v16220_v1 = vld [vmem:[%s21644_s4 + $0xf78] sm:$0xff] }
 0x2a4   :  { %5137 = vmatpush.bf16.msrb.mxu0 %v16144_v42  ;;  %5150 = vmatpush.bf16.msrb.mxu1 %v16152_v43 }
 0x2a5   :  { %5163 = vmatpush.bf16.msrb.mxu2 %v16160_v44  ;;  %5176 = vmatpush.bf16.msrb.mxu3 %v16168_v45  ;;  %v16175_v44 = vld [vmem:[%s21644_s4 + $0xe10] sm:$0xff] }
 0x2a6   :  { %v16183_v45 = vld [vmem:[%s21644_s4 + $0xe50] sm:$0xff] }
 0x2a8   :  { %5138 = vmatpush.bf16.msrb.mxu0 %v16143_v52  ;;  %5151 = vmatpush.bf16.msrb.mxu1 %v16151_v53  ;;  %v16190_v52 = vld [vmem:[%s21644_s4 + $0xe88] sm:$0xff] }
 0x2a9   :  { %5164 = vmatpush.bf16.msrb.mxu2 %v16159_v55  ;;  %5177 = vmatpush.bf16.msrb.mxu3 %v16167_v56  ;;  %v16198_v53 = vld [vmem:[%s21644_s4 + $0xec8] sm:$0xff] }
 0x2ac   :  { %5139 = vmatpush.bf16.msrb.mxu0 %v16142_v57  ;;  %5152 = vmatpush.bf16.msrb.mxu1 %v16150_v59  ;;  %v16173_v57 = vld [vmem:[%s21644_s4 + $0xe00] sm:$0xff] }
 0x2ad   :  { %5165 = vmatpush.bf16.msrb.mxu2 %v16158_v60  ;;  %5178 = vmatpush.bf16.msrb.mxu3 %v16166_v62  ;;  %v16181_v59 = vld [vmem:[%s21644_s4 + $0xe40] sm:$0xff] }
 0x2ae   :  { %v16189_v60 = vld [vmem:[%s21644_s4 + $0xe80] sm:$0xff] }
 0x2af   :  { %v16197_v62 = vld [vmem:[%s21644_s4 + $0xec0] sm:$0xff] }
 0x2b0   :  { %5140 = vmatpush.bf16.msrb.mxu0 %v16141_v2  ;;  %5153 = vmatpush.bf16.msrb.mxu1 %v16149_v3  ;;  %v4166_v25 = vpop.f32.mrf.mxu0  ;;  %v4179_v26 = vpop.f32.mrf.mxu1  ;;  %v16228_v2 = vld [vmem:[%s21644_s4 + $0xfb8] sm:$0xff] }
 0x2b1   :  { %5166 = vmatpush.bf16.msrb.mxu2 %v16157_v4  ;;  %5179 = vmatpush.bf16.msrb.mxu3 %v16165_v5  ;;  %v4167_v27 = vadd.f32 %v16760_v20, %v4166_v25  ;;  %v16236_v3 = vld [vmem:[%s21644_s4 + $0xff8] sm:$0xff]  ;;  %v16211_v4 = vld [vmem:[%s21644_s4 + $0xf30] sm:$0xff]  ;;  %v16209_v20 = vld [vmem:[%s21644_s4 + $0xf20] sm:$0xff] }
 0x2b2   :  { %v16219_v5 = vld [vmem:[%s21644_s4 + $0xf70] sm:$0xff]  ;;  %v16233_v25 = vld [vmem:[%s21644_s4 + $0xfe0] sm:$0xff] }
 0x2b3   :  { %5141 = vmatmul.bf16.vlgmr.msrb.gmra.mxu0 %v17156_v17  ;;  %5154 = vmatmul.bf16.vlgmr.msrb.gmra.mxu1 %v17158_v21  ;;  %v4180_v33 = vadd.f32 %v4179_v26, %v4167_v27  ;;  %v16208_v27 = vld [vmem:[%s21644_s4 + $0xf18] sm:$0xff] }
 0x2b4   :  { %5377 = vmatpush.bf16.msra.mxu0 %v16180_v6  ;;  %5390 = vmatpush.bf16.msra.mxu1 %v16188_v7  ;;  %v16227_v6 = vld [vmem:[%s21644_s4 + $0xfb0] sm:$0xff] }
 0x2b5   :  { %5403 = vmatpush.bf16.msra.mxu2 %v16196_v8  ;;  %5416 = vmatpush.bf16.msra.mxu3 %v16204_v10  ;;  %v16235_v7 = vld [vmem:[%s21644_s4 + $0xff0] sm:$0xff]  ;;  %v16210_v8 = vld [vmem:[%s21644_s4 + $0xf28] sm:$0xff] }
 0x2b6   :  { %5167 = vmatmul.bf16.vlgmr.msrb.gmra.mxu2 %v17160_v22  ;;  %5180 = vmatmul.bf16.vlgmr.msrb.gmra.mxu3 %v17162_v23  ;;  %v16218_v10 = vld [vmem:[%s21644_s4 + $0xf68] sm:$0xff] }
 0x2b8   :  { %5378 = vmatpush.bf16.msra.mxu0 %v16179_v11  ;;  %5391 = vmatpush.bf16.msra.mxu1 %v16187_v12  ;;  %v4168_v42 = vpop.f32.mrf.mxu0  ;;  %v4181_v43 = vpop.f32.mrf.mxu1  ;;  %v16761_v11 = vld [vmem:[%s21645_s5 + $0xa] ss:$0 sm:$0xff] }
 0x2b9   :  { %5404 = vmatpush.bf16.msra.mxu2 %v16195_v13  ;;  %5417 = vmatpush.bf16.msra.mxu3 %v16203_v14  ;;  %v4192_v39 = vpop.f32.mrf.mxu2  ;;  %v4205_v40 = vpop.f32.mrf.mxu3  ;;  %v16226_v12 = vld [vmem:[%s21644_s4 + $0xfa8] sm:$0xff]  ;;  %v16231_v42 = vld [vmem:[%s21644_s4 + $0xfd0] sm:$0xff] }
 0x2ba   :  { %v4193_v41 = vadd.f32 %v4192_v39, %v4180_v33  ;;  %v16234_v13 = vld [vmem:[%s21644_s4 + $0xfe8] sm:$0xff]  ;;  %v16215_v39 = vld [vmem:[%s21644_s4 + $0xf50] sm:$0xff] }
 0x2bb   :  { %v16206_v43 = vld [vmem:[%s21644_s4 + $0xf08] sm:$0xff] }
 0x2bc   :  { %5379 = vmatpush.bf16.msra.mxu0 %v16178_v15  ;;  %5392 = vmatpush.bf16.msra.mxu1 %v16186_v16  ;;  %v18486_v46 = vadd.f32 %v4205_v40, %v4193_v41  ;;  %v16223_v41 = vld [vmem:[%s21644_s4 + $0xf90] sm:$0xff] }
 0x2bd   :  { %5405 = vmatpush.bf16.msra.mxu2 %v16194_v18  ;;  %5418 = vmatpush.bf16.msra.mxu3 %v16202_v24  ;;  %v16217_v18 = vld [vmem:[%s21644_s4 + $0xf60] sm:$0xff] }
 0x2be   :  { %v16225_v24 = vld [vmem:[%s21644_s4 + $0xfa0] sm:$0xff] }
 0x2c0   :  { %5380 = vmatpush.bf16.msra.mxu0 %v16177_v28  ;;  %5393 = vmatpush.bf16.msra.mxu1 %v16185_v30  ;;  %v16216_v28 = vld [vmem:[%s21644_s4 + $0xf58] sm:$0xff] }
 0x2c1   :  { %5406 = vmatpush.bf16.msra.mxu2 %v16193_v31  ;;  %5419 = vmatpush.bf16.msra.mxu3 %v16201_v32  ;;  %v4194_v55 = vpop.f32.mrf.mxu2  ;;  %v4207_v56 = vpop.f32.mrf.mxu3  ;;  %v16224_v30 = vld [vmem:[%s21644_s4 + $0xf98] sm:$0xff] }
 0x2c2   :  { %v16232_v31 = vld [vmem:[%s21644_s4 + $0xfd8] sm:$0xff]  ;;  %v16229_v55 = vld [vmem:[%s21644_s4 + $0xfc0] sm:$0xff] }
 0x2c3   :  { %v16244_v56 = vld [vmem:[%s21644_s4 + $0x1038] sm:$0xff] }
 0x2c4   :  { %5381 = vmatpush.bf16.msra.mxu0 %v16176_v34  ;;  %5394 = vmatpush.bf16.msra.mxu1 %v16184_v36 }
 0x2c5   :  { %5407 = vmatpush.bf16.msra.mxu2 %v16192_v37  ;;  %5420 = vmatpush.bf16.msra.mxu3 %v16200_v38  ;;  %v16207_v38 = vld [vmem:[%s21644_s4 + $0xf10] sm:$0xff] }
 0x2c8   :  { %5382 = vmatpush.bf16.msra.mxu0 %v16175_v44  ;;  %5395 = vmatpush.bf16.msra.mxu1 %v16183_v45  ;;  %v16214_v44 = vld [vmem:[%s21644_s4 + $0xf48] sm:$0xff] }
 0x2c9   :  { %5408 = vmatpush.bf16.msra.mxu2 %v16191_v48  ;;  %5421 = vmatpush.bf16.msra.mxu3 %v16199_v49  ;;  %v16222_v45 = vld [vmem:[%s21644_s4 + $0xf88] sm:$0xff] }
 0x2ca   :  { %v16230_v48 = vld [vmem:[%s21644_s4 + $0xfc8] sm:$0xff] }
 0x2cc   :  { %5383 = vmatpush.bf16.msra.mxu0 %v16174_v50  ;;  %5396 = vmatpush.bf16.msra.mxu1 %v16182_v51  ;;  %v16205_v51 = vld [vmem:[%s21644_s4 + $0xf00] sm:$0xff] }
 0x2cd   :  { %5409 = vmatpush.bf16.msra.mxu2 %v16190_v52  ;;  %5422 = vmatpush.bf16.msra.mxu3 %v16198_v53  ;;  %v16213_v52 = vld [vmem:[%s21644_s4 + $0xf40] sm:$0xff] }
 0x2ce   :  { %v16221_v53 = vld [vmem:[%s21644_s4 + $0xf80] sm:$0xff] }
 0x2d0   :  { %5384 = vmatpush.bf16.msra.mxu0 %v16173_v57  ;;  %5397 = vmatpush.bf16.msra.mxu1 %v16181_v59  ;;  %v4410_v14 = vpop.f32.mrf.mxu0  ;;  %v4423_v15 = vpop.f32.mrf.mxu1  ;;  %v16252_v57 = vld [vmem:[%s21644_s4 + $0x1078] sm:$0xff] }
 0x2d1   :  { %5410 = vmatpush.bf16.msra.mxu2 %v16189_v60  ;;  %5423 = vmatpush.bf16.msra.mxu3 %v16197_v62  ;;  %v4411_v16 = vadd.f32 %v16761_v11, %v4410_v14  ;;  %v16260_v59 = vld [vmem:[%s21644_s4 + $0x10b8] sm:$0xff]  ;;  %v16243_v62 = vld [vmem:[%s21644_s4 + $0x1030] sm:$0xff]  ;;  %v16257_v14 = vld [vmem:[%s21644_s4 + $0x10a0] sm:$0xff] }
 0x2d2   :  { %v16268_v60 = vld [vmem:[%s21644_s4 + $0x10f8] sm:$0xff] }
 0x2d3   :  { %5385 = vmatmul.bf16.vlgmr.msra.gmra.mxu0 %v17156_v17  ;;  %5398 = vmatmul.bf16.vlgmr.msra.gmra.mxu1 %v17158_v21  ;;  %v4424_v26 = vadd.f32 %v4423_v15, %v4411_v16  ;;  %v16265_v15 = vld [vmem:[%s21644_s4 + $0x10e0] sm:$0xff] }
 0x2d4   :  { %5621 = vmatpush.bf16.msrb.mxu0 %v16212_v63  ;;  %5634 = vmatpush.bf16.msrb.mxu1 %v16220_v1  ;;  %v16251_v63 = vld [vmem:[%s21644_s4 + $0x1070] sm:$0xff] }
 0x2d5   :  { %5647 = vmatpush.bf16.msrb.mxu2 %v16228_v2  ;;  %5660 = vmatpush.bf16.msrb.mxu3 %v16236_v3  ;;  %v16259_v1 = vld [vmem:[%s21644_s4 + $0x10b0] sm:$0xff]  ;;  %v16242_v3 = vld [vmem:[%s21644_s4 + $0x1028] sm:$0xff] }
 0x2d6   :  { %5411 = vmatmul.bf16.vlgmr.msra.gmra.mxu2 %v17160_v22  ;;  %5424 = vmatmul.bf16.vlgmr.msra.gmra.mxu3 %v17162_v23  ;;  %v16267_v2 = vld [vmem:[%s21644_s4 + $0x10f0] sm:$0xff] }
 0x2d8   :  { %5622 = vmatpush.bf16.msrb.mxu0 %v16211_v4  ;;  %5635 = vmatpush.bf16.msrb.mxu1 %v16219_v5  ;;  %v4412_v36 = vpop.f32.mrf.mxu0  ;;  %v4425_v37 = vpop.f32.mrf.mxu1  ;;  %v16250_v4 = vld [vmem:[%s21644_s4 + $0x1068] sm:$0xff] }
 0x2d9   :  { %5648 = vmatpush.bf16.msrb.mxu2 %v16227_v6  ;;  %5661 = vmatpush.bf16.msrb.mxu3 %v16235_v7  ;;  %v4436_v32 = vpop.f32.mrf.mxu2  ;;  %v4449_v33 = vpop.f32.mrf.mxu3  ;;  %v16762_v5 = vld [vmem:[%s21645_s5 + $0xb] ss:$0 sm:$0xff]  ;;  %v16255_v36 = vld [vmem:[%s21644_s4 + $0x1090] sm:$0xff] }
 0x2da   :  { %v4437_v34 = vadd.f32 %v4436_v32, %v4424_v26  ;;  %v16258_v6 = vld [vmem:[%s21644_s4 + $0x10a8] sm:$0xff]  ;;  %v16239_v32 = vld [vmem:[%s21644_s4 + $0x1010] sm:$0xff] }
 0x2db   :  { %v16266_v7 = vld [vmem:[%s21644_s4 + $0x10e8] sm:$0xff]  ;;  %v16263_v37 = vld [vmem:[%s21644_s4 + $0x10d0] sm:$0xff] }
 0x2dc   :  { %5623 = vmatpush.bf16.msrb.mxu0 %v16210_v8  ;;  %5636 = vmatpush.bf16.msrb.mxu1 %v16218_v10  ;;  %v18591_v40 = vadd.f32 %v4449_v33, %v4437_v34  ;;  %v16247_v33 = vld [vmem:[%s21644_s4 + $0x1050] sm:$0xff] }
 0x2dd   :  { %5649 = vmatpush.bf16.msrb.mxu2 %v16226_v12  ;;  %5662 = vmatpush.bf16.msrb.mxu3 %v16234_v13  ;;  %v16241_v12 = vld [vmem:[%s21644_s4 + $0x1020] sm:$0xff] }
 0x2de   :  { %v16249_v13 = vld [vmem:[%s21644_s4 + $0x1060] sm:$0xff] }
 0x2e0   :  { %5624 = vmatpush.bf16.msrb.mxu0 %v16209_v20  ;;  %5637 = vmatpush.bf16.msrb.mxu1 %v16217_v18  ;;  %v16240_v20 = vld [vmem:[%s21644_s4 + $0x1018] sm:$0xff] }
 0x2e1   :  { %5650 = vmatpush.bf16.msrb.mxu2 %v16225_v24  ;;  %5663 = vmatpush.bf16.msrb.mxu3 %v16233_v25  ;;  %v4438_v49 = vpop.f32.mrf.mxu2  ;;  %v4451_v50 = vpop.f32.mrf.mxu3  ;;  %v16248_v18 = vld [vmem:[%s21644_s4 + $0x1058] sm:$0xff] }
 0x2e2   :  { %v16256_v24 = vld [vmem:[%s21644_s4 + $0x1098] sm:$0xff]  ;;  %v16253_v49 = vld [vmem:[%s21644_s4 + $0x1080] sm:$0xff] }
 0x2e3   :  { %v16264_v25 = vld [vmem:[%s21644_s4 + $0x10d8] sm:$0xff]  ;;  %v16261_v50 = vld [vmem:[%s21644_s4 + $0x10c0] sm:$0xff] }
 0x2e4   :  { %5625 = vmatpush.bf16.msrb.mxu0 %v16208_v27  ;;  %5638 = vmatpush.bf16.msrb.mxu1 %v16216_v28 }
 0x2e5   :  { %5651 = vmatpush.bf16.msrb.mxu2 %v16224_v30  ;;  %5664 = vmatpush.bf16.msrb.mxu3 %v16232_v31 }
 0x2e8   :  { %5626 = vmatpush.bf16.msrb.mxu0 %v16207_v38  ;;  %5639 = vmatpush.bf16.msrb.mxu1 %v16215_v39  ;;  %v16238_v38 = vld [vmem:[%s21644_s4 + $0x1008] sm:$0xff] }
 0x2e9   :  { %5652 = vmatpush.bf16.msrb.mxu2 %v16223_v41  ;;  %5665 = vmatpush.bf16.msrb.mxu3 %v16231_v42  ;;  %v16246_v39 = vld [vmem:[%s21644_s4 + $0x1048] sm:$0xff] }
 0x2ea   :  { %v16254_v41 = vld [vmem:[%s21644_s4 + $0x1088] sm:$0xff] }
 0x2eb   :  { %v16262_v42 = vld [vmem:[%s21644_s4 + $0x10c8] sm:$0xff] }
 0x2ec   :  { %5627 = vmatpush.bf16.msrb.mxu0 %v16206_v43  ;;  %5640 = vmatpush.bf16.msrb.mxu1 %v16214_v44 }
 0x2ed   :  { %5653 = vmatpush.bf16.msrb.mxu2 %v16222_v45  ;;  %5666 = vmatpush.bf16.msrb.mxu3 %v16230_v48  ;;  %v16237_v45 = vld [vmem:[%s21644_s4 + $0x1000] sm:$0xff] }
 0x2ee   :  { %v16245_v48 = vld [vmem:[%s21644_s4 + $0x1040] sm:$0xff] }
 0x2f0   :  { %5628 = vmatpush.bf16.msrb.mxu0 %v16205_v51  ;;  %5641 = vmatpush.bf16.msrb.mxu1 %v16213_v52  ;;  %v4654_v8 = vpop.f32.mrf.mxu0  ;;  %v4667_v10 = vpop.f32.mrf.mxu1  ;;  %v16276_v51 = vld [vmem:[%s21644_s4 + $0x1138] sm:$0xff] }
 0x2f1   :  { %5654 = vmatpush.bf16.msrb.mxu2 %v16221_v53  ;;  %5667 = vmatpush.bf16.msrb.mxu3 %v16229_v55  ;;  %v4655_v11 = vadd.f32 %v16762_v5, %v4654_v8  ;;  %v16284_v52 = vld [vmem:[%s21644_s4 + $0x1178] sm:$0xff]  ;;  %v16273_v5 = vld [vmem:[%s21644_s4 + $0x1120] sm:$0xff] }
 0x2f2   :  { %v16292_v53 = vld [vmem:[%s21644_s4 + $0x11b8] sm:$0xff]  ;;  %v16297_v8 = vld [vmem:[%s21644_s4 + $0x11e0] sm:$0xff] }
 0x2f3   :  { %5629 = vmatmul.bf16.vlgmr.msrb.gmra.mxu0 %v17156_v17  ;;  %5642 = vmatmul.bf16.vlgmr.msrb.gmra.mxu1 %v17158_v21  ;;  %v4668_v16 = vadd.f32 %v4667_v10, %v4655_v11  ;;  %v16300_v55 = vld [vmem:[%s21644_s4 + $0x11f8] sm:$0xff] }
 0x2f4   :  { %5865 = vmatpush.bf16.msra.mxu0 %v16244_v56  ;;  %5878 = vmatpush.bf16.msra.mxu1 %v16252_v57  ;;  %v16275_v56 = vld [vmem:[%s21644_s4 + $0x1130] sm:$0xff]  ;;  %v16272_v10 = vld [vmem:[%s21644_s4 + $0x1118] sm:$0xff] }
 0x2f5   :  { %5891 = vmatpush.bf16.msra.mxu2 %v16260_v59  ;;  %5904 = vmatpush.bf16.msra.mxu3 %v16268_v60  ;;  %v16283_v57 = vld [vmem:[%s21644_s4 + $0x1170] sm:$0xff]  ;;  %v16280_v11 = vld [vmem:[%s21644_s4 + $0x1158] sm:$0xff] }
 0x2f6   :  { %5655 = vmatmul.bf16.vlgmr.msrb.gmra.mxu2 %v17160_v22  ;;  %5668 = vmatmul.bf16.vlgmr.msrb.gmra.mxu3 %v17162_v23  ;;  %v16291_v59 = vld [vmem:[%s21644_s4 + $0x11b0] sm:$0xff] }
 0x2f7   :  { %v16299_v60 = vld [vmem:[%s21644_s4 + $0x11f0] sm:$0xff] }
 0x2f8   :  { %5866 = vmatpush.bf16.msra.mxu0 %v16243_v62  ;;  %5879 = vmatpush.bf16.msra.mxu1 %v16251_v63  ;;  %v4656_v30 = vpop.f32.mrf.mxu0  ;;  %v4669_v31 = vpop.f32.mrf.mxu1  ;;  %v16274_v62 = vld [vmem:[%s21644_s4 + $0x1128] sm:$0xff] }
 0x2f9   :  { %5892 = vmatpush.bf16.msra.mxu2 %v16259_v1  ;;  %5905 = vmatpush.bf16.msra.mxu3 %v16267_v2  ;;  %v4680_v26 = vpop.f32.mrf.mxu2  ;;  %v4693_v27 = vpop.f32.mrf.mxu3  ;;  %v16282_v63 = vld [vmem:[%s21644_s4 + $0x1168] sm:$0xff] }
 0x2fa   :  { %v4681_v28 = vadd.f32 %v4680_v26, %v4668_v16  ;;  %v16290_v1 = vld [vmem:[%s21644_s4 + $0x11a8] sm:$0xff]  ;;  %v16295_v26 = vld [vmem:[%s21644_s4 + $0x11d0] sm:$0xff] }
 0x2fb   :  { %v16298_v2 = vld [vmem:[%s21644_s4 + $0x11e8] sm:$0xff] }
 0x2fc   :  { %5867 = vmatpush.bf16.msra.mxu0 %v16242_v3  ;;  %5880 = vmatpush.bf16.msra.mxu1 %v16250_v4  ;;  %v18696_v34 = vadd.f32 %v4693_v27, %v4681_v28  ;;  %v16270_v27 = vld [vmem:[%s21644_s4 + $0x1108] sm:$0xff] }
 0x2fd   :  { %5893 = vmatpush.bf16.msra.mxu2 %v16258_v6  ;;  %5906 = vmatpush.bf16.msra.mxu3 %v16266_v7  ;;  %v16281_v6 = vld [vmem:[%s21644_s4 + $0x1160] sm:$0xff]  ;;  %v16278_v28 = vld [vmem:[%s21644_s4 + $0x1148] sm:$0xff] }
 0x2fe   :  { %v16289_v7 = vld [vmem:[%s21644_s4 + $0x11a0] sm:$0xff]  ;;  %v16286_v30 = vld [vmem:[%s21644_s4 + $0x1188] sm:$0xff] }
 0x2ff   :  { %v16294_v31 = vld [vmem:[%s21644_s4 + $0x11c8] sm:$0xff] }
 0x300   :  { %5868 = vmatpush.bf16.msra.mxu0 %v16241_v12  ;;  %5881 = vmatpush.bf16.msra.mxu1 %v16249_v13  ;;  %v16288_v12 = vld [vmem:[%s21644_s4 + $0x1198] sm:$0xff] }
 0x301   :  { %5894 = vmatpush.bf16.msra.mxu2 %v16257_v14  ;;  %5907 = vmatpush.bf16.msra.mxu3 %v16265_v15  ;;  %v4682_v43 = vpop.f32.mrf.mxu2  ;;  %v4695_v44 = vpop.f32.mrf.mxu3  ;;  %v16296_v13 = vld [vmem:[%s21644_s4 + $0x11d8] sm:$0xff] }
 0x302   :  { %v16324_v43 = vld [vmem:[%s21644_s4 + $0x12b8] sm:$0xff] }
 0x303   :  { %v16332_v44 = vld [vmem:[%s21644_s4 + $0x12f8] sm:$0xff] }
 0x304   :  { %5869 = vmatpush.bf16.msra.mxu0 %v16240_v20  ;;  %5882 = vmatpush.bf16.msra.mxu1 %v16248_v18  ;;  %v16271_v18 = vld [vmem:[%s21644_s4 + $0x1110] sm:$0xff] }
 0x305   :  { %5895 = vmatpush.bf16.msra.mxu2 %v16256_v24  ;;  %5908 = vmatpush.bf16.msra.mxu3 %v16264_v25  ;;  %v16279_v24 = vld [vmem:[%s21644_s4 + $0x1150] sm:$0xff] }
 0x306   :  { %v16287_v25 = vld [vmem:[%s21644_s4 + $0x1190] sm:$0xff] }
 0x308   :  { %5870 = vmatpush.bf16.msra.mxu0 %v16239_v32  ;;  %5883 = vmatpush.bf16.msra.mxu1 %v16247_v33 }
 0x309   :  { %5896 = vmatpush.bf16.msra.mxu2 %v16255_v36  ;;  %5909 = vmatpush.bf16.msra.mxu3 %v16263_v37  ;;  %v16269_v36 = vld [vmem:[%s21644_s4 + $0x1100] sm:$0xff] }
 0x30a   :  { %v16277_v37 = vld [vmem:[%s21644_s4 + $0x1140] sm:$0xff] }
 0x30c   :  { %5871 = vmatpush.bf16.msra.mxu0 %v16238_v38  ;;  %5884 = vmatpush.bf16.msra.mxu1 %v16246_v39  ;;  %v16285_v38 = vld [vmem:[%s21644_s4 + $0x1180] sm:$0xff] }
 0x30d   :  { %5897 = vmatpush.bf16.msra.mxu2 %v16254_v41  ;;  %5910 = vmatpush.bf16.msra.mxu3 %v16262_v42  ;;  %v16293_v39 = vld [vmem:[%s21644_s4 + $0x11c0] sm:$0xff]  ;;  %v16308_v41 = vld [vmem:[%s21644_s4 + $0x1238] sm:$0xff] }
 0x30e   :  { %v16316_v42 = vld [vmem:[%s21644_s4 + $0x1278] sm:$0xff] }
 0x310   :  { %5872 = vmatpush.bf16.msra.mxu0 %v16237_v45  ;;  %5885 = vmatpush.bf16.msra.mxu1 %v16245_v48  ;;  %v18768_v3 = vpop.f32.mrf.mxu0  ;;  %v18770_v4 = vpop.f32.mrf.mxu1  ;;  %v16307_v45 = vld [vmem:[%s21644_s4 + $0x1230] sm:$0xff] }
 0x311   :  { %5898 = vmatpush.bf16.msra.mxu2 %v16253_v49  ;;  %5911 = vmatpush.bf16.msra.mxu3 %v16261_v50  ;;  %v16315_v48 = vld [vmem:[%s21644_s4 + $0x1270] sm:$0xff] }
 0x312   :  { %v16323_v49 = vld [vmem:[%s21644_s4 + $0x12b0] sm:$0xff] }
 0x313   :  { %5873 = vmatmul.bf16.vlgmr.msra.gmra.mxu0 %v17156_v17  ;;  %5886 = vmatmul.bf16.vlgmr.msra.gmra.mxu1 %v17158_v21  ;;  %v16331_v50 = vld [vmem:[%s21644_s4 + $0x12f0] sm:$0xff] }
 0x314   :  { %6109 = vmatpush.bf16.msrb.mxu0 %v16276_v51  ;;  %6122 = vmatpush.bf16.msrb.mxu1 %v16284_v52  ;;  %v16306_v51 = vld [vmem:[%s21644_s4 + $0x1228] sm:$0xff] }
 0x315   :  { %6135 = vmatpush.bf16.msrb.mxu2 %v16292_v53  ;;  %6148 = vmatpush.bf16.msrb.mxu3 %v16300_v55  ;;  %v16314_v52 = vld [vmem:[%s21644_s4 + $0x1268] sm:$0xff] }
 0x316   :  { %5899 = vmatmul.bf16.vlgmr.msra.gmra.mxu2 %v17160_v22  ;;  %5912 = vmatmul.bf16.vlgmr.msra.gmra.mxu3 %v17162_v23  ;;  %v16322_v53 = vld [vmem:[%s21644_s4 + $0x12a8] sm:$0xff] }
 0x317   :  { %v16330_v55 = vld [vmem:[%s21644_s4 + $0x12e8] sm:$0xff] }
 0x318   :  { %6110 = vmatpush.bf16.msrb.mxu0 %v16275_v56  ;;  %6123 = vmatpush.bf16.msrb.mxu1 %v16283_v57  ;;  %v4900_v16 = vpop.f32.mrf.mxu0  ;;  %v4913_v20 = vpop.f32.mrf.mxu1 }
 0x319   :  { %6136 = vmatpush.bf16.msrb.mxu2 %v16291_v59  ;;  %6149 = vmatpush.bf16.msrb.mxu3 %v16299_v60  ;;  %v18796_v14 = vpop.f32.mrf.mxu2  ;;  %v18798_v15 = vpop.f32.mrf.mxu3  ;;  %v16305_v59 = vld [vmem:[%s21644_s4 + $0x1220] sm:$0xff]  ;;  %v16319_v16 = vld [vmem:[%s21644_s4 + $0x1290] sm:$0xff] }
 0x31a   :  { %v16313_v60 = vld [vmem:[%s21644_s4 + $0x1260] sm:$0xff]  ;;  %v16327_v20 = vld [vmem:[%s21644_s4 + $0x12d0] sm:$0xff] }
 0x31c   :  { %6111 = vmatpush.bf16.msrb.mxu0 %v16274_v62  ;;  %6124 = vmatpush.bf16.msrb.mxu1 %v16282_v63  ;;  %v16321_v62 = vld [vmem:[%s21644_s4 + $0x12a0] sm:$0xff] }
 0x31d   :  { %6137 = vmatpush.bf16.msrb.mxu2 %v16290_v1  ;;  %6150 = vmatpush.bf16.msrb.mxu3 %v16298_v2  ;;  %v16329_v63 = vld [vmem:[%s21644_s4 + $0x12e0] sm:$0xff]  ;;  %v16304_v1 = vld [vmem:[%s21644_s4 + $0x1218] sm:$0xff] }
 0x31e   :  { %v16312_v2 = vld [vmem:[%s21644_s4 + $0x1258] sm:$0xff] }
 0x320   :  { %6112 = vmatpush.bf16.msrb.mxu0 %v16273_v5  ;;  %6125 = vmatpush.bf16.msrb.mxu1 %v16281_v6  ;;  %v16320_v5 = vld [vmem:[%s21644_s4 + $0x1298] sm:$0xff] }
 0x321   :  { %6138 = vmatpush.bf16.msrb.mxu2 %v16289_v7  ;;  %6151 = vmatpush.bf16.msrb.mxu3 %v16297_v8  ;;  %v4926_v32 = vpop.f32.mrf.mxu2  ;;  %v4939_v33 = vpop.f32.mrf.mxu3  ;;  %v16328_v6 = vld [vmem:[%s21644_s4 + $0x12d8] sm:$0xff] }
 0x322   :  { %v16317_v32 = vld [vmem:[%s21644_s4 + $0x1280] sm:$0xff] }
 0x323   :  { %v16325_v33 = vld [vmem:[%s21644_s4 + $0x12c0] sm:$0xff] }
 0x324   :  { %6113 = vmatpush.bf16.msrb.mxu0 %v16272_v10  ;;  %6126 = vmatpush.bf16.msrb.mxu1 %v16280_v11 }
 0x325   :  { %6139 = vmatpush.bf16.msrb.mxu2 %v16288_v12  ;;  %6152 = vmatpush.bf16.msrb.mxu3 %v16296_v13  ;;  %v16303_v12 = vld [vmem:[%s21644_s4 + $0x1210] sm:$0xff] }
 0x326   :  { %v16311_v13 = vld [vmem:[%s21644_s4 + $0x1250] sm:$0xff] }
 0x328   :  { %6114 = vmatpush.bf16.msrb.mxu0 %v16271_v18  ;;  %6127 = vmatpush.bf16.msrb.mxu1 %v16279_v24  ;;  %v16302_v18 = vld [vmem:[%s21644_s4 + $0x1208] sm:$0xff] }
 0x329   :  { %6140 = vmatpush.bf16.msrb.mxu2 %v16287_v25  ;;  %6153 = vmatpush.bf16.msrb.mxu3 %v16295_v26  ;;  %v16310_v24 = vld [vmem:[%s21644_s4 + $0x1248] sm:$0xff] }
 0x32a   :  { %v16318_v25 = vld [vmem:[%s21644_s4 + $0x1288] sm:$0xff] }
 0x32b   :  { %v16326_v26 = vld [vmem:[%s21644_s4 + $0x12c8] sm:$0xff] }
 0x32c   :  { %6115 = vmatpush.bf16.msrb.mxu0 %v16270_v27  ;;  %6128 = vmatpush.bf16.msrb.mxu1 %v16278_v28 }
 0x32d   :  { %6141 = vmatpush.bf16.msrb.mxu2 %v16286_v30  ;;  %6154 = vmatpush.bf16.msrb.mxu3 %v16294_v31  ;;  %v16301_v30 = vld [vmem:[%s21644_s4 + $0x1200] sm:$0xff] }
 0x32e   :  { %v16309_v31 = vld [vmem:[%s21644_s4 + $0x1240] sm:$0xff] }
 0x330   :  { %6116 = vmatpush.bf16.msrb.mxu0 %v16269_v36  ;;  %6129 = vmatpush.bf16.msrb.mxu1 %v16277_v37  ;;  %v18876_v56 = vpop.f32.mrf.mxu0  ;;  %v18878_v57 = vpop.f32.mrf.mxu1  ;;  %v16340_v36 = vld [vmem:[%s21644_s4 + $0x1338] sm:$0xff] }
 0x331   :  { %6142 = vmatpush.bf16.msrb.mxu2 %v16285_v38  ;;  %6155 = vmatpush.bf16.msrb.mxu3 %v16293_v39  ;;  %v16348_v37 = vld [vmem:[%s21644_s4 + $0x1378] sm:$0xff] }
 0x332   :  { %v16356_v38 = vld [vmem:[%s21644_s4 + $0x13b8] sm:$0xff] }
 0x333   :  { %6117 = vmatmul.bf16.vlgmr.msrb.gmra.mxu0 %v17156_v17  ;;  %6130 = vmatmul.bf16.vlgmr.msrb.gmra.mxu1 %v17158_v21  ;;  %v16364_v39 = vld [vmem:[%s21644_s4 + $0x13f8] sm:$0xff] }
 0x334   :  { %6353 = vmatpush.bf16.msra.mxu0 %v16308_v41  ;;  %6366 = vmatpush.bf16.msra.mxu1 %v16316_v42  ;;  %v16339_v41 = vld [vmem:[%s21644_s4 + $0x1330] sm:$0xff] }
 0x335   :  { %6379 = vmatpush.bf16.msra.mxu2 %v16324_v43  ;;  %6392 = vmatpush.bf16.msra.mxu3 %v16332_v44  ;;  %v16347_v42 = vld [vmem:[%s21644_s4 + $0x1370] sm:$0xff] }
 0x336   :  { %6143 = vmatmul.bf16.vlgmr.msrb.gmra.mxu2 %v17160_v22  ;;  %6156 = vmatmul.bf16.vlgmr.msrb.gmra.mxu3 %v17162_v23  ;;  %v16355_v43 = vld [vmem:[%s21644_s4 + $0x13b0] sm:$0xff] }
 0x337   :  { %v16363_v44 = vld [vmem:[%s21644_s4 + $0x13f0] sm:$0xff] }
 0x338   :  { %6354 = vmatpush.bf16.msra.mxu0 %v16307_v45  ;;  %6367 = vmatpush.bf16.msra.mxu1 %v16315_v48  ;;  %v5144_v10 = vpop.f32.mrf.mxu0  ;;  %v5157_v11 = vpop.f32.mrf.mxu1  ;;  %v16338_v45 = vld [vmem:[%s21644_s4 + $0x1328] sm:$0xff] }
 0x339   :  { %6380 = vmatpush.bf16.msra.mxu2 %v16323_v49  ;;  %6393 = vmatpush.bf16.msra.mxu3 %v16331_v50  ;;  %v18904_v7 = vpop.f32.mrf.mxu2  ;;  %v18906_v8 = vpop.f32.mrf.mxu3  ;;  %v16346_v48 = vld [vmem:[%s21644_s4 + $0x1368] sm:$0xff]  ;;  %v16360_v10 = vld [vmem:[%s21644_s4 + $0x13d8] sm:$0xff] }
 0x33a   :  { %v16765_v49 = vld [vmem:[%s21645_s5 + $0xe] ss:$0 sm:$0xff] }
 0x33b   :  { %v16354_v50 = vld [vmem:[%s21644_s4 + $0x13a8] sm:$0xff] }
 0x33c   :  { %6355 = vmatpush.bf16.msra.mxu0 %v16306_v51  ;;  %6368 = vmatpush.bf16.msra.mxu1 %v16314_v52  ;;  %v16362_v51 = vld [vmem:[%s21644_s4 + $0x13e8] sm:$0xff] }
 0x33d   :  { %6381 = vmatpush.bf16.msra.mxu2 %v16322_v53  ;;  %6394 = vmatpush.bf16.msra.mxu3 %v16330_v55 }
 0x340   :  { %6356 = vmatpush.bf16.msra.mxu0 %v16305_v59  ;;  %6369 = vmatpush.bf16.msra.mxu1 %v16313_v60  ;;  %v16337_v59 = vld [vmem:[%s21644_s4 + $0x1320] sm:$0xff] }
 0x341   :  { %6382 = vmatpush.bf16.msra.mxu2 %v16321_v62  ;;  %6395 = vmatpush.bf16.msra.mxu3 %v16329_v63  ;;  %v5170_v27 = vpop.f32.mrf.mxu2  ;;  %v5183_v28 = vpop.f32.mrf.mxu3  ;;  %v16345_v60 = vld [vmem:[%s21644_s4 + $0x1360] sm:$0xff] }
 0x342   :  { %v16353_v62 = vld [vmem:[%s21644_s4 + $0x13a0] sm:$0xff]  ;;  %v16359_v27 = vld [vmem:[%s21644_s4 + $0x13d0] sm:$0xff]  ;;  %v16334_v28 = vld [vmem:[%s21644_s4 + $0x1308] sm:$0xff] }
 0x343   :  { %v16361_v63 = vld [vmem:[%s21644_s4 + $0x13e0] sm:$0xff] }
 0x344   :  { %6357 = vmatpush.bf16.msra.mxu0 %v16304_v1  ;;  %6370 = vmatpush.bf16.msra.mxu1 %v16312_v2  ;;  %v16336_v2 = vld [vmem:[%s21644_s4 + $0x1318] sm:$0xff] }
 0x345   :  { %6383 = vmatpush.bf16.msra.mxu2 %v16320_v5  ;;  %6396 = vmatpush.bf16.msra.mxu3 %v16328_v6  ;;  %v16344_v5 = vld [vmem:[%s21644_s4 + $0x1358] sm:$0xff] }
 0x346   :  { %v16352_v6 = vld [vmem:[%s21644_s4 + $0x1398] sm:$0xff] }
 0x348   :  { %6358 = vmatpush.bf16.msra.mxu0 %v16303_v12  ;;  %6371 = vmatpush.bf16.msra.mxu1 %v16311_v13 }
 0x349   :  { %6384 = vmatpush.bf16.msra.mxu2 %v16319_v16  ;;  %6397 = vmatpush.bf16.msra.mxu3 %v16327_v20 }
 0x34c   :  { %6359 = vmatpush.bf16.msra.mxu0 %v16302_v18  ;;  %6372 = vmatpush.bf16.msra.mxu1 %v16310_v24  ;;  %v16335_v18 = vld [vmem:[%s21644_s4 + $0x1310] sm:$0xff] }
 0x34d   :  { %6385 = vmatpush.bf16.msra.mxu2 %v16318_v25  ;;  %6398 = vmatpush.bf16.msra.mxu3 %v16326_v26  ;;  %v16343_v24 = vld [vmem:[%s21644_s4 + $0x1350] sm:$0xff] }
 0x34e   :  { %v16351_v26 = vld [vmem:[%s21644_s4 + $0x1390] sm:$0xff] }
 0x350   :  { %6360 = vmatpush.bf16.msra.mxu0 %v16301_v30  ;;  %6373 = vmatpush.bf16.msra.mxu1 %v16309_v31  ;;  %v5386_v52 = vpop.f32.mrf.mxu0  ;;  %v5399_v53 = vpop.f32.mrf.mxu1  ;;  %v16342_v30 = vld [vmem:[%s21644_s4 + $0x1348] sm:$0xff] }
 0x351   :  { %6386 = vmatpush.bf16.msra.mxu2 %v16317_v32  ;;  %6399 = vmatpush.bf16.msra.mxu3 %v16325_v33  ;;  %v5387_v55 = vadd.f32 %v16765_v49, %v5386_v52  ;;  %v16350_v31 = vld [vmem:[%s21644_s4 + $0x1388] sm:$0xff]  ;;  %v16379_v49 = vld [vmem:[%s21644_s4 + $0x1470] sm:$0xff] }
 0x352   :  { %v16358_v32 = vld [vmem:[%s21644_s4 + $0x13c8] sm:$0xff] }
 0x353   :  { %6361 = vmatmul.bf16.vlgmr.msra.gmra.mxu0 %v17156_v17  ;;  %6374 = vmatmul.bf16.vlgmr.msra.gmra.mxu1 %v17158_v21  ;;  %v5400_v1 = vadd.f32 %v5399_v53, %v5387_v55  ;;  %v16370_v52 = vld [vmem:[%s21644_s4 + $0x1428] sm:$0xff] }
 0x354   :  { %6597 = vmatpush.bf16.msrb.mxu0 %v16340_v36  ;;  %6610 = vmatpush.bf16.msrb.mxu1 %v16348_v37  ;;  %v16333_v37 = vld [vmem:[%s21644_s4 + $0x1300] sm:$0xff]  ;;  %v16378_v53 = vld [vmem:[%s21644_s4 + $0x1468] sm:$0xff] }
 0x355   :  { %6623 = vmatpush.bf16.msrb.mxu2 %v16356_v38  ;;  %6636 = vmatpush.bf16.msrb.mxu3 %v16364_v39  ;;  %v16341_v38 = vld [vmem:[%s21644_s4 + $0x1340] sm:$0xff]  ;;  %v16766_v55 = vld [vmem:[%s21645_s5 + $0xf] ss:$0 sm:$0xff] }
 0x356   :  { %6387 = vmatmul.bf16.vlgmr.msra.gmra.mxu2 %v17160_v22  ;;  %6400 = vmatmul.bf16.vlgmr.msra.gmra.mxu3 %v17162_v23  ;;  %v16349_v39 = vld [vmem:[%s21644_s4 + $0x1380] sm:$0xff] }
 0x358   :  { %6598 = vmatpush.bf16.msrb.mxu0 %v16339_v41  ;;  %6611 = vmatpush.bf16.msrb.mxu1 %v16347_v42  ;;  %v5388_v16 = vpop.f32.mrf.mxu0  ;;  %v5401_v20 = vpop.f32.mrf.mxu1  ;;  %v16357_v41 = vld [vmem:[%s21644_s4 + $0x13c0] sm:$0xff]  ;;  %v16372_v42 = vld [vmem:[%s21644_s4 + $0x1438] sm:$0xff] }
 0x359   :  { %6624 = vmatpush.bf16.msrb.mxu2 %v16355_v43  ;;  %6637 = vmatpush.bf16.msrb.mxu3 %v16363_v44  ;;  %v5412_v11 = vpop.f32.mrf.mxu2  ;;  %v5425_v12 = vpop.f32.mrf.mxu3  ;;  %v16380_v43 = vld [vmem:[%s21644_s4 + $0x1478] sm:$0xff] }
 0x35a   :  { %v5413_v13 = vadd.f32 %v5412_v11, %v5400_v1  ;;  %v16388_v44 = vld [vmem:[%s21644_s4 + $0x14b8] sm:$0xff] }
 0x35b   :  { %v16384_v16 = vld [vmem:[%s21644_s4 + $0x1498] sm:$0xff] }
 0x35c   :  { %6599 = vmatpush.bf16.msrb.mxu0 %v16338_v45  ;;  %6612 = vmatpush.bf16.msrb.mxu1 %v16346_v48  ;;  %v19017_v25 = vadd.f32 %v5425_v12, %v5413_v13  ;;  %v16396_v45 = vld [vmem:[%s21644_s4 + $0x14f8] sm:$0xff]  ;;  %v16371_v48 = vld [vmem:[%s21644_s4 + $0x1430] sm:$0xff] }
 0x35d   :  { %6625 = vmatpush.bf16.msrb.mxu2 %v16354_v50  ;;  %6638 = vmatpush.bf16.msrb.mxu3 %v16362_v51  ;;  %v16387_v50 = vld [vmem:[%s21644_s4 + $0x14b0] sm:$0xff]  ;;  %v16368_v12 = vld [vmem:[%s21644_s4 + $0x1418] sm:$0xff] }
 0x35e   :  { %v16395_v51 = vld [vmem:[%s21644_s4 + $0x14f0] sm:$0xff]  ;;  %v16376_v13 = vld [vmem:[%s21644_s4 + $0x1458] sm:$0xff] }
 0x35f   :  { %v16392_v20 = vld [vmem:[%s21644_s4 + $0x14d8] sm:$0xff] }
 0x360   :  { %6600 = vmatpush.bf16.msrb.mxu0 %v16337_v59  ;;  %6613 = vmatpush.bf16.msrb.mxu1 %v16345_v60  ;;  %v16386_v59 = vld [vmem:[%s21644_s4 + $0x14a8] sm:$0xff] }
 0x361   :  { %6626 = vmatpush.bf16.msrb.mxu2 %v16353_v62  ;;  %6639 = vmatpush.bf16.msrb.mxu3 %v16361_v63  ;;  %v5414_v33 = vpop.f32.mrf.mxu2  ;;  %v5427_v36 = vpop.f32.mrf.mxu3  ;;  %v16394_v60 = vld [vmem:[%s21644_s4 + $0x14e8] sm:$0xff] }
 0x362   :  { %v16383_v33 = vld [vmem:[%s21644_s4 + $0x1490] sm:$0xff] }
 0x363   :  { %v16391_v36 = vld [vmem:[%s21644_s4 + $0x14d0] sm:$0xff] }
 0x364   :  { %6601 = vmatpush.bf16.msrb.mxu0 %v16336_v2  ;;  %6614 = vmatpush.bf16.msrb.mxu1 %v16344_v5  ;;  %v16369_v2 = vld [vmem:[%s21644_s4 + $0x1420] sm:$0xff] }
 0x365   :  { %6627 = vmatpush.bf16.msrb.mxu2 %v16352_v6  ;;  %6640 = vmatpush.bf16.msrb.mxu3 %v16360_v10  ;;  %v16377_v5 = vld [vmem:[%s21644_s4 + $0x1460] sm:$0xff] }
 0x366   :  { %v16385_v6 = vld [vmem:[%s21644_s4 + $0x14a0] sm:$0xff] }
 0x367   :  { %v16393_v10 = vld [vmem:[%s21644_s4 + $0x14e0] sm:$0xff] }
 0x368   :  { %6602 = vmatpush.bf16.msrb.mxu0 %v16335_v18  ;;  %6615 = vmatpush.bf16.msrb.mxu1 %v16343_v24 }
 0x369   :  { %6628 = vmatpush.bf16.msrb.mxu2 %v16351_v26  ;;  %6641 = vmatpush.bf16.msrb.mxu3 %v16359_v27 }
 0x36c   :  { %6603 = vmatpush.bf16.msrb.mxu0 %v16334_v28  ;;  %6616 = vmatpush.bf16.msrb.mxu1 %v16342_v30  ;;  %v16367_v30 = vld [vmem:[%s21644_s4 + $0x1410] sm:$0xff] }
 0x36d   :  { %6629 = vmatpush.bf16.msrb.mxu2 %v16350_v31  ;;  %6642 = vmatpush.bf16.msrb.mxu3 %v16358_v32  ;;  %v16375_v31 = vld [vmem:[%s21644_s4 + $0x1450] sm:$0xff] }
 0x370   :  { %6604 = vmatpush.bf16.msrb.mxu0 %v16333_v37  ;;  %6617 = vmatpush.bf16.msrb.mxu1 %v16341_v38  ;;  %v5630_v62 = vpop.f32.mrf.mxu0  ;;  %v5643_v63 = vpop.f32.mrf.mxu1  ;;  %v16366_v37 = vld [vmem:[%s21644_s4 + $0x1408] sm:$0xff] }
 0x371   :  { %6630 = vmatpush.bf16.msrb.mxu2 %v16349_v39  ;;  %6643 = vmatpush.bf16.msrb.mxu3 %v16357_v41  ;;  %v5631_v1 = vadd.f32 %v16766_v55, %v5630_v62  ;;  %v16374_v38 = vld [vmem:[%s21644_s4 + $0x1448] sm:$0xff]  ;;  %v16403_v55 = vld [vmem:[%s21644_s4 + $0x1530] sm:$0xff] }
 0x372   :  { %v16382_v39 = vld [vmem:[%s21644_s4 + $0x1488] sm:$0xff]  ;;  %v16427_v62 = vld [vmem:[%s21644_s4 + $0x15f0] sm:$0xff] }
 0x373   :  { %6605 = vmatmul.bf16.vlgmr.msrb.gmra.mxu0 %v17156_v17  ;;  %6618 = vmatmul.bf16.vlgmr.msrb.gmra.mxu1 %v17158_v21  ;;  %v5644_v11 = vadd.f32 %v5643_v63, %v5631_v1  ;;  %v16390_v41 = vld [vmem:[%s21644_s4 + $0x14c8] sm:$0xff] }
 0x374   :  { %6841 = vmatpush.bf16.msra.mxu0 %v16372_v42  ;;  %6854 = vmatpush.bf16.msra.mxu1 %v16380_v43  ;;  %v16402_v63 = vld [vmem:[%s21644_s4 + $0x1528] sm:$0xff] }
 0x375   :  { %6867 = vmatpush.bf16.msra.mxu2 %v16388_v44  ;;  %6880 = vmatpush.bf16.msra.mxu3 %v16396_v45  ;;  %v16365_v44 = vld [vmem:[%s21644_s4 + $0x1400] sm:$0xff]  ;;  %v16410_v1 = vld [vmem:[%s21644_s4 + $0x1568] sm:$0xff] }
 0x376   :  { %6631 = vmatmul.bf16.vlgmr.msrb.gmra.mxu2 %v17160_v22  ;;  %6644 = vmatmul.bf16.vlgmr.msrb.gmra.mxu3 %v17162_v23  ;;  %v16373_v45 = vld [vmem:[%s21644_s4 + $0x1440] sm:$0xff] }
 0x378   :  { %6842 = vmatpush.bf16.msra.mxu0 %v16371_v48  ;;  %6855 = vmatpush.bf16.msra.mxu1 %v16379_v49  ;;  %v5632_v27 = vpop.f32.mrf.mxu0  ;;  %v5645_v28 = vpop.f32.mrf.mxu1  ;;  %v16381_v48 = vld [vmem:[%s21644_s4 + $0x1480] sm:$0xff] }
 0x379   :  { %6868 = vmatpush.bf16.msra.mxu2 %v16387_v50  ;;  %6881 = vmatpush.bf16.msra.mxu3 %v16395_v51  ;;  %v5656_v18 = vpop.f32.mrf.mxu2  ;;  %v5669_v24 = vpop.f32.mrf.mxu3  ;;  %v16389_v49 = vld [vmem:[%s21644_s4 + $0x14c0] sm:$0xff]  ;;  %v16404_v50 = vld [vmem:[%s21644_s4 + $0x1538] sm:$0xff] }
 0x37a   :  { %v5657_v26 = vadd.f32 %v5656_v18, %v5644_v11  ;;  %v16412_v51 = vld [vmem:[%s21644_s4 + $0x1578] sm:$0xff]  ;;  %v16425_v18 = vld [vmem:[%s21644_s4 + $0x15e0] sm:$0xff] }
 0x37b   :  { %v16408_v27 = vld [vmem:[%s21644_s4 + $0x1558] sm:$0xff] }
 0x37c   :  { %6843 = vmatpush.bf16.msra.mxu0 %v16370_v52  ;;  %6856 = vmatpush.bf16.msra.mxu1 %v16378_v53  ;;  %v19122_v32 = vadd.f32 %v5669_v24, %v5657_v26  ;;  %v16420_v52 = vld [vmem:[%s21644_s4 + $0x15b8] sm:$0xff] }
 0x37d   :  { %6869 = vmatpush.bf16.msra.mxu2 %v16386_v59  ;;  %6882 = vmatpush.bf16.msra.mxu3 %v16394_v60  ;;  %v16428_v53 = vld [vmem:[%s21644_s4 + $0x15f8] sm:$0xff]  ;;  %v16411_v59 = vld [vmem:[%s21644_s4 + $0x1570] sm:$0xff] }
 0x37e   :  { %v16419_v60 = vld [vmem:[%s21644_s4 + $0x15b0] sm:$0xff]  ;;  %v16400_v26 = vld [vmem:[%s21644_s4 + $0x1518] sm:$0xff] }
 0x37f   :  { %v16416_v28 = vld [vmem:[%s21644_s4 + $0x1598] sm:$0xff] }
 0x380   :  { %6844 = vmatpush.bf16.msra.mxu0 %v16369_v2  ;;  %6857 = vmatpush.bf16.msra.mxu1 %v16377_v5  ;;  %v16767_v2 = vld [vmem:[%s21645_s5 + $0x10] ss:$0 sm:$0xff]  ;;  %v16418_v5 = vld [vmem:[%s21644_s4 + $0x15a8] sm:$0xff] }
 0x381   :  { %6870 = vmatpush.bf16.msra.mxu2 %v16385_v6  ;;  %6883 = vmatpush.bf16.msra.mxu3 %v16393_v10  ;;  %v5658_v42 = vpop.f32.mrf.mxu2  ;;  %v5671_v43 = vpop.f32.mrf.mxu3  ;;  %v16426_v6 = vld [vmem:[%s21644_s4 + $0x15e8] sm:$0xff] }
 0x382   :  { %v16415_v43 = vld [vmem:[%s21644_s4 + $0x1590] sm:$0xff] }
 0x384   :  { %6845 = vmatpush.bf16.msra.mxu0 %v16368_v12  ;;  %6858 = vmatpush.bf16.msra.mxu1 %v16376_v13  ;;  %v16401_v13 = vld [vmem:[%s21644_s4 + $0x1520] sm:$0xff] }
 0x385   :  { %6871 = vmatpush.bf16.msra.mxu2 %v16384_v16  ;;  %6884 = vmatpush.bf16.msra.mxu3 %v16392_v20  ;;  %v16409_v16 = vld [vmem:[%s21644_s4 + $0x1560] sm:$0xff] }
 0x386   :  { %v16417_v20 = vld [vmem:[%s21644_s4 + $0x15a0] sm:$0xff] }
 0x388   :  { %6846 = vmatpush.bf16.msra.mxu0 %v16367_v30  ;;  %6859 = vmatpush.bf16.msra.mxu1 %v16375_v31  ;;  %v16424_v30 = vld [vmem:[%s21644_s4 + $0x15d8] sm:$0xff] }
 0x389   :  { %6872 = vmatpush.bf16.msra.mxu2 %v16383_v33  ;;  %6885 = vmatpush.bf16.msra.mxu3 %v16391_v36 }
 0x38c   :  { %6847 = vmatpush.bf16.msra.mxu0 %v16366_v37  ;;  %6860 = vmatpush.bf16.msra.mxu1 %v16374_v38 }
 0x38d   :  { %6873 = vmatpush.bf16.msra.mxu2 %v16382_v39  ;;  %6886 = vmatpush.bf16.msra.mxu3 %v16390_v41  ;;  %v16399_v39 = vld [vmem:[%s21644_s4 + $0x1510] sm:$0xff] }
 0x38e   :  { %v16407_v41 = vld [vmem:[%s21644_s4 + $0x1550] sm:$0xff] }
 0x390   :  { %6848 = vmatpush.bf16.msra.mxu0 %v16365_v44  ;;  %6861 = vmatpush.bf16.msra.mxu1 %v16373_v45  ;;  %v5874_v10 = vpop.f32.mrf.mxu0  ;;  %v5887_v11 = vpop.f32.mrf.mxu1  ;;  %v16423_v44 = vld [vmem:[%s21644_s4 + $0x15d0] sm:$0xff]  ;;  %v16398_v45 = vld [vmem:[%s21644_s4 + $0x1508] sm:$0xff] }
 0x391   :  { %6874 = vmatpush.bf16.msra.mxu2 %v16381_v48  ;;  %6887 = vmatpush.bf16.msra.mxu3 %v16389_v49  ;;  %v5875_v12 = vadd.f32 %v16767_v2, %v5874_v10  ;;  %v16406_v48 = vld [vmem:[%s21644_s4 + $0x1548] sm:$0xff]  ;;  %v16460_v2 = vld [vmem:[%s21644_s4 + $0x16f8] sm:$0xff]  ;;  %v16451_v10 = vld [vmem:[%s21644_s4 + $0x16b0] sm:$0xff] }
 0x392   :  { %v16414_v49 = vld [vmem:[%s21644_s4 + $0x1588] sm:$0xff] }
 0x393   :  { %6849 = vmatmul.bf16.vlgmr.msra.gmra.mxu0 %v17156_v17  ;;  %6862 = vmatmul.bf16.vlgmr.msra.gmra.mxu1 %v17158_v21  ;;  %v5888_v24 = vadd.f32 %v5887_v11, %v5875_v12  ;;  %v16459_v11 = vld [vmem:[%s21644_s4 + $0x16f0] sm:$0xff]  ;;  %v16434_v12 = vld [vmem:[%s21644_s4 + $0x1628] sm:$0xff] }
 0x394   :  { %7085 = vmatpush.bf16.msrb.mxu0 %v16404_v50  ;;  %7098 = vmatpush.bf16.msrb.mxu1 %v16412_v51  ;;  %v16422_v50 = vld [vmem:[%s21644_s4 + $0x15c8] sm:$0xff] }
 0x395   :  { %7111 = vmatpush.bf16.msrb.mxu2 %v16420_v52  ;;  %7124 = vmatpush.bf16.msrb.mxu3 %v16428_v53  ;;  %v16397_v53 = vld [vmem:[%s21644_s4 + $0x1500] sm:$0xff] }
 0x396   :  { %6875 = vmatmul.bf16.vlgmr.msra.gmra.mxu2 %v17160_v22  ;;  %6888 = vmatmul.bf16.vlgmr.msra.gmra.mxu3 %v17162_v23 }
 0x398   :  { %7086 = vmatpush.bf16.msrb.mxu0 %v16403_v55  ;;  %7099 = vmatpush.bf16.msrb.mxu1 %v16411_v59  ;;  %v5876_v37 = vpop.f32.mrf.mxu0  ;;  %v5889_v38 = vpop.f32.mrf.mxu1  ;;  %v16405_v55 = vld [vmem:[%s21644_s4 + $0x1540] sm:$0xff] }
 0x399   :  { %7112 = vmatpush.bf16.msrb.mxu2 %v16419_v60  ;;  %7125 = vmatpush.bf16.msrb.mxu3 %v16427_v62  ;;  %v5900_v31 = vpop.f32.mrf.mxu2  ;;  %v5913_v33 = vpop.f32.mrf.mxu3  ;;  %v16413_v59 = vld [vmem:[%s21644_s4 + $0x1580] sm:$0xff]  ;;  %v16436_v62 = vld [vmem:[%s21644_s4 + $0x1638] sm:$0xff] }
 0x39a   :  { %v5901_v36 = vadd.f32 %v5900_v31, %v5888_v24  ;;  %v16421_v60 = vld [vmem:[%s21644_s4 + $0x15c0] sm:$0xff]  ;;  %v16432_v37 = vld [vmem:[%s21644_s4 + $0x1618] sm:$0xff] }
 0x39b   :  { %v16449_v31 = vld [vmem:[%s21644_s4 + $0x16a0] sm:$0xff]  ;;  %v16440_v38 = vld [vmem:[%s21644_s4 + $0x1658] sm:$0xff] }
 0x39c   :  { %7087 = vmatpush.bf16.msrb.mxu0 %v16402_v63  ;;  %7100 = vmatpush.bf16.msrb.mxu1 %v16410_v1  ;;  %v19227_v42 = vadd.f32 %v5913_v33, %v5901_v36  ;;  %v16444_v63 = vld [vmem:[%s21644_s4 + $0x1678] sm:$0xff]  ;;  %v16457_v33 = vld [vmem:[%s21644_s4 + $0x16e0] sm:$0xff] }
 0x39d   :  { %7113 = vmatpush.bf16.msrb.mxu2 %v16418_v5  ;;  %7126 = vmatpush.bf16.msrb.mxu3 %v16426_v6  ;;  %v16452_v1 = vld [vmem:[%s21644_s4 + $0x16b8] sm:$0xff]  ;;  %v16435_v5 = vld [vmem:[%s21644_s4 + $0x1630] sm:$0xff] }
 0x39e   :  { %v16443_v6 = vld [vmem:[%s21644_s4 + $0x1670] sm:$0xff] }
 0x3a0   :  { %7088 = vmatpush.bf16.msrb.mxu0 %v16401_v13  ;;  %7101 = vmatpush.bf16.msrb.mxu1 %v16409_v16  ;;  %v16442_v13 = vld [vmem:[%s21644_s4 + $0x1668] sm:$0xff]  ;;  %v16768_v16 = vld [vmem:[%s21645_s5 + $0x11] ss:$0 sm:$0xff] }
 0x3a1   :  { %7114 = vmatpush.bf16.msrb.mxu2 %v16417_v20  ;;  %7127 = vmatpush.bf16.msrb.mxu3 %v16425_v18  ;;  %v5902_v51 = vpop.f32.mrf.mxu2  ;;  %v5915_v52 = vpop.f32.mrf.mxu3  ;;  %v16450_v20 = vld [vmem:[%s21644_s4 + $0x16a8] sm:$0xff] }
 0x3a2   :  { %v16458_v18 = vld [vmem:[%s21644_s4 + $0x16e8] sm:$0xff]  ;;  %v16447_v51 = vld [vmem:[%s21644_s4 + $0x1690] sm:$0xff] }
 0x3a3   :  { %v16455_v52 = vld [vmem:[%s21644_s4 + $0x16d0] sm:$0xff] }
 0x3a4   :  { %7089 = vmatpush.bf16.msrb.mxu0 %v16400_v26  ;;  %7102 = vmatpush.bf16.msrb.mxu1 %v16408_v27 }
 0x3a5   :  { %7115 = vmatpush.bf16.msrb.mxu2 %v16416_v28  ;;  %7128 = vmatpush.bf16.msrb.mxu3 %v16424_v30  ;;  %v16433_v28 = vld [vmem:[%s21644_s4 + $0x1620] sm:$0xff] }
 0x3a6   :  { %v16441_v30 = vld [vmem:[%s21644_s4 + $0x1660] sm:$0xff] }
 0x3a8   :  { %7090 = vmatpush.bf16.msrb.mxu0 %v16399_v39  ;;  %7103 = vmatpush.bf16.msrb.mxu1 %v16407_v41  ;;  %v16448_v39 = vld [vmem:[%s21644_s4 + $0x1698] sm:$0xff] }
 0x3a9   :  { %7116 = vmatpush.bf16.msrb.mxu2 %v16415_v43  ;;  %7129 = vmatpush.bf16.msrb.mxu3 %v16423_v44  ;;  %v16456_v41 = vld [vmem:[%s21644_s4 + $0x16d8] sm:$0xff] }
 0x3ac   :  { %7091 = vmatpush.bf16.msrb.mxu0 %v16398_v45  ;;  %7104 = vmatpush.bf16.msrb.mxu1 %v16406_v48 }
 0x3ad   :  { %7117 = vmatpush.bf16.msrb.mxu2 %v16414_v49  ;;  %7130 = vmatpush.bf16.msrb.mxu3 %v16422_v50  ;;  %v16431_v49 = vld [vmem:[%s21644_s4 + $0x1610] sm:$0xff] }
 0x3ae   :  { %v16439_v50 = vld [vmem:[%s21644_s4 + $0x1650] sm:$0xff] }
 0x3b0   :  { %7092 = vmatpush.bf16.msrb.mxu0 %v16397_v53  ;;  %7105 = vmatpush.bf16.msrb.mxu1 %v16405_v55  ;;  %v6118_v24 = vpop.f32.mrf.mxu0  ;;  %v6131_v26 = vpop.f32.mrf.mxu1  ;;  %v16430_v53 = vld [vmem:[%s21644_s4 + $0x1608] sm:$0xff] }
 0x3b1   :  { %7118 = vmatpush.bf16.msrb.mxu2 %v16413_v59  ;;  %7131 = vmatpush.bf16.msrb.mxu3 %v16421_v60  ;;  %v6119_v27 = vadd.f32 %v16768_v16, %v6118_v24  ;;  %v16438_v55 = vld [vmem:[%s21644_s4 + $0x1648] sm:$0xff]  ;;  %v16467_v16 = vld [vmem:[%s21644_s4 + $0x1730] sm:$0xff] }
 0x3b2   :  { %v16446_v59 = vld [vmem:[%s21644_s4 + $0x1688] sm:$0xff]  ;;  %v16491_v24 = vld [vmem:[%s21644_s4 + $0x17f0] sm:$0xff] }
 0x3b3   :  { %7093 = vmatmul.bf16.vlgmr.msrb.gmra.mxu0 %v17156_v17  ;;  %7106 = vmatmul.bf16.vlgmr.msrb.gmra.mxu1 %v17158_v21  ;;  %v19314_v36 = vadd.f32 %v6131_v26, %v6119_v27  ;;  %v16454_v60 = vld [vmem:[%s21644_s4 + $0x16c8] sm:$0xff] }
 0x3b4   :  { %7329 = vmatpush.bf16.msra.mxu0 %v16436_v62  ;;  %7342 = vmatpush.bf16.msra.mxu1 %v16444_v63  ;;  %v16466_v26 = vld [vmem:[%s21644_s4 + $0x1728] sm:$0xff] }
 0x3b5   :  { %7355 = vmatpush.bf16.msra.mxu2 %v16452_v1  ;;  %7368 = vmatpush.bf16.msra.mxu3 %v16460_v2  ;;  %v16429_v1 = vld [vmem:[%s21644_s4 + $0x1600] sm:$0xff]  ;;  %v16474_v27 = vld [vmem:[%s21644_s4 + $0x1768] sm:$0xff] }
 0x3b6   :  { %7119 = vmatmul.bf16.vlgmr.msrb.gmra.mxu2 %v17160_v22  ;;  %7132 = vmatmul.bf16.vlgmr.msrb.gmra.mxu3 %v17162_v23  ;;  %v16437_v2 = vld [vmem:[%s21644_s4 + $0x1640] sm:$0xff] }
 0x3b8   :  { %7330 = vmatpush.bf16.msra.mxu0 %v16435_v5  ;;  %7343 = vmatpush.bf16.msra.mxu1 %v16443_v6  ;;  %v6120_v45 = vpop.f32.mrf.mxu0  ;;  %v6133_v48 = vpop.f32.mrf.mxu1  ;;  %v16445_v5 = vld [vmem:[%s21644_s4 + $0x1680] sm:$0xff] }
 0x3b9   :  { %7356 = vmatpush.bf16.msra.mxu2 %v16451_v10  ;;  %7369 = vmatpush.bf16.msra.mxu3 %v16459_v11  ;;  %v19328_v43 = vpop.f32.mrf.mxu2  ;;  %v19330_v44 = vpop.f32.mrf.mxu3  ;;  %v16453_v6 = vld [vmem:[%s21644_s4 + $0x16c0] sm:$0xff]  ;;  %v16468_v10 = vld [vmem:[%s21644_s4 + $0x1738] sm:$0xff] }
 0x3ba   :  { %v16476_v11 = vld [vmem:[%s21644_s4 + $0x1778] sm:$0xff] }
 0x3bb   :  { %v16464_v45 = vld [vmem:[%s21644_s4 + $0x1718] sm:$0xff] }
 0x3bc   :  { %7331 = vmatpush.bf16.msra.mxu0 %v16434_v12  ;;  %7344 = vmatpush.bf16.msra.mxu1 %v16442_v13  ;;  %v16484_v12 = vld [vmem:[%s21644_s4 + $0x17b8] sm:$0xff] }
 0x3bd   :  { %7357 = vmatpush.bf16.msra.mxu2 %v16450_v20  ;;  %7370 = vmatpush.bf16.msra.mxu3 %v16458_v18  ;;  %v16492_v13 = vld [vmem:[%s21644_s4 + $0x17f8] sm:$0xff]  ;;  %v16475_v20 = vld [vmem:[%s21644_s4 + $0x1770] sm:$0xff] }
 0x3be   :  { %v16483_v18 = vld [vmem:[%s21644_s4 + $0x17b0] sm:$0xff]  ;;  %v16472_v48 = vld [vmem:[%s21644_s4 + $0x1758] sm:$0xff] }
 0x3c0   :  { %7332 = vmatpush.bf16.msra.mxu0 %v16433_v28  ;;  %7345 = vmatpush.bf16.msra.mxu1 %v16441_v30  ;;  %v16482_v28 = vld [vmem:[%s21644_s4 + $0x17a8] sm:$0xff] }
 0x3c1   :  { %7358 = vmatpush.bf16.msra.mxu2 %v16449_v31  ;;  %7371 = vmatpush.bf16.msra.mxu3 %v16457_v33  ;;  %v6146_v62 = vpop.f32.mrf.mxu2  ;;  %v6159_v63 = vpop.f32.mrf.mxu3  ;;  %v16490_v30 = vld [vmem:[%s21644_s4 + $0x17e8] sm:$0xff] }
 0x3c2   :  { %v16479_v62 = vld [vmem:[%s21644_s4 + $0x1790] sm:$0xff] }
 0x3c3   :  { %v16487_v63 = vld [vmem:[%s21644_s4 + $0x17d0] sm:$0xff] }
 0x3c4   :  { %7333 = vmatpush.bf16.msra.mxu0 %v16432_v37  ;;  %7346 = vmatpush.bf16.msra.mxu1 %v16440_v38  ;;  %v16465_v37 = vld [vmem:[%s21644_s4 + $0x1720] sm:$0xff] }
 0x3c5   :  { %7359 = vmatpush.bf16.msra.mxu2 %v16448_v39  ;;  %7372 = vmatpush.bf16.msra.mxu3 %v16456_v41  ;;  %v16473_v38 = vld [vmem:[%s21644_s4 + $0x1760] sm:$0xff] }
 0x3c6   :  { %v16481_v39 = vld [vmem:[%s21644_s4 + $0x17a0] sm:$0xff] }
 0x3c7   :  { %v16489_v41 = vld [vmem:[%s21644_s4 + $0x17e0] sm:$0xff] }
 0x3c8   :  { %7334 = vmatpush.bf16.msra.mxu0 %v16431_v49  ;;  %7347 = vmatpush.bf16.msra.mxu1 %v16439_v50  ;;  %v16480_v49 = vld [vmem:[%s21644_s4 + $0x1798] sm:$0xff] }
 0x3c9   :  { %7360 = vmatpush.bf16.msra.mxu2 %v16447_v51  ;;  %7373 = vmatpush.bf16.msra.mxu3 %v16455_v52  ;;  %v16488_v50 = vld [vmem:[%s21644_s4 + $0x17d8] sm:$0xff] }
 0x3cc   :  { %7335 = vmatpush.bf16.msra.mxu0 %v16430_v53  ;;  %7348 = vmatpush.bf16.msra.mxu1 %v16438_v55 }
 0x3cd   :  { %7361 = vmatpush.bf16.msra.mxu2 %v16446_v59  ;;  %7374 = vmatpush.bf16.msra.mxu3 %v16454_v60  ;;  %v16463_v59 = vld [vmem:[%s21644_s4 + $0x1710] sm:$0xff] }
 0x3ce   :  { %v16471_v60 = vld [vmem:[%s21644_s4 + $0x1750] sm:$0xff] }
 0x3d0   :  { %7336 = vmatpush.bf16.msra.mxu0 %v16429_v1  ;;  %7349 = vmatpush.bf16.msra.mxu1 %v16437_v2  ;;  %v19408_v31 = vpop.f32.mrf.mxu0  ;;  %v19410_v33 = vpop.f32.mrf.mxu1  ;;  %v16763_v1 = vld [vmem:[%s21645_s5 + $0xc] ss:$0 sm:$0xff]  ;;  %v16764_v2 = vld [vmem:[%s21645_s5 + $0xd] ss:$0 sm:$0xff] }
 0x3d1   :  { %7362 = vmatpush.bf16.msra.mxu2 %v16445_v5  ;;  %7375 = vmatpush.bf16.msra.mxu3 %v16453_v6  ;;  %v16462_v5 = vld [vmem:[%s21644_s4 + $0x1708] sm:$0xff] }
 0x3d2   :  { %v16470_v6 = vld [vmem:[%s21644_s4 + $0x1748] sm:$0xff] }
 0x3d3   :  { %7337 = vmatmul.bf16.vlgmr.msra.gmra.mxu0 %v17156_v17  ;;  %7350 = vmatmul.bf16.vlgmr.msra.gmra.mxu1 %v17158_v21 }
 0x3d4   :  { %7573 = vmatpush.bf16.msrb.mxu0 %v16468_v10  ;;  %7586 = vmatpush.bf16.msrb.mxu1 %v16476_v11  ;;  %v16478_v10 = vld [vmem:[%s21644_s4 + $0x1788] sm:$0xff] }
 0x3d5   :  { %7599 = vmatpush.bf16.msrb.mxu2 %v16484_v12  ;;  %7612 = vmatpush.bf16.msrb.mxu3 %v16492_v13  ;;  %v16486_v11 = vld [vmem:[%s21644_s4 + $0x17c8] sm:$0xff]  ;;  %v4899_v12 = vadd.f32 %v16763_v1, %v18768_v3  ;;  %v5143_v13 = vadd.f32 %v16764_v2, %v18876_v56  ;;  %v16477_v3 = vld [vmem:[%s21644_s4 + $0x1780] sm:$0xff] }
 0x3d6   :  { %7363 = vmatmul.bf16.vlgmr.msra.gmra.mxu2 %v17160_v22  ;;  %7376 = vmatmul.bf16.vlgmr.msra.gmra.mxu3 %v17162_v23  ;;  %v16485_v56 = vld [vmem:[%s21644_s4 + $0x17c0] sm:$0xff] }
 0x3d8   :  { %7574 = vmatpush.bf16.msrb.mxu0 %v16467_v16  ;;  %7587 = vmatpush.bf16.msrb.mxu1 %v16475_v20  ;;  %v6364_v53 = vpop.f32.mrf.mxu0  ;;  %v6377_v55 = vpop.f32.mrf.mxu1 }
 0x3d9   :  { %7600 = vmatpush.bf16.msrb.mxu2 %v16483_v18  ;;  %7613 = vmatpush.bf16.msrb.mxu3 %v16491_v24  ;;  %v19436_v51 = vpop.f32.mrf.mxu2  ;;  %v19438_v52 = vpop.f32.mrf.mxu3  ;;  %v16461_v18 = vld [vmem:[%s21644_s4 + $0x1700] sm:$0xff] }
 0x3da   :  { %v16469_v24 = vld [vmem:[%s21644_s4 + $0x1740] sm:$0xff] }
 0x3dc   :  { %7575 = vmatpush.bf16.msrb.mxu0 %v16466_v26  ;;  %7588 = vmatpush.bf16.msrb.mxu1 %v16474_v27  ;;  %v4912_v26 = vadd.f32 %v18770_v4, %v4899_v12  ;;  %v5156_v27 = vadd.f32 %v18878_v57, %v5143_v13 }
 0x3dd   :  { %7601 = vmatpush.bf16.msrb.mxu2 %v16482_v28  ;;  %7614 = vmatpush.bf16.msrb.mxu3 %v16490_v30 }
 0x3de   :  { %v4925_v28 = vadd.f32 %v18796_v14, %v4912_v26  ;;  %v5169_v30 = vadd.f32 %v18904_v7, %v5156_v27 }
 0x3e0   :  { %7576 = vmatpush.bf16.msrb.mxu0 %v16465_v37  ;;  %7589 = vmatpush.bf16.msrb.mxu1 %v16473_v38  ;;  %v19497_v4 = vadd.f32 %v18798_v15, %v4925_v28  ;;  %v19500_v14 = vadd.f32 %v18906_v8, %v5169_v30  ;;  %v16769_v15 = vld [vmem:[%s21645_s5 + $0x12] ss:$0 sm:$0xff]  ;;  %v6145_v37 = vadd.f32 %v19328_v43, %v19314_v36  ;;  %v16773_v30 = vld [vmem:[%s21645_s5 + $0x16] ss:$0 sm:$0xff] }
 0x3e1   :  { %7602 = vmatpush.bf16.msrb.mxu2 %v16481_v39  ;;  %7615 = vmatpush.bf16.msrb.mxu3 %v16489_v41  ;;  %v6390_v16 = vpop.f32.mrf.mxu2  ;;  %v6403_v20 = vpop.f32.mrf.mxu3 }
 0x3e2   :  { %v19528_v53 = vadd.f32 %v19330_v44, %v6145_v37 }
 0x3e4   :  { %7577 = vmatpush.bf16.msrb.mxu0 %v16464_v45  ;;  %7590 = vmatpush.bf16.msrb.mxu1 %v16472_v48 }
 0x3e5   :  { %7603 = vmatpush.bf16.msrb.mxu2 %v16480_v49  ;;  %7616 = vmatpush.bf16.msrb.mxu3 %v16488_v50 }
 0x3e8   :  { %7578 = vmatpush.bf16.msrb.mxu0 %v16463_v59  ;;  %7591 = vmatpush.bf16.msrb.mxu1 %v16471_v60 }
 0x3e9   :  { %7604 = vmatpush.bf16.msrb.mxu2 %v16479_v62  ;;  %7617 = vmatpush.bf16.msrb.mxu3 %v16487_v63 }
 0x3ec   :  { %7579 = vmatpush.bf16.msrb.mxu0 %v16462_v5  ;;  %7592 = vmatpush.bf16.msrb.mxu1 %v16470_v6 }
 0x3ed   :  { %7605 = vmatpush.bf16.msrb.mxu2 %v16478_v10  ;;  %7618 = vmatpush.bf16.msrb.mxu3 %v16486_v11  ;;  %v16772_v10 = vld [vmem:[%s21645_s5 + $0x15] ss:$0 sm:$0xff] }
 0x3f0   :  { %7580 = vmatpush.bf16.msrb.mxu0 %v16461_v18  ;;  %7593 = vmatpush.bf16.msrb.mxu1 %v16469_v24 }
 0x3f1   :  { %7606 = vmatpush.bf16.msrb.mxu2 %v16477_v3  ;;  %7619 = vmatpush.bf16.msrb.mxu3 %v16485_v56 }
 0x3f3   :  { %7581 = vmatmul.bf16.vlgmr.msrb.gmra.mxu0 %v17156_v17  ;;  %7594 = vmatmul.bf16.vlgmr.msrb.gmra.mxu1 %v17158_v21  ;;  %v16770_v17 = vld [vmem:[%s21645_s5 + $0x13] ss:$0 sm:$0xff]  ;;  %v6606_v21 = vpop.f32.mrf.mxu0 }
 0x3f4   :  { %14573 = vmatpush.xpose.msk.msra.mxu0 %vm7633_vm7, %v18381_v54  ;;  %14575 = vmatpush.xpose.msk.msra.mxu1 %vm7633_vm7, %v18486_v46  ;;  %v6607_v57 = vadd.f32 %v16770_v17, %v6606_v21 }
 0x3f5   :  { %14577 = vmatpush.xpose.msk.msra.mxu2 %vm7633_vm7, %v18591_v40  ;;  %14579 = vmatpush.xpose.msk.msra.mxu3 %vm7633_vm7, %v18696_v34 }
 0x3f6   :  { %7607 = vmatmul.bf16.vlgmr.msrb.gmra.mxu2 %v17160_v22  ;;  %7620 = vmatmul.bf16.vlgmr.msrb.gmra.mxu3 %v17162_v23  ;;  %v6619_v22 = vpop.f32.mrf.mxu1  ;;  %v6363_v23 = vadd.f32 %v16769_v15, %v19408_v31  ;;  %v16771_v31 = vld [vmem:[%s21645_s5 + $0x14] ss:$0 sm:$0xff] }
 0x3f7   :  { %v6620_v8 = vadd.f32 %v6619_v22, %v6607_v57 }
 0x3f8   :  { %14581 = vmatpush.xpose.msk.msrb.mxu0 %vm7633_vm7, %v19497_v4  ;;  %14583 = vmatpush.xpose.msk.msrb.mxu1 %vm7633_vm7, %v19500_v14  ;;  %v6376_v7 = vadd.f32 %v19410_v33, %v6363_v23 }
 0x3f9   :  { %14585 = vmatpush.xpose.msk.msrb.mxu2 %vm7633_vm7, %v19017_v25  ;;  %14587 = vmatpush.xpose.msk.msrb.mxu3 %vm7633_vm7, %v19122_v32  ;;  %v6632_v38 = vpop.f32.mrf.mxu2  ;;  %v6645_v39 = vpop.f32.mrf.mxu3 }
 0x3fa   :  { %v6389_v41 = vadd.f32 %v19436_v51, %v6376_v7  ;;  %v6633_v45 = vadd.f32 %v6632_v38, %v6620_v8 }
 0x3fb   :  { %v6608_v48 = vpop.f32.mrf.mxu0 }
 0x3fc   :  { %v19525_v50 = vadd.f32 %v6645_v39, %v6633_v45  ;;  %v19535_v36 = vadd.f32 %v19438_v52, %v6389_v41  ;;  %v16774_v45 = vld [vmem:[%s21645_s5 + $0x17] ss:$0 sm:$0xff]  ;;  %s11490_s5 = sshll.u32 %s16880_s27, 4  ;;  %s11491_s5 = int_to_ptr.vmem [resolvable:$true] %s11490_s5 }
 0x3fe   :  { %v6621_v49 = vpop.f32.mrf.mxu1 }
 0x401   :  { %v6634_v43 = vpop.f32.mrf.mxu2  ;;  %v6647_v44 = vpop.f32.mrf.mxu3 }
 0x403   :  { %14574 = vmatmul.msk.f32.vlgmr.msra.gmra.mxu0 %vm7633_vm7, %v17629_v58  ;;  %14576 = vmatmul.msk.f32.vlgmr.msra.gmra.mxu1 %vm7633_vm7, %v17688_v29 }
 0x404   :  { %14589 = vmatpush.msk.msra.mxu0 %vm8055_vm8, %v19227_v42  ;;  %14591 = vmatpush.msk.msra.mxu1 %vm8055_vm8, %v19528_v53 }
 0x406   :  { %14578 = vmatmul.msk.f32.vlgmr.msra.gmra.mxu2 %vm7633_vm7, %v17751_v61  ;;  %14580 = vmatmul.msk.f32.vlgmr.msra.gmra.mxu3 %vm7633_vm7, %v17856_v47 }
 0x407   :  { %14593 = vmatpush.msk.msra.mxu2 %vm8055_vm8, %v19535_v36  ;;  %14595 = vmatpush.msk.msra.mxu3 %vm8055_vm8, %v19525_v50 }
 0x40b   :  { %14582 = vmatmul.msk.f32.vlgmr.msrb.gmra.mxu0 %vm7633_vm7, %v17961_v35  ;;  %14584 = vmatmul.msk.f32.vlgmr.msrb.gmra.mxu1 %vm7633_vm7, %v18066_v19 }
 0x40e   :  { %14586 = vmatmul.msk.f32.vlgmr.msrb.gmra.mxu2 %vm7633_vm7, %v18171_v9  ;;  %14588 = vmatmul.msk.f32.vlgmr.msrb.gmra.mxu3 %vm7633_vm7, %v18276_v0 }
 0x410   :  { %v6850_v33 = vpop.f32.mrf.mxu0  ;;  %v6863_v51 = vpop.f32.mrf.mxu1 }
 0x411   :  { %v6851_v52 = vadd.f32 %v16771_v31, %v6850_v33 }
 0x413   :  { %v6864_v55 = vadd.f32 %v6863_v51, %v6851_v52 }
 0x418   :  { %v6852_v63 = vpop.f32.mrf.mxu0  ;;  %v6865_v1 = vpop.f32.mrf.mxu1 }
 0x419   :  { %v6876_v59 = vpop.f32.mrf.mxu2  ;;  %v6889_v60 = vpop.f32.mrf.mxu3 }
 0x41a   :  { %v6877_v62 = vadd.f32 %v6876_v59, %v6864_v55 }
 0x41c   :  { %v19560_v2 = vadd.f32 %v6889_v60, %v6877_v62  ;;  %v19586_v60 = vld [vmem:[%s21641_s1] sm:$0xf] }
 0x41d   :  { %vm7842_vm9 = vcmp.eq.f32.partialorder %v19586_v60, 0.0 }
 0x41e   :  { %14597 = vmatpush.msk.msrb.mxu0 %vm8055_vm8, %v19560_v2 }
 0x421   :  { %v6878_v5 = vpop.f32.mrf.mxu2  ;;  %v6891_v6 = vpop.f32.mrf.mxu3 }
 0x422   :  { %v19596_v6 = vld [vmem:[%s21641_s1 + $0x4] sm:$0xf] }
 0x423   :  { %vm7843_vm11 = vcmp.eq.f32.partialorder %v19596_v6, 0.0 }
 0x430   :  { %v7094_v11 = vpop.f32.mrf.mxu0  ;;  %v7107_v12 = vpop.f32.mrf.mxu1 }
 0x431   :  { %v7095_v13 = vadd.f32 %v16772_v10, %v7094_v11  ;;  %v19602_v11 = vld [vmem:[%s21641_s1 + $0x8] sm:$0xf] }
 0x432   :  { %vm7844_vm12 = vcmp.eq.f32.partialorder %v19602_v11, 0.0 }
 0x433   :  { %v7108_v16 = vadd.f32 %v7107_v12, %v7095_v13 }
 0x438   :  { %v7096_v3 = vpop.f32.mrf.mxu0  ;;  %v7109_v56 = vpop.f32.mrf.mxu1 }
 0x439   :  { %v7120_v20 = vpop.f32.mrf.mxu2  ;;  %v7133_v18 = vpop.f32.mrf.mxu3  ;;  %v19619_v3 = vld [vmem:[%s21641_s1 + $0x10] sm:$0xf] }
 0x43a   :  { %v7121_v24 = vadd.f32 %v7120_v20, %v7108_v16  ;;  %vm21652_vm14 = vcmp.eq.f32.partialorder %v19619_v3, 0.0 }
 0x43c   :  { %v19567_v26 = vadd.f32 %v7133_v18, %v7121_v24  ;;  %v19613_v18 = vld [vmem:[%s21641_s1 + $0xc] sm:$0xf] }
 0x43d   :  { %vm7845_vm13 = vcmp.eq.f32.partialorder %v19613_v18, 0.0 }
 0x43e   :  { %14599 = vmatpush.msk.msrb.mxu1 %vm8055_vm8, %v19567_v26 }
 0x441   :  { %v7122_v27 = vpop.f32.mrf.mxu2  ;;  %v7135_v28 = vpop.f32.mrf.mxu3 }
 0x450   :  { %v7338_v15 = vpop.f32.mrf.mxu0  ;;  %v7351_v17 = vpop.f32.mrf.mxu1 }
 0x451   :  { %v7339_v21 = vadd.f32 %v16773_v30, %v7338_v15 }
 0x453   :  { %v7352_v22 = vadd.f32 %v7351_v17, %v7339_v21  ;;  %v19632_v21 = vld [vmem:[%s21641_s1 + $0x14] sm:$0xf] }
 0x454   :  { %vm21651_vm15 = vcmp.eq.f32.partialorder %v19632_v21, 0.0 }
 0x458   :  { %v7340_v8 = vpop.f32.mrf.mxu0  ;;  %v7353_v37 = vpop.f32.mrf.mxu1 }
 0x459   :  { %v7364_v23 = vpop.f32.mrf.mxu2  ;;  %v7377_v57 = vpop.f32.mrf.mxu3 }
 0x45a   :  { %v7365_v7 = vadd.f32 %v7364_v23, %v7352_v22 }
 0x45c   :  { %v19574_v38 = vadd.f32 %v7377_v57, %v7365_v7  ;;  %v19641_v7 = vld [vmem:[%s21641_s1 + $0x1c] sm:$0xf] }
 0x45d   :  { %vm21650_vm0 = vcmp.eq.f32.partialorder %v19641_v7, 0.0 }
 0x45e   :  { %14601 = vmatpush.msk.msrb.mxu2 %vm8055_vm8, %v19574_v38 }
 0x461   :  { %v7366_v39 = vpop.f32.mrf.mxu2  ;;  %v7379_v41 = vpop.f32.mrf.mxu3 }
 0x470   :  { %v7582_v48 = vpop.f32.mrf.mxu0  ;;  %v7595_v49 = vpop.f32.mrf.mxu1 }
 0x471   :  { %v7583_v43 = vadd.f32 %v16774_v45, %v7582_v48 }
 0x473   :  { %v7596_v44 = vadd.f32 %v7595_v49, %v7583_v43 }
 0x478   :  { %v7584_v52 = vpop.f32.mrf.mxu0  ;;  %v7597_v55 = vpop.f32.mrf.mxu1 }
 0x479   :  { %v7608_v31 = vpop.f32.mrf.mxu2  ;;  %v7621_v33 = vpop.f32.mrf.mxu3 }
 0x47a   :  { %v7609_v51 = vadd.f32 %v7608_v31, %v7596_v44 }
 0x47c   :  { %v19581_v59 = vadd.f32 %v7621_v33, %v7609_v51 }
 0x47e   :  { %14603 = vmatpush.msk.msrb.mxu3 %vm8055_vm8, %v19581_v59 }
 0x480   :  { %v7657_v1 = vpop.f32.mrf.mxu0  ;;  %v7683_v12 = vpop.f32.mrf.mxu1 }
 0x481   :  { %v7610_v62 = vpop.f32.mrf.mxu2  ;;  %v7623_v63 = vpop.f32.mrf.mxu3  ;;  %v7850_v5 = vsel %vm7842_vm9, -1e+09, %v7657_v1  ;;  %v7851_v13 = vsel %vm7843_vm11, -1e+09, %v7683_v12 }
 0x482   :  { %v7859_v10 = vsel %vm7858_vm10, %v7850_v5, -inf  ;;  %v7862_v56 = vsel %vm7858_vm10, %v7851_v13, -inf }
 0x483   :  { %7860 = vmax.xlane.f32.xlu1 %v7859_v10 }
 0x488   :  { %v7761_v28 = vpop.f32.mrf.mxu0  ;;  %v7787_v23 = vpop.f32.mrf.mxu1 }
 0x489   :  { %v7709_v16 = vpop.f32.mrf.mxu2  ;;  %v7735_v27 = vpop.f32.mrf.mxu3  ;;  %v7854_v15 = vsel %vm21652_vm14, -1e+09, %v7761_v28  ;;  %v7855_v57 = vsel %vm21651_vm15, -1e+09, %v7787_v23 }
 0x48a   :  { %v7852_v20 = vsel %vm7844_vm12, -1e+09, %v7709_v16  ;;  %v7853_v30 = vsel %vm7845_vm13, -1e+09, %v7735_v27  ;;  %v7871_v22 = vsel %vm7858_vm10, %v7854_v15, -inf  ;;  %v7874_v8 = vsel %vm7858_vm10, %v7855_v57, -inf }
 0x48b   :  { %v7865_v24 = vsel %vm7858_vm10, %v7852_v20, -inf  ;;  %7863 = vmax.xlane.f32.xlu1 %v7862_v56  ;;  %v7868_v17 = vsel %vm7858_vm10, %v7853_v30, -inf }
 0x48c   :  { %7866 = vmax.xlane.f32.xlu2 %v7865_v24 }
 0x491   :  { %v7839_v37 = vpop.f32.mrf.mxu3  ;;  %v7813_v27 = vpop.f32.mrf.mxu2 }
 0x492   :  { %v7857_v39 = vsel %vm21650_vm0, -1e+09, %v7839_v37 }
 0x493   :  { %7872 = vmax.xlane.f32.xlu1 %v7871_v22  ;;  %v7880_v41 = vsel %vm7858_vm10, %v7857_v39, -inf }
 0x494   :  { %7869 = vmax.xlane.f32.xlu2 %v7868_v17 }
 0x49b   :  { %7875 = vmax.xlane.f32.xlu1 %v7874_v8 }
 0x4a3   :  { %7881 = vmax.xlane.f32.xlu1 %v7880_v41 }
 0x4f6   :  { %v7861_v45 = vpop.xlane.xlu1 %7860 }
 0x4f7   :  { %v7883_v48 = vsub.f32 %v7850_v5, %v7861_v45 }
 0x4f9   :  { %v7891_v49 = vmul.f32 1.442695, %v7883_v48 }
 0x4fb   :  { %16781 = vpow2.f32 %v7891_v49 }
 0x4fe   :  { %v7864_v31 = vpop.xlane.xlu1 %7863 }
 0x4ff   :  { %v7867_v43 = vpop.xlane.xlu2 %7866  ;;  %v7884_v33 = vsub.f32 %v7851_v13, %v7864_v31  ;;  %v19659_v13 = vld [vmem:[%s21641_s1 + $0x18] sm:$0xf] }
 0x500   :  { %v7885_v44 = vsub.f32 %v7852_v20, %v7867_v43  ;;  %vm21649_vm1 = vcmp.eq.f32.partialorder %v19659_v13, 0.0 }
 0x501   :  { %v19648_v52 = vpop.eup %16781  ;;  %v7893_v55 = vmul.f32 1.442695, %v7884_v33  ;;  %v19668_v17 = vsel %vm21649_vm1, -1e+09, %v7813_v27 }
 0x502   :  { %v7895_v51 = vmul.f32 1.442695, %v7885_v44  ;;  %v7907_v62 = vsel %vm7858_vm10, %v19648_v52, 0.0  ;;  %v7877_v37 = vsel %vm7858_vm10, %v19668_v17, -inf }
 0x503   :  { %7908 = vadd.xlane.f32.xlu0 %v7907_v62 }
 0x504   :  { %16783 = vpow2.f32 %v7895_v51 }
 0x505   :  { %16785 = vpow2.f32 %v7893_v55 }
 0x506   :  { %v7873_v10 = vpop.xlane.xlu1 %7872 }
 0x507   :  { %v7870_v63 = vpop.xlane.xlu2 %7869  ;;  %v7887_v20 = vsub.f32 %v7854_v15, %v7873_v10 }
 0x508   :  { %v7886_v1 = vsub.f32 %v7853_v30, %v7870_v63 }
 0x509   :  { %v7899_v28 = vmul.f32 1.442695, %v7887_v20 }
 0x50a   :  { %v19652_v5 = vpop.eup %16783  ;;  %v7897_v12 = vmul.f32 1.442695, %v7886_v1 }
 0x50b   :  { %v19654_v16 = vpop.eup %16785  ;;  %v7913_v24 = vsel %vm7858_vm10, %v19652_v5, 0.0 }
 0x50c   :  { %16787 = vpow2.f32 %v7897_v12  ;;  %v7910_v56 = vsel %vm7858_vm10, %v19654_v16, 0.0  ;;  %7914 = vadd.xlane.f32.xlu0 %v7913_v24 }
 0x50d   :  { %7911 = vadd.xlane.f32.xlu2 %v7910_v56  ;;  %16789 = vpow2.f32 %v7899_v28 }
 0x50e   :  { %v7876_v30 = vpop.xlane.xlu1 %7875 }
 0x50f   :  { %v7888_v15 = vsub.f32 %v7855_v57, %v7876_v30 }
 0x511   :  { %v7901_v23 = vmul.f32 1.442695, %v7888_v15 }
 0x512   :  { %v19670_v22 = vpop.eup %16787 }
 0x513   :  { %v7916_v8 = vsel %vm7858_vm10, %v19670_v22, 0.0  ;;  %16791 = vpow2.f32 %v7901_v23  ;;  %v19676_v45 = vpop.eup %16789 }
 0x514   :  { %7917 = vadd.xlane.f32.xlu0 %v7916_v8  ;;  %v7919_v43 = vsel %vm7858_vm10, %v19676_v45, 0.0 }
 0x515   :  { %7878 = vmax.xlane.f32.xlu2 %v7877_v37 }
 0x516   :  { %v7882_v41 = vpop.xlane.xlu1 %7881 }
 0x517   :  { %v7890_v57 = vsub.f32 %v7857_v39, %v7882_v41 }
 0x519   :  { %v19678_v48 = vpop.eup %16791  ;;  %v7905_v49 = vmul.f32 1.442695, %v7890_v57 }
 0x51a   :  { %v7922_v44 = vsel %vm7858_vm10, %v19678_v48, 0.0 }
 0x51b   :  { %16793 = vpow2.f32 %v7905_v49 }
 0x51c   :  { %7923 = vadd.xlane.f32.xlu0 %v7922_v44 }
 0x51d   :  { %7920 = vadd.xlane.f32.xlu2 %v7919_v43 }
 0x521   :  { %v19684_v31 = vpop.eup %16793 }
 0x522   :  { %v7928_v33 = vsel %vm7858_vm10, %v19684_v31, 0.0 }
 0x525   :  { %7929 = vadd.xlane.f32.xlu2 %v7928_v33 }
 0x576   :  { %v7909_v51 = vpop.xlane.xlu0 %7908 }
 0x577   :  { %16795 = vrcp.f32 %v7909_v51  ;;  %v7942_v10 = vand.u32 2147483648, %v7909_v51  ;;  %v7940_v20 = vand.u32 2147483647, %v7909_v51  ;;  %vm7936_vm3 = vweird.f32 %v7909_v51 }
 0x579   :  { %v7943_v27 = vor.u32 1.1754944e-38, %v7942_v10  ;;  %vm7941_vm5 = vcmp.eq.f32.partialorder %v7940_v20, 8.507059e+37  ;;  %v14655_v10 = vld [vmem:[%s21646_s6 + $0x60] sm:$0xf] }
 0x57d   :  { %v16796_v39 = vpop.eup %16795 }
 0x57e   :  { %v7932_v55 = vmul.f32 %v16796_v39, %v7909_v51  ;;  %vm7937_vm2 = vweird.f32 %v16796_v39 }
 0x57f   :  { %v7915_v62 = vpop.xlane.xlu0 %7914  ;;  %vm7938_vm4 = vmor %vm7936_vm3, %vm7937_vm2 }
 0x580   :  { %v19688_v63 = vpop.xlane.xlu2 %7911  ;;  %16797 = vrcp.f32 %v7915_v62  ;;  %v7933_v1 = vsub.f32 1.0, %v7932_v55  ;;  %v7968_v43 = vand.u32 2147483647, %v7915_v62  ;;  %v7970_v44 = vand.u32 2147483648, %v7915_v62 }
 0x581   :  { %16799 = vrcp.f32 %v19688_v63  ;;  %v7954_v51 = vand.u32 2147483647, %v19688_v63  ;;  %vm7964_vm3 = vweird.f32 %v7915_v62  ;;  %vm7950_vm0 = vweird.f32 %v19688_v63 }
 0x582   :  { %v7934_v12 = vmul.f32 %v16796_v39, %v7933_v1  ;;  %v7956_v1 = vand.u32 2147483648, %v19688_v63  ;;  %vm19711_vm1 = vcmp.eq.f32.partialorder %v7968_v43, 8.507059e+37 }
 0x584   :  { %v7935_v24 = vadd.f32 %v16796_v39, %v7934_v12 }
 0x586   :  { %v16798_v56 = vpop.eup %16797  ;;  %v7939_v30 = vsel %vm7938_vm4, %v16796_v39, %v7935_v24 }
 0x587   :  { %v16800_v28 = vpop.eup %16799  ;;  %v7960_v15 = vmul.f32 %v16798_v56, %v7915_v62  ;;  %v19691_v23 = vpop.xlane.xlu0 %7917  ;;  %v7944_v37 = vsel %vm7941_vm5, %v7943_v27, %v7939_v30  ;;  %vm7965_vm2 = vweird.f32 %v16798_v56  ;;  %v7971_v30 = vor.u32 1.1754944e-38, %v7970_v44 }
 0x588   :  { %v7879_v8 = vpop.xlane.xlu2 %7878  ;;  %v7946_v41 = vmul.f32 %v16800_v28, %v19688_v63  ;;  %16801 = vrcp.f32 %v19691_v23  ;;  %v8043_v57 = vmul.f32 %v19648_v52, %v7944_v37  ;;  %v16507_v52 = vld [vmem:[%s21646_s6 + $0x6c] sm:$0xf0]  ;;  %vm7951_vm4 = vweird.f32 %v16800_v28  ;;  %vm19707_vm5 = vmor %vm7964_vm3, %vm7965_vm2 }
 0x589   :  { %v7961_v49 = vsub.f32 1.0, %v7960_v15  ;;  %v7889_v39 = vsub.f32 %v19668_v17, %v7879_v8  ;;  %v14656_v24 = vor.u32 %v16507_v52, %v14655_v10  ;;  %v16505_v15 = vld [vmem:[%s21646_s6 + $0x64] sm:$0xf]  ;;  %vm7952_vm2 = vmor %vm7950_vm0, %vm7951_vm4  ;;  %v7957_v63 = vor.u32 1.1754944e-38, %v7956_v1  ;;  %v14623_v1 = vld [vmem:[%s21646_s6 + $0x20] sm:$0xf] }
 0x58a   :  { %v7947_v33 = vsub.f32 1.0, %v7946_v41  ;;  %14590 = vmatmul.msk.f32.vlgmr.msra.gmra.mxu0 %vm8051_vm6, %v8043_v57  ;;  %v14657_v41 = vld [vmem:[%s21646_s6 + $0x70] sm:$0xf0]  ;;  %v14639_v57 = vld [vmem:[%s21646_s6 + $0x40] sm:$0xf]  ;;  %vm7955_vm3 = vcmp.eq.f32.partialorder %v7954_v51, 8.507059e+37 }
 0x58b   :  { %v7962_v55 = vmul.f32 %v16798_v56, %v7961_v49  ;;  %v7903_v20 = vmul.f32 1.442695, %v7889_v39  ;;  %8484 = vmatpush.bf16.msra.mxu0 %v14656_v24  ;;  %v16503_v49 = vld [vmem:[%s21646_s6 + $0x4c] sm:$0xf0]  ;;  %v14660_v24 = vor.u32 %v16505_v15, %v14657_v41  ;;  %v14641_v51 = vld [vmem:[%s21646_s6 + $0x50] sm:$0xf0] }
 0x58c   :  { %v7948_v12 = vmul.f32 %v16800_v28, %v7947_v33 }
 0x58d   :  { %v7963_v27 = vadd.f32 %v16798_v56, %v7962_v55  ;;  %16803 = vpow2.f32 %v7903_v20  ;;  %v14640_v55 = vor.u32 %v16503_v49, %v14639_v57  ;;  %v16506_v57 = vld [vmem:[%s21646_s6 + $0x6c] sm:$0xf]  ;;  %v14665_v49 = vld [vmem:[%s21646_s6 + $0x78] sm:$0xf0] }
 0x58e   :  { %v16802_v8 = vpop.eup %16801  ;;  %v7949_v37 = vadd.f32 %v16800_v28, %v7948_v12 }
 0x58f   :  { %v7967_v43 = vsel %vm19707_vm5, %v16798_v56, %v7963_v27  ;;  %v7974_v44 = vmul.f32 %v16802_v8, %v19691_v23  ;;  %v19734_v39 = vpop.xlane.xlu0 %7923  ;;  %v16499_v27 = vld [vmem:[%s21646_s6 + $0x2c] sm:$0xf0]  ;;  %8485 = vmatpush.bf16.msra.mxu0 %v14640_v55  ;;  %vm7979_vm0 = vweird.f32 %v16802_v8  ;;  %v14625_v55 = vld [vmem:[%s21646_s6 + $0x30] sm:$0xf0] }
 0x590   :  { %v19732_v33 = vpop.xlane.xlu2 %7920  ;;  %v7972_v10 = vsel %vm19711_vm1, %v7971_v30, %v7967_v43  ;;  %v7953_v52 = vsel %vm7952_vm2, %v16800_v28, %v7949_v37  ;;  %v7984_v28 = vand.u32 2147483648, %v19691_v23  ;;  %v7982_v30 = vand.u32 2147483647, %v19691_v23 }
 0x591   :  { %16805 = vrcp.f32 %v19732_v33  ;;  %v8045_v12 = vmul.f32 %v19652_v5, %v7972_v10  ;;  %v7958_v56 = vsel %vm7955_vm3, %v7957_v63, %v7953_v52  ;;  %v7975_v20 = vsub.f32 1.0, %v7974_v44  ;;  %v16501_v5 = vld [vmem:[%s21646_s6 + $0x44] sm:$0xf] }
 0x592   :  { %v8044_v17 = vmul.f32 %v19654_v16, %v7958_v56  ;;  %16807 = vrcp.f32 %v19734_v39  ;;  %v14624_v15 = vor.u32 %v16499_v27, %v14623_v1  ;;  %vm7978_vm1 = vweird.f32 %v19691_v23  ;;  %v16497_v23 = vld [vmem:[%s21646_s6 + $0x24] sm:$0xf] }
 0x593   :  { %v7976_v62 = vmul.f32 %v16802_v8, %v7975_v20  ;;  %14594 = vmatmul.msk.f32.vlgmr.msra.gmra.mxu2 %vm8051_vm6, %v8045_v12  ;;  %v19757_v16 = vpop.eup %16803  ;;  %v14644_v43 = vor.u32 %v16501_v5, %v14641_v51  ;;  %vm7980_vm4 = vmor %vm7978_vm1, %vm7979_vm0  ;;  %v7985_v44 = vor.u32 1.1754944e-38, %v7984_v28  ;;  %vm7983_vm5 = vcmp.eq.f32.partialorder %v7982_v30, 8.507059e+37  ;;  %v16502_v28 = vld [vmem:[%s21646_s6 + $0x4c] sm:$0xf] }
 0x594   :  { %14592 = vmatmul.msk.f32.vlgmr.msra.gmra.mxu1 %vm8051_vm6, %v8044_v17  ;;  %v7925_v41 = vsel %vm7858_vm10, %v19757_v16, 0.0  ;;  %8486 = vmatpush.bf16.msra.mxu0 %v14624_v15  ;;  %v14628_v5 = vor.u32 %v16497_v23, %v14625_v55  ;;  %v7998_v51 = vand.u32 2147483648, %v19732_v33  ;;  %v7996_v30 = vand.u32 2147483647, %v19732_v33 }
 0x595   :  { %v7977_v37 = vadd.f32 %v16802_v8, %v7976_v62  ;;  %8497 = vmatpush.bf16.msra.mxu1 %v14660_v24  ;;  %7926 = vadd.xlane.f32.xlu1 %v7925_v41  ;;  %v14668_v24 = vor.u32 %v16506_v57, %v14665_v49  ;;  %vm7992_vm3 = vweird.f32 %v19732_v33  ;;  %v8012_v15 = vand.u32 2147483648, %v19734_v39 }
 0x596   :  { %v8010_v49 = vand.u32 2147483647, %v19734_v39 }
 0x597   :  { %v16806_v63 = vpop.eup %16805  ;;  %v7981_v10 = vsel %vm7980_vm4, %v16802_v8, %v7977_v37  ;;  %v14649_v8 = vld [vmem:[%s21646_s6 + $0x58] sm:$0xf0]  ;;  %vm8006_vm4 = vweird.f32 %v19734_v39 }
 0x598   :  { %v7988_v52 = vmul.f32 %v16806_v63, %v19732_v33  ;;  %v7930_v12 = vpop.xlane.xlu2 %7929  ;;  %v16808_v56 = vpop.eup %16807  ;;  %v7986_v20 = vsel %vm7983_vm5, %v7985_v44, %v7981_v10  ;;  %vm7993_vm2 = vweird.f32 %v16806_v63  ;;  %v14652_v37 = vor.u32 %v16502_v28, %v14649_v8  ;;  %v14633_v44 = vld [vmem:[%s21646_s6 + $0x38] sm:$0xf0] }
 0x599   :  { %16809 = vrcp.f32 %v7930_v12  ;;  %v8046_v1 = vmul.f32 %v19670_v22, %v7986_v20  ;;  %v8002_v17 = vmul.f32 %v16808_v56, %v19734_v39  ;;  %8498 = vmatpush.bf16.msra.mxu1 %v14644_v43  ;;  %vm8007_vm0 = vweird.f32 %v16808_v56  ;;  %v16498_v43 = vld [vmem:[%s21646_s6 + $0x2c] sm:$0xf]  ;;  %vm7994_vm1 = vmor %vm7992_vm3, %vm7993_vm2 }
 0x59a   :  { %v7989_v27 = vsub.f32 1.0, %v7988_v52  ;;  %v7999_v33 = vor.u32 1.1754944e-38, %v7998_v51  ;;  %vm7997_vm5 = vcmp.eq.f32.partialorder %v7996_v30, 8.507059e+37  ;;  %vm8008_vm15 = vmor %vm8006_vm4, %vm8007_vm0  ;;  %vm8011_vm14 = vcmp.eq.f32.partialorder %v8010_v49, 8.507059e+37 }
 0x59b   :  { %v8003_v22 = vsub.f32 1.0, %v8002_v17  ;;  %14596 = vmatmul.msk.f32.vlgmr.msra.gmra.mxu3 %vm8051_vm6, %v8046_v1  ;;  %v14636_v1 = vor.u32 %v16498_v43, %v14633_v44  ;;  %v8038_v39 = vand.u32 2147483647, %v7930_v12  ;;  %vm8034_vm3 = vweird.f32 %v7930_v12  ;;  %v14723_v44 = vld [vmem:[%s21646_s6 + $0xe0] sm:$0xf] }
 0x59c   :  { %v7990_v62 = vmul.f32 %v16806_v63, %v7989_v27  ;;  %8523 = vmatpush.bf16.msra.mxu3 %v14668_v24  ;;  %v8013_v24 = vor.u32 1.1754944e-38, %v8012_v15  ;;  %v16495_v15 = vld [vmem:[%s21646_s6 + $0xc] sm:$0xf0] }
 0x59d   :  { %v8004_v57 = vmul.f32 %v16808_v56, %v8003_v22  ;;  %8499 = vmatpush.bf16.msra.mxu1 %v14628_v5  ;;  %v8040_v5 = vand.u32 2147483648, %v7930_v12 }
 0x59e   :  { %v7991_v41 = vadd.f32 %v16806_v63, %v7990_v62 }
 0x59f   :  { %v16810_v23 = vpop.eup %16809  ;;  %v8005_v10 = vadd.f32 %v16808_v56, %v8004_v57  ;;  %v8041_v30 = vor.u32 1.1754944e-38, %v8040_v5  ;;  %v14617_v57 = vld [vmem:[%s21646_s6 + $0x18] sm:$0xf0]  ;;  %v14709_v5 = vld [vmem:[%s21646_s6 + $0xd0] sm:$0xf0] }
 0x5a0   :  { %v7995_v55 = vsel %vm7994_vm1, %v16806_v63, %v7991_v41  ;;  %v8030_v52 = vmul.f32 %v16810_v23, %v7930_v12  ;;  %8524 = vmatpush.bf16.msra.mxu3 %v14652_v37  ;;  %vm8035_vm2 = vweird.f32 %v16810_v23  ;;  %v16493_v12 = vld [vmem:[%s21646_s6 + $0x4] sm:$0xf]  ;;  %v14609_v41 = vld [vmem:[%s21646_s6 + $0x10] sm:$0xf0] }
 0x5a1   :  { %v8000_v20 = vsel %vm7997_vm5, %v7999_v33, %v7995_v55  ;;  %v8009_v17 = vsel %vm8008_vm15, %v16808_v56, %v8005_v10  ;;  %vm8036_vm0 = vmor %vm8034_vm3, %vm8035_vm2  ;;  %vm8039_vm15 = vcmp.eq.f32.partialorder %v8038_v39, 8.507059e+37  ;;  %v14612_v49 = vor.u32 %v16493_v12, %v14609_v41  ;;  %v16521_v33 = vld [vmem:[%s21646_s6 + $0xe4] sm:$0xf]  ;;  %v14725_v10 = vld [vmem:[%s21646_s6 + $0xf0] sm:$0xf0] }
 0x5a2   :  { %v8047_v27 = vmul.f32 %v19676_v45, %v8000_v20  ;;  %v8031_v28 = vsub.f32 1.0, %v8030_v52  ;;  %v8014_v8 = vsel %vm8011_vm14, %v8013_v24, %v8009_v17  ;;  %v16522_v52 = vld [vmem:[%s21646_s6 + $0xec] sm:$0xf]  ;;  %v14733_v20 = vld [vmem:[%s21646_s6 + $0xf8] sm:$0xf0]  ;;  %v14728_v24 = vor.u32 %v16521_v33, %v14725_v10 }
 0x5a3   :  { %v8048_v51 = vmul.f32 %v19678_v48, %v8014_v8  ;;  %v14607_v48 = vld [vmem:[%s21646_s6] sm:$0xf]  ;;  %8500 = vmatpush.bf16.msra.mxu1 %v14612_v49  ;;  %v16519_v17 = vld [vmem:[%s21646_s6 + $0xcc] sm:$0xf0]  ;;  %v14693_v12 = vld [vmem:[%s21646_s6 + $0xb0] sm:$0xf0] }
 0x5a4   :  { %v8032_v62 = vmul.f32 %v16810_v23, %v8031_v28  ;;  %14598 = vmatmul.msk.f32.vlgmr.msrb.gmra.mxu0 %vm8051_vm6, %v8047_v27  ;;  %8525 = vmatpush.bf16.msra.mxu3 %v14636_v1  ;;  %v14608_v37 = vor.u32 %v16495_v15, %v14607_v48  ;;  %v14736_v1 = vor.u32 %v16522_v52, %v14733_v20  ;;  %v14707_v27 = vld [vmem:[%s21646_s6 + $0xc0] sm:$0xf]  ;;  %v16517_v28 = vld [vmem:[%s21646_s6 + $0xc4] sm:$0xf]  ;;  %v16515_v48 = vld [vmem:[%s21646_s6 + $0xac] sm:$0xf0] }
 0x5a5   :  { %14600 = vmatmul.msk.f32.vlgmr.msrb.gmra.mxu1 %vm8051_vm6, %v8048_v51  ;;  %v14708_v8 = vor.u32 %v16519_v17, %v14707_v27  ;;  %v16518_v51 = vld [vmem:[%s21646_s6 + $0xcc] sm:$0xf]  ;;  %v14712_v39 = vor.u32 %v16517_v28, %v14709_v5  ;;  %v16513_v15 = vld [vmem:[%s21646_s6 + $0xa4] sm:$0xf]  ;;  %v14677_v52 = vld [vmem:[%s21646_s6 + $0x90] sm:$0xf0] }
 0x5a6   :  { %v8033_v63 = vadd.f32 %v16810_v23, %v8032_v62  ;;  %8487 = vmatpush.bf16.msra.mxu0 %v14608_v37  ;;  %v14717_v62 = vld [vmem:[%s21646_s6 + $0xd8] sm:$0xf0]  ;;  %v14696_v41 = vor.u32 %v16513_v15, %v14693_v12  ;;  %v16509_v10 = vld [vmem:[%s21646_s6 + $0x84] sm:$0xf]  ;;  %v14631_v28 = vld [vmem:[%s21646_s6 + $0x28] sm:$0xf] }
 0x5a7   :  { %8632 = vmatpush.bf16.msrb.mxu1 %v14728_v24  ;;  %v14680_v24 = vor.u32 %v16509_v10, %v14677_v52  ;;  %v14685_v27 = vld [vmem:[%s21646_s6 + $0x98] sm:$0xf0] }
 0x5a8   :  { %v8037_v45 = vsel %vm8036_vm0, %v16810_v23, %v8033_v63  ;;  %v16523_v23 = vld [vmem:[%s21646_s6 + $0xec] sm:$0xf0]  ;;  %v14720_v63 = vor.u32 %v16518_v51, %v14717_v62  ;;  %v14615_v51 = vld [vmem:[%s21646_s6 + $0x8] sm:$0xf]  ;;  %v16496_v62 = vld [vmem:[%s21646_s6 + $0x14] sm:$0xf0] }
 0x5a9   :  { %v8042_v56 = vsel %vm8039_vm15, %v8041_v30, %v8037_v45  ;;  %v14724_v55 = vor.u32 %v16523_v23, %v14723_v44  ;;  %v14663_v30 = vld [vmem:[%s21646_s6 + $0x68] sm:$0xf]  ;;  %v16508_v45 = vld [vmem:[%s21646_s6 + $0x74] sm:$0xf0]  ;;  %v14675_v23 = vld [vmem:[%s21646_s6 + $0x80] sm:$0xf] }
 0x5aa   :  { %v8050_v22 = vmul.f32 %v19684_v31, %v8042_v56  ;;  %v16494_v31 = vld [vmem:[%s21646_s6 + $0xc] sm:$0xf]  ;;  %v14691_v56 = vld [vmem:[%s21646_s6 + $0xa0] sm:$0xf]  ;;  %v16504_v44 = vld [vmem:[%s21646_s6 + $0x54] sm:$0xf0] }
 0x5ab   :  { %v14620_v43 = vor.u32 %v16494_v31, %v14617_v57  ;;  %8619 = vmatpush.bf16.msrb.mxu0 %v14724_v55  ;;  %8633 = vmatpush.bf16.msrb.mxu1 %v14712_v39  ;;  %v14692_v37 = vor.u32 %v16515_v48, %v14691_v56  ;;  %v16514_v31 = vld [vmem:[%s21646_s6 + $0xac] sm:$0xf]  ;;  %v14701_v57 = vld [vmem:[%s21646_s6 + $0xb8] sm:$0xf0]  ;;  %v16511_v55 = vld [vmem:[%s21646_s6 + $0x8c] sm:$0xf0]  ;;  %v14616_v39 = vor.u32 %v16496_v62, %v14615_v51 }
 0x5ac   :  { %14604 = vmatmul.msk.f32.vlgmr.msrb.gmra.mxu3 %vm8051_vm6, %v8050_v22  ;;  %v14664_v22 = vor.u32 %v16508_v45, %v14663_v30  ;;  %v14704_v49 = vor.u32 %v16514_v31, %v14701_v57  ;;  %v14676_v20 = vor.u32 %v16511_v55, %v14675_v23  ;;  %v16539_v30 = vld [vmem:[%s21646_s6 + $0x16c] sm:$0xf0]  ;;  %v16537_v45 = vld [vmem:[%s21646_s6 + $0x164] sm:$0xf]  ;;  %v14793_v56 = vld [vmem:[%s21646_s6 + $0x170] sm:$0xf0] }
 0x5ad   :  { %8526 = vmatpush.bf16.msra.mxu3 %v14620_v43  ;;  %v14647_v43 = vld [vmem:[%s21646_s6 + $0x48] sm:$0xf]  ;;  %v14801_v48 = vld [vmem:[%s21646_s6 + $0x178] sm:$0xf0]  ;;  %v14796_v31 = vor.u32 %v16537_v45, %v14793_v56  ;;  %v14777_v23 = vld [vmem:[%s21646_s6 + $0x150] sm:$0xf0] }
 0x5ae   :  { %8510 = vmatpush.bf16.msra.mxu2 %v14664_v22  ;;  %v14648_v33 = vor.u32 %v16504_v44, %v14647_v43  ;;  %v16538_v22 = vld [vmem:[%s21646_s6 + $0x16c] sm:$0xf]  ;;  %v16535_v43 = vld [vmem:[%s21646_s6 + $0x14c] sm:$0xf0]  ;;  %v16533_v44 = vld [vmem:[%s21646_s6 + $0x144] sm:$0xf] }
 0x5af   :  { %8620 = vmatpush.bf16.msrb.mxu0 %v14708_v8  ;;  %8634 = vmatpush.bf16.msrb.mxu1 %v14696_v41  ;;  %v16500_v8 = vld [vmem:[%s21646_s6 + $0x34] sm:$0xf0]  ;;  %v14804_v57 = vor.u32 %v16538_v22, %v14801_v48  ;;  %v14785_v55 = vld [vmem:[%s21646_s6 + $0x158] sm:$0xf0]  ;;  %v14780_v52 = vor.u32 %v16533_v44, %v14777_v23  ;;  %v14743_v62 = vld [vmem:[%s21646_s6 + $0x100] sm:$0xf] }
 0x5b0   :  { %v14632_v5 = vor.u32 %v16500_v8, %v14631_v28  ;;  %v16530_v28 = vld [vmem:[%s21646_s6 + $0x12c] sm:$0xf]  ;;  %v14769_v8 = vld [vmem:[%s21646_s6 + $0x138] sm:$0xf0]  ;;  %v16527_v45 = vld [vmem:[%s21646_s6 + $0x10c] sm:$0xf0] }
 0x5b1   :  { %8658 = vmatpush.bf16.msrb.mxu3 %v14736_v1  ;;  %v16510_v1 = vld [vmem:[%s21646_s6 + $0x8c] sm:$0xf]  ;;  %v16525_v56 = vld [vmem:[%s21646_s6 + $0x104] sm:$0xf]  ;;  %v14745_v22 = vld [vmem:[%s21646_s6 + $0x110] sm:$0xf0] }
 0x5b2   :  { %8511 = vmatpush.bf16.msra.mxu2 %v14648_v33  ;;  %v14688_v17 = vor.u32 %v16510_v1, %v14685_v27  ;;  %v16534_v33 = vld [vmem:[%s21646_s6 + $0x14c] sm:$0xf]  ;;  %v16531_v1 = vld [vmem:[%s21646_s6 + $0x12c] sm:$0xf0]  ;;  %v16529_v27 = vld [vmem:[%s21646_s6 + $0x124] sm:$0xf] }
 0x5b3   :  { %8621 = vmatpush.bf16.msrb.mxu0 %v14692_v37  ;;  %8635 = vmatpush.bf16.msrb.mxu1 %v14680_v24  ;;  %v14759_v24 = vld [vmem:[%s21646_s6 + $0x120] sm:$0xf]  ;;  %v16526_v48 = vld [vmem:[%s21646_s6 + $0x10c] sm:$0xf] }
 0x5b4   :  { %v14760_v51 = vor.u32 %v16531_v1, %v14759_v24  ;;  %v14861_v24 = vld [vmem:[%s21646_s6 + $0x1f0] sm:$0xf0] }
 0x5b5   :  { %8659 = vmatpush.bf16.msrb.mxu3 %v14720_v63  ;;  %v14791_v63 = vld [vmem:[%s21646_s6 + $0x160] sm:$0xf] }
 0x5b6   :  { %8512 = vmatpush.bf16.msra.mxu2 %v14632_v5  ;;  %v14792_v12 = vor.u32 %v16539_v30, %v14791_v63  ;;  %v14772_v30 = vor.u32 %v16530_v28, %v14769_v8  ;;  %v14869_v28 = vld [vmem:[%s21646_s6 + $0x1f8] sm:$0xf0] }
 0x5b7   :  { %8622 = vmatpush.bf16.msrb.mxu0 %v14676_v20  ;;  %v14788_v20 = vor.u32 %v16534_v33, %v14785_v55  ;;  %v14859_v33 = vld [vmem:[%s21646_s6 + $0x1e0] sm:$0xf]  ;;  %v16555_v55 = vld [vmem:[%s21646_s6 + $0x1ec] sm:$0xf0] }
 0x5b9   :  { %8660 = vmatpush.bf16.msrb.mxu3 %v14704_v49  ;;  %v14775_v49 = vld [vmem:[%s21646_s6 + $0x140] sm:$0xf] }
 0x5ba   :  { %8513 = vmatpush.bf16.msra.mxu2 %v14616_v39  ;;  %v14776_v10 = vor.u32 %v16535_v43, %v14775_v49  ;;  %v14748_v49 = vor.u32 %v16525_v56, %v14745_v22 }
 0x5bd   :  { %8661 = vmatpush.bf16.msrb.mxu3 %v14688_v17  ;;  %v14761_v17 = vld [vmem:[%s21646_s6 + $0x130] sm:$0xf0] }
 0x5be   :  { %v14764_v63 = vor.u32 %v16529_v27, %v14761_v17  ;;  %v16524_v27 = vld [vmem:[%s21646_s6 + $0xf4] sm:$0xf0]  ;;  %v16554_v17 = vld [vmem:[%s21646_s6 + $0x1ec] sm:$0xf] }
 0x5bf   :  { %v14872_v22 = vor.u32 %v16554_v17, %v14869_v28 }
 0x607   :  { %v8076_v15 = vpop.f32.mrf.mxu0 }
 0x608   :  { %v19936_v37 = vpop.xlane.xlu1 %7926  ;;  %v19938_v41 = vpack.c.bf16 %v8076_v15, %v8076_v15  ;;  %v14753_v15 = vld [vmem:[%s21646_s6 + $0x118] sm:$0xf0] }
 0x609   :  { %16811 = vrcp.f32 %v19936_v37  ;;  %v8024_v44 = vand.u32 2147483647, %v19936_v37  ;;  %v14756_v23 = vor.u32 %v16526_v48, %v14753_v15  ;;  %vm8020_vm1 = vweird.f32 %v19936_v37  ;;  %v16549_v48 = vld [vmem:[%s21646_s6 + $0x1c4] sm:$0xf]  ;;  %v14845_v15 = vld [vmem:[%s21646_s6 + $0x1d0] sm:$0xf0] }
 0x60a   :  { %14669 = vmatmul.msk.bf16.vlgmr.msra.gmra.mxu0 %vm7633_vm7, %v19938_v41  ;;  %14670 = vmatmul.msk.bf16.vlgmr.msra.gmra.mxu1 %vm7633_vm7, %v19938_v41 }
 0x60b   :  { %14672 = vmatmul.msk.bf16.vlgmr.msra.gmra.mxu3 %vm7633_vm7, %v19938_v41  ;;  %8754 = vmatpush.bf16.msra.mxu0 %v14792_v12  ;;  %vm8025_vm5 = vcmp.eq.f32.partialorder %v8024_v44, 8.507059e+37  ;;  %v14827_v44 = vld [vmem:[%s21646_s6 + $0x1a0] sm:$0xf] }
 0x60c   :  { %8767 = vmatpush.bf16.msra.mxu1 %v14796_v31  ;;  %8793 = vmatpush.bf16.msra.mxu3 %v14804_v57  ;;  %v8026_v31 = vand.u32 2147483648, %v19936_v37  ;;  %v14744_v57 = vor.u32 %v16527_v45, %v14743_v62 }
 0x60e   :  { %v8027_v8 = vor.u32 1.1754944e-38, %v8026_v31  ;;  %v16520_v31 = vld [vmem:[%s21646_s6 + $0xd4] sm:$0xf0] }
 0x60f   :  { %v16812_v5 = vpop.eup %16811  ;;  %8755 = vmatpush.bf16.msra.mxu0 %v14776_v10 }
 0x610   :  { %v8016_v39 = vmul.f32 %v16812_v5, %v19936_v37  ;;  %8768 = vmatpush.bf16.msra.mxu1 %v14780_v52  ;;  %8794 = vmatpush.bf16.msra.mxu3 %v14788_v20  ;;  %vm8021_vm14 = vweird.f32 %v16812_v5  ;;  %v14731_v52 = vld [vmem:[%s21646_s6 + $0xe8] sm:$0xf]  ;;  %v16553_v20 = vld [vmem:[%s21646_s6 + $0x1e4] sm:$0xf] }
 0x611   :  { %v8102_v10 = vpop.f32.mrf.mxu1  ;;  %vm8022_vm4 = vmor %vm8020_vm1, %vm8021_vm14  ;;  %v14732_v56 = vor.u32 %v16524_v27, %v14731_v52  ;;  %v16545_v52 = vld [vmem:[%s21646_s6 + $0x1a4] sm:$0xf]  ;;  %v14837_v27 = vld [vmem:[%s21646_s6 + $0x1b8] sm:$0xf0] }
 0x612   :  { %v8017_v12 = vsub.f32 1.0, %v8016_v39  ;;  %v20030_v37 = vpack.c.bf16 %v8102_v10, %v8102_v10  ;;  %v14864_v39 = vor.u32 %v16553_v20, %v14861_v24  ;;  %v14829_v20 = vld [vmem:[%s21646_s6 + $0x1b0] sm:$0xf0]  ;;  %v16516_v24 = vld [vmem:[%s21646_s6 + $0xb4] sm:$0xf0] }
 0x613   :  { %8756 = vmatpush.bf16.msra.mxu0 %v14760_v51  ;;  %v14860_v51 = vor.u32 %v16555_v55, %v14859_v33  ;;  %v14699_v55 = vld [vmem:[%s21646_s6 + $0xa8] sm:$0xf]  ;;  %v14832_v28 = vor.u32 %v16545_v52, %v14829_v20 }
 0x614   :  { %v8018_v43 = vmul.f32 %v16812_v5, %v8017_v12  ;;  %8769 = vmatpush.bf16.msra.mxu1 %v14764_v63  ;;  %8795 = vmatpush.bf16.msra.mxu3 %v14772_v30  ;;  %v14843_v63 = vld [vmem:[%s21646_s6 + $0x1c0] sm:$0xf]  ;;  %v16551_v30 = vld [vmem:[%s21646_s6 + $0x1cc] sm:$0xf0]  ;;  %v14783_v20 = vld [vmem:[%s21646_s6 + $0x148] sm:$0xf] }
 0x616   :  { %v8019_v1 = vadd.f32 %v16812_v5, %v8018_v43  ;;  %v14848_v43 = vor.u32 %v16549_v48, %v14845_v15  ;;  %v14799_v15 = vld [vmem:[%s21646_s6 + $0x168] sm:$0xf] }
 0x617   :  { %8757 = vmatpush.bf16.msra.mxu0 %v14744_v57  ;;  %v16550_v57 = vld [vmem:[%s21646_s6 + $0x1cc] sm:$0xf] }
 0x618   :  { %v8023_v62 = vsel %vm8022_vm4, %v16812_v5, %v8019_v1  ;;  %8770 = vmatpush.bf16.msra.mxu1 %v14748_v49  ;;  %8796 = vmatpush.bf16.msra.mxu3 %v14756_v23  ;;  %v14715_v5 = vld [vmem:[%s21646_s6 + $0xc8] sm:$0xf]  ;;  %v14853_v49 = vld [vmem:[%s21646_s6 + $0x1d8] sm:$0xf0]  ;;  %v16547_v23 = vld [vmem:[%s21646_s6 + $0x1ac] sm:$0xf0] }
 0x619   :  { %v8028_v45 = vsel %vm8025_vm5, %v8027_v8, %v8023_v62  ;;  %v14716_v33 = vor.u32 %v16520_v31, %v14715_v5  ;;  %v14856_v10 = vor.u32 %v16550_v57, %v14853_v49  ;;  %v16546_v1 = vld [vmem:[%s21646_s6 + $0x1ac] sm:$0xf]  ;;  %v14828_v17 = vor.u32 %v16547_v23, %v14827_v44  ;;  %v14811_v8 = vld [vmem:[%s21646_s6 + $0x180] sm:$0xf]  ;;  %v8128_v49 = vpop.f32.mrf.mxu2  ;;  %v16569_v44 = vld [vmem:[%s21646_s6 + $0x264] sm:$0xf] }
 0x61a   :  { %v8049_v12 = vmul.f32 %v19757_v16, %v8028_v45  ;;  %14737 = vmatmul.msk.bf16.vlgmr.msrb.gmra.mxu0 %vm7633_vm7, %v20030_v37  ;;  %14738 = vmatmul.msk.bf16.vlgmr.msrb.gmra.mxu1 %vm7633_vm7, %v20030_v37  ;;  %v14844_v16 = vor.u32 %v16551_v30, %v14843_v63  ;;  %v14700_v62 = vor.u32 %v16516_v24, %v14699_v55  ;;  %v16541_v30 = vld [vmem:[%s21646_s6 + $0x184] sm:$0xf]  ;;  %v14813_v45 = vld [vmem:[%s21646_s6 + $0x190] sm:$0xf0]  ;;  %v16542_v5 = vld [vmem:[%s21646_s6 + $0x18c] sm:$0xf] }
 0x61b   :  { %14740 = vmatmul.msk.bf16.vlgmr.msrb.gmra.mxu3 %vm7633_vm7, %v20030_v37  ;;  %8889 = vmatpush.bf16.msrb.mxu0 %v14860_v51  ;;  %v16543_v51 = vld [vmem:[%s21646_s6 + $0x18c] sm:$0xf0]  ;;  %v14840_v63 = vor.u32 %v16546_v1, %v14837_v27  ;;  %v14816_v31 = vor.u32 %v16541_v30, %v14813_v45  ;;  %v14927_v57 = vld [vmem:[%s21646_s6 + $0x260] sm:$0xf]  ;;  %v14929_v23 = vld [vmem:[%s21646_s6 + $0x270] sm:$0xf0]  ;;  %v20138_v52 = vpack.c.bf16 %v8128_v49, %v8128_v49 }
 0x61c   :  { %14602 = vmatmul.msk.f32.vlgmr.msrb.gmra.mxu2 %vm8051_vm6, %v8049_v12  ;;  %8902 = vmatpush.bf16.msrb.mxu1 %v14864_v39  ;;  %v14683_v39 = vld [vmem:[%s21646_s6 + $0x88] sm:$0xf]  ;;  %v14812_v48 = vor.u32 %v16543_v51, %v14811_v8  ;;  %v16540_v12 = vld [vmem:[%s21646_s6 + $0x174] sm:$0xf0]  ;;  %v14937_v55 = vld [vmem:[%s21646_s6 + $0x278] sm:$0xf0]  ;;  %v14932_v27 = vor.u32 %v16569_v44, %v14929_v23 }
 0x61d   :  { %8645 = vmatpush.bf16.msrb.mxu2 %v14732_v56  ;;  %8928 = vmatpush.bf16.msrb.mxu3 %v14872_v22  ;;  %v16512_v56 = vld [vmem:[%s21646_s6 + $0x94] sm:$0xf0]  ;;  %v14821_v22 = vld [vmem:[%s21646_s6 + $0x198] sm:$0xf0]  ;;  %v16567_v8 = vld [vmem:[%s21646_s6 + $0x24c] sm:$0xf0] }
 0x61e   :  { %v16536_v24 = vld [vmem:[%s21646_s6 + $0x154] sm:$0xf0]  ;;  %v16565_v51 = vld [vmem:[%s21646_s6 + $0x244] sm:$0xf]  ;;  %v14767_v45 = vld [vmem:[%s21646_s6 + $0x128] sm:$0xf] }
 0x61f   :  { %8890 = vmatpush.bf16.msrb.mxu0 %v14844_v16  ;;  %v14684_v16 = vor.u32 %v16512_v56, %v14683_v39  ;;  %v16566_v39 = vld [vmem:[%s21646_s6 + $0x24c] sm:$0xf]  ;;  %v14784_v30 = vor.u32 %v16536_v24, %v14783_v20  ;;  %v16532_v56 = vld [vmem:[%s21646_s6 + $0x134] sm:$0xf0]  ;;  %v14867_v23 = vld [vmem:[%s21646_s6 + $0x1e8] sm:$0xf] }
 0x620   :  { %8903 = vmatpush.bf16.msrb.mxu1 %v14848_v43  ;;  %v14824_v43 = vor.u32 %v16542_v5, %v14821_v22  ;;  %v16562_v49 = vld [vmem:[%s21646_s6 + $0x22c] sm:$0xf]  ;;  %v16528_v44 = vld [vmem:[%s21646_s6 + $0x114] sm:$0xf0]  ;;  %v14879_v24 = vld [vmem:[%s21646_s6 + $0x200] sm:$0xf] }
 0x621   :  { %8646 = vmatpush.bf16.msrb.mxu2 %v14716_v33  ;;  %8929 = vmatpush.bf16.msrb.mxu3 %v14856_v10  ;;  %v16570_v33 = vld [vmem:[%s21646_s6 + $0x26c] sm:$0xf]  ;;  %v14800_v10 = vor.u32 %v16540_v12, %v14799_v15  ;;  %v14895_v15 = vld [vmem:[%s21646_s6 + $0x220] sm:$0xf]  ;;  %v16563_v12 = vld [vmem:[%s21646_s6 + $0x22c] sm:$0xf0] }
 0x623   :  { %8891 = vmatpush.bf16.msrb.mxu0 %v14828_v17  ;;  %v14911_v17 = vld [vmem:[%s21646_s6 + $0x240] sm:$0xf] }
 0x624   :  { %14671 = vmatmul.msk.bf16.vlgmr.msra.gmra.mxu2 %vm7633_vm7, %v19938_v41  ;;  %8904 = vmatpush.bf16.msrb.mxu1 %v14832_v28  ;;  %v16571_v41 = vld [vmem:[%s21646_s6 + $0x26c] sm:$0xf0]  ;;  %v14940_v28 = vor.u32 %v16570_v33, %v14937_v55  ;;  %v14912_v5 = vor.u32 %v16567_v8, %v14911_v17  ;;  %v16556_v33 = vld [vmem:[%s21646_s6 + $0x1f4] sm:$0xf0]  ;;  %v14896_v55 = vor.u32 %v16563_v12, %v14895_v15  ;;  %v14881_v17 = vld [vmem:[%s21646_s6 + $0x210] sm:$0xf0] }
 0x625   :  { %8647 = vmatpush.bf16.msrb.mxu2 %v14700_v62  ;;  %8930 = vmatpush.bf16.msrb.mxu3 %v14840_v63  ;;  %v14928_v1 = vor.u32 %v16571_v41, %v14927_v57  ;;  %v14913_v62 = vld [vmem:[%s21646_s6 + $0x250] sm:$0xf0]  ;;  %v14921_v63 = vld [vmem:[%s21646_s6 + $0x258] sm:$0xf0]  ;;  %v14751_v41 = vld [vmem:[%s21646_s6 + $0x108] sm:$0xf] }
 0x626   :  { %v14916_v22 = vor.u32 %v16565_v51, %v14913_v62  ;;  %v14897_v57 = vld [vmem:[%s21646_s6 + $0x230] sm:$0xf0]  ;;  %v14889_v8 = vld [vmem:[%s21646_s6 + $0x218] sm:$0xf0]  ;;  %v14752_v51 = vor.u32 %v16528_v44, %v14751_v41  ;;  %v14868_v62 = vor.u32 %v16556_v33, %v14867_v23  ;;  %v16586_v12 = vld [vmem:[%s21646_s6 + $0x2ec] sm:$0xf] }
 0x627   :  { %8892 = vmatpush.bf16.msrb.mxu0 %v14812_v48  ;;  %v14924_v48 = vor.u32 %v16566_v39, %v14921_v63  ;;  %v14851_v39 = vld [vmem:[%s21646_s6 + $0x1c8] sm:$0xf]  ;;  %v14997_v15 = vld [vmem:[%s21646_s6 + $0x2f0] sm:$0xf0]  ;;  %v14979_v44 = vld [vmem:[%s21646_s6 + $0x2c0] sm:$0xf] }
 0x628   :  { %8905 = vmatpush.bf16.msrb.mxu1 %v14816_v31  ;;  %v16561_v31 = vld [vmem:[%s21646_s6 + $0x224] sm:$0xf]  ;;  %v16583_v23 = vld [vmem:[%s21646_s6 + $0x2cc] sm:$0xf0]  ;;  %v16548_v33 = vld [vmem:[%s21646_s6 + $0x1b4] sm:$0xf0] }
 0x629   :  { %8648 = vmatpush.bf16.msrb.mxu2 %v14684_v16  ;;  %8931 = vmatpush.bf16.msrb.mxu3 %v14824_v43  ;;  %v14905_v16 = vld [vmem:[%s21646_s6 + $0x238] sm:$0xf0]  ;;  %v14768_v43 = vor.u32 %v16532_v56, %v14767_v45  ;;  %v16587_v45 = vld [vmem:[%s21646_s6 + $0x2ec] sm:$0xf0]  ;;  %v8154_v56 = vpop.f32.mrf.mxu3 }
 0x62a   :  { %14805 = vmatmul.msk.bf16.vlgmr.msra.gmra.mxu0 %vm7633_vm7, %v20138_v52  ;;  %14806 = vmatmul.msk.bf16.vlgmr.msra.gmra.mxu1 %vm7633_vm7, %v20138_v52  ;;  %v14908_v20 = vor.u32 %v16562_v49, %v14905_v16  ;;  %v20250_v49 = vpack.c.bf16 %v8154_v56, %v8154_v56  ;;  %v16578_v56 = vld [vmem:[%s21646_s6 + $0x2ac] sm:$0xf] }
 0x62b   :  { %14808 = vmatmul.msk.bf16.vlgmr.msra.gmra.mxu3 %vm7633_vm7, %v20138_v52  ;;  %9024 = vmatpush.bf16.msra.mxu0 %v14928_v1  ;;  %v16559_v1 = vld [vmem:[%s21646_s6 + $0x20c] sm:$0xf0] }
 0x62c   :  { %9037 = vmatpush.bf16.msra.mxu1 %v14932_v27  ;;  %v16557_v27 = vld [vmem:[%s21646_s6 + $0x204] sm:$0xf]  ;;  %v14880_v63 = vor.u32 %v16559_v1, %v14879_v24  ;;  %v16582_v24 = vld [vmem:[%s21646_s6 + $0x2cc] sm:$0xf]  ;;  %v14989_v1 = vld [vmem:[%s21646_s6 + $0x2d8] sm:$0xf0] }
 0x62d   :  { %8780 = vmatpush.bf16.msra.mxu2 %v14800_v10  ;;  %9063 = vmatpush.bf16.msra.mxu3 %v14940_v28  ;;  %v14900_v10 = vor.u32 %v16561_v31, %v14897_v57  ;;  %v16558_v28 = vld [vmem:[%s21646_s6 + $0x20c] sm:$0xf]  ;;  %v15005_v31 = vld [vmem:[%s21646_s6 + $0x2f8] sm:$0xf0] }
 0x62f   :  { %9025 = vmatpush.bf16.msra.mxu0 %v14912_v5  ;;  %v14884_v5 = vor.u32 %v16557_v27, %v14881_v17  ;;  %v14980_v27 = vor.u32 %v16583_v23, %v14979_v44  ;;  %v16574_v23 = vld [vmem:[%s21646_s6 + $0x28c] sm:$0xf] }
 0x630   :  { %9038 = vmatpush.bf16.msra.mxu1 %v14916_v22  ;;  %v14892_v22 = vor.u32 %v16558_v28, %v14889_v8  ;;  %v14963_v8 = vld [vmem:[%s21646_s6 + $0x2a0] sm:$0xf] }
 0x631   :  { %8781 = vmatpush.bf16.msra.mxu2 %v14784_v30  ;;  %9064 = vmatpush.bf16.msra.mxu3 %v14924_v48  ;;  %v14995_v30 = vld [vmem:[%s21646_s6 + $0x2e0] sm:$0xf]  ;;  %v16585_v48 = vld [vmem:[%s21646_s6 + $0x2e4] sm:$0xf] }
 0x632   :  { %v14996_v57 = vor.u32 %v16587_v45, %v14995_v30  ;;  %v15000_v41 = vor.u32 %v16585_v48, %v14997_v15  ;;  %v14965_v30 = vld [vmem:[%s21646_s6 + $0x2b0] sm:$0xf0]  ;;  %v16544_v45 = vld [vmem:[%s21646_s6 + $0x194] sm:$0xf0] }
 0x633   :  { %9026 = vmatpush.bf16.msra.mxu0 %v14896_v55  ;;  %v15008_v55 = vor.u32 %v16586_v12, %v15005_v31  ;;  %v14947_v12 = vld [vmem:[%s21646_s6 + $0x280] sm:$0xf]  ;;  %v16575_v31 = vld [vmem:[%s21646_s6 + $0x28c] sm:$0xf0] }
 0x634   :  { %14739 = vmatmul.msk.bf16.vlgmr.msrb.gmra.mxu2 %vm7633_vm7, %v20030_v37  ;;  %9039 = vmatpush.bf16.msra.mxu1 %v14900_v10  ;;  %v16552_v37 = vld [vmem:[%s21646_s6 + $0x1d4] sm:$0xf0]  ;;  %v16581_v10 = vld [vmem:[%s21646_s6 + $0x2c4] sm:$0xf] }
 0x635   :  { %8782 = vmatpush.bf16.msra.mxu2 %v14768_v43  ;;  %9065 = vmatpush.bf16.msra.mxu3 %v14908_v20  ;;  %v14852_v16 = vor.u32 %v16552_v37, %v14851_v39  ;;  %v14835_v43 = vld [vmem:[%s21646_s6 + $0x1a8] sm:$0xf]  ;;  %v14981_v20 = vld [vmem:[%s21646_s6 + $0x2d0] sm:$0xf0]  ;;  %v14992_v39 = vor.u32 %v16582_v24, %v14989_v1  ;;  %v14973_v37 = vld [vmem:[%s21646_s6 + $0x2b8] sm:$0xf0]  ;;  %v8180_v1 = vpop.f32.mrf.mxu0 }
 0x636   :  { %v14836_v17 = vor.u32 %v16548_v33, %v14835_v43  ;;  %v14984_v28 = vor.u32 %v16581_v10, %v14981_v20  ;;  %v16573_v43 = vld [vmem:[%s21646_s6 + $0x284] sm:$0xf]  ;;  %v14957_v33 = vld [vmem:[%s21646_s6 + $0x298] sm:$0xf0]  ;;  %v14919_v10 = vld [vmem:[%s21646_s6 + $0x248] sm:$0xf] }
 0x637   :  { %9027 = vmatpush.bf16.msra.mxu0 %v14880_v63  ;;  %v16577_v63 = vld [vmem:[%s21646_s6 + $0x2a4] sm:$0xf]  ;;  %v16568_v20 = vld [vmem:[%s21646_s6 + $0x254] sm:$0xf0] }
 0x638   :  { %9040 = vmatpush.bf16.msra.mxu1 %v14884_v5  ;;  %v14935_v5 = vld [vmem:[%s21646_s6 + $0x268] sm:$0xf]  ;;  %v14968_v15 = vor.u32 %v16577_v63, %v14965_v30  ;;  %v16588_v30 = vld [vmem:[%s21646_s6 + $0x2f4] sm:$0xf0] }
 0x639   :  { %8783 = vmatpush.bf16.msra.mxu2 %v14752_v51  ;;  %9066 = vmatpush.bf16.msra.mxu3 %v14892_v22  ;;  %v16579_v51 = vld [vmem:[%s21646_s6 + $0x2ac] sm:$0xf0]  ;;  %v16572_v22 = vld [vmem:[%s21646_s6 + $0x274] sm:$0xf0]  ;;  %v15003_v63 = vld [vmem:[%s21646_s6 + $0x2e8] sm:$0xf] }
 0x63a   :  { %14873 = vmatmul.msk.bf16.vlgmr.msrb.gmra.mxu0 %vm7633_vm7, %v20250_v49  ;;  %14874 = vmatmul.msk.bf16.vlgmr.msrb.gmra.mxu1 %vm7633_vm7, %v20250_v49  ;;  %v14964_v48 = vor.u32 %v16579_v51, %v14963_v8  ;;  %v14936_v44 = vor.u32 %v16572_v22, %v14935_v5  ;;  %v16564_v8 = vld [vmem:[%s21646_s6 + $0x234] sm:$0xf0]  ;;  %v15063_v22 = vld [vmem:[%s21646_s6 + $0x360] sm:$0xf] }
 0x63b   :  { %14876 = vmatmul.msk.bf16.vlgmr.msrb.gmra.mxu3 %vm7633_vm7, %v20250_v49  ;;  %9159 = vmatpush.bf16.msrb.mxu0 %v14996_v57  ;;  %v16584_v5 = vld [vmem:[%s21646_s6 + $0x2d4] sm:$0xf0] }
 0x63c   :  { %9172 = vmatpush.bf16.msrb.mxu1 %v15000_v41  ;;  %v14949_v41 = vld [vmem:[%s21646_s6 + $0x290] sm:$0xf0] }
 0x63d   :  { %8915 = vmatpush.bf16.msrb.mxu2 %v14868_v62  ;;  %9198 = vmatpush.bf16.msrb.mxu3 %v15008_v55  ;;  %v14819_v62 = vld [vmem:[%s21646_s6 + $0x188] sm:$0xf]  ;;  %v14948_v55 = vor.u32 %v16575_v31, %v14947_v12  ;;  %v14952_v24 = vor.u32 %v16573_v43, %v14949_v41  ;;  %v8206_v12 = vpop.f32.mrf.mxu1  ;;  %v16580_v43 = vld [vmem:[%s21646_s6 + $0x2b4] sm:$0xf0] }
 0x63e   :  { %v14820_v57 = vor.u32 %v16544_v45, %v14819_v62  ;;  %v14887_v62 = vld [vmem:[%s21646_s6 + $0x208] sm:$0xf] }
 0x63f   :  { %9160 = vmatpush.bf16.msrb.mxu0 %v14980_v27  ;;  %v14960_v27 = vor.u32 %v16574_v23, %v14957_v33  ;;  %v15073_v23 = vld [vmem:[%s21646_s6 + $0x378] sm:$0xf0] }
 0x640   :  { %9173 = vmatpush.bf16.msrb.mxu1 %v14984_v28  ;;  %v8265_v28 = vpack.c.bf16 %v8180_v1, %v8180_v1 }
 0x641   :  { %8916 = vmatpush.bf16.msrb.mxu2 %v14852_v16  ;;  %9199 = vmatpush.bf16.msrb.mxu3 %v14992_v39  ;;  %v14976_v16 = vor.u32 %v16578_v56, %v14973_v37  ;;  %v16560_v39 = vld [vmem:[%s21646_s6 + $0x214] sm:$0xf0]  ;;  %v15004_v56 = vor.u32 %v16588_v30, %v15003_v63  ;;  %v14987_v37 = vld [vmem:[%s21646_s6 + $0x2c8] sm:$0xf]  ;;  %v15049_v63 = vld [vmem:[%s21646_s6 + $0x350] sm:$0xf0] }
 0x642   :  { %v14888_v45 = vor.u32 %v16560_v39, %v14887_v62  ;;  %v14988_v31 = vor.u32 %v16584_v5, %v14987_v37  ;;  %v16597_v62 = vld [vmem:[%s21646_s6 + $0x344] sm:$0xf]  ;;  %v16600_v30 = vld [vmem:[%s21646_s6 + $0x354] sm:$0xf0]  ;;  %v16598_v37 = vld [vmem:[%s21646_s6 + $0x34c] sm:$0xf] }
 0x643   :  { %9161 = vmatpush.bf16.msrb.mxu0 %v14964_v48  ;;  %v16603_v48 = vld [vmem:[%s21646_s6 + $0x36c] sm:$0xf0]  ;;  %v15057_v5 = vld [vmem:[%s21646_s6 + $0x358] sm:$0xf0] }
 0x644   :  { %14807 = vmatmul.msk.bf16.vlgmr.msra.gmra.mxu2 %vm7633_vm7, %v20138_v52  ;;  %9174 = vmatpush.bf16.msrb.mxu1 %v14968_v15  ;;  %v14903_v52 = vld [vmem:[%s21646_s6 + $0x228] sm:$0xf]  ;;  %v16601_v15 = vld [vmem:[%s21646_s6 + $0x364] sm:$0xf] }
 0x645   :  { %8917 = vmatpush.bf16.msrb.mxu2 %v14836_v17  ;;  %9200 = vmatpush.bf16.msrb.mxu3 %v14976_v16  ;;  %v14920_v17 = vor.u32 %v16568_v20, %v14919_v10  ;;  %v14904_v51 = vor.u32 %v16564_v8, %v14903_v52  ;;  %v15065_v16 = vld [vmem:[%s21646_s6 + $0x370] sm:$0xf0]  ;;  %v14955_v20 = vld [vmem:[%s21646_s6 + $0x288] sm:$0xf]  ;;  %v15047_v8 = vld [vmem:[%s21646_s6 + $0x340] sm:$0xf] }
 0x646   :  { %v15068_v41 = vor.u32 %v16601_v15, %v15065_v16  ;;  %v16595_v15 = vld [vmem:[%s21646_s6 + $0x32c] sm:$0xf0]  ;;  %v16596_v16 = vld [vmem:[%s21646_s6 + $0x334] sm:$0xf0] }
 0x647   :  { %9162 = vmatpush.bf16.msrb.mxu0 %v14948_v55  ;;  %v20391_v55 = vpack.c.bf16 %v8206_v12, %v8206_v12  ;;  %v16593_v12 = vld [vmem:[%s21646_s6 + $0x324] sm:$0xf] }
 0x648   :  { %9175 = vmatpush.bf16.msrb.mxu1 %v14952_v24  ;;  %v16576_v24 = vld [vmem:[%s21646_s6 + $0x294] sm:$0xf0] }
 0x649   :  { %8918 = vmatpush.bf16.msrb.mxu2 %v14820_v57  ;;  %9201 = vmatpush.bf16.msrb.mxu3 %v14960_v27  ;;  %v14971_v57 = vld [vmem:[%s21646_s6 + $0x2a8] sm:$0xf]  ;;  %v14956_v1 = vor.u32 %v16576_v24, %v14955_v20  ;;  %v16591_v20 = vld [vmem:[%s21646_s6 + $0x30c] sm:$0xf0]  ;;  %v16589_v24 = vld [vmem:[%s21646_s6 + $0x304] sm:$0xf] }
 0x64a   :  { %14941 = vmatmul.msk.bf16.vlgmr.msra.gmra.mxu0 %vm7633_vm7, %v8265_v28  ;;  %14942 = vmatmul.msk.bf16.vlgmr.msra.gmra.mxu1 %vm7633_vm7, %v8265_v28  ;;  %v14972_v10 = vor.u32 %v16580_v43, %v14971_v57  ;;  %v15071_v27 = vld [vmem:[%s21646_s6 + $0x368] sm:$0xf]  ;;  %v15033_v57 = vld [vmem:[%s21646_s6 + $0x330] sm:$0xf0] }
 0x64b   :  { %14944 = vmatmul.msk.bf16.vlgmr.msra.gmra.mxu3 %vm7633_vm7, %v8265_v28  ;;  %v15036_v43 = vor.u32 %v16593_v12, %v15033_v57  ;;  %v15115_v57 = vld [vmem:[%s21646_s6 + $0x3c0] sm:$0xf] }
 0x64c   :  { %9307 = vmatpush.bf16.msra.mxu1 %v15068_v41 }
 0x64d   :  { %9050 = vmatpush.bf16.msra.mxu2 %v14936_v44  ;;  %v16602_v44 = vld [vmem:[%s21646_s6 + $0x36c] sm:$0xf] }
 0x64e   :  { %v15076_v33 = vor.u32 %v16602_v44, %v15073_v23  ;;  %v16594_v44 = vld [vmem:[%s21646_s6 + $0x32c] sm:$0xf]  ;;  %v15041_v23 = vld [vmem:[%s21646_s6 + $0x338] sm:$0xf0] }
 0x650   :  { %9333 = vmatpush.bf16.msra.mxu3 %v15076_v33  ;;  %v15015_v33 = vld [vmem:[%s21646_s6 + $0x300] sm:$0xf] }
 0x651   :  { %9051 = vmatpush.bf16.msra.mxu2 %v14920_v17  ;;  %v16604_v17 = vld [vmem:[%s21646_s6 + $0x374] sm:$0xf0] }
 0x652   :  { %v15072_v52 = vor.u32 %v16604_v17, %v15071_v27  ;;  %v15016_v27 = vor.u32 %v16591_v20, %v15015_v33  ;;  %v16614_v20 = vld [vmem:[%s21646_s6 + $0x3cc] sm:$0xf] }
 0x654   :  { %14875 = vmatmul.msk.bf16.vlgmr.msrb.gmra.mxu2 %vm7633_vm7, %v20250_v49  ;;  %v15064_v49 = vor.u32 %v16603_v48, %v15063_v22  ;;  %v15060_v22 = vor.u32 %v16598_v37, %v15057_v5  ;;  %v15031_v48 = vld [vmem:[%s21646_s6 + $0x320] sm:$0xf]  ;;  %v15133_v37 = vld [vmem:[%s21646_s6 + $0x3f0] sm:$0xf0]  ;;  %v15139_v5 = vld [vmem:[%s21646_s6 + $0x3e8] sm:$0xf] }
 0x655   :  { %9052 = vmatpush.bf16.msra.mxu2 %v14904_v51  ;;  %v16599_v51 = vld [vmem:[%s21646_s6 + $0x34c] sm:$0xf0] }
 0x656   :  { %9294 = vmatpush.bf16.msra.mxu0 %v15064_v49  ;;  %v15048_v39 = vor.u32 %v16599_v51, %v15047_v8  ;;  %9334 = vmatpush.bf16.msra.mxu3 %v15060_v22  ;;  %v15039_v49 = vld [vmem:[%s21646_s6 + $0x328] sm:$0xf]  ;;  %v16592_v8 = vld [vmem:[%s21646_s6 + $0x314] sm:$0xf0]  ;;  %v16590_v51 = vld [vmem:[%s21646_s6 + $0x30c] sm:$0xf] }
 0x657   :  { %v15040_v41 = vor.u32 %v16596_v16, %v15039_v49  ;;  %v16615_v49 = vld [vmem:[%s21646_s6 + $0x3cc] sm:$0xf0]  ;;  %v16613_v16 = vld [vmem:[%s21646_s6 + $0x3c4] sm:$0xf] }
 0x659   :  { %9053 = vmatpush.bf16.msra.mxu2 %v14888_v45  ;;  %v15052_v45 = vor.u32 %v16597_v62, %v15049_v63  ;;  %v15131_v63 = vld [vmem:[%s21646_s6 + $0x3e0] sm:$0xf] }
 0x65a   :  { %15009 = vmatmul.msk.bf16.vlgmr.msrb.gmra.mxu0 %vm7633_vm7, %v20391_v55  ;;  %15010 = vmatmul.msk.bf16.vlgmr.msrb.gmra.mxu1 %vm7633_vm7, %v20391_v55 }
 0x65b   :  { %15012 = vmatmul.msk.bf16.vlgmr.msrb.gmra.mxu3 %vm7633_vm7, %v20391_v55  ;;  %9295 = vmatpush.bf16.msra.mxu0 %v15048_v39  ;;  %v15025_v39 = vld [vmem:[%s21646_s6 + $0x318] sm:$0xf0] }
 0x65c   :  { %9308 = vmatpush.bf16.msra.mxu1 %v15052_v45 }
 0x65d   :  { %9185 = vmatpush.bf16.msrb.mxu2 %v15004_v56 }
 0x660   :  { %9309 = vmatpush.bf16.msra.mxu1 %v15036_v43  ;;  %v15116_v43 = vor.u32 %v16615_v49, %v15115_v57  ;;  %v16606_v49 = vld [vmem:[%s21646_s6 + $0x38c] sm:$0xf] }
 0x661   :  { %9186 = vmatpush.bf16.msrb.mxu2 %v14988_v31  ;;  %v15032_v31 = vor.u32 %v16595_v15, %v15031_v48  ;;  %v16618_v48 = vld [vmem:[%s21646_s6 + $0x3ec] sm:$0xf]  ;;  %v15141_v15 = vld [vmem:[%s21646_s6 + $0x3f8] sm:$0xf0] }
 0x663   :  { %9296 = vmatpush.bf16.msra.mxu0 %v15032_v31  ;;  %v15144_v31 = vor.u32 %v16618_v48, %v15141_v15  ;;  %v15085_v48 = vld [vmem:[%s21646_s6 + $0x390] sm:$0xf0]  ;;  %v15091_v15 = vld [vmem:[%s21646_s6 + $0x388] sm:$0xf] }
 0x664   :  { %14943 = vmatmul.msk.bf16.vlgmr.msra.gmra.mxu2 %vm7633_vm7, %v8265_v28  ;;  %v15055_v28 = vld [vmem:[%s21646_s6 + $0x348] sm:$0xf] }
 0x665   :  { %9187 = vmatpush.bf16.msrb.mxu2 %v14972_v10  ;;  %v15056_v56 = vor.u32 %v16600_v30, %v15055_v28  ;;  %v15044_v10 = vor.u32 %v16594_v44, %v15041_v23  ;;  %v16619_v28 = vld [vmem:[%s21646_s6 + $0x3ec] sm:$0xf0]  ;;  %v15028_v30 = vor.u32 %v16590_v51, %v15025_v39  ;;  %v15123_v44 = vld [vmem:[%s21646_s6 + $0x3c8] sm:$0xf]  ;;  %v16616_v23 = vld [vmem:[%s21646_s6 + $0x3d4] sm:$0xf0] }
 0x666   :  { %v15132_v45 = vor.u32 %v16619_v28, %v15131_v63  ;;  %v16612_v39 = vld [vmem:[%s21646_s6 + $0x3b4] sm:$0xf0]  ;;  %v16610_v63 = vld [vmem:[%s21646_s6 + $0x3ac] sm:$0xf] }
 0x667   :  { %9335 = vmatpush.bf16.msra.mxu3 %v15044_v10  ;;  %9297 = vmatpush.bf16.msra.mxu0 %v15016_v27  ;;  %v15124_v10 = vor.u32 %v16616_v23, %v15123_v44 }
 0x669   :  { %9188 = vmatpush.bf16.msrb.mxu2 %v14956_v1  ;;  %v15017_v1 = vld [vmem:[%s21646_s6 + $0x310] sm:$0xf0] }
 0x66a   :  { %v15020_v17 = vor.u32 %v16589_v24, %v15017_v1  ;;  %v15125_v24 = vld [vmem:[%s21646_s6 + $0x3d8] sm:$0xf0]  ;;  %v15099_v1 = vld [vmem:[%s21646_s6 + $0x3a0] sm:$0xf] }
 0x66b   :  { %9336 = vmatpush.bf16.msra.mxu3 %v15028_v30  ;;  %9429 = vmatpush.bf16.msrb.mxu0 %v15132_v45  ;;  %v15128_v27 = vor.u32 %v16614_v20, %v15125_v24  ;;  %v15109_v45 = vld [vmem:[%s21646_s6 + $0x3b8] sm:$0xf0] }
 0x66c   :  { %9310 = vmatpush.bf16.msra.mxu1 %v15020_v17  ;;  %v16611_v17 = vld [vmem:[%s21646_s6 + $0x3ac] sm:$0xf0] }
 0x66d   :  { %9320 = vmatpush.bf16.msra.mxu2 %v15072_v52  ;;  %v15023_v52 = vld [vmem:[%s21646_s6 + $0x308] sm:$0xf]  ;;  %v15100_v51 = vor.u32 %v16611_v17, %v15099_v1 }
 0x66e   :  { %v15024_v62 = vor.u32 %v16592_v8, %v15023_v52  ;;  %v16609_v52 = vld [vmem:[%s21646_s6 + $0x3a4] sm:$0xf]  ;;  %v15101_v8 = vld [vmem:[%s21646_s6 + $0x3b0] sm:$0xf0] }
 0x66f   :  { %9468 = vmatpush.bf16.msrb.mxu3 %v15144_v31  ;;  %9430 = vmatpush.bf16.msrb.mxu0 %v15116_v43  ;;  %v15104_v28 = vor.u32 %v16609_v52, %v15101_v8 }
 0x671   :  { %9321 = vmatpush.bf16.msra.mxu2 %v15056_v56  ;;  %v16617_v56 = vld [vmem:[%s21646_s6 + $0x3e4] sm:$0xf] }
 0x672   :  { %v15136_v22 = vor.u32 %v16617_v56, %v15133_v37  ;;  %v15112_v56 = vor.u32 %v16610_v63, %v15109_v45  ;;  %v15083_v37 = vld [vmem:[%s21646_s6 + $0x380] sm:$0xf] }
 0x673   :  { %9469 = vmatpush.bf16.msrb.mxu3 %v15128_v27  ;;  %9431 = vmatpush.bf16.msrb.mxu0 %v15100_v51 }
 0x674   :  { %15011 = vmatmul.msk.bf16.vlgmr.msrb.gmra.mxu2 %vm7633_vm7, %v20391_v55  ;;  %v16620_v55 = vld [vmem:[%s21646_s6 + $0x3f4] sm:$0xf0]  ;;  %9442 = vmatpush.bf16.msrb.mxu1 %v15136_v22  ;;  %v16605_v22 = vld [vmem:[%s21646_s6 + $0x384] sm:$0xf] }
 0x675   :  { %9322 = vmatpush.bf16.msra.mxu2 %v15040_v41  ;;  %v15140_v12 = vor.u32 %v16620_v55, %v15139_v5  ;;  %v15117_v41 = vld [vmem:[%s21646_s6 + $0x3d0] sm:$0xf0]  ;;  %v16607_v5 = vld [vmem:[%s21646_s6 + $0x38c] sm:$0xf0]  ;;  %v15088_v31 = vor.u32 %v16605_v22, %v15085_v48  ;;  %v9586_v48 = vrot.slane %v18486_v46, 4 }
 0x676   :  { %v15120_v33 = vor.u32 %v16613_v16, %v15117_v41  ;;  %v15084_v55 = vor.u32 %v16607_v5, %v15083_v37  ;;  %v15093_v16 = vld [vmem:[%s21646_s6 + $0x398] sm:$0xf0]  ;;  %v8258_v41 = vpop.f32.mrf.mxu3 }
 0x677   :  { %9470 = vmatpush.bf16.msrb.mxu3 %v15112_v56  ;;  %v15096_v43 = vor.u32 %v16606_v49, %v15093_v16 }
 0x678   :  { %9443 = vmatpush.bf16.msrb.mxu1 %v15120_v33  ;;  %9432 = vmatpush.bf16.msrb.mxu0 %v15084_v55  ;;  %v9560_v55 = vrot.slane %v18381_v54, 4 }
 0x679   :  { %9323 = vmatpush.bf16.msra.mxu2 %v15024_v62  ;;  %v15107_v62 = vld [vmem:[%s21646_s6 + $0x3a8] sm:$0xf] }
 0x67a   :  { %v15108_v30 = vor.u32 %v16612_v39, %v15107_v62 }
 0x67b   :  { %9471 = vmatpush.bf16.msrb.mxu3 %v15096_v43 }
 0x67c   :  { %9444 = vmatpush.bf16.msrb.mxu1 %v15104_v28 }
 0x67d   :  { %9455 = vmatpush.bf16.msrb.mxu2 %v15140_v12  ;;  %v16608_v12 = vld [vmem:[%s21646_s6 + $0x394] sm:$0xf0] }
 0x67e   :  { %v15092_v57 = vor.u32 %v16608_v12, %v15091_v15  ;;  %v9612_v15 = vrot.slane %v18591_v40, 4  ;;  %v9638_v12 = vrot.slane %v18696_v34, 4 }
 0x680   :  { %9445 = vmatpush.bf16.msrb.mxu1 %v15088_v31 }
 0x681   :  { %9456 = vmatpush.bf16.msrb.mxu2 %v15124_v10 }
 0x685   :  { %9457 = vmatpush.bf16.msrb.mxu2 %v15108_v30 }
 0x687   :  { %v8489_v44 = vpop.f32.mrf.mxu0  ;;  %v8502_v23 = vpop.f32.mrf.mxu1 }
 0x688   :  { %v9477_v17 = vsel %vm8055_vm8, %v8489_v44, 0.0  ;;  %v9492_v52 = vsel %vm8055_vm8, %v8502_v23, 0.0 }
 0x689   :  { %9458 = vmatpush.bf16.msrb.mxu2 %v15092_v57 }
 0x68e   :  { %v8528_v33 = vpop.f32.mrf.mxu3 }
 0x68f   :  { %v8491_v10 = vpop.f32.mrf.mxu0  ;;  %v8504_v20 = vpop.f32.mrf.mxu1  ;;  %v9522_v28 = vsel %vm8055_vm8, %v8528_v33, 0.0 }
 0x690   :  { %v8268_v10 = vpack.c.bf16 %v8258_v41, %v8258_v41 }
 0x696   :  { %v8530_v24 = vpop.f32.mrf.mxu3 }
 0x697   :  { %v8624_v1 = vpop.f32.mrf.mxu0  ;;  %v8637_v27 = vpop.f32.mrf.mxu1 }
 0x698   :  { %v9478_v8 = vsel %vm8055_vm8, %v8624_v1, 0.0  ;;  %v9493_v51 = vsel %vm8055_vm8, %v8637_v27, 0.0  ;;  %v9664_v1 = vrot.slane %v19497_v4, 4  ;;  %v9690_v27 = vrot.slane %v19500_v14, 4 }
 0x699   :  { %v9479_v62 = vadd.f32 %v9478_v8, %v9477_v17  ;;  %v9494_v39 = vadd.f32 %v9493_v51, %v9492_v52  ;;  %v9716_v17 = vrot.slane %v19017_v25, 4  ;;  %v9742_v52 = vrot.slane %v19122_v32, 4 }
 0x69e   :  { %v8663_v63 = vpop.f32.mrf.mxu3 }
 0x69f   :  { %v8232_v30 = vpop.f32.mrf.mxu2  ;;  %v9523_v45 = vsel %vm8055_vm8, %v8663_v63, 0.0  ;;  %v8626_v56 = vpop.f32.mrf.mxu0 }
 0x6a0   :  { %v8267_v37 = vpack.c.bf16 %v8232_v30, %v8232_v30  ;;  %v9524_v5 = vadd.f32 %v9523_v45, %v9522_v28  ;;  %v8639_v22 = vpop.f32.mrf.mxu1 }
 0x6a1   :  { %v9585_v22 = vrot.slane %v17688_v29, 4 }
 0x6a2   :  { %15077 = vmatmul.msk.bf16.vlgmr.msra.gmra.mxu0 %vm7633_vm7, %v8267_v37  ;;  %15078 = vmatmul.msk.bf16.vlgmr.msra.gmra.mxu1 %vm7633_vm7, %v8267_v37 }
 0x6a3   :  { %15079 = vmatmul.msk.bf16.vlgmr.msra.gmra.mxu2 %vm7633_vm7, %v8267_v37  ;;  %15080 = vmatmul.msk.bf16.vlgmr.msra.gmra.mxu3 %vm7633_vm7, %v8267_v37 }
 0x6a4   :  { %15149 = vmatpush.xpose.msk.msra.mxu0 %vm7633_vm7, %v9560_v55  ;;  %15151 = vmatpush.xpose.msk.msra.mxu1 %vm7633_vm7, %v9586_v48 }
 0x6a5   :  { %15153 = vmatpush.xpose.msk.msra.mxu2 %vm7633_vm7, %v9612_v15  ;;  %15155 = vmatpush.xpose.msk.msra.mxu3 %vm7633_vm7, %v9638_v12  ;;  %v9611_v15 = vrot.slane %v17751_v61, 4  ;;  %v9637_v12 = vrot.slane %v17856_v47, 4  ;;  %v9663_v61 = vrot.slane %v17961_v35, 4  ;;  %v10097_v35 = vrot.slane %v19567_v26, 4 }
 0x6a6   :  { %v8665_v54 = vpop.f32.mrf.mxu3 }
 0x6a7   :  { %v8515_v46 = vpop.f32.mrf.mxu2  ;;  %v8759_v31 = vpop.f32.mrf.mxu0  ;;  %v9967_v54 = vrot.slane %v19227_v42, 4 }
 0x6a8   :  { %v9480_v57 = vsel %vm8055_vm8, %v8759_v31, 0.0  ;;  %v8772_v40 = vpop.f32.mrf.mxu1  ;;  %v9507_v8 = vsel %vm8055_vm8, %v8515_v46, 0.0  ;;  %v9993_v46 = vrot.slane %v19528_v53, 4  ;;  %v10019_v31 = vrot.slane %v19535_v36, 4 }
 0x6a9   :  { %v9481_v49 = vadd.f32 %v9480_v57, %v9479_v62  ;;  %v9495_v34 = vsel %vm8055_vm8, %v8772_v40, 0.0  ;;  %v9689_v53 = vrot.slane %v18066_v19, 4  ;;  %v10123_v19 = vrot.slane %v19574_v38, 4 }
 0x6aa   :  { %v9496_v16 = vadd.f32 %v9495_v34, %v9494_v39 }
 0x6ae   :  { %v8798_v43 = vpop.f32.mrf.mxu3 }
 0x6af   :  { %v8517_v44 = vpop.f32.mrf.mxu2  ;;  %v9525_v23 = vsel %vm8055_vm8, %v8798_v43, 0.0  ;;  %v8761_v33 = vpop.f32.mrf.mxu0 }
 0x6b0   :  { %v9526_v20 = vadd.f32 %v9525_v23, %v9524_v5  ;;  %v8774_v24 = vpop.f32.mrf.mxu1  ;;  %v9559_v5 = vrot.slane %v17629_v58, 4  ;;  %v10045_v58 = vrot.slane %v19525_v50, 4  ;;  %v9715_v50 = vrot.slane %v18171_v9, 4 }
 0x6b1   :  { %v10071_v44 = vrot.slane %v19560_v2, 4  ;;  %v10149_v9 = vrot.slane %v19581_v59, 4 }
 0x6b2   :  { %15145 = vmatmul.msk.bf16.vlgmr.msrb.gmra.mxu0 %vm7633_vm7, %v8268_v10  ;;  %15146 = vmatmul.msk.bf16.vlgmr.msrb.gmra.mxu1 %vm7633_vm7, %v8268_v10 }
 0x6b3   :  { %15147 = vmatmul.msk.bf16.vlgmr.msrb.gmra.mxu2 %vm7633_vm7, %v8268_v10  ;;  %15148 = vmatmul.msk.bf16.vlgmr.msrb.gmra.mxu3 %vm7633_vm7, %v8268_v10 }
 0x6b4   :  { %15157 = vmatpush.xpose.msk.msrb.mxu0 %vm7633_vm7, %v9664_v1  ;;  %15159 = vmatpush.xpose.msk.msrb.mxu1 %vm7633_vm7, %v9690_v27 }
 0x6b5   :  { %15161 = vmatpush.xpose.msk.msrb.mxu2 %vm7633_vm7, %v9716_v17  ;;  %15163 = vmatpush.xpose.msk.msrb.mxu3 %vm7633_vm7, %v9742_v52 }
 0x6b6   :  { %v8800_v4 = vpop.f32.mrf.mxu3 }
 0x6b7   :  { %v8650_v14 = vpop.f32.mrf.mxu2  ;;  %v8894_v41 = vpop.f32.mrf.mxu0 }
 0x6b8   :  { %v9508_v25 = vsel %vm8055_vm8, %v8650_v14, 0.0  ;;  %v9482_v32 = vsel %vm8055_vm8, %v8894_v41, 0.0  ;;  %v8907_v51 = vpop.f32.mrf.mxu1 }
 0x6b9   :  { %v9509_v62 = vadd.f32 %v9508_v25, %v9507_v8  ;;  %v9483_v39 = vadd.f32 %v9482_v32, %v9481_v49  ;;  %v9497_v63 = vsel %vm8055_vm8, %v8907_v51, 0.0  ;;  %v9741_v49 = vrot.slane %v18276_v0, 4 }
 0x6ba   :  { %v9498_v28 = vadd.f32 %v9497_v63, %v9496_v16 }
 0x6be   :  { %v8933_v30 = vpop.f32.mrf.mxu3 }
 0x6bf   :  { %v8652_v45 = vpop.f32.mrf.mxu2  ;;  %v9527_v56 = vsel %vm8055_vm8, %v8933_v30, 0.0  ;;  %v8896_v37 = vpop.f32.mrf.mxu0 }
 0x6c0   :  { %v9528_v55 = vadd.f32 %v9527_v56, %v9526_v20  ;;  %v8909_v48 = vpop.f32.mrf.mxu1 }
 0x6c2   :  { %15150 = vmatmul.msk.f32.vlgmr.msra.gmra.mxu0 %vm7633_vm7, %v9559_v5  ;;  %15152 = vmatmul.msk.f32.vlgmr.msra.gmra.mxu1 %vm7633_vm7, %v9585_v22 }
 0x6c3   :  { %15154 = vmatmul.msk.f32.vlgmr.msra.gmra.mxu2 %vm7633_vm7, %v9611_v15  ;;  %15156 = vmatmul.msk.f32.vlgmr.msra.gmra.mxu3 %vm7633_vm7, %v9637_v12 }
 0x6c4   :  { %15165 = vmatpush.msk.msra.mxu0 %vm8055_vm8, %v9967_v54  ;;  %15167 = vmatpush.msk.msra.mxu1 %vm8055_vm8, %v9993_v46 }
 0x6c5   :  { %15169 = vmatpush.msk.msra.mxu2 %vm8055_vm8, %v10019_v31  ;;  %15171 = vmatpush.msk.msra.mxu3 %vm8055_vm8, %v10045_v58  ;;  %v9537_v58 = vld [vmem:[%s21647_s7] sm:$0xf] }
 0x6c6   :  { %v8935_v29 = vpop.f32.mrf.mxu3 }
 0x6c7   :  { %v8785_v47 = vpop.f32.mrf.mxu2  ;;  %v9029_v42 = vpop.f32.mrf.mxu0 }
 0x6c8   :  { %v9510_v36 = vsel %vm8055_vm8, %v8785_v47, 0.0  ;;  %v9484_v57 = vsel %vm8055_vm8, %v9029_v42, 0.0  ;;  %v9042_v40 = vpop.f32.mrf.mxu1 }
 0x6c9   :  { %v9511_v34 = vadd.f32 %v9510_v36, %v9509_v62  ;;  %v9485_v16 = vadd.f32 %v9484_v57, %v9483_v39  ;;  %v9499_v43 = vsel %vm8055_vm8, %v9042_v40, 0.0  ;;  %v9540_v57 = vperm.slane %v9537_v58, 1 }
 0x6ca   :  { %v9500_v23 = vadd.f32 %v9499_v43, %v9498_v28  ;;  %15158 = vmatmul.msk.f32.vlgmr.msrb.gmra.mxu0 %vm7633_vm7, %v9663_v61  ;;  %15160 = vmatmul.msk.f32.vlgmr.msrb.gmra.mxu1 %vm7633_vm7, %v9689_v53 }
 0x6cb   :  { %15162 = vmatmul.msk.f32.vlgmr.msrb.gmra.mxu2 %vm7633_vm7, %v9715_v50  ;;  %15164 = vmatmul.msk.f32.vlgmr.msrb.gmra.mxu3 %vm7633_vm7, %v9741_v49  ;;  %v9539_v50 = vperm.slane %v9537_v58, 0 }
 0x6cc   :  { %15173 = vmatpush.msk.msrb.mxu0 %vm8055_vm8, %v10071_v44  ;;  %15175 = vmatpush.msk.msrb.mxu1 %vm8055_vm8, %v10097_v35 }
 0x6cd   :  { %15177 = vmatpush.msk.msrb.mxu2 %vm8055_vm8, %v10123_v19  ;;  %15179 = vmatpush.msk.msrb.mxu3 %vm8055_vm8, %v10149_v9 }
 0x6ce   :  { %v9068_v0 = vpop.f32.mrf.mxu3 }
 0x6cf   :  { %v8787_v2 = vpop.f32.mrf.mxu2  ;;  %v9529_v26 = vsel %vm8055_vm8, %v9068_v0, 0.0  ;;  %v9031_v33 = vpop.f32.mrf.mxu0  ;;  %v16845_v0 = vld [vmem:[%s21640_s0] sm:$0xff] }
 0x6d0   :  { %v9530_v38 = vadd.f32 %v9529_v26, %v9528_v55  ;;  %v9044_v10 = vpop.f32.mrf.mxu1  ;;  %v16846_v26 = vld [vmem:[%s21640_s0 + $0x8] sm:$0xff] }
 0x6d6   :  { %v9070_v59 = vpop.f32.mrf.mxu3 }
 0x6d7   :  { %v8920_v20 = vpop.f32.mrf.mxu2  ;;  %v9164_v24 = vpop.f32.mrf.mxu0 }
 0x6d8   :  { %v9512_v1 = vsel %vm8055_vm8, %v8920_v20, 0.0  ;;  %v9486_v27 = vsel %vm8055_vm8, %v9164_v24, 0.0  ;;  %v9177_v17 = vpop.f32.mrf.mxu1  ;;  %v9541_v20 = vperm.slane %v9537_v58, 2 }
 0x6d9   :  { %v9513_v52 = vadd.f32 %v9512_v1, %v9511_v34  ;;  %v9487_v4 = vadd.f32 %v9486_v27, %v9485_v16  ;;  %v9501_v14 = vsel %vm8055_vm8, %v9177_v17, 0.0  ;;  %v9542_v1 = vperm.slane %v9537_v58, 3 }
 0x6da   :  { %v9502_v41 = vadd.f32 %v9501_v14, %v9500_v23 }
 0x6de   :  { %v9203_v8 = vpop.f32.mrf.mxu3 }
 0x6df   :  { %v8922_v25 = vpop.f32.mrf.mxu2  ;;  %v9531_v32 = vsel %vm8055_vm8, %v9203_v8, 0.0  ;;  %v9166_v51 = vpop.f32.mrf.mxu0 }
 0x6e0   :  { %v9532_v62 = vadd.f32 %v9531_v32, %v9530_v38  ;;  %v9179_v39 = vpop.f32.mrf.mxu1  ;;  %v16847_v32 = vld [vmem:[%s21640_s0 + $0x10] sm:$0xff] }
 0x6e6   :  { %v9205_v63 = vpop.f32.mrf.mxu3 }
 0x6e7   :  { %v9055_v28 = vpop.f32.mrf.mxu2 }
 0x6e8   :  { %v9514_v30 = vsel %vm8055_vm8, %v9055_v28, 0.0 }
 0x6e9   :  { %v9515_v45 = vadd.f32 %v9514_v30, %v9513_v52 }
 0x6ef   :  { %v9057_v56 = vpop.f32.mrf.mxu2 }
 0x6f7   :  { %v9190_v37 = vpop.f32.mrf.mxu2 }
 0x6f8   :  { %v9516_v34 = vsel %vm8055_vm8, %v9190_v37, 0.0 }
 0x6f9   :  { %v9517_v9 = vadd.f32 %v9516_v34, %v9515_v45 }
 0x6ff   :  { %v9192_v5 = vpop.f32.mrf.mxu2 }
 0x71f   :  { %v9299_v22 = vpop.f32.mrf.mxu0  ;;  %v9312_v55 = vpop.f32.mrf.mxu1 }
 0x720   :  { %v9488_v46 = vsel %vm8055_vm8, %v9299_v22, 0.0  ;;  %v9503_v31 = vsel %vm8055_vm8, %v9312_v55, 0.0 }
 0x721   :  { %v9489_v47 = vadd.f32 %v9488_v46, %v9487_v4  ;;  %v9504_v42 = vadd.f32 %v9503_v31, %v9502_v41 }
 0x726   :  { %v9325_v48 = vpop.f32.mrf.mxu2  ;;  %v9338_v15 = vpop.f32.mrf.mxu3 }
 0x727   :  { %v9301_v12 = vpop.f32.mrf.mxu0  ;;  %v9314_v54 = vpop.f32.mrf.mxu1  ;;  %v9518_v44 = vsel %vm8055_vm8, %v9325_v48, 0.0  ;;  %v9533_v35 = vsel %vm8055_vm8, %v9338_v15, 0.0 }
 0x728   :  { %v9519_v38 = vadd.f32 %v9518_v44, %v9517_v9  ;;  %v9534_v10 = vadd.f32 %v9533_v35, %v9532_v62  ;;  %v16848_v62 = vld [vmem:[%s21640_s0 + $0x18] sm:$0xff] }
 0x72e   :  { %v9327_v29 = vpop.f32.mrf.mxu2  ;;  %v9340_v61 = vpop.f32.mrf.mxu3 }
 0x72f   :  { %v9434_v53 = vpop.f32.mrf.mxu0  ;;  %v9447_v36 = vpop.f32.mrf.mxu1 }
 0x730   :  { %v9490_v40 = vsel %vm8055_vm8, %v9434_v53, 0.0  ;;  %v9505_v49 = vsel %vm8055_vm8, %v9447_v36, 0.0 }
 0x731   :  { %v9491_v16 = vadd.f32 %v9490_v40, %v9489_v47  ;;  %v9506_v43 = vadd.f32 %v9505_v49, %v9504_v42 }
 0x733   :  { %v9547_v23 = vadd.f32 %v9539_v50, %v9491_v16  ;;  %v9548_v19 = vadd.f32 %v9540_v57, %v9506_v43 }
 0x735   :  { %v9551_v2 = vadd.f32 %v16845_v0, %v9547_v23  ;;  %v9552_v33 = vadd.f32 %v16846_v26, %v9548_v19 }
 0x736   :  { %v9460_v59 = vpop.f32.mrf.mxu2  ;;  %v9473_v24 = vpop.f32.mrf.mxu3 }
 0x737   :  { %9555 = vst [vmem:[#allocation2] sm:$0xf] %v9551_v2  ;;  %v9520_v27 = vsel %vm8055_vm8, %v9460_v59, 0.0  ;;  %v9535_v17 = vsel %vm8055_vm8, %v9473_v24, 0.0  ;;  %v9436_v52 = vpop.f32.mrf.mxu0  ;;  %v9449_v4 = vpop.f32.mrf.mxu1 }
 0x738   :  { %9556 = vst [vmem:[#allocation2 + $0x8] sm:$0xf] %v9552_v33  ;;  %v9521_v14 = vadd.f32 %v9520_v27, %v9519_v38  ;;  %v9536_v41 = vadd.f32 %v9535_v17, %v9534_v10 }
 0x73a   :  { %v9549_v8 = vadd.f32 %v9541_v20, %v9521_v14  ;;  %v9550_v25 = vadd.f32 %v9542_v1, %v9536_v41 }
 0x73c   :  { %v9553_v51 = vadd.f32 %v16847_v32, %v9549_v8  ;;  %v9554_v39 = vadd.f32 %v16848_v62, %v9550_v25 }
 0x73e   :  { %9557 = vst [vmem:[#allocation2 + $0x10] sm:$0xf] %v9553_v51  ;;  %v9462_v63 = vpop.f32.mrf.mxu2  ;;  %v9475_v28 = vpop.f32.mrf.mxu3 }
 0x73f   :  { %9558 = vst [vmem:[#allocation2 + $0x18] sm:$0xf] %v9554_v39  ;;  %v9582_v30 = vpop.f32.mrf.mxu0  ;;  %v9608_v45 = vpop.f32.mrf.mxu1 }
 0x740   :  { %v9767_v56 = vsel %vm7842_vm9, -1e+09, %v9582_v30  ;;  %v9768_v37 = vsel %vm7843_vm11, -1e+09, %v9608_v45  ;;  %vm21657_vm9 = vcmp.eq.f32.partialorder %v19619_v3, 0.0  ;;  %vm21658_vm11 = vcmp.eq.f32.partialorder %v19632_v21, 0.0 }
 0x741   :  { %v9778_v5 = vsel %vm7858_vm10, %v9768_v37, -inf  ;;  %v9775_v22 = vsel %vm7858_vm10, %v9767_v56, -inf }
 0x742   :  { %9779 = vmax.xlane.f32.xlu1 %v9778_v5  ;;  %9776 = vmax.xlane.f32.xlu0 %v9775_v22 }
 0x746   :  { %v9634_v55 = vpop.f32.mrf.mxu2  ;;  %v9660_v48 = vpop.f32.mrf.mxu3 }
 0x747   :  { %v9769_v15 = vsel %vm7844_vm12, -1e+09, %v9634_v55  ;;  %v9770_v12 = vsel %vm7845_vm13, -1e+09, %v9660_v48  ;;  %v9686_v54 = vpop.f32.mrf.mxu0  ;;  %v9712_v58 = vpop.f32.mrf.mxu1  ;;  %vm21659_vm12 = vcmp.eq.f32.partialorder %v19641_v7, 0.0  ;;  %vm21660_vm13 = vcmp.eq.f32.partialorder %v19659_v13, 0.0 }
 0x748   :  { %v9781_v60 = vsel %vm7858_vm10, %v9769_v15, -inf  ;;  %v9784_v6 = vsel %vm7858_vm10, %v9770_v12, -inf  ;;  %v9771_v46 = vsel %vm21657_vm9, -1e+09, %v9686_v54  ;;  %v9772_v11 = vsel %vm21658_vm11, -1e+09, %v9712_v58 }
 0x749   :  { %9782 = vmax.xlane.f32.xlu2 %v9781_v60  ;;  %v9787_v31 = vsel %vm7858_vm10, %v9771_v46, -inf  ;;  %v9790_v18 = vsel %vm7858_vm10, %v9772_v11, -inf }
 0x74a   :  { %9785 = vmax.xlane.f32.xlu0 %v9784_v6 }
 0x74e   :  { %v9764_v29 = vpop.f32.mrf.mxu3  ;;  %v9738_v23 = vpop.f32.mrf.mxu2 }
 0x74f   :  { %v9774_v61 = vsel %vm21659_vm12, -1e+09, %v9764_v29  ;;  %v9773_v2 = vsel %vm21660_vm13, -1e+09, %v9738_v23 }
 0x750   :  { %v9796_v47 = vsel %vm7858_vm10, %v9774_v61, -inf  ;;  %v9793_v38 = vsel %vm7858_vm10, %v9773_v2, -inf }
 0x751   :  { %9788 = vmax.xlane.f32.xlu2 %v9787_v31 }
 0x759   :  { %9791 = vmax.xlane.f32.xlu2 %v9790_v18 }
 0x761   :  { %9797 = vmax.xlane.f32.xlu2 %v9796_v47 }
 0x7b5   :  { %v9780_v42 = vpop.xlane.xlu1 %9779  ;;  %v9777_v3 = vpop.xlane.xlu0 %9776 }
 0x7b6   :  { %v9800_v53 = vsub.f32 %v9768_v37, %v9780_v42  ;;  %v9799_v50 = vsub.f32 %v9767_v56, %v9777_v3 }
 0x7b8   :  { %v9809_v36 = vmul.f32 1.442695, %v9800_v53  ;;  %v9807_v57 = vmul.f32 1.442695, %v9799_v50 }
 0x7ba   :  { %16813 = vpow2.f32 %v9809_v36 }
 0x7bb   :  { %16815 = vpow2.f32 %v9807_v57 }
 0x7bc   :  { %v9783_v21 = vpop.xlane.xlu2 %9782 }
 0x7bd   :  { %v9801_v40 = vsub.f32 %v9769_v15, %v9783_v21  ;;  %v9786_v49 = vpop.xlane.xlu0 %9785 }
 0x7be   :  { %v9802_v43 = vsub.f32 %v9770_v12, %v9786_v49  ;;  %v15231_v49 = vld [vmem:[%s21646_s6 + $0x60] sm:$0xf] }
 0x7bf   :  { %v9811_v34 = vmul.f32 1.442695, %v9801_v40 }
 0x7c0   :  { %v20706_v16 = vpop.eup %16813  ;;  %v9813_v19 = vmul.f32 1.442695, %v9802_v43  ;;  %v16635_v43 = vld [vmem:[%s21646_s6 + $0x6c] sm:$0xf0] }
 0x7c1   :  { %v20708_v7 = vpop.eup %16815  ;;  %16817 = vpow2.f32 %v9811_v34  ;;  %v9826_v44 = vsel %vm7858_vm10, %v20706_v16, 0.0  ;;  %v15232_v23 = vor.u32 %v16635_v43, %v15231_v49 }
 0x7c2   :  { %9827 = vadd.xlane.f32.xlu0 %v9826_v44  ;;  %v9823_v35 = vsel %vm7858_vm10, %v20708_v7, 0.0  ;;  %16819 = vpow2.f32 %v9813_v19  ;;  %v15233_v19 = vld [vmem:[%s21646_s6 + $0x70] sm:$0xf0] }
 0x7c3   :  { %9824 = vadd.xlane.f32.xlu1 %v9823_v35  ;;  %v16633_v35 = vld [vmem:[%s21646_s6 + $0x64] sm:$0xf] }
 0x7c4   :  { %v9789_v9 = vpop.xlane.xlu2 %9788 }
 0x7c5   :  { %v9803_v0 = vsub.f32 %v9771_v46, %v9789_v9 }
 0x7c7   :  { %v20716_v26 = vpop.eup %16817  ;;  %v9815_v33 = vmul.f32 1.442695, %v9803_v0  ;;  %v15236_v0 = vor.u32 %v16633_v35, %v15233_v19  ;;  %v15217_v35 = vld [vmem:[%s21646_s6 + $0x50] sm:$0xf0] }
 0x7c8   :  { %v9829_v10 = vsel %vm7858_vm10, %v20716_v26, 0.0  ;;  %v20721_v24 = vpop.eup %16819 }
 0x7c9   :  { %16821 = vpow2.f32 %v9815_v33  ;;  %v9832_v17 = vsel %vm7858_vm10, %v20721_v24, 0.0 }
 0x7ca   :  { %9794 = vmax.xlane.f32.xlu0 %v9793_v38 }
 0x7cb   :  { %9830 = vadd.xlane.f32.xlu1 %v9829_v10 }
 0x7cc   :  { %v9792_v59 = vpop.xlane.xlu2 %9791 }
 0x7cd   :  { %v9804_v20 = vsub.f32 %v9772_v11, %v9792_v59 }
 0x7cf   :  { %v20723_v1 = vpop.eup %16821  ;;  %v9817_v13 = vmul.f32 1.442695, %v9804_v20 }
 0x7d0   :  { %v9835_v27 = vsel %vm7858_vm10, %v20723_v1, 0.0 }
 0x7d1   :  { %16823 = vpow2.f32 %v9817_v13 }
 0x7d2   :  { %9836 = vadd.xlane.f32.xlu0 %v9835_v27 }
 0x7d3   :  { %9833 = vadd.xlane.f32.xlu1 %v9832_v17 }
 0x7d4   :  { %v9798_v52 = vpop.xlane.xlu2 %9797 }
 0x7d5   :  { %v9806_v4 = vsub.f32 %v9774_v61, %v9798_v52 }
 0x7d7   :  { %v20729_v14 = vpop.eup %16823  ;;  %v9821_v41 = vmul.f32 1.442695, %v9806_v4 }
 0x7d8   :  { %v9838_v8 = vsel %vm7858_vm10, %v20729_v14, 0.0 }
 0x7d9   :  { %16825 = vpow2.f32 %v9821_v41 }
 0x7db   :  { %9839 = vadd.xlane.f32.xlu1 %v9838_v8 }
 0x7df   :  { %v20733_v25 = vpop.eup %16825 }
 0x7e0   :  { %v9844_v32 = vsel %vm7858_vm10, %v20733_v25, 0.0 }
 0x7e1   :  { %9845 = vadd.xlane.f32.xlu0 %v9844_v32 }
 0x835   :  { %v9828_v51 = vpop.xlane.xlu0 %9827 }
 0x836   :  { %v9825_v62 = vpop.xlane.xlu1 %9824  ;;  %16827 = vrcp.f32 %v9828_v51  ;;  %v9872_v55 = vand.u32 2147483648, %v9828_v51  ;;  %v9870_v60 = vand.u32 2147483647, %v9828_v51  ;;  %vm9866_vm0 = vweird.f32 %v9828_v51 }
 0x837   :  { %16829 = vrcp.f32 %v9825_v62  ;;  %v9858_v15 = vand.u32 2147483648, %v9825_v62  ;;  %v9856_v54 = vand.u32 2147483647, %v9825_v62  ;;  %vm9852_vm15 = vweird.f32 %v9825_v62 }
 0x838   :  { %v9873_v58 = vor.u32 1.1754944e-38, %v9872_v55  ;;  %vm9871_vm4 = vcmp.eq.f32.partialorder %v9870_v60, 8.507059e+37 }
 0x839   :  { %v9859_v18 = vor.u32 1.1754944e-38, %v9858_v15  ;;  %vm9857_vm5 = vcmp.eq.f32.partialorder %v9856_v54, 8.507059e+37 }
 0x83c   :  { %v16828_v39 = vpop.eup %16827 }
 0x83d   :  { %v16830_v63 = vpop.eup %16829  ;;  %v9862_v28 = vmul.f32 %v16828_v39, %v9828_v51  ;;  %v9795_v30 = vpop.xlane.xlu0 %9794  ;;  %vm9867_vm2 = vweird.f32 %v16828_v39 }
 0x83e   :  { %v9848_v45 = vmul.f32 %v16830_v63, %v9825_v62  ;;  %v9831_v56 = vpop.xlane.xlu1 %9830  ;;  %v9805_v37 = vsub.f32 %v9773_v2, %v9795_v30  ;;  %vm9853_vm3 = vweird.f32 %v16830_v63  ;;  %vm9868_vm14 = vmor %vm9866_vm0, %vm9867_vm2  ;;  %v15241_v30 = vld [vmem:[%s21646_s6 + $0x78] sm:$0xf0] }
 0x83f   :  { %v9863_v5 = vsub.f32 1.0, %v9862_v28  ;;  %16831 = vrcp.f32 %v9831_v56  ;;  %vm9854_vm1 = vmor %vm9852_vm15, %vm9853_vm3  ;;  %v9886_v34 = vand.u32 2147483648, %v9831_v56  ;;  %v9884_v44 = vand.u32 2147483647, %v9831_v56 }
 0x840   :  { %v9849_v22 = vsub.f32 1.0, %v9848_v45  ;;  %v9819_v48 = vmul.f32 1.442695, %v9805_v37  ;;  %vm9880_vm11 = vweird.f32 %v9831_v56 }
 0x841   :  { %v9864_v12 = vmul.f32 %v16828_v39, %v9863_v5  ;;  %v9887_v33 = vor.u32 1.1754944e-38, %v9886_v34  ;;  %vm9885_vm13 = vcmp.eq.f32.partialorder %v9884_v44, 8.507059e+37  ;;  %v16629_v44 = vld [vmem:[%s21646_s6 + $0x44] sm:$0xf] }
 0x842   :  { %v9850_v6 = vmul.f32 %v16830_v63, %v9849_v22  ;;  %16833 = vpow2.f32 %v9819_v48  ;;  %v15220_v19 = vor.u32 %v16629_v44, %v15217_v35  ;;  %v15251_v44 = vld [vmem:[%s21646_s6 + $0x80] sm:$0xf]  ;;  %v16639_v35 = vld [vmem:[%s21646_s6 + $0x8c] sm:$0xf0] }
 0x843   :  { %v9865_v46 = vadd.f32 %v16828_v39, %v9864_v12 }
 0x844   :  { %v9851_v31 = vadd.f32 %v16830_v63, %v9850_v6 }
 0x845   :  { %v16832_v11 = vpop.eup %16831  ;;  %v9869_v29 = vsel %vm9868_vm14, %v16828_v39, %v9865_v46  ;;  %v20737_v53 = vpop.xlane.xlu0 %9836 }
 0x846   :  { %v9855_v61 = vsel %vm9854_vm1, %v16830_v63, %v9851_v31  ;;  %v9874_v47 = vsel %vm9871_vm4, %v9873_v58, %v9869_v29  ;;  %v9876_v42 = vmul.f32 %v16832_v11, %v9831_v56  ;;  %v9834_v3 = vpop.xlane.xlu1 %9833  ;;  %vm9881_vm9 = vweird.f32 %v16832_v11 }
 0x847   :  { %v9860_v50 = vsel %vm9857_vm5, %v9859_v18, %v9855_v61  ;;  %v9960_v36 = vmul.f32 %v20706_v16, %v9874_v47  ;;  %16835 = vrcp.f32 %v9834_v3  ;;  %vm9882_vm12 = vmor %vm9880_vm11, %vm9881_vm9  ;;  %v9900_v4 = vand.u32 2147483648, %v9834_v3 }
 0x848   :  { %v20740_v57 = vpop.eup %16833  ;;  %v9959_v21 = vmul.f32 %v20708_v7, %v9860_v50  ;;  %v9877_v40 = vsub.f32 1.0, %v9876_v42  ;;  %16837 = vrcp.f32 %v20737_v53  ;;  %v9898_v8 = vand.u32 2147483647, %v9834_v3 }
 0x849   :  { %15168 = vmatmul.msk.f32.vlgmr.msra.gmra.mxu1 %vm8051_vm6, %v9960_v36  ;;  %v9841_v7 = vsel %vm7858_vm10, %v20740_v57, 0.0  ;;  %vm9894_vm2 = vweird.f32 %v9834_v3  ;;  %v9914_v51 = vand.u32 2147483648, %v20737_v53  ;;  %v9912_v63 = vand.u32 2147483647, %v20737_v53 }
 0x84a   :  { %v9878_v16 = vmul.f32 %v16832_v11, %v9877_v40  ;;  %15166 = vmatmul.msk.f32.vlgmr.msra.gmra.mxu0 %vm8051_vm6, %v9959_v21  ;;  %9842 = vadd.xlane.f32.xlu2 %v9841_v7  ;;  %v9901_v56 = vor.u32 1.1754944e-38, %v9900_v4  ;;  %vm9908_vm15 = vweird.f32 %v20737_v53  ;;  %vm9899_vm14 = vcmp.eq.f32.partialorder %v9898_v8, 8.507059e+37  ;;  %v16621_v4 = vld [vmem:[%s21646_s6 + $0x4] sm:$0xf]  ;;  %v15185_v8 = vld [vmem:[%s21646_s6 + $0x10] sm:$0xf0] }
 0x84b   :  { %10398 = vmatpush.bf16.msra.mxu0 %v15232_v23  ;;  %10411 = vmatpush.bf16.msra.mxu1 %v15236_v0  ;;  %v9915_v48 = vor.u32 1.1754944e-38, %v9914_v51  ;;  %vm9913_vm4 = vcmp.eq.f32.partialorder %v9912_v63, 8.507059e+37  ;;  %v15225_v23 = vld [vmem:[%s21646_s6 + $0x58] sm:$0xf0]  ;;  %v15199_v0 = vld [vmem:[%s21646_s6 + $0x20] sm:$0xf] }
 0x84c   :  { %v9879_v9 = vadd.f32 %v16832_v11, %v9878_v16  ;;  %v16631_v16 = vld [vmem:[%s21646_s6 + $0x4c] sm:$0xf0]  ;;  %v15193_v51 = vld [vmem:[%s21646_s6 + $0x18] sm:$0xf0]  ;;  %v15239_v63 = vld [vmem:[%s21646_s6 + $0x68] sm:$0xf] }
 0x84d   :  { %v16836_v2 = vpop.eup %16835 }
 0x84e   :  { %v9883_v38 = vsel %vm9882_vm12, %v16832_v11, %v9879_v9  ;;  %v9890_v10 = vmul.f32 %v16836_v2, %v9834_v3  ;;  %v9840_v59 = vpop.xlane.xlu1 %9839  ;;  %v16838_v20 = vpop.eup %16837  ;;  %vm9895_vm10 = vweird.f32 %v16836_v2 }
 0x84f   :  { %v9888_v13 = vsel %vm9885_vm13, %v9887_v33, %v9883_v38  ;;  %16839 = vrcp.f32 %v9840_v59  ;;  %v9904_v52 = vmul.f32 %v16838_v20, %v20737_v53  ;;  %vm9909_vm3 = vweird.f32 %v16838_v20  ;;  %vm9896_vm0 = vmor %vm9894_vm2, %vm9895_vm10  ;;  %10412 = vmatpush.bf16.msra.mxu1 %v15220_v19  ;;  %v16625_v33 = vld [vmem:[%s21646_s6 + $0x24] sm:$0xf] }
 0x850   :  { %v9961_v27 = vmul.f32 %v20716_v26, %v9888_v13  ;;  %v9891_v17 = vsub.f32 1.0, %v9890_v10  ;;  %v16634_v26 = vld [vmem:[%s21646_s6 + $0x6c] sm:$0xf]  ;;  %vm9910_vm1 = vmor %vm9908_vm15, %vm9909_vm3  ;;  %v9928_v46 = vand.u32 2147483648, %v9840_v59  ;;  %v9926_v11 = vand.u32 2147483647, %v9840_v59 }
 0x851   :  { %v9905_v32 = vsub.f32 1.0, %v9904_v52  ;;  %v15244_v15 = vor.u32 %v16634_v26, %v15241_v30  ;;  %vm9922_vm9 = vweird.f32 %v9840_v59  ;;  %v15201_v10 = vld [vmem:[%s21646_s6 + $0x30] sm:$0xf0]  ;;  %v16623_v52 = vld [vmem:[%s21646_s6 + $0xc] sm:$0xf0]  ;;  %v15252_v19 = vor.u32 %v16639_v35, %v15251_v44 }
 0x852   :  { %v9892_v41 = vmul.f32 %v16836_v2, %v9891_v17  ;;  %15170 = vmatmul.msk.f32.vlgmr.msra.gmra.mxu2 %vm8051_vm6, %v9961_v27  ;;  %vm9927_vm12 = vcmp.eq.f32.partialorder %v9926_v11, 8.507059e+37  ;;  %v15204_v13 = vor.u32 %v16625_v33, %v15201_v10  ;;  %v15183_v17 = vld [vmem:[%s21646_s6] sm:$0xf]  ;;  %v15275_v44 = vld [vmem:[%s21646_s6 + $0xa8] sm:$0xf] }
 0x853   :  { %v9906_v39 = vmul.f32 %v16838_v20, %v9905_v32  ;;  %v16622_v32 = vld [vmem:[%s21646_s6 + $0xc] sm:$0xf]  ;;  %v15299_v26 = vld [vmem:[%s21646_s6 + $0xe0] sm:$0xf] }
 0x854   :  { %v9893_v62 = vadd.f32 %v16836_v2, %v9892_v41  ;;  %v9846_v28 = vpop.xlane.xlu0 %9845  ;;  %10413 = vmatpush.bf16.msra.mxu1 %v15204_v13  ;;  %v15184_v41 = vor.u32 %v16623_v52, %v15183_v17  ;;  %v15367_v10 = vld [vmem:[%s21646_s6 + $0x160] sm:$0xf]  ;;  %v15369_v13 = vld [vmem:[%s21646_s6 + $0x170] sm:$0xf0]  ;;  %v16666_v17 = vld [vmem:[%s21646_s6 + $0x16c] sm:$0xf] }
 0x855   :  { %v16840_v45 = vpop.eup %16839  ;;  %16841 = vrcp.f32 %v9846_v28  ;;  %v9907_v5 = vadd.f32 %v16838_v20, %v9906_v39  ;;  %v9956_v53 = vand.u32 2147483648, %v9846_v28  ;;  %v9954_v36 = vand.u32 2147483647, %v9846_v28  ;;  %v15377_v52 = vld [vmem:[%s21646_s6 + $0x178] sm:$0xf0] }
 0x856   :  { %v9897_v37 = vsel %vm9896_vm0, %v16836_v2, %v9893_v62  ;;  %v9918_v22 = vmul.f32 %v16840_v45, %v9840_v59  ;;  %vm9923_vm5 = vweird.f32 %v16840_v45  ;;  %vm9950_vm10 = vweird.f32 %v9846_v28  ;;  %v16627_v2 = vld [vmem:[%s21646_s6 + $0x2c] sm:$0xf0]  ;;  %v16626_v59 = vld [vmem:[%s21646_s6 + $0x2c] sm:$0xf] }
 0x857   :  { %v9902_v55 = vsel %vm9899_vm14, %v9901_v56, %v9897_v37  ;;  %v9911_v60 = vsel %vm9910_vm1, %v16838_v20, %v9907_v5  ;;  %vm9924_vm11 = vmor %vm9922_vm9, %vm9923_vm5  ;;  %v9957_v40 = vor.u32 1.1754944e-38, %v9956_v53  ;;  %vm9955_vm3 = vcmp.eq.f32.partialorder %v9954_v36, 8.507059e+37  ;;  %v15209_v20 = vld [vmem:[%s21646_s6 + $0x38] sm:$0xf0]  ;;  %v16649_v56 = vld [vmem:[%s21646_s6 + $0xe4] sm:$0xf] }
 0x858   :  { %v9962_v12 = vmul.f32 %v20721_v24, %v9902_v55  ;;  %v9919_v6 = vsub.f32 1.0, %v9918_v22  ;;  %v9916_v54 = vsel %vm9913_vm4, %v9915_v48, %v9911_v60  ;;  %v9929_v24 = vor.u32 1.1754944e-38, %v9928_v46  ;;  %v15301_v37 = vld [vmem:[%s21646_s6 + $0xf0] sm:$0xf0]  ;;  %v16650_v55 = vld [vmem:[%s21646_s6 + $0xec] sm:$0xf] }
 0x859   :  { %v9963_v31 = vmul.f32 %v20723_v1, %v9916_v54  ;;  %v15200_v38 = vor.u32 %v16627_v2, %v15199_v0  ;;  %v15212_v27 = vor.u32 %v16626_v59, %v15209_v20  ;;  %v15188_v62 = vor.u32 %v16621_v4, %v15185_v8  ;;  %v15309_v48 = vld [vmem:[%s21646_s6 + $0xf8] sm:$0xf0]  ;;  %v16632_v60 = vld [vmem:[%s21646_s6 + $0x54] sm:$0xf0]  ;;  %v16647_v46 = vld [vmem:[%s21646_s6 + $0xcc] sm:$0xf0] }
 0x85a   :  { %v9920_v58 = vmul.f32 %v16840_v45, %v9919_v6  ;;  %15172 = vmatmul.msk.f32.vlgmr.msra.gmra.mxu3 %vm8051_vm6, %v9962_v12  ;;  %v15196_v39 = vor.u32 %v16622_v32, %v15193_v51  ;;  %v15304_v22 = vor.u32 %v16649_v56, %v15301_v37  ;;  %v15223_v12 = vld [vmem:[%s21646_s6 + $0x48] sm:$0xf]  ;;  %v15283_v6 = vld [vmem:[%s21646_s6 + $0xc0] sm:$0xf]  ;;  %v15269_v36 = vld [vmem:[%s21646_s6 + $0xb0] sm:$0xf0] }
 0x85b   :  { %v16842_v18 = vpop.eup %16841  ;;  %10437 = vmatpush.bf16.msra.mxu3 %v15244_v15  ;;  %15174 = vmatmul.msk.f32.vlgmr.msrb.gmra.mxu0 %vm8051_vm6, %v9963_v31  ;;  %v15312_v15 = vor.u32 %v16650_v55, %v15309_v48  ;;  %v15224_v54 = vor.u32 %v16632_v60, %v15223_v12  ;;  %v16645_v31 = vld [vmem:[%s21646_s6 + $0xc4] sm:$0xf]  ;;  %v15284_v11 = vor.u32 %v16647_v46, %v15283_v6  ;;  %v16638_v0 = vld [vmem:[%s21646_s6 + $0x8c] sm:$0xf]  ;;  %v15261_v2 = vld [vmem:[%s21646_s6 + $0x98] sm:$0xf0] }
 0x85c   :  { %v9921_v29 = vadd.f32 %v16840_v45, %v9920_v58  ;;  %v9946_v61 = vmul.f32 %v16842_v18, %v9846_v28  ;;  %vm9951_vm13 = vweird.f32 %v16842_v18  ;;  %10414 = vmatpush.bf16.msra.mxu1 %v15188_v62  ;;  %v16636_v28 = vld [vmem:[%s21646_s6 + $0x74] sm:$0xf0]  ;;  %v15285_v58 = vld [vmem:[%s21646_s6 + $0xd0] sm:$0xf0]  ;;  %v15264_v33 = vor.u32 %v16638_v0, %v15261_v2  ;;  %v16667_v59 = vld [vmem:[%s21646_s6 + $0x16c] sm:$0xf0] }
 0x85d   :  { %vm9952_vm2 = vmor %vm9950_vm10, %vm9951_vm13  ;;  %v15240_v30 = vor.u32 %v16636_v28, %v15239_v63  ;;  %v16665_v20 = vld [vmem:[%s21646_s6 + $0x164] sm:$0xf]  ;;  %v15368_v8 = vor.u32 %v16667_v59, %v15367_v10  ;;  %v15351_v51 = vld [vmem:[%s21646_s6 + $0x140] sm:$0xf]  ;;  %v15380_v28 = vor.u32 %v16666_v17, %v15377_v52 }
 0x85e   :  { %v9925_v47 = vsel %vm9924_vm11, %v16840_v45, %v9921_v29  ;;  %v9947_v42 = vsub.f32 1.0, %v9946_v61  ;;  %v16651_v45 = vld [vmem:[%s21646_s6 + $0xec] sm:$0xf0]  ;;  %v16646_v29 = vld [vmem:[%s21646_s6 + $0xcc] sm:$0xf]  ;;  %v15372_v32 = vor.u32 %v16665_v20, %v15369_v13 }
 0x85f   :  { %v9930_v3 = vsel %vm9927_vm12, %v9929_v24, %v9925_v47  ;;  %v15300_v5 = vor.u32 %v16651_v45, %v15299_v26  ;;  %10424 = vmatpush.bf16.msra.mxu2 %v15240_v30  ;;  %v15293_v61 = vld [vmem:[%s21646_s6 + $0xd8] sm:$0xf0]  ;;  %v15207_v47 = vld [vmem:[%s21646_s6 + $0x28] sm:$0xf]  ;;  %v16663_v26 = vld [vmem:[%s21646_s6 + $0x14c] sm:$0xf0] }
 0x860   :  { %v9964_v1 = vmul.f32 %v20729_v14, %v9930_v3  ;;  %v9948_v50 = vmul.f32 %v16842_v18, %v9947_v42  ;;  %v15215_v14 = vld [vmem:[%s21646_s6 + $0x40] sm:$0xf]  ;;  %v15296_v24 = vor.u32 %v16646_v29, %v15293_v61  ;;  %v16628_v42 = vld [vmem:[%s21646_s6 + $0x34] sm:$0xf0]  ;;  %v16661_v30 = vld [vmem:[%s21646_s6 + $0x144] sm:$0xf] }
 0x861   :  { %v15216_v7 = vor.u32 %v16631_v16, %v15215_v14  ;;  %v15267_v3 = vld [vmem:[%s21646_s6 + $0xa0] sm:$0xf]  ;;  %v15208_v53 = vor.u32 %v16628_v42, %v15207_v47  ;;  %v15191_v14 = vld [vmem:[%s21646_s6 + $0x8] sm:$0xf]  ;;  %v16624_v16 = vld [vmem:[%s21646_s6 + $0x14] sm:$0xf0] }
 0x862   :  { %v9949_v21 = vadd.f32 %v16842_v18, %v9948_v50  ;;  %15176 = vmatmul.msk.f32.vlgmr.msrb.gmra.mxu1 %vm8051_vm6, %v9964_v1  ;;  %v16643_v1 = vld [vmem:[%s21646_s6 + $0xac] sm:$0xf0]  ;;  %v16641_v50 = vld [vmem:[%s21646_s6 + $0xa4] sm:$0xf]  ;;  %v15353_v45 = vld [vmem:[%s21646_s6 + $0x150] sm:$0xf0] }
 0x863   :  { %10399 = vmatpush.bf16.msra.mxu0 %v15216_v7  ;;  %10546 = vmatpush.bf16.msrb.mxu1 %v15304_v22  ;;  %v15192_v7 = vor.u32 %v16624_v16, %v15191_v14  ;;  %v16662_v56 = vld [vmem:[%s21646_s6 + $0x14c] sm:$0xf]  ;;  %v15361_v37 = vld [vmem:[%s21646_s6 + $0x158] sm:$0xf0]  ;;  %v15307_v55 = vld [vmem:[%s21646_s6 + $0xe8] sm:$0xf]  ;;  %v15356_v6 = vor.u32 %v16661_v30, %v15353_v45 }
 0x864   :  { %v9953_v49 = vsel %vm9952_vm2, %v16842_v18, %v9949_v21  ;;  %v15288_v18 = vor.u32 %v16645_v31, %v15285_v58  ;;  %10425 = vmatpush.bf16.msra.mxu2 %v15224_v54  ;;  %v15268_v21 = vor.u32 %v16643_v1, %v15267_v3  ;;  %v16652_v48 = vld [vmem:[%s21646_s6 + $0xf4] sm:$0xf0]  ;;  %v15335_v12 = vld [vmem:[%s21646_s6 + $0x120] sm:$0xf]  ;;  %v15364_v54 = vor.u32 %v16662_v56, %v15361_v37  ;;  %v16659_v46 = vld [vmem:[%s21646_s6 + $0x12c] sm:$0xf0] }
 0x865   :  { %v9958_v34 = vsel %vm9955_vm3, %v9957_v40, %v9953_v49  ;;  %v15272_v40 = vor.u32 %v16641_v50, %v15269_v36  ;;  %v16642_v49 = vld [vmem:[%s21646_s6 + $0xac] sm:$0xf]  ;;  %v16657_v31 = vld [vmem:[%s21646_s6 + $0x124] sm:$0xf]  ;;  %v15337_v58 = vld [vmem:[%s21646_s6 + $0x130] sm:$0xf0]  ;;  %v15308_v47 = vor.u32 %v16652_v48, %v15307_v55 }
 0x866   :  { %v9966_v43 = vmul.f32 %v20733_v25, %v9958_v34  ;;  %v16630_v25 = vld [vmem:[%s21646_s6 + $0x4c] sm:$0xf]  ;;  %v15277_v34 = vld [vmem:[%s21646_s6 + $0xb8] sm:$0xf0]  ;;  %v15291_v42 = vld [vmem:[%s21646_s6 + $0xc8] sm:$0xf]  ;;  %v15340_v50 = vor.u32 %v16657_v31, %v15337_v58 }
 0x867   :  { %v15228_v9 = vor.u32 %v16630_v25, %v15225_v23  ;;  %10400 = vmatpush.bf16.msra.mxu0 %v15200_v38  ;;  %10547 = vmatpush.bf16.msrb.mxu1 %v15288_v18  ;;  %v16637_v25 = vld [vmem:[%s21646_s6 + $0x84] sm:$0xf]  ;;  %v15253_v23 = vld [vmem:[%s21646_s6 + $0x90] sm:$0xf0]  ;;  %v16658_v18 = vld [vmem:[%s21646_s6 + $0x12c] sm:$0xf] }
 0x868   :  { %15180 = vmatmul.msk.f32.vlgmr.msrb.gmra.mxu3 %vm8051_vm6, %v9966_v43  ;;  %10426 = vmatpush.bf16.msra.mxu2 %v15208_v53  ;;  %v15280_v43 = vor.u32 %v16642_v49, %v15277_v34  ;;  %v15345_v29 = vld [vmem:[%s21646_s6 + $0x138] sm:$0xf0]  ;;  %v16648_v3 = vld [vmem:[%s21646_s6 + $0xd4] sm:$0xf0]  ;;  %v15336_v53 = vor.u32 %v16659_v46, %v15335_v12  ;;  %v16653_v49 = vld [vmem:[%s21646_s6 + $0x104] sm:$0xf] }
 0x869   :  { %10438 = vmatpush.bf16.msra.mxu3 %v15228_v9  ;;  %v15256_v9 = vor.u32 %v16637_v25, %v15253_v23  ;;  %v15348_v36 = vor.u32 %v16658_v18, %v15345_v29  ;;  %v16654_v34 = vld [vmem:[%s21646_s6 + $0x10c] sm:$0xf]  ;;  %v15292_v14 = vor.u32 %v16648_v3, %v15291_v42  ;;  %v16681_v0 = vld [vmem:[%s21646_s6 + $0x1e4] sm:$0xf]  ;;  %v15437_v2 = vld [vmem:[%s21646_s6 + $0x1f0] sm:$0xf0] }
 0x86a   :  { %v15259_v20 = vld [vmem:[%s21646_s6 + $0x88] sm:$0xf]  ;;  %v16640_v13 = vld [vmem:[%s21646_s6 + $0x94] sm:$0xf0]  ;;  %v15440_v52 = vor.u32 %v16681_v0, %v15437_v2  ;;  %v15403_v37 = vld [vmem:[%s21646_s6 + $0x1a0] sm:$0xf] }
 0x86b   :  { %10401 = vmatpush.bf16.msra.mxu0 %v15184_v41  ;;  %10548 = vmatpush.bf16.msrb.mxu1 %v15272_v40  ;;  %v16655_v40 = vld [vmem:[%s21646_s6 + $0x10c] sm:$0xf0]  ;;  %v15375_v17 = vld [vmem:[%s21646_s6 + $0x168] sm:$0xf]  ;;  %v16673_v48 = vld [vmem:[%s21646_s6 + $0x1a4] sm:$0xf] }
 0x86c   :  { %10427 = vmatpush.bf16.msra.mxu2 %v15192_v7  ;;  %v16644_v7 = vld [vmem:[%s21646_s6 + $0xb4] sm:$0xf0]  ;;  %v15359_v45 = vld [vmem:[%s21646_s6 + $0x148] sm:$0xf]  ;;  %v16674_v12 = vld [vmem:[%s21646_s6 + $0x1ac] sm:$0xf] }
 0x86d   :  { %10439 = vmatpush.bf16.msra.mxu3 %v15212_v27  ;;  %v15276_v59 = vor.u32 %v16644_v7, %v15275_v44  ;;  %v15343_v46 = vld [vmem:[%s21646_s6 + $0x128] sm:$0xf]  ;;  %v15387_v58 = vld [vmem:[%s21646_s6 + $0x180] sm:$0xf]  ;;  %v16660_v18 = vld [vmem:[%s21646_s6 + $0x134] sm:$0xf0] }
 0x86e   :  { %v16656_v42 = vld [vmem:[%s21646_s6 + $0x114] sm:$0xf0]  ;;  %v15513_v44 = vld [vmem:[%s21646_s6 + $0x278] sm:$0xf0]  ;;  %v16695_v0 = vld [vmem:[%s21646_s6 + $0x24c] sm:$0xf0] }
 0x86f   :  { %10533 = vmatpush.bf16.msrb.mxu0 %v15300_v5  ;;  %10549 = vmatpush.bf16.msrb.mxu1 %v15256_v9  ;;  %v16683_v9 = vld [vmem:[%s21646_s6 + $0x1ec] sm:$0xf0] }
 0x871   :  { %10440 = vmatpush.bf16.msra.mxu3 %v15196_v39 }
 0x873   :  { %10534 = vmatpush.bf16.msrb.mxu0 %v15284_v11 }
 0x875   :  { %10572 = vmatpush.bf16.msrb.mxu3 %v15312_v15  ;;  %v15352_v15 = vor.u32 %v16663_v26, %v15351_v51  ;;  %v16677_v51 = vld [vmem:[%s21646_s6 + $0x1c4] sm:$0xf] }
 0x877   :  { %10535 = vmatpush.bf16.msrb.mxu0 %v15268_v21  ;;  %v15319_v21 = vld [vmem:[%s21646_s6 + $0x100] sm:$0xf] }
 0x878   :  { %v15320_v16 = vor.u32 %v16655_v40, %v15319_v21  ;;  %v15397_v21 = vld [vmem:[%s21646_s6 + $0x198] sm:$0xf0]  ;;  %v15503_v40 = vld [vmem:[%s21646_s6 + $0x260] sm:$0xf] }
 0x879   :  { %10573 = vmatpush.bf16.msrb.mxu3 %v15296_v24 }
 0x87b   :  { %10536 = vmatpush.bf16.msrb.mxu0 %v15252_v19  ;;  %v15435_v19 = vld [vmem:[%s21646_s6 + $0x1e0] sm:$0xf] }
 0x87d   :  { %10574 = vmatpush.bf16.msrb.mxu3 %v15280_v43  ;;  %v15329_v43 = vld [vmem:[%s21646_s6 + $0x118] sm:$0xf0] }
 0x87e   :  { %v15332_v25 = vor.u32 %v16654_v34, %v15329_v43  ;;  %v16697_v34 = vld [vmem:[%s21646_s6 + $0x264] sm:$0xf]  ;;  %v15505_v43 = vld [vmem:[%s21646_s6 + $0x270] sm:$0xf0] }
 0x881   :  { %10575 = vmatpush.bf16.msrb.mxu3 %v15264_v33  ;;  %v16682_v33 = vld [vmem:[%s21646_s6 + $0x1ec] sm:$0xf] }
 0x8bd   :  { %v9843_v38 = vpop.xlane.xlu2 %9842 }
 0x8be   :  { %16843 = vrcp.f32 %v9843_v38  ;;  %v9942_v39 = vand.u32 2147483648, %v9843_v38  ;;  %v9940_v22 = vand.u32 2147483647, %v9843_v38  ;;  %vm9936_vm15 = vweird.f32 %v9843_v38 }
 0x8c0   :  { %v9943_v11 = vor.u32 1.1754944e-38, %v9942_v39  ;;  %vm9941_vm1 = vcmp.eq.f32.partialorder %v9940_v22, 8.507059e+37  ;;  %v16678_v39 = vld [vmem:[%s21646_s6 + $0x1cc] sm:$0xf]  ;;  %v16664_v22 = vld [vmem:[%s21646_s6 + $0x154] sm:$0xf0] }
 0x8c4   :  { %v16844_v27 = vpop.eup %16843 }
 0x8c5   :  { %v9932_v4 = vmul.f32 %v16844_v27, %v9843_v38  ;;  %vm9937_vm0 = vweird.f32 %v16844_v27  ;;  %v15445_v38 = vld [vmem:[%s21646_s6 + $0x1f8] sm:$0xf0] }
 0x8c6   :  { %vm9938_vm14 = vmor %vm9936_vm15, %vm9937_vm0  ;;  %v10016_v23 = vpop.f32.mrf.mxu1 }
 0x8c7   :  { %v9990_v41 = vpop.f32.mrf.mxu0  ;;  %v9933_v62 = vsub.f32 1.0, %v9932_v4  ;;  %v21050_v10 = vpack.c.bf16 %v10016_v23, %v10016_v23  ;;  %v15448_v4 = vor.u32 %v16682_v33, %v15445_v38  ;;  %v15427_v38 = vld [vmem:[%s21646_s6 + $0x1c8] sm:$0xf] }
 0x8c8   :  { %v20952_v63 = vpack.c.bf16 %v9990_v41, %v9990_v41  ;;  %v15419_v41 = vld [vmem:[%s21646_s6 + $0x1c0] sm:$0xf] }
 0x8c9   :  { %v9934_v5 = vmul.f32 %v16844_v27, %v9933_v62  ;;  %v15421_v62 = vld [vmem:[%s21646_s6 + $0x1d0] sm:$0xf0] }
 0x8ca   :  { %15245 = vmatmul.msk.bf16.vlgmr.msra.gmra.mxu0 %vm7633_vm7, %v20952_v63  ;;  %15246 = vmatmul.msk.bf16.vlgmr.msra.gmra.mxu1 %vm7633_vm7, %v20952_v63  ;;  %v15424_v56 = vor.u32 %v16677_v51, %v15421_v62  ;;  %v15411_v51 = vld [vmem:[%s21646_s6 + $0x1a8] sm:$0xf]  ;;  %v16689_v62 = vld [vmem:[%s21646_s6 + $0x224] sm:$0xf] }
 0x8cb   :  { %15248 = vmatmul.msk.bf16.vlgmr.msra.gmra.mxu3 %vm7633_vm7, %v20952_v63  ;;  %10668 = vmatpush.bf16.msra.mxu0 %v15368_v8  ;;  %v9935_v60 = vadd.f32 %v16844_v27, %v9934_v5  ;;  %v16679_v8 = vld [vmem:[%s21646_s6 + $0x1cc] sm:$0xf0] }
 0x8cc   :  { %10681 = vmatpush.bf16.msra.mxu1 %v15372_v32  ;;  %10707 = vmatpush.bf16.msra.mxu3 %v15380_v28  ;;  %v16668_v32 = vld [vmem:[%s21646_s6 + $0x174] sm:$0xf0]  ;;  %v15260_v28 = vor.u32 %v16640_v13, %v15259_v20  ;;  %v15420_v26 = vor.u32 %v16679_v8, %v15419_v41  ;;  %v16675_v5 = vld [vmem:[%s21646_s6 + $0x1ac] sm:$0xf0]  ;;  %v15489_v20 = vld [vmem:[%s21646_s6 + $0x250] sm:$0xf0] }
 0x8cd   :  { %v9939_v61 = vsel %vm9938_vm14, %v16844_v27, %v9935_v60  ;;  %v15436_v27 = vor.u32 %v16683_v9, %v15435_v19  ;;  %v15376_v30 = vor.u32 %v16668_v32, %v15375_v17  ;;  %v15413_v60 = vld [vmem:[%s21646_s6 + $0x1b8] sm:$0xf0]  ;;  %v15508_v19 = vor.u32 %v16697_v34, %v15505_v43  ;;  %v15487_v9 = vld [vmem:[%s21646_s6 + $0x240] sm:$0xf]  ;;  %v16694_v13 = vld [vmem:[%s21646_s6 + $0x24c] sm:$0xf] }
 0x8ce   :  { %v9944_v24 = vsel %vm9941_vm1, %v9943_v11, %v9939_v61  ;;  %v16671_v11 = vld [vmem:[%s21646_s6 + $0x18c] sm:$0xf0]  ;;  %v15416_v29 = vor.u32 %v16674_v12, %v15413_v60  ;;  %v16669_v61 = vld [vmem:[%s21646_s6 + $0x184] sm:$0xf]  ;;  %v15488_v17 = vor.u32 %v16695_v0, %v15487_v9  ;;  %v16672_v12 = vld [vmem:[%s21646_s6 + $0x194] sm:$0xf0] }
 0x8cf   :  { %10669 = vmatpush.bf16.msra.mxu0 %v15352_v15  ;;  %v9965_v1 = vmul.f32 %v20740_v57, %v9944_v24  ;;  %v15321_v57 = vld [vmem:[%s21646_s6 + $0x110] sm:$0xf0]  ;;  %v15388_v3 = vor.u32 %v16671_v11, %v15387_v58  ;;  %v16691_v41 = vld [vmem:[%s21646_s6 + $0x22c] sm:$0xf0]  ;;  %v15511_v58 = vld [vmem:[%s21646_s6 + $0x268] sm:$0xf] }
 0x8d0   :  { %10682 = vmatpush.bf16.msra.mxu1 %v15356_v6  ;;  %10708 = vmatpush.bf16.msra.mxu3 %v15364_v54  ;;  %v15324_v35 = vor.u32 %v16653_v49, %v15321_v57  ;;  %v15405_v15 = vld [vmem:[%s21646_s6 + $0x1b0] sm:$0xf0]  ;;  %v15404_v6 = vor.u32 %v16675_v5, %v15403_v37  ;;  %v15360_v54 = vor.u32 %v16664_v22, %v15359_v45  ;;  %v16699_v49 = vld [vmem:[%s21646_s6 + $0x26c] sm:$0xf0]  ;;  %v15443_v57 = vld [vmem:[%s21646_s6 + $0x1e8] sm:$0xf] }
 0x8d1   :  { %15178 = vmatmul.msk.f32.vlgmr.msrb.gmra.mxu2 %vm8051_vm6, %v9965_v1  ;;  %v15408_v31 = vor.u32 %v16673_v48, %v15405_v15  ;;  %v15389_v24 = vld [vmem:[%s21646_s6 + $0x190] sm:$0xf0]  ;;  %v16687_v37 = vld [vmem:[%s21646_s6 + $0x20c] sm:$0xf0]  ;;  %v15395_v15 = vld [vmem:[%s21646_s6 + $0x188] sm:$0xf] }
 0x8d2   :  { %10559 = vmatpush.bf16.msrb.mxu2 %v15308_v47  ;;  %v15327_v47 = vld [vmem:[%s21646_s6 + $0x108] sm:$0xf]  ;;  %v15457_v48 = vld [vmem:[%s21646_s6 + $0x210] sm:$0xf0]  ;;  %v16700_v11 = vld [vmem:[%s21646_s6 + $0x274] sm:$0xf0] }
 0x8d3   :  { %10670 = vmatpush.bf16.msra.mxu0 %v15336_v53  ;;  %v16670_v53 = vld [vmem:[%s21646_s6 + $0x18c] sm:$0xf]  ;;  %v15328_v23 = vor.u32 %v16656_v42, %v15327_v47  ;;  %v15581_v42 = vld [vmem:[%s21646_s6 + $0x2f8] sm:$0xf0]  ;;  %v15555_v34 = vld [vmem:[%s21646_s6 + $0x2c0] sm:$0xf] }
 0x8d4   :  { %10683 = vmatpush.bf16.msra.mxu1 %v15340_v50  ;;  %10709 = vmatpush.bf16.msra.mxu3 %v15348_v36  ;;  %v15344_v50 = vor.u32 %v16660_v18, %v15343_v46  ;;  %v15392_v36 = vor.u32 %v16669_v61, %v15389_v24  ;;  %v15571_v18 = vld [vmem:[%s21646_s6 + $0x2e0] sm:$0xf]  ;;  %v16713_v61 = vld [vmem:[%s21646_s6 + $0x2e4] sm:$0xf]  ;;  %v15573_v24 = vld [vmem:[%s21646_s6 + $0x2f0] sm:$0xf0] }
 0x8d5   :  { %v10042_v1 = vpop.f32.mrf.mxu2  ;;  %v16714_v47 = vld [vmem:[%s21646_s6 + $0x2ec] sm:$0xf]  ;;  %v16711_v43 = vld [vmem:[%s21646_s6 + $0x2cc] sm:$0xf0] }
 0x8d6   :  { %10560 = vmatpush.bf16.msrb.mxu2 %v15292_v14  ;;  %v16684_v14 = vld [vmem:[%s21646_s6 + $0x1f4] sm:$0xf0]  ;;  %v21168_v7 = vpack.c.bf16 %v10042_v1, %v10042_v1 }
 0x8d7   :  { %10671 = vmatpush.bf16.msra.mxu0 %v15320_v16  ;;  %v16698_v16 = vld [vmem:[%s21646_s6 + $0x26c] sm:$0xf]  ;;  %v15444_v2 = vor.u32 %v16684_v14, %v15443_v57  ;;  %v15584_v57 = vor.u32 %v16714_v47, %v15581_v42  ;;  %v16709_v14 = vld [vmem:[%s21646_s6 + $0x2c4] sm:$0xf]  ;;  %v15649_v42 = vld [vmem:[%s21646_s6 + $0x378] sm:$0xf0] }
 0x8d8   :  { %10684 = vmatpush.bf16.msra.mxu1 %v15324_v35  ;;  %10710 = vmatpush.bf16.msra.mxu3 %v15332_v25  ;;  %v15400_v35 = vor.u32 %v16670_v53, %v15397_v21  ;;  %v15504_v25 = vor.u32 %v16699_v49, %v15503_v40  ;;  %v15516_v33 = vor.u32 %v16698_v16, %v15513_v44  ;;  %v15495_v21 = vld [vmem:[%s21646_s6 + $0x248] sm:$0xf]  ;;  %v16696_v40 = vld [vmem:[%s21646_s6 + $0x254] sm:$0xf0]  ;;  %v15557_v16 = vld [vmem:[%s21646_s6 + $0x2d0] sm:$0xf0] }
 0x8d9   :  { %15247 = vmatmul.msk.bf16.vlgmr.msra.gmra.mxu2 %vm7633_vm7, %v20952_v63  ;;  %v15429_v63 = vld [vmem:[%s21646_s6 + $0x1d8] sm:$0xf0]  ;;  %v15396_v53 = vor.u32 %v16672_v12, %v15395_v15  ;;  %v15576_v49 = vor.u32 %v16713_v61, %v15573_v24  ;;  %v16710_v44 = vld [vmem:[%s21646_s6 + $0x2cc] sm:$0xf]  ;;  %v15560_v9 = vor.u32 %v16709_v14, %v15557_v16  ;;  %v16712_v15 = vld [vmem:[%s21646_s6 + $0x2d4] sm:$0xf0] }
 0x8da   :  { %15313 = vmatmul.msk.bf16.vlgmr.msrb.gmra.mxu0 %vm7633_vm7, %v21050_v10  ;;  %15314 = vmatmul.msk.bf16.vlgmr.msrb.gmra.mxu1 %vm7633_vm7, %v21050_v10  ;;  %v15432_v55 = vor.u32 %v16678_v39, %v15429_v63  ;;  %v15473_v39 = vld [vmem:[%s21646_s6 + $0x230] sm:$0xf0]  ;;  %v16676_v63 = vld [vmem:[%s21646_s6 + $0x1b4] sm:$0xf0]  ;;  %v16730_v24 = vld [vmem:[%s21646_s6 + $0x36c] sm:$0xf] }
 0x8db   :  { %15316 = vmatmul.msk.bf16.vlgmr.msrb.gmra.mxu3 %vm7633_vm7, %v21050_v10  ;;  %10561 = vmatpush.bf16.msrb.mxu2 %v15276_v59  ;;  %v16693_v59 = vld [vmem:[%s21646_s6 + $0x244] sm:$0xf]  ;;  %v15476_v45 = vor.u32 %v16689_v62, %v15473_v39  ;;  %v15412_v5 = vor.u32 %v16676_v63, %v15411_v51  ;;  %v10094_v62 = vpop.f32.mrf.mxu0  ;;  %v16732_v61 = vld [vmem:[%s21646_s6 + $0x374] sm:$0xf0] }
 0x8dc   :  { %10803 = vmatpush.bf16.msrb.mxu0 %v15436_v27  ;;  %10816 = vmatpush.bf16.msrb.mxu1 %v15440_v52  ;;  %v15497_v27 = vld [vmem:[%s21646_s6 + $0x258] sm:$0xf0]  ;;  %v15492_v52 = vor.u32 %v16693_v59, %v15489_v20  ;;  %v15541_v59 = vld [vmem:[%s21646_s6 + $0x2b0] sm:$0xf0]  ;;  %v16706_v20 = vld [vmem:[%s21646_s6 + $0x2ac] sm:$0xf] }
 0x8dd   :  { %10842 = vmatpush.bf16.msrb.mxu3 %v15448_v4  ;;  %v15471_v4 = vld [vmem:[%s21646_s6 + $0x220] sm:$0xf]  ;;  %v15500_v32 = vor.u32 %v16694_v13, %v15497_v27  ;;  %v16701_v51 = vld [vmem:[%s21646_s6 + $0x284] sm:$0xf] }
 0x8df   :  { %10562 = vmatpush.bf16.msrb.mxu2 %v15260_v28  ;;  %v16690_v28 = vld [vmem:[%s21646_s6 + $0x22c] sm:$0xf] }
 0x8e0   :  { %10804 = vmatpush.bf16.msrb.mxu0 %v15420_v26  ;;  %10817 = vmatpush.bf16.msrb.mxu1 %v15424_v56  ;;  %v15481_v26 = vld [vmem:[%s21646_s6 + $0x238] sm:$0xf0]  ;;  %v15455_v56 = vld [vmem:[%s21646_s6 + $0x200] sm:$0xf] }
 0x8e1   :  { %10843 = vmatpush.bf16.msrb.mxu3 %v15432_v55  ;;  %v15484_v22 = vor.u32 %v16690_v28, %v15481_v26  ;;  %v16685_v55 = vld [vmem:[%s21646_s6 + $0x204] sm:$0xf]  ;;  %v15456_v60 = vor.u32 %v16687_v37, %v15455_v56  ;;  %v15525_v28 = vld [vmem:[%s21646_s6 + $0x290] sm:$0xf0]  ;;  %v16702_v26 = vld [vmem:[%s21646_s6 + $0x28c] sm:$0xf]  ;;  %v10179_v37 = vpack.c.bf16 %v10094_v62, %v10094_v62 }
 0x8e2   :  { %v15460_v46 = vor.u32 %v16685_v55, %v15457_v48  ;;  %v16716_v56 = vld [vmem:[%s21646_s6 + $0x2f4] sm:$0xf0]  ;;  %v15563_v48 = vld [vmem:[%s21646_s6 + $0x2c8] sm:$0xf] }
 0x8e3   :  { %10694 = vmatpush.bf16.msra.mxu2 %v15376_v30  ;;  %v15472_v30 = vor.u32 %v16691_v41, %v15471_v4  ;;  %v16688_v41 = vld [vmem:[%s21646_s6 + $0x214] sm:$0xf0]  ;;  %v15564_v12 = vor.u32 %v16712_v15, %v15563_v48  ;;  %v15707_v48 = vld [vmem:[%s21646_s6 + $0x3e0] sm:$0xf]  ;;  %v16747_v15 = vld [vmem:[%s21646_s6 + $0x3ec] sm:$0xf0] }
 0x8e4   :  { %10805 = vmatpush.bf16.msrb.mxu0 %v15404_v6  ;;  %10818 = vmatpush.bf16.msrb.mxu1 %v15408_v31  ;;  %v16686_v6 = vld [vmem:[%s21646_s6 + $0x20c] sm:$0xf]  ;;  %v15465_v31 = vld [vmem:[%s21646_s6 + $0x218] sm:$0xf0] }
 0x8e5   :  { %10844 = vmatpush.bf16.msrb.mxu3 %v15416_v29  ;;  %v16715_v29 = vld [vmem:[%s21646_s6 + $0x2ec] sm:$0xf0]  ;;  %v15468_v1 = vor.u32 %v16686_v6, %v15465_v31  ;;  %v16708_v6 = vld [vmem:[%s21646_s6 + $0x2b4] sm:$0xf0] }
 0x8e6   :  { %v16704_v31 = vld [vmem:[%s21646_s6 + $0x294] sm:$0xf0] }
 0x8e7   :  { %10695 = vmatpush.bf16.msra.mxu2 %v15360_v54  ;;  %v10068_v54 = vpop.f32.mrf.mxu3 }
 0x8e8   :  { %10806 = vmatpush.bf16.msrb.mxu0 %v15388_v3  ;;  %10819 = vmatpush.bf16.msrb.mxu1 %v15392_v36  ;;  %v21274_v3 = vpack.c.bf16 %v10068_v54, %v10068_v54  ;;  %v15572_v36 = vor.u32 %v16715_v29, %v15571_v18  ;;  %v15647_v29 = vld [vmem:[%s21646_s6 + $0x368] sm:$0xf] }
 0x8e9   :  { %15315 = vmatmul.msk.bf16.vlgmr.msrb.gmra.mxu2 %vm7633_vm7, %v21050_v10  ;;  %v16680_v10 = vld [vmem:[%s21646_s6 + $0x1d4] sm:$0xf0]  ;;  %10845 = vmatpush.bf16.msrb.mxu3 %v15400_v35  ;;  %v15496_v35 = vor.u32 %v16696_v40, %v15495_v21  ;;  %v15648_v47 = vor.u32 %v16732_v61, %v15647_v29  ;;  %v15641_v21 = vld [vmem:[%s21646_s6 + $0x370] sm:$0xf0]  ;;  %v15631_v40 = vld [vmem:[%s21646_s6 + $0x348] sm:$0xf] }
 0x8ea   :  { %15381 = vmatmul.msk.bf16.vlgmr.msra.gmra.mxu0 %vm7633_vm7, %v21168_v7  ;;  %15382 = vmatmul.msk.bf16.vlgmr.msra.gmra.mxu1 %vm7633_vm7, %v21168_v7  ;;  %v15428_v8 = vor.u32 %v16680_v10, %v15427_v38  ;;  %v16705_v38 = vld [vmem:[%s21646_s6 + $0x2a4] sm:$0xf]  ;;  %v15549_v10 = vld [vmem:[%s21646_s6 + $0x2b8] sm:$0xf0] }
 0x8eb   :  { %10696 = vmatpush.bf16.msra.mxu2 %v15344_v50  ;;  %15384 = vmatmul.msk.bf16.vlgmr.msra.gmra.mxu3 %vm7633_vm7, %v21168_v7  ;;  %v15512_v50 = vor.u32 %v16700_v11, %v15511_v58  ;;  %v15552_v4 = vor.u32 %v16706_v20, %v15549_v10  ;;  %v10120_v58 = vpop.f32.mrf.mxu1  ;;  %v16723_v20 = vld [vmem:[%s21646_s6 + $0x32c] sm:$0xf0] }
 0x8ec   :  { %10938 = vmatpush.bf16.msra.mxu0 %v15504_v25  ;;  %10951 = vmatpush.bf16.msra.mxu1 %v15508_v19  ;;  %v15556_v25 = vor.u32 %v16711_v43, %v15555_v34  ;;  %v16692_v19 = vld [vmem:[%s21646_s6 + $0x234] sm:$0xf0]  ;;  %v10180_v18 = vpack.c.bf16 %v10120_v58, %v10120_v58  ;;  %v16726_v34 = vld [vmem:[%s21646_s6 + $0x34c] sm:$0xf]  ;;  %v15633_v43 = vld [vmem:[%s21646_s6 + $0x358] sm:$0xf0] }
 0x8ed   :  { %10977 = vmatpush.bf16.msra.mxu3 %v15516_v33  ;;  %v16707_v33 = vld [vmem:[%s21646_s6 + $0x2ac] sm:$0xf0]  ;;  %v15636_v16 = vor.u32 %v16726_v34, %v15633_v43  ;;  %v16744_v58 = vld [vmem:[%s21646_s6 + $0x3d4] sm:$0xf0] }
 0x8ee   :  { %v16739_v34 = vld [vmem:[%s21646_s6 + $0x3ac] sm:$0xf0] }
 0x8ef   :  { %10697 = vmatpush.bf16.msra.mxu2 %v15328_v23  ;;  %v15479_v23 = vld [vmem:[%s21646_s6 + $0x228] sm:$0xf] }
 0x8f0   :  { %10939 = vmatpush.bf16.msra.mxu0 %v15488_v17  ;;  %10952 = vmatpush.bf16.msra.mxu1 %v15492_v52  ;;  %v15480_v13 = vor.u32 %v16692_v19, %v15479_v23  ;;  %v15463_v17 = vld [vmem:[%s21646_s6 + $0x208] sm:$0xf]  ;;  %v15544_v52 = vor.u32 %v16705_v38, %v15541_v59  ;;  %v15625_v23 = vld [vmem:[%s21646_s6 + $0x350] sm:$0xf0]  ;;  %v15617_v38 = vld [vmem:[%s21646_s6 + $0x338] sm:$0xf0] }
 0x8f1   :  { %10978 = vmatpush.bf16.msra.mxu3 %v15500_v32  ;;  %v16703_v32 = vld [vmem:[%s21646_s6 + $0x28c] sm:$0xf0]  ;;  %v15464_v39 = vor.u32 %v16688_v41, %v15463_v17  ;;  %v15607_v59 = vld [vmem:[%s21646_s6 + $0x320] sm:$0xf]  ;;  %v15609_v17 = vld [vmem:[%s21646_s6 + $0x330] sm:$0xf0] }
 0x8f2   :  { %v16720_v41 = vld [vmem:[%s21646_s6 + $0x314] sm:$0xf0] }
 0x8f3   :  { %10829 = vmatpush.bf16.msrb.mxu2 %v15444_v2  ;;  %v15539_v2 = vld [vmem:[%s21646_s6 + $0x2a0] sm:$0xf] }
 0x8f4   :  { %10940 = vmatpush.bf16.msra.mxu0 %v15472_v30  ;;  %10953 = vmatpush.bf16.msra.mxu1 %v15476_v45  ;;  %v15540_v27 = vor.u32 %v16707_v33, %v15539_v2  ;;  %v15533_v30 = vld [vmem:[%s21646_s6 + $0x298] sm:$0xf0]  ;;  %v15579_v45 = vld [vmem:[%s21646_s6 + $0x2e8] sm:$0xf]  ;;  %v16722_v2 = vld [vmem:[%s21646_s6 + $0x32c] sm:$0xf] }
 0x8f5   :  { %10979 = vmatpush.bf16.msra.mxu3 %v15484_v22  ;;  %v15536_v22 = vor.u32 %v16702_v26, %v15533_v30  ;;  %v15580_v55 = vor.u32 %v16716_v56, %v15579_v45  ;;  %v15620_v10 = vor.u32 %v16722_v2, %v15617_v38  ;;  %v15593_v30 = vld [vmem:[%s21646_s6 + $0x310] sm:$0xf0]  ;;  %v15715_v56 = vld [vmem:[%s21646_s6 + $0x3e8] sm:$0xf]  ;;  %v15659_v2 = vld [vmem:[%s21646_s6 + $0x380] sm:$0xf] }
 0x8f6   :  { %v16733_v38 = vld [vmem:[%s21646_s6 + $0x384] sm:$0xf] }
 0x8f7   :  { %10830 = vmatpush.bf16.msrb.mxu2 %v15428_v8  ;;  %v15523_v8 = vld [vmem:[%s21646_s6 + $0x280] sm:$0xf] }
 0x8f8   :  { %10941 = vmatpush.bf16.msra.mxu0 %v15456_v60  ;;  %10954 = vmatpush.bf16.msra.mxu1 %v15460_v46  ;;  %v15524_v63 = vor.u32 %v16703_v32, %v15523_v8  ;;  %v15547_v60 = vld [vmem:[%s21646_s6 + $0x2a8] sm:$0xf]  ;;  %v16718_v8 = vld [vmem:[%s21646_s6 + $0x30c] sm:$0xf]  ;;  %v15601_v32 = vld [vmem:[%s21646_s6 + $0x318] sm:$0xf0] }
 0x8f9   :  { %15383 = vmatmul.msk.bf16.vlgmr.msra.gmra.mxu2 %vm7633_vm7, %v21168_v7  ;;  %v15565_v7 = vld [vmem:[%s21646_s6 + $0x2d8] sm:$0xf0]  ;;  %10980 = vmatpush.bf16.msra.mxu3 %v15468_v1  ;;  %v15548_v54 = vor.u32 %v16708_v6, %v15547_v60  ;;  %v15531_v46 = vld [vmem:[%s21646_s6 + $0x288] sm:$0xf]  ;;  %v15652_v1 = vor.u32 %v16730_v24, %v15649_v42  ;;  %v15604_v62 = vor.u32 %v16718_v8, %v15601_v32  ;;  %v16745_v6 = vld [vmem:[%s21646_s6 + $0x3e4] sm:$0xf] }
 0x8fa   :  { %15449 = vmatmul.msk.bf16.vlgmr.msrb.gmra.mxu0 %vm7633_vm7, %v21274_v3  ;;  %15450 = vmatmul.msk.bf16.vlgmr.msrb.gmra.mxu1 %vm7633_vm7, %v21274_v3  ;;  %v15568_v0 = vor.u32 %v16710_v44, %v15565_v7  ;;  %v15532_v11 = vor.u32 %v16704_v31, %v15531_v46  ;;  %v15623_v44 = vld [vmem:[%s21646_s6 + $0x340] sm:$0xf]  ;;  %v16727_v7 = vld [vmem:[%s21646_s6 + $0x34c] sm:$0xf0]  ;;  %v15708_v60 = vor.u32 %v16747_v15, %v15707_v48  ;;  %v15699_v46 = vld [vmem:[%s21646_s6 + $0x3c8] sm:$0xf] }
 0x8fb   :  { %10831 = vmatpush.bf16.msrb.mxu2 %v15412_v5  ;;  %15452 = vmatmul.msk.bf16.vlgmr.msrb.gmra.mxu3 %vm7633_vm7, %v21274_v3  ;;  %v15528_v5 = vor.u32 %v16701_v51, %v15525_v28  ;;  %v16717_v28 = vld [vmem:[%s21646_s6 + $0x304] sm:$0xf]  ;;  %v15700_v29 = vor.u32 %v16744_v58, %v15699_v46  ;;  %v15691_v24 = vld [vmem:[%s21646_s6 + $0x3c0] sm:$0xf] }
 0x8fc   :  { %11073 = vmatpush.bf16.msrb.mxu0 %v15572_v36  ;;  %11086 = vmatpush.bf16.msrb.mxu1 %v15576_v49  ;;  %v16729_v36 = vld [vmem:[%s21646_s6 + $0x364] sm:$0xf]  ;;  %v15596_v45 = vor.u32 %v16717_v28, %v15593_v30 }
 0x8fd   :  { %11112 = vmatpush.bf16.msrb.mxu3 %v15584_v57  ;;  %v15644_v49 = vor.u32 %v16729_v36, %v15641_v21  ;;  %v16728_v57 = vld [vmem:[%s21646_s6 + $0x354] sm:$0xf0]  ;;  %v16741_v42 = vld [vmem:[%s21646_s6 + $0x3c4] sm:$0xf]  ;;  %v16738_v21 = vld [vmem:[%s21646_s6 + $0x3ac] sm:$0xf] }
 0x8fe   :  { %v15632_v14 = vor.u32 %v16728_v57, %v15631_v40  ;;  %v16740_v36 = vld [vmem:[%s21646_s6 + $0x3b4] sm:$0xf0]  ;;  %v15675_v57 = vld [vmem:[%s21646_s6 + $0x3a0] sm:$0xf] }
 0x8ff   :  { %10832 = vmatpush.bf16.msrb.mxu2 %v15396_v53  ;;  %v16731_v53 = vld [vmem:[%s21646_s6 + $0x36c] sm:$0xf0] }
 0x900   :  { %11074 = vmatpush.bf16.msrb.mxu0 %v15556_v25  ;;  %11087 = vmatpush.bf16.msrb.mxu1 %v15560_v9  ;;  %v15624_v25 = vor.u32 %v16727_v7, %v15623_v44  ;;  %v15615_v9 = vld [vmem:[%s21646_s6 + $0x328] sm:$0xf]  ;;  %v15677_v44 = vld [vmem:[%s21646_s6 + $0x3b0] sm:$0xf0] }
 0x901   :  { %11113 = vmatpush.bf16.msrb.mxu3 %v15568_v0  ;;  %v16724_v0 = vld [vmem:[%s21646_s6 + $0x334] sm:$0xf0]  ;;  %v15667_v7 = vld [vmem:[%s21646_s6 + $0x388] sm:$0xf] }
 0x902   :  { %v15616_v33 = vor.u32 %v16724_v0, %v15615_v9 }
 0x903   :  { %10964 = vmatpush.bf16.msra.mxu2 %v15512_v50 }
 0x904   :  { %11075 = vmatpush.bf16.msrb.mxu0 %v15540_v27  ;;  %11088 = vmatpush.bf16.msrb.mxu1 %v15544_v52  ;;  %v16721_v27 = vld [vmem:[%s21646_s6 + $0x324] sm:$0xf]  ;;  %v15599_v52 = vld [vmem:[%s21646_s6 + $0x308] sm:$0xf] }
 0x905   :  { %11114 = vmatpush.bf16.msrb.mxu3 %v15552_v4  ;;  %v15612_v4 = vor.u32 %v16721_v27, %v15609_v17  ;;  %v15600_v51 = vor.u32 %v16720_v41, %v15599_v52 }
 0x907   :  { %10965 = vmatpush.bf16.msra.mxu2 %v15496_v35  ;;  %v16725_v35 = vld [vmem:[%s21646_s6 + $0x344] sm:$0xf] }
 0x908   :  { %11076 = vmatpush.bf16.msrb.mxu0 %v15524_v63  ;;  %11089 = vmatpush.bf16.msrb.mxu1 %v15528_v5  ;;  %v15628_v19 = vor.u32 %v16725_v35, %v15625_v23  ;;  %v16719_v63 = vld [vmem:[%s21646_s6 + $0x30c] sm:$0xf0]  ;;  %v16746_v5 = vld [vmem:[%s21646_s6 + $0x3ec] sm:$0xf] }
 0x909   :  { %15451 = vmatmul.msk.bf16.vlgmr.msrb.gmra.mxu2 %vm7633_vm7, %v21274_v3  ;;  %11115 = vmatpush.bf16.msrb.mxu3 %v15536_v22  ;;  %v15639_v3 = vld [vmem:[%s21646_s6 + $0x360] sm:$0xf]  ;;  %v16734_v23 = vld [vmem:[%s21646_s6 + $0x38c] sm:$0xf] }
 0x90a   :  { %15517 = vmatmul.msk.bf16.vlgmr.msra.gmra.mxu0 %vm7633_vm7, %v10179_v37  ;;  %15518 = vmatmul.msk.bf16.vlgmr.msra.gmra.mxu1 %vm7633_vm7, %v10179_v37  ;;  %v15640_v50 = vor.u32 %v16731_v53, %v15639_v3  ;;  %v15693_v53 = vld [vmem:[%s21646_s6 + $0x3d0] sm:$0xf0] }
 0x90b   :  { %10966 = vmatpush.bf16.msra.mxu2 %v15480_v13  ;;  %15520 = vmatmul.msk.bf16.vlgmr.msra.gmra.mxu3 %vm7633_vm7, %v10179_v37  ;;  %v15608_v13 = vor.u32 %v16723_v20, %v15607_v59  ;;  %v15661_v20 = vld [vmem:[%s21646_s6 + $0x390] sm:$0xf0] }
 0x90c   :  { %11208 = vmatpush.bf16.msra.mxu0 %v15640_v50  ;;  %11221 = vmatpush.bf16.msra.mxu1 %v15644_v49  ;;  %v15683_v50 = vld [vmem:[%s21646_s6 + $0x3a8] sm:$0xf]  ;;  %v15685_v49 = vld [vmem:[%s21646_s6 + $0x3b8] sm:$0xf0] }
 0x90d   :  { %11247 = vmatpush.bf16.msra.mxu3 %v15652_v1  ;;  %v15696_v1 = vor.u32 %v16741_v42, %v15693_v53  ;;  %v15684_v40 = vor.u32 %v16740_v36, %v15683_v50  ;;  %v15688_v43 = vor.u32 %v16738_v21, %v15685_v49 }
 0x90f   :  { %10967 = vmatpush.bf16.msra.mxu2 %v15464_v39  ;;  %v15591_v39 = vld [vmem:[%s21646_s6 + $0x300] sm:$0xf] }
 0x910   :  { %11209 = vmatpush.bf16.msra.mxu0 %v15624_v25  ;;  %11222 = vmatpush.bf16.msra.mxu1 %v15628_v19  ;;  %v15592_v26 = vor.u32 %v16719_v63, %v15591_v39  ;;  %v16736_v25 = vld [vmem:[%s21646_s6 + $0x394] sm:$0xf0]  ;;  %v15669_v19 = vld [vmem:[%s21646_s6 + $0x398] sm:$0xf0] }
 0x911   :  { %11248 = vmatpush.bf16.msra.mxu3 %v15636_v16  ;;  %v16737_v16 = vld [vmem:[%s21646_s6 + $0x3a4] sm:$0xf]  ;;  %v15668_v9 = vor.u32 %v16736_v25, %v15667_v7  ;;  %v15672_v0 = vor.u32 %v16734_v23, %v15669_v19 }
 0x912   :  { %v15680_v35 = vor.u32 %v16737_v16, %v15677_v44 }
 0x913   :  { %11099 = vmatpush.bf16.msrb.mxu2 %v15580_v55  ;;  %v15717_v55 = vld [vmem:[%s21646_s6 + $0x3f8] sm:$0xf0] }
 0x914   :  { %11210 = vmatpush.bf16.msra.mxu0 %v15608_v13  ;;  %11223 = vmatpush.bf16.msra.mxu1 %v15612_v4  ;;  %v15664_v13 = vor.u32 %v16733_v38, %v15661_v20 }
 0x915   :  { %11249 = vmatpush.bf16.msra.mxu3 %v15620_v10  ;;  %v10172_v10 = vpop.f32.mrf.mxu3 }
 0x917   :  { %11100 = vmatpush.bf16.msrb.mxu2 %v15564_v12  ;;  %v15720_v12 = vor.u32 %v16746_v5, %v15717_v55 }
 0x918   :  { %11211 = vmatpush.bf16.msra.mxu0 %v15592_v26  ;;  %11224 = vmatpush.bf16.msra.mxu1 %v15596_v45 }
 0x919   :  { %15519 = vmatmul.msk.bf16.vlgmr.msra.gmra.mxu2 %vm7633_vm7, %v10179_v37  ;;  %11250 = vmatpush.bf16.msra.mxu3 %v15604_v62  ;;  %v16748_v37 = vld [vmem:[%s21646_s6 + $0x3f4] sm:$0xf0] }
 0x91a   :  { %15585 = vmatmul.msk.bf16.vlgmr.msrb.gmra.mxu0 %vm7633_vm7, %v10180_v18  ;;  %15586 = vmatmul.msk.bf16.vlgmr.msrb.gmra.mxu1 %vm7633_vm7, %v10180_v18  ;;  %v15716_v22 = vor.u32 %v16748_v37, %v15715_v56 }
 0x91b   :  { %11101 = vmatpush.bf16.msrb.mxu2 %v15548_v54  ;;  %15588 = vmatmul.msk.bf16.vlgmr.msrb.gmra.mxu3 %vm7633_vm7, %v10180_v18  ;;  %v15709_v54 = vld [vmem:[%s21646_s6 + $0x3f0] sm:$0xf0] }
 0x91c   :  { %v15712_v31 = vor.u32 %v16745_v6, %v15709_v54  ;;  %11343 = vmatpush.bf16.msrb.mxu0 %v15708_v60  ;;  %v10182_v6 = vpack.c.bf16 %v10172_v10, %v10172_v10 }
 0x91d   :  { %11382 = vmatpush.bf16.msrb.mxu3 %v15720_v12 }
 0x91e   :  { %11356 = vmatpush.bf16.msrb.mxu1 %v15712_v31 }
 0x91f   :  { %11102 = vmatpush.bf16.msrb.mxu2 %v15532_v11  ;;  %v16742_v11 = vld [vmem:[%s21646_s6 + $0x3cc] sm:$0xf] }
 0x922   :  { %11357 = vmatpush.bf16.msrb.mxu1 %v15696_v1 }
 0x923   :  { %11234 = vmatpush.bf16.msra.mxu2 %v15648_v47  ;;  %v16743_v47 = vld [vmem:[%s21646_s6 + $0x3cc] sm:$0xf0] }
 0x924   :  { %v15692_v3 = vor.u32 %v16743_v47, %v15691_v24 }
 0x926   :  { %11344 = vmatpush.bf16.msrb.mxu0 %v15692_v3  ;;  %11358 = vmatpush.bf16.msrb.mxu1 %v15680_v35 }
 0x927   :  { %11235 = vmatpush.bf16.msra.mxu2 %v15632_v14  ;;  %v15676_v14 = vor.u32 %v16739_v34, %v15675_v57 }
 0x929   :  { %15587 = vmatmul.msk.bf16.vlgmr.msrb.gmra.mxu2 %vm7633_vm7, %v10180_v18  ;;  %v15701_v18 = vld [vmem:[%s21646_s6 + $0x3d8] sm:$0xf0] }
 0x92a   :  { %v15704_v61 = vor.u32 %v16742_v11, %v15701_v18  ;;  %11345 = vmatpush.bf16.msrb.mxu0 %v15676_v14  ;;  %11359 = vmatpush.bf16.msrb.mxu1 %v15664_v13 }
 0x92b   :  { %11236 = vmatpush.bf16.msra.mxu2 %v15616_v33  ;;  %v16735_v33 = vld [vmem:[%s21646_s6 + $0x38c] sm:$0xf0] }
 0x92c   :  { %11383 = vmatpush.bf16.msrb.mxu3 %v15704_v61  ;;  %v15660_v59 = vor.u32 %v16735_v33, %v15659_v2 }
 0x92e   :  { %11346 = vmatpush.bf16.msrb.mxu0 %v15660_v59 }
 0x92f   :  { %11237 = vmatpush.bf16.msra.mxu2 %v15600_v51 }
 0x930   :  { %11384 = vmatpush.bf16.msrb.mxu3 %v15688_v43 }
 0x933   :  { %11369 = vmatpush.bf16.msrb.mxu2 %v15716_v22 }
 0x934   :  { %11385 = vmatpush.bf16.msrb.mxu3 %v15672_v0 }
 0x937   :  { %11370 = vmatpush.bf16.msrb.mxu2 %v15700_v29 }
 0x93b   :  { %11371 = vmatpush.bf16.msrb.mxu2 %v15684_v40 }
 0x93f   :  { %11372 = vmatpush.bf16.msrb.mxu2 %v15668_v9 }
 0x947   :  { %v10403_v27 = vpop.f32.mrf.mxu0  ;;  %v10416_v17 = vpop.f32.mrf.mxu1 }
 0x948   :  { %v11391_v39 = vsel %vm8055_vm8, %v10403_v27, 0.0  ;;  %v11406_v26 = vsel %vm8055_vm8, %v10416_v17, 0.0 }
 0x94e   :  { %v10442_v52 = vpop.f32.mrf.mxu3 }
 0x94f   :  { %v10405_v4 = vpop.f32.mrf.mxu0  ;;  %v10418_v41 = vpop.f32.mrf.mxu1  ;;  %v11436_v22 = vsel %vm8055_vm8, %v10442_v52, 0.0 }
 0x954   :  { %v10146_v8 = vpop.f32.mrf.mxu2 }
 0x955   :  { %v10181_v32 = vpack.c.bf16 %v10146_v8, %v10146_v8 }
 0x956   :  { %v10444_v51 = vpop.f32.mrf.mxu3 }
 0x957   :  { %v10538_v62 = vpop.f32.mrf.mxu0  ;;  %v10551_v28 = vpop.f32.mrf.mxu1  ;;  %15653 = vmatmul.msk.bf16.vlgmr.msra.gmra.mxu0 %vm7633_vm7, %v10181_v32  ;;  %15654 = vmatmul.msk.bf16.vlgmr.msra.gmra.mxu1 %vm7633_vm7, %v10181_v32 }
 0x958   :  { %v11392_v63 = vsel %vm8055_vm8, %v10538_v62, 0.0  ;;  %v11407_v45 = vsel %vm8055_vm8, %v10551_v28, 0.0  ;;  %15655 = vmatmul.msk.bf16.vlgmr.msra.gmra.mxu2 %vm7633_vm7, %v10181_v32  ;;  %15656 = vmatmul.msk.bf16.vlgmr.msra.gmra.mxu3 %vm7633_vm7, %v10181_v32 }
 0x959   :  { %v11393_v30 = vadd.f32 %v11392_v63, %v11391_v39  ;;  %v11408_v56 = vadd.f32 %v11407_v45, %v11406_v26 }
 0x95c   :  { %v10429_v37 = vpop.f32.mrf.mxu2 }
 0x95d   :  { %v11421_v24 = vsel %vm8055_vm8, %v10429_v37, 0.0 }
 0x95e   :  { %v10577_v5 = vpop.f32.mrf.mxu3 }
 0x95f   :  { %v11437_v55 = vsel %vm8055_vm8, %v10577_v5, 0.0  ;;  %v10540_v48 = vpop.f32.mrf.mxu0  ;;  %v10553_v12 = vpop.f32.mrf.mxu1 }
 0x960   :  { %v11438_v15 = vadd.f32 %v11437_v55, %v11436_v22 }
 0x964   :  { %v10431_v60 = vpop.f32.mrf.mxu2 }
 0x966   :  { %v10579_v54 = vpop.f32.mrf.mxu3 }
 0x967   :  { %v10673_v46 = vpop.f32.mrf.mxu0  ;;  %v10686_v58 = vpop.f32.mrf.mxu1  ;;  %15721 = vmatmul.msk.bf16.vlgmr.msrb.gmra.mxu0 %vm7633_vm7, %v10182_v6  ;;  %15722 = vmatmul.msk.bf16.vlgmr.msrb.gmra.mxu1 %vm7633_vm7, %v10182_v6 }
 0x968   :  { %v11394_v31 = vsel %vm8055_vm8, %v10673_v46, 0.0  ;;  %v11409_v18 = vsel %vm8055_vm8, %v10686_v58, 0.0  ;;  %15723 = vmatmul.msk.bf16.vlgmr.msrb.gmra.mxu2 %vm7633_vm7, %v10182_v6  ;;  %15724 = vmatmul.msk.bf16.vlgmr.msrb.gmra.mxu3 %vm7633_vm7, %v10182_v6 }
 0x969   :  { %v11395_v11 = vadd.f32 %v11394_v31, %v11393_v30  ;;  %v11410_v29 = vadd.f32 %v11409_v18, %v11408_v56 }
 0x96c   :  { %v10564_v61 = vpop.f32.mrf.mxu2 }
 0x96d   :  { %v11422_v47 = vsel %vm8055_vm8, %v10564_v61, 0.0 }
 0x96e   :  { %v10712_v42 = vpop.f32.mrf.mxu3  ;;  %v11423_v3 = vadd.f32 %v11422_v47, %v11421_v24 }
 0x96f   :  { %v11439_v53 = vsel %vm8055_vm8, %v10712_v42, 0.0  ;;  %v10675_v1 = vpop.f32.mrf.mxu0  ;;  %v10688_v36 = vpop.f32.mrf.mxu1 }
 0x970   :  { %v11440_v50 = vadd.f32 %v11439_v53, %v11438_v15  ;;  %v11451_v53 = vld [vmem:[%s21647_s7] sm:$0xf] }
 0x974   :  { %v10566_v21 = vpop.f32.mrf.mxu2 }
 0x976   :  { %v10714_v40 = vpop.f32.mrf.mxu3 }
 0x977   :  { %v10808_v49 = vpop.f32.mrf.mxu0  ;;  %v10821_v34 = vpop.f32.mrf.mxu1 }
 0x978   :  { %v11396_v57 = vsel %vm8055_vm8, %v10808_v49, 0.0  ;;  %v11411_v14 = vsel %vm8055_vm8, %v10821_v34, 0.0  ;;  %v11453_v49 = vperm.slane %v11451_v53, 0  ;;  %v11454_v34 = vperm.slane %v11451_v53, 1 }
 0x979   :  { %v11397_v43 = vadd.f32 %v11396_v57, %v11395_v11  ;;  %v11412_v16 = vadd.f32 %v11411_v14, %v11410_v29 }
 0x97c   :  { %v10699_v44 = vpop.f32.mrf.mxu2 }
 0x97d   :  { %v11424_v7 = vsel %vm8055_vm8, %v10699_v44, 0.0 }
 0x97e   :  { %v10847_v35 = vpop.f32.mrf.mxu3  ;;  %v11425_v25 = vadd.f32 %v11424_v7, %v11423_v3 }
 0x97f   :  { %v11441_v23 = vsel %vm8055_vm8, %v10847_v35, 0.0  ;;  %v10810_v19 = vpop.f32.mrf.mxu0  ;;  %v10823_v0 = vpop.f32.mrf.mxu1 }
 0x980   :  { %v11442_v9 = vadd.f32 %v11441_v23, %v11440_v50 }
 0x984   :  { %v10701_v2 = vpop.f32.mrf.mxu2 }
 0x986   :  { %v10849_v33 = vpop.f32.mrf.mxu3 }
 0x987   :  { %v10943_v38 = vpop.f32.mrf.mxu0  ;;  %v10956_v20 = vpop.f32.mrf.mxu1 }
 0x988   :  { %v11398_v59 = vsel %vm8055_vm8, %v10943_v38, 0.0  ;;  %v11413_v13 = vsel %vm8055_vm8, %v10956_v20, 0.0  ;;  %v11455_v20 = vperm.slane %v11451_v53, 2 }
 0x989   :  { %v11399_v10 = vadd.f32 %v11398_v59, %v11397_v43  ;;  %v11414_v27 = vadd.f32 %v11413_v13, %v11412_v16  ;;  %v11456_v13 = vperm.slane %v11451_v53, 3 }
 0x98c   :  { %v10834_v17 = vpop.f32.mrf.mxu2 }
 0x98d   :  { %v11426_v52 = vsel %vm8055_vm8, %v10834_v17, 0.0 }
 0x98e   :  { %v10982_v4 = vpop.f32.mrf.mxu3  ;;  %v11427_v41 = vadd.f32 %v11426_v52, %v11425_v25  ;;  %v16850_v52 = vld [vmem:[%s21640_s0 + $0x8] sm:$0xff] }
 0x98f   :  { %v11443_v8 = vsel %vm8055_vm8, %v10982_v4, 0.0  ;;  %v10945_v32 = vpop.f32.mrf.mxu0  ;;  %v10958_v62 = vpop.f32.mrf.mxu1 }
 0x990   :  { %v11444_v51 = vadd.f32 %v11443_v8, %v11442_v9 }
 0x994   :  { %v10836_v39 = vpop.f32.mrf.mxu2 }
 0x996   :  { %v10984_v63 = vpop.f32.mrf.mxu3 }
 0x997   :  { %v11078_v28 = vpop.f32.mrf.mxu0  ;;  %v11091_v30 = vpop.f32.mrf.mxu1 }
 0x998   :  { %v11400_v26 = vsel %vm8055_vm8, %v11078_v28, 0.0  ;;  %v11415_v56 = vsel %vm8055_vm8, %v11091_v30, 0.0 }
 0x999   :  { %v11401_v45 = vadd.f32 %v11400_v26, %v11399_v10  ;;  %v11416_v37 = vadd.f32 %v11415_v56, %v11414_v27  ;;  %v16849_v27 = vld [vmem:[%s21640_s0] sm:$0xff] }
 0x99c   :  { %v10969_v5 = vpop.f32.mrf.mxu2 }
 0x99d   :  { %v11428_v22 = vsel %vm8055_vm8, %v10969_v5, 0.0 }
 0x99e   :  { %v11117_v55 = vpop.f32.mrf.mxu3  ;;  %v11429_v48 = vadd.f32 %v11428_v22, %v11427_v41 }
 0x99f   :  { %v11445_v15 = vsel %vm8055_vm8, %v11117_v55, 0.0  ;;  %v11080_v12 = vpop.f32.mrf.mxu0  ;;  %v11093_v6 = vpop.f32.mrf.mxu1 }
 0x9a0   :  { %v11446_v60 = vadd.f32 %v11445_v15, %v11444_v51 }
 0x9a4   :  { %v10971_v54 = vpop.f32.mrf.mxu2 }
 0x9a6   :  { %v11119_v46 = vpop.f32.mrf.mxu3 }
 0x9ac   :  { %v11104_v31 = vpop.f32.mrf.mxu2 }
 0x9ad   :  { %v11430_v16 = vsel %vm8055_vm8, %v11104_v31, 0.0 }
 0x9ae   :  { %v11431_v9 = vadd.f32 %v11430_v16, %v11429_v48 }
 0x9b4   :  { %v11106_v58 = vpop.f32.mrf.mxu2 }
 0x9d4   :  { %v11213_v11 = vpop.f32.mrf.mxu0  ;;  %v11226_v18 = vpop.f32.mrf.mxu1 }
 0x9d5   :  { %v11402_v42 = vsel %vm8055_vm8, %v11213_v11, 0.0  ;;  %v11417_v3 = vsel %vm8055_vm8, %v11226_v18, 0.0 }
 0x9d6   :  { %v11403_v36 = vadd.f32 %v11402_v42, %v11401_v45  ;;  %v11418_v21 = vadd.f32 %v11417_v3, %v11416_v37  ;;  %v16851_v45 = vld [vmem:[%s21640_s0 + $0x10] sm:$0xff]  ;;  %v16852_v37 = vld [vmem:[%s21640_s0 + $0x18] sm:$0xff] }
 0x9db   :  { %v11239_v29 = vpop.f32.mrf.mxu2  ;;  %v11252_v61 = vpop.f32.mrf.mxu3 }
 0x9dc   :  { %v11215_v24 = vpop.f32.mrf.mxu0  ;;  %v11228_v47 = vpop.f32.mrf.mxu1  ;;  %v11432_v35 = vsel %vm8055_vm8, %v11239_v29, 0.0  ;;  %v11447_v25 = vsel %vm8055_vm8, %v11252_v61, 0.0 }
 0x9dd   :  { %v11433_v33 = vadd.f32 %v11432_v35, %v11431_v9  ;;  %v11448_v38 = vadd.f32 %v11447_v25, %v11446_v60 }
 0x9e3   :  { %v11241_v1 = vpop.f32.mrf.mxu2  ;;  %v11254_v50 = vpop.f32.mrf.mxu3 }
 0x9e4   :  { %v11348_v40 = vpop.f32.mrf.mxu0  ;;  %v11361_v57 = vpop.f32.mrf.mxu1 }
 0x9e5   :  { %v11404_v43 = vsel %vm8055_vm8, %v11348_v40, 0.0  ;;  %v11419_v14 = vsel %vm8055_vm8, %v11361_v57, 0.0 }
 0x9e6   :  { %v11405_v44 = vadd.f32 %v11404_v43, %v11403_v36  ;;  %v11420_v7 = vadd.f32 %v11419_v14, %v11418_v21 }
 0x9e8   :  { %v11461_v23 = vadd.f32 %v11453_v49, %v11405_v44  ;;  %v11462_v19 = vadd.f32 %v11454_v34, %v11420_v7 }
 0x9ea   :  { %v11469_v0 = vrot.slane %v11461_v23, 4  ;;  %v11470_v2 = vrot.slane %v11462_v19, 4 }
 0x9eb   :  { %v11374_v59 = vpop.f32.mrf.mxu2  ;;  %v11387_v10 = vpop.f32.mrf.mxu3 }
 0x9ec   :  { %v11477_v17 = vadd.f32 %v16849_v27, %v11469_v0  ;;  %v11478_v4 = vadd.f32 %v16850_v52, %v11470_v2  ;;  %v11434_v41 = vsel %vm8055_vm8, %v11374_v59, 0.0  ;;  %v11449_v8 = vsel %vm8055_vm8, %v11387_v10, 0.0  ;;  %v11350_v32 = vpop.f32.mrf.mxu0  ;;  %v11363_v51 = vpop.f32.mrf.mxu1 }
 0x9ed   :  { %v11435_v62 = vadd.f32 %v11434_v41, %v11433_v33  ;;  %v11450_v39 = vadd.f32 %v11449_v8, %v11448_v38 }
 0x9ee   :  { %11481 = vst [vmem:[#allocation2] sm:$0xf0] %v11477_v17 }
 0x9ef   :  { %11482 = vst [vmem:[#allocation2 + $0x8] sm:$0xf0] %v11478_v4  ;;  %v11463_v63 = vadd.f32 %v11455_v20, %v11435_v62  ;;  %v11464_v28 = vadd.f32 %v11456_v13, %v11450_v39 }
 0x9f1   :  { %v11471_v26 = vrot.slane %v11463_v63, 4  ;;  %v11472_v30 = vrot.slane %v11464_v28, 4 }
 0x9f3   :  { %v11479_v56 = vadd.f32 %v16851_v45, %v11471_v26  ;;  %v11480_v5 = vadd.f32 %v16852_v37, %v11472_v30  ;;  %v11376_v22 = vpop.f32.mrf.mxu2  ;;  %v11389_v55 = vpop.f32.mrf.mxu3 }
 0x9f5   :  { %11483 = vst [vmem:[#allocation2 + $0x10] sm:$0xf0] %v11479_v56 }
 0x9f6   :  { %11484 = vst [vmem:[#allocation2 + $0x18] sm:$0xf0] %v11480_v5 }
 0x9f7   :  { %11495 = dma.vmem_to_hbm [thread:$0]  %s11491_s5, 512, %s11493_s30, [#allocation3]  }
 0x9f8   :  { %16877 = dma.done.wait [#allocation3], 512  }
 0x9f9   :  { %16878 = vsyncadd [#allocation3], 4294966784 }
 0x9fa   :  { %11500 = vsyncpa [#allocation3], 1 }

</bundles_post_ra>
